<compile_context>
chip_gen: v6e
topology: v6e:2x2x1
jax: 0.10.0
libtpu: 0.0.40
codegen_flags: <defaults>
</compile_context>

<pallas_src>
import jax
import jax.numpy as jnp
from jax import lax
from jax.experimental import pallas as pl
from jax.experimental.pallas import tpu as pltpu

_VMEM_LIMIT = 64 * 1024 * 1024  # <= physical VMEM on v5e/v6e (128 MiB) and v7x (64 MiB)


def _cparams(*semantics):
    return pltpu.CompilerParams(dimension_semantics=tuple(semantics),
                                vmem_limit_bytes=_VMEM_LIMIT)


# ----------------------------------------------------------------------------
# Replicate-padded 3x3 conv + bias + relu + residual, row-tiled.
# ----------------------------------------------------------------------------
def _conv3x3_kernel(xpad_ref, res_ref, w_ref, b_ref, o_ref):
    # xpad_ref: (H+2, W+2, C) bf16  -- VMEM-resident padded image of one batch element
    # res_ref / o_ref: (TH, W, C) f32 row tile;  w_ref: (9, C, C) bf16;  b_ref: (1, C) f32
    th, w, c = o_ref.shape
    row0 = pl.program_id(1) * th
    bias = b_ref[...]
    w_taps = [w_ref[k] for k in range(9)]          # hoisted: 9 (C, C) bf16 weight taps
    for i in range(th):                            # static unroll over tile rows
        acc = jnp.zeros((w, c), jnp.float32)
        for dy in range(3):
            row = xpad_ref[row0 + i + dy]          # (W+2, C) bf16 padded input row
            for dx in range(3):
                acc = acc + jnp.dot(row[dx:dx + w, :], w_taps[dy * 3 + dx],
                                    preferred_element_type=jnp.float32)
        out_row = jnp.maximum(acc + bias, 0.0) + res_ref[i]
        o_ref[i] = out_row.astype(o_ref.dtype)


def _pick_tile_h(h, w, target_rows=1024):
    th = max(1, min(h, target_rows // max(w, 1)))
    while h % th:
        th -= 1
    return th


def conv3x3_relu_res(x_nhwc, w9, bias, residual):
    """relu(3x3 replicate-pad conv(x) + b) + residual, in one row-tiled Pallas kernel."""
    b, h, w, c = x_nhwc.shape
    xpad = jnp.pad(x_nhwc, ((0, 0), (1, 1), (1, 1), (0, 0)),
                   mode="edge").astype(jnp.bfloat16)
    th = _pick_tile_h(h, w)
    return pl.pallas_call(
        _conv3x3_kernel,
        out_shape=jax.ShapeDtypeStruct((b, h, w, c), jnp.float32),
        grid=(b, h // th),
        in_specs=[
            pl.BlockSpec((None, h + 2, w + 2, c), lambda bi, ri: (bi, 0, 0, 0)),
            pl.BlockSpec((None, th, w, c), lambda bi, ri: (bi, ri, 0, 0)),
            pl.BlockSpec((9, c, c), lambda bi, ri: (0, 0, 0)),
            pl.BlockSpec((1, c), lambda bi, ri: (0, 0)),
        ],
        out_specs=pl.BlockSpec((None, th, w, c), lambda bi, ri: (bi, ri, 0, 0)),
        compiler_params=_cparams("parallel", "parallel"),
    )(xpad, residual, w9, bias)


# ----------------------------------------------------------------------------
# Fused 1x1 projections: dcm = tmp3@W4+b4, x1 = dcm@W1+b1, x2 = dcm@W2+b2.
# ----------------------------------------------------------------------------
def _proj_kernel(t3_ref, w4_ref, b4_ref, w1_ref, b1_ref, w2_ref, b2_ref,
                 dcm_ref, x1_ref, x2_ref):
    t3 = t3_ref[...].astype(jnp.bfloat16)
    dcm = jnp.dot(t3, w4_ref[...], preferred_element_type=jnp.float32) + b4_ref[...]
    dcm_ref[...] = dcm.astype(dcm_ref.dtype)
    dcm_bf = dcm.astype(jnp.bfloat16)
    x1_ref[...] = (jnp.dot(dcm_bf, w1_ref[...], preferred_element_type=jnp.float32)
                   + b1_ref[...]).astype(x1_ref.dtype)
    x2_ref[...] = (jnp.dot(dcm_bf, w2_ref[...], preferred_element_type=jnp.float32)
                   + b2_ref[...]).astype(x2_ref.dtype)


def dcm_gcm_projections(t3_flat, kp, p, q):
    m, c = t3_flat.shape
    tm = min(1024, m)
    if tm >= 8:
        tm = (tm // 8) * 8
    const = lambda i: (0, 0)
    return pl.pallas_call(
        _proj_kernel,
        out_shape=(jax.ShapeDtypeStruct((m, c), jnp.float32),
                   jax.ShapeDtypeStruct((m, p), jnp.bfloat16),
                   jax.ShapeDtypeStruct((m, q), jnp.bfloat16)),
        grid=(pl.cdiv(m, tm),),
        in_specs=[
            pl.BlockSpec((tm, c), lambda i: (i, 0)),
            pl.BlockSpec((c, c), const), pl.BlockSpec((1, c), const),
            pl.BlockSpec((c, p), const), pl.BlockSpec((1, p), const),
            pl.BlockSpec((c, q), const), pl.BlockSpec((1, q), const),
        ],
        out_specs=(pl.BlockSpec((tm, c), lambda i: (i, 0)),
                   pl.BlockSpec((tm, p), lambda i: (i, 0)),
                   pl.BlockSpec((tm, q), lambda i: (i, 0))),
        compiler_params=_cparams("parallel"),
    )(t3_flat, kp["dcm_w4"], kp["dcm_b4"], kp["gcm_w1"], kp["gcm_b1"],
      kp["gcm_w2"], kp["gcm_b2"])


# ----------------------------------------------------------------------------
# GCM fused kernel (per batch element), including the final BlockEncoder residual.
# ----------------------------------------------------------------------------
def _gcm_kernel(x1_ref, x2_ref, dcm_ref, xin_ref,
                w3_ref, b3_ref, w4t_ref, b4_ref, w5t_ref, b5_ref, o_ref):
    x1 = x1_ref[...]                                  # (HW, P) bf16
    x2 = x2_ref[...]                                  # (HW, Q) bf16
    # v = x1^T @ x2  (contract over the HW axis of both operands)
    v = lax.dot_general(x1, x2, (((0,), (0,)), ((), ())),
                        preferred_element_type=jnp.float32)           # (P, Q)
    # softmax over the flattened P*Q entries
    m = jnp.max(jnp.max(v, axis=1, keepdims=True), axis=0, keepdims=True)
    e = jnp.exp(v - m)
    s = jnp.sum(jnp.sum(e, axis=1, keepdims=True), axis=0, keepdims=True)
    v = e * pl.reciprocal(s, approx=True)
    # conv3 (1x1 over P) + residual + relu
    n = jnp.dot(w3_ref[...], v, preferred_element_type=jnp.float32) + b3_ref[...]
    n = jnp.maximum(v + n, 0.0)                                        # (P, Q)
    # conv4 (1x1 over Q), transposed layout: z^T = n @ W4^T + b4
    zt = jnp.dot(n, w4t_ref[...], preferred_element_type=jnp.float32) + b4_ref[...]
    # second bmm, transposed: y^T = x1 @ z^T                           (HW, Q)
    yt = jnp.dot(x1, zt.astype(jnp.bfloat16), preferred_element_type=jnp.float32)
    # conv5: x_res^T = y^T @ W5^T + b5                                 (HW, C)
    x_res = jnp.dot(yt.astype(jnp.bfloat16), w5t_ref[...],
                    preferred_element_type=jnp.float32) + b5_ref[...]
    # gcm output (dcm + x_res) plus the final BlockEncoder +x residual, in one pass
    o_ref[...] = (xin_ref[...] + dcm_ref[...] + x_res).astype(o_ref.dtype)


# TODO(synk): for very large H*W, split the GCM kernel into an HW-reduction phase
# (accumulating the (P, Q) gram matrix over HW tiles) plus an HW-tiled output phase so
# per-batch blocks stay within v7x's 64 MiB VMEM; at GRNet block sizes one shot fits.
def gcm_core(x1, x2, dcm, xin, kp):
    b, hw, p = x1.shape
    q = x2.shape[2]
    c = dcm.shape[2]
    big = lambda i: (i, 0, 0)
    const = lambda i: (0, 0)
    return pl.pallas_call(
        _gcm_kernel,
        out_shape=jax.ShapeDtypeStruct((b, hw, c), jnp.float32),
        grid=(b,),
        in_specs=[
            pl.BlockSpec((None, hw, p), big),
            pl.BlockSpec((None, hw, q), big),
            pl.BlockSpec((None, hw, c), big),
            pl.BlockSpec((None, hw, c), big),
            pl.BlockSpec((p, p), const), pl.BlockSpec((p, 1), const),
            pl.BlockSpec((q, q), const), pl.BlockSpec((1, q), const),
            pl.BlockSpec((q, c), const), pl.BlockSpec((1, c), const),
        ],
        out_specs=pl.BlockSpec((None, hw, c), big),
        compiler_params=_cparams("parallel"),
    )(x1, x2, dcm, xin, kp["gcm_w3"], kp["gcm_b3_col"], kp["gcm_w4T"],
      kp["gcm_b4_row"], kp["gcm_w5T"], kp["gcm_b5_row"])


# ----------------------------------------------------------------------------
# Parameter setup and full forward pass.
# ----------------------------------------------------------------------------
def init_params(key, C):
    P, Q = C // 4, C // 2
    ks = jax.random.split(key, 18)

    def w(k, shape, scale=0.1):
        return (scale * jax.random.normal(k, shape)).astype(jnp.float32)

    # PyTorch-layout parameters (Conv2d: OIHW weights, (O,) biases).
    return {
        "dcm_w1": w(ks[0], (C, C, 3, 3)), "dcm_b1": w(ks[1], (C,), 0.05),
        "dcm_w2": w(ks[2], (C, C, 3, 3)), "dcm_b2": w(ks[3], (C,), 0.05),
        "dcm_w3": w(ks[4], (C, C, 3, 3)), "dcm_b3": w(ks[5], (C,), 0.05),
        "dcm_w4": w(ks[6], (C, C, 1, 1)), "dcm_b4": w(ks[7], (C,), 0.05),
        "gcm_w1": w(ks[8], (P, C, 1, 1)), "gcm_b1": w(ks[9], (P,), 0.05),
        "gcm_w2": w(ks[10], (Q, C, 1, 1)), "gcm_b2": w(ks[11], (Q,), 0.05),
        "gcm_w3": w(ks[12], (P, P, 1, 1)), "gcm_b3": w(ks[13], (P,), 0.05),
        "gcm_w4": w(ks[14], (Q, Q, 1, 1)), "gcm_b4": w(ks[15], (Q,), 0.05),
        "gcm_w5": w(ks[16], (C, Q, 1, 1)), "gcm_b5": w(ks[17], (C,), 0.05),
    }


def pt_to_kernel_params(pt, C):
    P, Q = C // 4, C // 2

    def w3x3(wt):  # OIHW -> (9, Cin, Cout), tap-major (dy, dx), bf16 MXU operand
        return jnp.transpose(wt, (2, 3, 1, 0)).reshape(
            9, wt.shape[1], wt.shape[0]).astype(jnp.bfloat16)

    def w1x1(wt):  # OIHW (1x1) -> (Cin, Cout), bf16 MXU operand
        return wt[:, :, 0, 0].T.astype(jnp.bfloat16)

    f32 = lambda a: a.astype(jnp.float32)
    return {
        "dcm_w1": w3x3(pt["dcm_w1"]), "dcm_b1": f32(pt["dcm_b1"]).reshape(1, C),
        "dcm_w2": w3x3(pt["dcm_w2"]), "dcm_b2": f32(pt["dcm_b2"]).reshape(1, C),
        "dcm_w3": w3x3(pt["dcm_w3"]), "dcm_b3": f32(pt["dcm_b3"]).reshape(1, C),
        "dcm_w4": w1x1(pt["dcm_w4"]), "dcm_b4": f32(pt["dcm_b4"]).reshape(1, C),
        "gcm_w1": w1x1(pt["gcm_w1"]), "gcm_b1": f32(pt["gcm_b1"]).reshape(1, P),
        "gcm_w2": w1x1(pt["gcm_w2"]), "gcm_b2": f32(pt["gcm_b2"]).reshape(1, Q),
        "gcm_w3": f32(pt["gcm_w3"][:, :, 0, 0]),
        "gcm_b3_col": f32(pt["gcm_b3"]).reshape(P, 1),
        "gcm_w4T": f32(pt["gcm_w4"][:, :, 0, 0].T),
        "gcm_b4_row": f32(pt["gcm_b4"]).reshape(1, Q),
        "gcm_w5T": pt["gcm_w5"][:, :, 0, 0].T.astype(jnp.bfloat16),
        "gcm_b5_row": f32(pt["gcm_b5"]).reshape(1, C),
    }


def block_encoder_forward(x_nchw, kp):
    b, c, h, w = x_nchw.shape
    p, q = c // 4, c // 2
    hw = h * w
    x_nhwc = jnp.transpose(x_nchw, (0, 2, 3, 1)).astype(jnp.float32)

    # ---- DCM: three replicate-padded 3x3 conv+relu+residual (fused, row-tiled) ----
    tmp1 = conv3x3_relu_res(x_nhwc, kp["dcm_w1"], kp["dcm_b1"], x_nhwc)
    tmp2 = conv3x3_relu_res(tmp1, kp["dcm_w2"], kp["dcm_b2"], tmp1)
    tmp3 = conv3x3_relu_res(tmp2, kp["dcm_w3"], kp["dcm_b3"], tmp2)

    # ---- Fused 1x1 projections: dcm = DCM.conv4(tmp3); x1 / x2 = GCM.conv1/2(dcm) ----
    dcm_flat, x1_flat, x2_flat = dcm_gcm_projections(tmp3.reshape(b * hw, c), kp, p, q)

    # ---- GCM context branch + final residual, fused per batch element ----
    out = gcm_core(x1_flat.reshape(b, hw, p), x2_flat.reshape(b, hw, q),
                   dcm_flat.reshape(b, hw, c), x_nhwc.reshape(b, hw, c), kp)
    return jnp.transpose(out.reshape(b, h, w, c), (0, 3, 1, 2))        # back to NCHW


# ----------------------------------------------------------------------------
# Pure-JAX NCHW reference (mirrors the PyTorch module) for a sanity check.
# ----------------------------------------------------------------------------
def reference_forward(x, pt):
    prec = jax.lax.Precision.HIGHEST

    def conv(x, w, b, replicate_pad=0):
        if replicate_pad:
            x = jnp.pad(x, ((0, 0), (0, 0), (replicate_pad,) * 2,
                            (replicate_pad,) * 2), mode="edge")
        y = jax.lax.conv_general_dilated(
            x, w, (1, 1), "VALID",
            dimension_numbers=("NCHW", "OIHW", "NCHW"), precision=prec)
        return y + b[None, :, None, None]

    relu = jax.nn.relu
    B, C, H, W = x.shape
    P, Q = C // 4, C // 2

    tmp1 = relu(conv(x, pt["dcm_w1"], pt["dcm_b1"], 1)) + x
    tmp2 = relu(conv(tmp1, pt["dcm_w2"], pt["dcm_b2"], 1)) + tmp1
    tmp3 = relu(conv(tmp2, pt["dcm_w3"], pt["dcm_b3"], 1)) + tmp2
    dcm = conv(tmp3, pt["dcm_w4"], pt["dcm_b4"])

    x1 = conv(dcm, pt["gcm_w1"], pt["gcm_b1"]).reshape(B, P, H * W)
    x2 = conv(dcm, pt["gcm_w2"], pt["gcm_b2"]).reshape(B, Q, H * W)
    v = jnp.matmul(x1, jnp.transpose(x2, (0, 2, 1)), precision=prec)    # (B,P,Q)
    v = jax.nn.softmax(v.reshape(B, P * Q), axis=-1).reshape(B, P, Q)
    n = jnp.einsum("op,bpq->boq", pt["gcm_w3"][:, :, 0, 0], v,
                   precision=prec) + pt["gcm_b3"][None, :, None]
    n = relu(v + n)
    z = jnp.einsum("oq,bpq->bop", pt["gcm_w4"][:, :, 0, 0], n,
                   precision=prec) + pt["gcm_b4"][None, :, None]        # (B,Q,P)
    y = jnp.matmul(z, x1, precision=prec).reshape(B, Q, H, W)
    x_res = conv(y, pt["gcm_w5"], pt["gcm_b5"])
    gcm = dcm + x_res
    return x + gcm


if __name__ == "__main__":
    B, C, H, W = 2, 8, 16, 16
    key = jax.random.PRNGKey(0)
    kx, kparam = jax.random.split(key)
    x = jax.random.normal(kx, (B, C, H, W), dtype=jnp.float32)

    pt = init_params(kparam, C)
    kp = pt_to_kernel_params(pt, C)

    fwd = jax.jit(block_encoder_forward)
    out = jax.block_until_ready(fwd(x, kp))
    ref = jax.block_until_ready(reference_forward(x, pt))

    assert out.shape == (B, C, H, W), out.shape
    err = float(jnp.max(jnp.abs(out - ref)))
    # bf16 MXU operands with f32 accumulation -> bf16-level tolerance vs f32 reference.
    assert err < 1e-1, f"max abs err vs reference: {err}"
    print("KERNEL_OK")
</pallas_src>

<mosaic_0001>
module attributes {stable_mosaic.version = 11 : i64} {
  func.func @_proj_kernel(%arg0: i32, %arg1: memref<512x8xf32, #tpu.memory_space<vmem>>, %arg2: memref<8x8xbf16, #tpu.memory_space<vmem>>, %arg3: memref<1x8xf32, #tpu.memory_space<vmem>>, %arg4: memref<8x2xbf16, #tpu.memory_space<vmem>>, %arg5: memref<1x2xf32, #tpu.memory_space<vmem>>, %arg6: memref<8x4xbf16, #tpu.memory_space<vmem>>, %arg7: memref<1x4xf32, #tpu.memory_space<vmem>>, %arg8: memref<512x8xf32, #tpu.memory_space<vmem>>, %arg9: memref<512x2xbf16, #tpu.memory_space<vmem>>, %arg10: memref<512x4xbf16, #tpu.memory_space<vmem>>) attributes {dimension_semantics = [#tpu.dimension_semantics<parallel>], iteration_bounds = array<i64: 1>, scalar_prefetch = 0 : i64, scratch_operands = 0 : i64, tpu.core_type = #tpu.core_type<tc>, window_params = [{transform_indices = @transform_0, window_bounds = array<i64: 512, 8>}, {pipeline_mode = #tpu.pipeline_mode<synchronous>, transform_indices = @transform_1, window_bounds = array<i64: 8, 8>}, {pipeline_mode = #tpu.pipeline_mode<synchronous>, transform_indices = @transform_2, window_bounds = array<i64: 1, 8>}, {pipeline_mode = #tpu.pipeline_mode<synchronous>, transform_indices = @transform_3, window_bounds = array<i64: 8, 2>}, {pipeline_mode = #tpu.pipeline_mode<synchronous>, transform_indices = @transform_4, window_bounds = array<i64: 1, 2>}, {pipeline_mode = #tpu.pipeline_mode<synchronous>, transform_indices = @transform_5, window_bounds = array<i64: 8, 4>}, {pipeline_mode = #tpu.pipeline_mode<synchronous>, transform_indices = @transform_6, window_bounds = array<i64: 1, 4>}, {transform_indices = @transform_7, window_bounds = array<i64: 512, 8>}, {transform_indices = @transform_8, window_bounds = array<i64: 512, 2>}, {transform_indices = @transform_9, window_bounds = array<i64: 512, 4>}]} {
    %c0 = arith.constant 0 : index
    %c0_0 = arith.constant 0 : index
    %0 = vector.load %arg1[%c0, %c0_0] : memref<512x8xf32, #tpu.memory_space<vmem>>, vector<512x8xf32>
    %1 = arith.truncf %0 : vector<512x8xf32> to vector<512x8xbf16>
    %c0_1 = arith.constant 0 : index
    %c0_2 = arith.constant 0 : index
    %2 = vector.load %arg2[%c0_1, %c0_2] : memref<8x8xbf16, #tpu.memory_space<vmem>>, vector<8x8xbf16>
    %cst = arith.constant dense<0.000000e+00> : vector<512x8xf32>
    %3 = tpu.matmul %1, %2, %cst {dimension_numbers = #tpu.dot_dimension_numbers<[1], [0], [0], [1], [0, 0, 1, 1], [], []>} : vector<512x8xbf16>, vector<8x8xbf16>, vector<512x8xf32> -> vector<512x8xf32>
    %c0_3 = arith.constant 0 : index
    %c0_4 = arith.constant 0 : index
    %4 = vector.load %arg3[%c0_3, %c0_4] : memref<1x8xf32, #tpu.memory_space<vmem>>, vector<1x8xf32>
    %5 = vector.broadcast %4 : vector<1x8xf32> to vector<512x8xf32>
    %6 = arith.addf %3, %5 : vector<512x8xf32>
    %c0_5 = arith.constant 0 : index
    %c0_6 = arith.constant 0 : index
    %7 = vector.load %arg8[%c0_5, %c0_6] : memref<512x8xf32, #tpu.memory_space<vmem>>, vector<512x8xf32>
    tpu.vector_store %arg8[%c0_5, %c0_6], %6 {strides = array<i32>} : memref<512x8xf32, #tpu.memory_space<vmem>>, vector<512x8xf32>,
    %8 = arith.truncf %6 : vector<512x8xf32> to vector<512x8xbf16>
    %c0_7 = arith.constant 0 : index
    %c0_8 = arith.constant 0 : index
    %9 = vector.load %arg4[%c0_7, %c0_8] : memref<8x2xbf16, #tpu.memory_space<vmem>>, vector<8x2xbf16>
    %cst_9 = arith.constant dense<0.000000e+00> : vector<512x2xf32>
    %10 = tpu.matmul %8, %9, %cst_9 {dimension_numbers = #tpu.dot_dimension_numbers<[1], [0], [0], [1], [0, 0, 1, 1], [], []>} : vector<512x8xbf16>, vector<8x2xbf16>, vector<512x2xf32> -> vector<512x2xf32>
    %c0_10 = arith.constant 0 : index
    %c0_11 = arith.constant 0 : index
    %11 = vector.load %arg5[%c0_10, %c0_11] : memref<1x2xf32, #tpu.memory_space<vmem>>, vector<1x2xf32>
    %12 = vector.broadcast %11 : vector<1x2xf32> to vector<512x2xf32>
    %13 = arith.addf %10, %12 : vector<512x2xf32>
    %14 = arith.truncf %13 : vector<512x2xf32> to vector<512x2xbf16>
    %c0_12 = arith.constant 0 : index
    %c0_13 = arith.constant 0 : index
    %15 = vector.load %arg9[%c0_12, %c0_13] : memref<512x2xbf16, #tpu.memory_space<vmem>>, vector<512x2xbf16>
    tpu.vector_store %arg9[%c0_12, %c0_13], %14 {strides = array<i32>} : memref<512x2xbf16, #tpu.memory_space<vmem>>, vector<512x2xbf16>,
    %c0_14 = arith.constant 0 : index
    %c0_15 = arith.constant 0 : index
    %16 = vector.load %arg6[%c0_14, %c0_15] : memref<8x4xbf16, #tpu.memory_space<vmem>>, vector<8x4xbf16>
    %cst_16 = arith.constant dense<0.000000e+00> : vector<512x4xf32>
    %17 = tpu.matmul %8, %16, %cst_16 {dimension_numbers = #tpu.dot_dimension_numbers<[1], [0], [0], [1], [0, 0, 1, 1], [], []>} : vector<512x8xbf16>, vector<8x4xbf16>, vector<512x4xf32> -> vector<512x4xf32>
    %c0_17 = arith.constant 0 : index
    %c0_18 = arith.constant 0 : index
    %18 = vector.load %arg7[%c0_17, %c0_18] : memref<1x4xf32, #tpu.memory_space<vmem>>, vector<1x4xf32>
    %19 = vector.broadcast %18 : vector<1x4xf32> to vector<512x4xf32>
    %20 = arith.addf %17, %19 : vector<512x4xf32>
    %21 = arith.truncf %20 : vector<512x4xf32> to vector<512x4xbf16>
    %c0_19 = arith.constant 0 : index
    %c0_20 = arith.constant 0 : index
    %22 = vector.load %arg10[%c0_19, %c0_20] : memref<512x4xbf16, #tpu.memory_space<vmem>>, vector<512x4xbf16>
    tpu.vector_store %arg10[%c0_19, %c0_20], %21 {strides = array<i32>} : memref<512x4xbf16, #tpu.memory_space<vmem>>, vector<512x4xbf16>,
    return
  }
  func.func @transform_0(%arg0: i32) -> (i32, i32) {
    %c0_i32 = arith.constant 0 : i32
    %c0_i32_0 = arith.constant 0 : i32
    return %arg0, %c0_i32 : i32, i32
  }
  func.func @transform_1(%arg0: i32) -> (i32, i32) {
    %c0_i32 = arith.constant 0 : i32
    %c0_i32_0 = arith.constant 0 : i32
    %c0_i32_1 = arith.constant 0 : i32
    return %c0_i32, %c0_i32_0 : i32, i32
  }
  func.func @transform_2(%arg0: i32) -> (i32, i32) {
    %c0_i32 = arith.constant 0 : i32
    %c0_i32_0 = arith.constant 0 : i32
    %c0_i32_1 = arith.constant 0 : i32
    return %c0_i32, %c0_i32_0 : i32, i32
  }
  func.func @transform_3(%arg0: i32) -> (i32, i32) {
    %c0_i32 = arith.constant 0 : i32
    %c0_i32_0 = arith.constant 0 : i32
    %c0_i32_1 = arith.constant 0 : i32
    return %c0_i32, %c0_i32_0 : i32, i32
  }
  func.func @transform_4(%arg0: i32) -> (i32, i32) {
    %c0_i32 = arith.constant 0 : i32
    %c0_i32_0 = arith.constant 0 : i32
    %c0_i32_1 = arith.constant 0 : i32
    return %c0_i32, %c0_i32_0 : i32, i32
  }
  func.func @transform_5(%arg0: i32) -> (i32, i32) {
    %c0_i32 = arith.constant 0 : i32
    %c0_i32_0 = arith.constant 0 : i32
    %c0_i32_1 = arith.constant 0 : i32
    return %c0_i32, %c0_i32_0 : i32, i32
  }
  func.func @transform_6(%arg0: i32) -> (i32, i32) {
    %c0_i32 = arith.constant 0 : i32
    %c0_i32_0 = arith.constant 0 : i32
    %c0_i32_1 = arith.constant 0 : i32
    return %c0_i32, %c0_i32_0 : i32, i32
  }
  func.func @transform_7(%arg0: i32) -> (i32, i32) {
    %c0_i32 = arith.constant 0 : i32
    %c0_i32_0 = arith.constant 0 : i32
    return %arg0, %c0_i32 : i32, i32
  }
  func.func @transform_8(%arg0: i32) -> (i32, i32) {
    %c0_i32 = arith.constant 0 : i32
    %c0_i32_0 = arith.constant 0 : i32
    return %arg0, %c0_i32 : i32, i32
  }
  func.func @transform_9(%arg0: i32) -> (i32, i32) {
    %c0_i32 = arith.constant 0 : i32
    %c0_i32_0 = arith.constant 0 : i32
    return %arg0, %c0_i32 : i32, i32
  }
}

module attributes {stable_mosaic.version = 11 : i64} {
  func.func @_gcm_kernel(%arg0: i32, %arg1: memref<1x256x2xbf16, #tpu.memory_space<vmem>>, %arg2: memref<1x256x4xbf16, #tpu.memory_space<vmem>>, %arg3: memref<1x256x8xf32, #tpu.memory_space<vmem>>, %arg4: memref<1x256x8xf32, #tpu.memory_space<vmem>>, %arg5: memref<2x2xf32, #tpu.memory_space<vmem>>, %arg6: memref<2x1xf32, #tpu.memory_space<vmem>>, %arg7: memref<4x4xf32, #tpu.memory_space<vmem>>, %arg8: memref<1x4xf32, #tpu.memory_space<vmem>>, %arg9: memref<4x8xbf16, #tpu.memory_space<vmem>>, %arg10: memref<1x8xf32, #tpu.memory_space<vmem>>, %arg11: memref<1x256x8xf32, #tpu.memory_space<vmem>>) attributes {dimension_semantics = [#tpu.dimension_semantics<parallel>], iteration_bounds = array<i64: 2>, scalar_prefetch = 0 : i64, scratch_operands = 0 : i64, tpu.core_type = #tpu.core_type<tc>, window_params = [{transform_indices = @transform_0, window_bounds = array<i64: 1, 256, 2>}, {transform_indices = @transform_1, window_bounds = array<i64: 1, 256, 4>}, {transform_indices = @transform_2, window_bounds = array<i64: 1, 256, 8>}, {transform_indices = @transform_3, window_bounds = array<i64: 1, 256, 8>}, {pipeline_mode = #tpu.pipeline_mode<synchronous>, transform_indices = @transform_4, window_bounds = array<i64: 2, 2>}, {pipeline_mode = #tpu.pipeline_mode<synchronous>, transform_indices = @transform_5, window_bounds = array<i64: 2, 1>}, {pipeline_mode = #tpu.pipeline_mode<synchronous>, transform_indices = @transform_6, window_bounds = array<i64: 4, 4>}, {pipeline_mode = #tpu.pipeline_mode<synchronous>, transform_indices = @transform_7, window_bounds = array<i64: 1, 4>}, {pipeline_mode = #tpu.pipeline_mode<synchronous>, transform_indices = @transform_8, window_bounds = array<i64: 4, 8>}, {pipeline_mode = #tpu.pipeline_mode<synchronous>, transform_indices = @transform_9, window_bounds = array<i64: 1, 8>}, {transform_indices = @transform_10, window_bounds = array<i64: 1, 256, 8>}]} {
    %c0 = arith.constant 0 : index
    %c0_0 = arith.constant 0 : index
    %c0_1 = arith.constant 0 : index
    %0 = vector.load %arg1[%c0, %c0_0, %c0_1] : memref<1x256x2xbf16, #tpu.memory_space<vmem>>, vector<1x256x2xbf16>
    %1 = vector.shape_cast %0 : vector<1x256x2xbf16> to vector<256x2xbf16>
    %c0_2 = arith.constant 0 : index
    %c0_3 = arith.constant 0 : index
    %c0_4 = arith.constant 0 : index
    %2 = vector.load %arg2[%c0_2, %c0_3, %c0_4] : memref<1x256x4xbf16, #tpu.memory_space<vmem>>, vector<1x256x4xbf16>
    %3 = vector.shape_cast %2 : vector<1x256x4xbf16> to vector<256x4xbf16>
    %cst = arith.constant dense<0.000000e+00> : vector<2x4xf32>
    %4 = tpu.matmul %1, %3, %cst {dimension_numbers = #tpu.dot_dimension_numbers<[0], [0], [1], [1], [0, 1, 1, 1], [], []>} : vector<256x2xbf16>, vector<256x4xbf16>, vector<2x4xf32> -> vector<2x4xf32>
    %cst_5 = arith.constant dense<0xFF800000> : vector<2xf32>
    %5 = vector.multi_reduction <maximumf>, %4, %cst_5 [1] : vector<2x4xf32> to vector<2xf32>
    %6 = vector.shape_cast %5 : vector<2xf32> to vector<2x1xf32>
    %cst_6 = arith.constant dense<0xFF800000> : vector<1xf32>
    %7 = vector.multi_reduction <maximumf>, %6, %cst_6 [0] : vector<2x1xf32> to vector<1xf32>
    %8 = vector.shape_cast %7 : vector<1xf32> to vector<1x1xf32>
    %9 = vector.broadcast %8 : vector<1x1xf32> to vector<2x4xf32>
    %10 = arith.subf %4, %9 : vector<2x4xf32>
    %11 = math.exp %10 : vector<2x4xf32>
    %cst_7 = arith.constant dense<0.000000e+00> : vector<2xf32>
    %12 = vector.multi_reduction <add>, %11, %cst_7 [1] : vector<2x4xf32> to vector<2xf32>
    %13 = vector.shape_cast %12 : vector<2xf32> to vector<2x1xf32>
    %cst_8 = arith.constant dense<0.000000e+00> : vector<1xf32>
    %14 = vector.multi_reduction <add>, %13, %cst_8 [0] : vector<2x1xf32> to vector<1xf32>
    %15 = vector.shape_cast %14 : vector<1xf32> to vector<1x1xf32>
    %16 = tpu.reciprocal %15 {approx = true} : vector<1x1xf32> -> vector<1x1xf32>
    %17 = vector.broadcast %16 : vector<1x1xf32> to vector<2x4xf32>
    %18 = arith.mulf %11, %17 : vector<2x4xf32>
    %c0_9 = arith.constant 0 : index
    %c0_10 = arith.constant 0 : index
    %19 = vector.load %arg5[%c0_9, %c0_10] : memref<2x2xf32, #tpu.memory_space<vmem>>, vector<2x2xf32>
    %cst_11 = arith.constant dense<0.000000e+00> : vector<2x4xf32>
    %20 = tpu.matmul %19, %18, %cst_11 {dimension_numbers = #tpu.dot_dimension_numbers<[1], [0], [0], [1], [0, 0, 1, 1], [], []>} : vector<2x2xf32>, vector<2x4xf32>, vector<2x4xf32> -> vector<2x4xf32>
    %c0_12 = arith.constant 0 : index
    %c0_13 = arith.constant 0 : index
    %21 = vector.load %arg6[%c0_12, %c0_13] : memref<2x1xf32, #tpu.memory_space<vmem>>, vector<2x1xf32>
    %22 = vector.broadcast %21 : vector<2x1xf32> to vector<2x4xf32>
    %23 = arith.addf %20, %22 : vector<2x4xf32>
    %24 = arith.addf %18, %23 : vector<2x4xf32>
    %cst_14 = arith.constant 0.000000e+00 : f32
    %25 = vector.broadcast %cst_14 : f32 to vector<2x4xf32>
    %26 = arith.maximumf %24, %25 : vector<2x4xf32>
    %c0_15 = arith.constant 0 : index
    %c0_16 = arith.constant 0 : index
    %27 = vector.load %arg7[%c0_15, %c0_16] : memref<4x4xf32, #tpu.memory_space<vmem>>, vector<4x4xf32>
    %cst_17 = arith.constant dense<0.000000e+00> : vector<2x4xf32>
    %28 = tpu.matmul %26, %27, %cst_17 {dimension_numbers = #tpu.dot_dimension_numbers<[1], [0], [0], [1], [0, 0, 1, 1], [], []>} : vector<2x4xf32>, vector<4x4xf32>, vector<2x4xf32> -> vector<2x4xf32>
    %c0_18 = arith.constant 0 : index
    %c0_19 = arith.constant 0 : index
    %29 = vector.load %arg8[%c0_18, %c0_19] : memref<1x4xf32, #tpu.memory_space<vmem>>, vector<1x4xf32>
    %30 = vector.broadcast %29 : vector<1x4xf32> to vector<2x4xf32>
    %31 = arith.addf %28, %30 : vector<2x4xf32>
    %32 = arith.truncf %31 : vector<2x4xf32> to vector<2x4xbf16>
    %cst_20 = arith.constant dense<0.000000e+00> : vector<256x4xf32>
    %33 = tpu.matmul %1, %32, %cst_20 {dimension_numbers = #tpu.dot_dimension_numbers<[1], [0], [0], [1], [0, 0, 1, 1], [], []>} : vector<256x2xbf16>, vector<2x4xbf16>, vector<256x4xf32> -> vector<256x4xf32>
    %34 = arith.truncf %33 : vector<256x4xf32> to vector<256x4xbf16>
    %c0_21 = arith.constant 0 : index
    %c0_22 = arith.constant 0 : index
    %35 = vector.load %arg9[%c0_21, %c0_22] : memref<4x8xbf16, #tpu.memory_space<vmem>>, vector<4x8xbf16>
    %cst_23 = arith.constant dense<0.000000e+00> : vector<256x8xf32>
    %36 = tpu.matmul %34, %35, %cst_23 {dimension_numbers = #tpu.dot_dimension_numbers<[1], [0], [0], [1], [0, 0, 1, 1], [], []>} : vector<256x4xbf16>, vector<4x8xbf16>, vector<256x8xf32> -> vector<256x8xf32>
    %c0_24 = arith.constant 0 : index
    %c0_25 = arith.constant 0 : index
    %37 = vector.load %arg10[%c0_24, %c0_25] : memref<1x8xf32, #tpu.memory_space<vmem>>, vector<1x8xf32>
    %38 = vector.broadcast %37 : vector<1x8xf32> to vector<256x8xf32>
    %39 = arith.addf %36, %38 : vector<256x8xf32>
    %c0_26 = arith.constant 0 : index
    %c0_27 = arith.constant 0 : index
    %c0_28 = arith.constant 0 : index
    %40 = vector.load %arg4[%c0_26, %c0_27, %c0_28] : memref<1x256x8xf32, #tpu.memory_space<vmem>>, vector<1x256x8xf32>
    %41 = vector.shape_cast %40 : vector<1x256x8xf32> to vector<256x8xf32>
    %c0_29 = arith.constant 0 : index
    %c0_30 = arith.constant 0 : index
    %c0_31 = arith.constant 0 : index
    %42 = vector.load %arg3[%c0_29, %c0_30, %c0_31] : memref<1x256x8xf32, #tpu.memory_space<vmem>>, vector<1x256x8xf32>
    %43 = vector.shape_cast %42 : vector<1x256x8xf32> to vector<256x8xf32>
    %44 = arith.addf %41, %43 : vector<256x8xf32>
    %45 = arith.addf %44, %39 : vector<256x8xf32>
    %c0_32 = arith.constant 0 : index
    %c0_33 = arith.constant 0 : index
    %c0_34 = arith.constant 0 : index
    %46 = vector.load %arg11[%c0_32, %c0_33, %c0_34] : memref<1x256x8xf32, #tpu.memory_space<vmem>>, vector<1x256x8xf32>
    %47 = vector.shape_cast %46 : vector<1x256x8xf32> to vector<256x8xf32>
    %48 = vector.shape_cast %45 : vector<256x8xf32> to vector<1x256x8xf32>
    tpu.vector_store %arg11[%c0_32, %c0_33, %c0_34], %48 {strides = array<i32>} : memref<1x256x8xf32, #tpu.memory_space<vmem>>, vector<1x256x8xf32>,
    return
  }
  func.func @transform_0(%arg0: i32) -> (i32, i32, i32) {
    %c0_i32 = arith.constant 0 : i32
    %c0_i32_0 = arith.constant 0 : i32
    %c0_i32_1 = arith.constant 0 : i32
    return %arg0, %c0_i32, %c0_i32_0 : i32, i32, i32
  }
  func.func @transform_1(%arg0: i32) -> (i32, i32, i32) {
    %c0_i32 = arith.constant 0 : i32
    %c0_i32_0 = arith.constant 0 : i32
    %c0_i32_1 = arith.constant 0 : i32
    return %arg0, %c0_i32, %c0_i32_0 : i32, i32, i32
  }
  func.func @transform_2(%arg0: i32) -> (i32, i32, i32) {
    %c0_i32 = arith.constant 0 : i32
    %c0_i32_0 = arith.constant 0 : i32
    %c0_i32_1 = arith.constant 0 : i32
    return %arg0, %c0_i32, %c0_i32_0 : i32, i32, i32
  }
  func.func @transform_3(%arg0: i32) -> (i32, i32, i32) {
    %c0_i32 = arith.constant 0 : i32
    %c0_i32_0 = arith.constant 0 : i32
    %c0_i32_1 = arith.constant 0 : i32
    return %arg0, %c0_i32, %c0_i32_0 : i32, i32, i32
  }
  func.func @transform_4(%arg0: i32) -> (i32, i32) {
    %c0_i32 = arith.constant 0 : i32
    %c0_i32_0 = arith.constant 0 : i32
    %c0_i32_1 = arith.constant 0 : i32
    return %c0_i32, %c0_i32_0 : i32, i32
  }
  func.func @transform_5(%arg0: i32) -> (i32, i32) {
    %c0_i32 = arith.constant 0 : i32
    %c0_i32_0 = arith.constant 0 : i32
    %c0_i32_1 = arith.constant 0 : i32
    return %c0_i32, %c0_i32_0 : i32, i32
  }
  func.func @transform_6(%arg0: i32) -> (i32, i32) {
    %c0_i32 = arith.constant 0 : i32
    %c0_i32_0 = arith.constant 0 : i32
    %c0_i32_1 = arith.constant 0 : i32
    return %c0_i32, %c0_i32_0 : i32, i32
  }
  func.func @transform_7(%arg0: i32) -> (i32, i32) {
    %c0_i32 = arith.constant 0 : i32
    %c0_i32_0 = arith.constant 0 : i32
    %c0_i32_1 = arith.constant 0 : i32
    return %c0_i32, %c0_i32_0 : i32, i32
  }
  func.func @transform_8(%arg0: i32) -> (i32, i32) {
    %c0_i32 = arith.constant 0 : i32
    %c0_i32_0 = arith.constant 0 : i32
    %c0_i32_1 = arith.constant 0 : i32
    return %c0_i32, %c0_i32_0 : i32, i32
  }
  func.func @transform_9(%arg0: i32) -> (i32, i32) {
    %c0_i32 = arith.constant 0 : i32
    %c0_i32_0 = arith.constant 0 : i32
    %c0_i32_1 = arith.constant 0 : i32
    return %c0_i32, %c0_i32_0 : i32, i32
  }
  func.func @transform_10(%arg0: i32) -> (i32, i32, i32) {
    %c0_i32 = arith.constant 0 : i32
    %c0_i32_0 = arith.constant 0 : i32
    %c0_i32_1 = arith.constant 0 : i32
    return %arg0, %c0_i32, %c0_i32_0 : i32, i32, i32
  }
}

module attributes {stable_mosaic.version = 11 : i64} {
  func.func @_conv3x3_kernel(%arg0: i32, %arg1: i32, %arg2: memref<1x18x18x8xbf16, #tpu.memory_space<vmem>>, %arg3: memref<1x16x16x8xf32, #tpu.memory_space<vmem>>, %arg4: memref<9x8x8xbf16, #tpu.memory_space<vmem>>, %arg5: memref<1x8xf32, #tpu.memory_space<vmem>>, %arg6: memref<1x16x16x8xf32, #tpu.memory_space<vmem>>) attributes {dimension_semantics = [#tpu.dimension_semantics<parallel>, #tpu.dimension_semantics<parallel>], iteration_bounds = array<i64: 2, 1>, scalar_prefetch = 0 : i64, scratch_operands = 0 : i64, tpu.core_type = #tpu.core_type<tc>, window_params = [{transform_indices = @transform_0, window_bounds = array<i64: 1, 18, 18, 8>}, {transform_indices = @transform_1, window_bounds = array<i64: 1, 16, 16, 8>}, {pipeline_mode = #tpu.pipeline_mode<synchronous>, transform_indices = @transform_2, window_bounds = array<i64: 9, 8, 8>}, {pipeline_mode = #tpu.pipeline_mode<synchronous>, transform_indices = @transform_3, window_bounds = array<i64: 1, 8>}, {transform_indices = @transform_4, window_bounds = array<i64: 1, 16, 16, 8>}]} {
    %c16_i32 = arith.constant 16 : i32
    %0 = arith.muli %arg1, %c16_i32 : i32
    %c0 = arith.constant 0 : index
    %c0_0 = arith.constant 0 : index
    %1 = vector.load %arg5[%c0, %c0_0] : memref<1x8xf32, #tpu.memory_space<vmem>>, vector<1x8xf32>
    %c0_1 = arith.constant 0 : index
    %c0_2 = arith.constant 0 : index
    %c0_3 = arith.constant 0 : index
    %2 = vector.load %arg4[%c0_1, %c0_2, %c0_3] : memref<9x8x8xbf16, #tpu.memory_space<vmem>>, vector<1x8x8xbf16>
    %3 = vector.shape_cast %2 : vector<1x8x8xbf16> to vector<8x8xbf16>
    %c1 = arith.constant 1 : index
    %c0_4 = arith.constant 0 : index
    %c0_5 = arith.constant 0 : index
    %4 = vector.load %arg4[%c1, %c0_4, %c0_5] : memref<9x8x8xbf16, #tpu.memory_space<vmem>>, vector<1x8x8xbf16>
    %5 = vector.shape_cast %4 : vector<1x8x8xbf16> to vector<8x8xbf16>
    %c2 = arith.constant 2 : index
    %c0_6 = arith.constant 0 : index
    %c0_7 = arith.constant 0 : index
    %6 = vector.load %arg4[%c2, %c0_6, %c0_7] : memref<9x8x8xbf16, #tpu.memory_space<vmem>>, vector<1x8x8xbf16>
    %7 = vector.shape_cast %6 : vector<1x8x8xbf16> to vector<8x8xbf16>
    %c3 = arith.constant 3 : index
    %c0_8 = arith.constant 0 : index
    %c0_9 = arith.constant 0 : index
    %8 = vector.load %arg4[%c3, %c0_8, %c0_9] : memref<9x8x8xbf16, #tpu.memory_space<vmem>>, vector<1x8x8xbf16>
    %9 = vector.shape_cast %8 : vector<1x8x8xbf16> to vector<8x8xbf16>
    %c4 = arith.constant 4 : index
    %c0_10 = arith.constant 0 : index
    %c0_11 = arith.constant 0 : index
    %10 = vector.load %arg4[%c4, %c0_10, %c0_11] : memref<9x8x8xbf16, #tpu.memory_space<vmem>>, vector<1x8x8xbf16>
    %11 = vector.shape_cast %10 : vector<1x8x8xbf16> to vector<8x8xbf16>
    %c5 = arith.constant 5 : index
    %c0_12 = arith.constant 0 : index
    %c0_13 = arith.constant 0 : index
    %12 = vector.load %arg4[%c5, %c0_12, %c0_13] : memref<9x8x8xbf16, #tpu.memory_space<vmem>>, vector<1x8x8xbf16>
    %13 = vector.shape_cast %12 : vector<1x8x8xbf16> to vector<8x8xbf16>
    %c6 = arith.constant 6 : index
    %c0_14 = arith.constant 0 : index
    %c0_15 = arith.constant 0 : index
    %14 = vector.load %arg4[%c6, %c0_14, %c0_15] : memref<9x8x8xbf16, #tpu.memory_space<vmem>>, vector<1x8x8xbf16>
    %15 = vector.shape_cast %14 : vector<1x8x8xbf16> to vector<8x8xbf16>
    %c7 = arith.constant 7 : index
    %c0_16 = arith.constant 0 : index
    %c0_17 = arith.constant 0 : index
    %16 = vector.load %arg4[%c7, %c0_16, %c0_17] : memref<9x8x8xbf16, #tpu.memory_space<vmem>>, vector<1x8x8xbf16>
    %17 = vector.shape_cast %16 : vector<1x8x8xbf16> to vector<8x8xbf16>
    %c8 = arith.constant 8 : index
    %c0_18 = arith.constant 0 : index
    %c0_19 = arith.constant 0 : index
    %18 = vector.load %arg4[%c8, %c0_18, %c0_19] : memref<9x8x8xbf16, #tpu.memory_space<vmem>>, vector<1x8x8xbf16>
    %19 = vector.shape_cast %18 : vector<1x8x8xbf16> to vector<8x8xbf16>
    %cst = arith.constant 0.000000e+00 : f32
    %20 = vector.broadcast %cst : f32 to vector<16x8xf32>
    %c0_i32 = arith.constant 0 : i32
    %21 = arith.addi %0, %c0_i32 : i32
    %c0_i32_20 = arith.constant 0 : i32
    %22 = arith.addi %21, %c0_i32_20 : i32
    %c0_21 = arith.constant 0 : index
    %23 = arith.index_cast %22 : i32 to index
    %c0_22 = arith.constant 0 : index
    %c0_23 = arith.constant 0 : index
    %24 = vector.load %arg2[%c0_21, %23, %c0_22, %c0_23] : memref<1x18x18x8xbf16, #tpu.memory_space<vmem>>, vector<1x1x18x8xbf16>
    %25 = vector.shape_cast %24 : vector<1x1x18x8xbf16> to vector<18x8xbf16>
    %26 = vector.extract_strided_slice %25 {offsets = [0, 0], sizes = [16, 8], strides = [1, 1]} : vector<18x8xbf16> to vector<16x8xbf16>
    %cst_24 = arith.constant dense<0.000000e+00> : vector<16x8xf32>
    %27 = tpu.matmul %26, %3, %cst_24 {dimension_numbers = #tpu.dot_dimension_numbers<[1], [0], [0], [1], [0, 0, 1, 1], [], []>} : vector<16x8xbf16>, vector<8x8xbf16>, vector<16x8xf32> -> vector<16x8xf32>
    %28 = arith.addf %20, %27 : vector<16x8xf32>
    %29 = vector.extract_strided_slice %25 {offsets = [1, 0], sizes = [16, 8], strides = [1, 1]} : vector<18x8xbf16> to vector<16x8xbf16>
    %cst_25 = arith.constant dense<0.000000e+00> : vector<16x8xf32>
    %30 = tpu.matmul %29, %5, %cst_25 {dimension_numbers = #tpu.dot_dimension_numbers<[1], [0], [0], [1], [0, 0, 1, 1], [], []>} : vector<16x8xbf16>, vector<8x8xbf16>, vector<16x8xf32> -> vector<16x8xf32>
    %31 = arith.addf %28, %30 : vector<16x8xf32>
    %32 = vector.extract_strided_slice %25 {offsets = [2, 0], sizes = [16, 8], strides = [1, 1]} : vector<18x8xbf16> to vector<16x8xbf16>
    %cst_26 = arith.constant dense<0.000000e+00> : vector<16x8xf32>
    %33 = tpu.matmul %32, %7, %cst_26 {dimension_numbers = #tpu.dot_dimension_numbers<[1], [0], [0], [1], [0, 0, 1, 1], [], []>} : vector<16x8xbf16>, vector<8x8xbf16>, vector<16x8xf32> -> vector<16x8xf32>
    %34 = arith.addf %31, %33 : vector<16x8xf32>
    %c0_i32_27 = arith.constant 0 : i32
    %35 = arith.addi %0, %c0_i32_27 : i32
    %c1_i32 = arith.constant 1 : i32
    %36 = arith.addi %35, %c1_i32 : i32
    %c0_28 = arith.constant 0 : index
    %37 = arith.index_cast %36 : i32 to index
    %c0_29 = arith.constant 0 : index
    %c0_30 = arith.constant 0 : index
    %38 = vector.load %arg2[%c0_28, %37, %c0_29, %c0_30] : memref<1x18x18x8xbf16, #tpu.memory_space<vmem>>, vector<1x1x18x8xbf16>
    %39 = vector.shape_cast %38 : vector<1x1x18x8xbf16> to vector<18x8xbf16>
    %40 = vector.extract_strided_slice %39 {offsets = [0, 0], sizes = [16, 8], strides = [1, 1]} : vector<18x8xbf16> to vector<16x8xbf16>
    %cst_31 = arith.constant dense<0.000000e+00> : vector<16x8xf32>
    %41 = tpu.matmul %40, %9, %cst_31 {dimension_numbers = #tpu.dot_dimension_numbers<[1], [0], [0], [1], [0, 0, 1, 1], [], []>} : vector<16x8xbf16>, vector<8x8xbf16>, vector<16x8xf32> -> vector<16x8xf32>
    %42 = arith.addf %34, %41 : vector<16x8xf32>
    %43 = vector.extract_strided_slice %39 {offsets = [1, 0], sizes = [16, 8], strides = [1, 1]} : vector<18x8xbf16> to vector<16x8xbf16>
    %cst_32 = arith.constant dense<0.000000e+00> : vector<16x8xf32>
    %44 = tpu.matmul %43, %11, %cst_32 {dimension_numbers = #tpu.dot_dimension_numbers<[1], [0], [0], [1], [0, 0, 1, 1], [], []>} : vector<16x8xbf16>, vector<8x8xbf16>, vector<16x8xf32> -> vector<16x8xf32>
    %45 = arith.addf %42, %44 : vector<16x8xf32>
    %46 = vector.extract_strided_slice %39 {offsets = [2, 0], sizes = [16, 8], strides = [1, 1]} : vector<18x8xbf16> to vector<16x8xbf16>
    %cst_33 = arith.constant dense<0.000000e+00> : vector<16x8xf32>
    %47 = tpu.matmul %46, %13, %cst_33 {dimension_numbers = #tpu.dot_dimension_numbers<[1], [0], [0], [1], [0, 0, 1, 1], [], []>} : vector<16x8xbf16>, vector<8x8xbf16>, vector<16x8xf32> -> vector<16x8xf32>
    %48 = arith.addf %45, %47 : vector<16x8xf32>
    %c0_i32_34 = arith.constant 0 : i32
    %49 = arith.addi %0, %c0_i32_34 : i32
    %c2_i32 = arith.constant 2 : i32
    %50 = arith.addi %49, %c2_i32 : i32
    %c0_35 = arith.constant 0 : index
    %51 = arith.index_cast %50 : i32 to index
    %c0_36 = arith.constant 0 : index
    %c0_37 = arith.constant 0 : index
    %52 = vector.load %arg2[%c0_35, %51, %c0_36, %c0_37] : memref<1x18x18x8xbf16, #tpu.memory_space<vmem>>, vector<1x1x18x8xbf16>
    %53 = vector.shape_cast %52 : vector<1x1x18x8xbf16> to vector<18x8xbf16>
    %54 = vector.extract_strided_slice %53 {offsets = [0, 0], sizes = [16, 8], strides = [1, 1]} : vector<18x8xbf16> to vector<16x8xbf16>
    %cst_38 = arith.constant dense<0.000000e+00> : vector<16x8xf32>
    %55 = tpu.matmul %54, %15, %cst_38 {dimension_numbers = #tpu.dot_dimension_numbers<[1], [0], [0], [1], [0, 0, 1, 1], [], []>} : vector<16x8xbf16>, vector<8x8xbf16>, vector<16x8xf32> -> vector<16x8xf32>
    %56 = arith.addf %48, %55 : vector<16x8xf32>
    %57 = vector.extract_strided_slice %53 {offsets = [1, 0], sizes = [16, 8], strides = [1, 1]} : vector<18x8xbf16> to vector<16x8xbf16>
    %cst_39 = arith.constant dense<0.000000e+00> : vector<16x8xf32>
    %58 = tpu.matmul %57, %17, %cst_39 {dimension_numbers = #tpu.dot_dimension_numbers<[1], [0], [0], [1], [0, 0, 1, 1], [], []>} : vector<16x8xbf16>, vector<8x8xbf16>, vector<16x8xf32> -> vector<16x8xf32>
    %59 = arith.addf %56, %58 : vector<16x8xf32>
    %60 = vector.extract_strided_slice %53 {offsets = [2, 0], sizes = [16, 8], strides = [1, 1]} : vector<18x8xbf16> to vector<16x8xbf16>
    %cst_40 = arith.constant dense<0.000000e+00> : vector<16x8xf32>
    %61 = tpu.matmul %60, %19, %cst_40 {dimension_numbers = #tpu.dot_dimension_numbers<[1], [0], [0], [1], [0, 0, 1, 1], [], []>} : vector<16x8xbf16>, vector<8x8xbf16>, vector<16x8xf32> -> vector<16x8xf32>
    %62 = arith.addf %59, %61 : vector<16x8xf32>
    %63 = vector.broadcast %1 : vector<1x8xf32> to vector<16x8xf32>
    %64 = arith.addf %62, %63 : vector<16x8xf32>
    %cst_41 = arith.constant 0.000000e+00 : f32
    %65 = vector.broadcast %cst_41 : f32 to vector<16x8xf32>
    %66 = arith.maximumf %64, %65 : vector<16x8xf32>
    %c0_42 = arith.constant 0 : index
    %c0_43 = arith.constant 0 : index
    %c0_44 = arith.constant 0 : index
    %c0_45 = arith.constant 0 : index
    %67 = vector.load %arg3[%c0_42, %c0_43, %c0_44, %c0_45] : memref<1x16x16x8xf32, #tpu.memory_space<vmem>>, vector<1x1x16x8xf32>
    %68 = vector.shape_cast %67 : vector<1x1x16x8xf32> to vector<16x8xf32>
    %69 = arith.addf %66, %68 : vector<16x8xf32>
    %c0_46 = arith.constant 0 : index
    %c0_47 = arith.constant 0 : index
    %c0_48 = arith.constant 0 : index
    %c0_49 = arith.constant 0 : index
    %70 = vector.load %arg6[%c0_46, %c0_47, %c0_48, %c0_49] : memref<1x16x16x8xf32, #tpu.memory_space<vmem>>, vector<1x1x16x8xf32>
    %71 = vector.shape_cast %70 : vector<1x1x16x8xf32> to vector<16x8xf32>
    %72 = vector.shape_cast %69 : vector<16x8xf32> to vector<1x1x16x8xf32>
    tpu.vector_store %arg6[%c0_46, %c0_47, %c0_48, %c0_49], %72 {strides = array<i32>} : memref<1x16x16x8xf32, #tpu.memory_space<vmem>>, vector<1x1x16x8xf32>,
    %cst_50 = arith.constant 0.000000e+00 : f32
    %73 = vector.broadcast %cst_50 : f32 to vector<16x8xf32>
    %c1_i32_51 = arith.constant 1 : i32
    %74 = arith.addi %0, %c1_i32_51 : i32
    %c0_i32_52 = arith.constant 0 : i32
    %75 = arith.addi %74, %c0_i32_52 : i32
    %c0_53 = arith.constant 0 : index
    %76 = arith.index_cast %75 : i32 to index
    %c0_54 = arith.constant 0 : index
    %c0_55 = arith.constant 0 : index
    %77 = vector.load %arg2[%c0_53, %76, %c0_54, %c0_55] : memref<1x18x18x8xbf16, #tpu.memory_space<vmem>>, vector<1x1x18x8xbf16>
    %78 = vector.shape_cast %77 : vector<1x1x18x8xbf16> to vector<18x8xbf16>
    %79 = vector.extract_strided_slice %78 {offsets = [0, 0], sizes = [16, 8], strides = [1, 1]} : vector<18x8xbf16> to vector<16x8xbf16>
    %cst_56 = arith.constant dense<0.000000e+00> : vector<16x8xf32>
    %80 = tpu.matmul %79, %3, %cst_56 {dimension_numbers = #tpu.dot_dimension_numbers<[1], [0], [0], [1], [0, 0, 1, 1], [], []>} : vector<16x8xbf16>, vector<8x8xbf16>, vector<16x8xf32> -> vector<16x8xf32>
    %81 = arith.addf %73, %80 : vector<16x8xf32>
    %82 = vector.extract_strided_slice %78 {offsets = [1, 0], sizes = [16, 8], strides = [1, 1]} : vector<18x8xbf16> to vector<16x8xbf16>
    %cst_57 = arith.constant dense<0.000000e+00> : vector<16x8xf32>
    %83 = tpu.matmul %82, %5, %cst_57 {dimension_numbers = #tpu.dot_dimension_numbers<[1], [0], [0], [1], [0, 0, 1, 1], [], []>} : vector<16x8xbf16>, vector<8x8xbf16>, vector<16x8xf32> -> vector<16x8xf32>
    %84 = arith.addf %81, %83 : vector<16x8xf32>
    %85 = vector.extract_strided_slice %78 {offsets = [2, 0], sizes = [16, 8], strides = [1, 1]} : vector<18x8xbf16> to vector<16x8xbf16>
    %cst_58 = arith.constant dense<0.000000e+00> : vector<16x8xf32>
    %86 = tpu.matmul %85, %7, %cst_58 {dimension_numbers = #tpu.dot_dimension_numbers<[1], [0], [0], [1], [0, 0, 1, 1], [], []>} : vector<16x8xbf16>, vector<8x8xbf16>, vector<16x8xf32> -> vector<16x8xf32>
    %87 = arith.addf %84, %86 : vector<16x8xf32>
    %c1_i32_59 = arith.constant 1 : i32
    %88 = arith.addi %0, %c1_i32_59 : i32
    %c1_i32_60 = arith.constant 1 : i32
    %89 = arith.addi %88, %c1_i32_60 : i32
    %c0_61 = arith.constant 0 : index
    %90 = arith.index_cast %89 : i32 to index
    %c0_62 = arith.constant 0 : index
    %c0_63 = arith.constant 0 : index
    %91 = vector.load %arg2[%c0_61, %90, %c0_62, %c0_63] : memref<1x18x18x8xbf16, #tpu.memory_space<vmem>>, vector<1x1x18x8xbf16>
    %92 = vector.shape_cast %91 : vector<1x1x18x8xbf16> to vector<18x8xbf16>
    %93 = vector.extract_strided_slice %92 {offsets = [0, 0], sizes = [16, 8], strides = [1, 1]} : vector<18x8xbf16> to vector<16x8xbf16>
    %cst_64 = arith.constant dense<0.000000e+00> : vector<16x8xf32>
    %94 = tpu.matmul %93, %9, %cst_64 {dimension_numbers = #tpu.dot_dimension_numbers<[1], [0], [0], [1], [0, 0, 1, 1], [], []>} : vector<16x8xbf16>, vector<8x8xbf16>, vector<16x8xf32> -> vector<16x8xf32>
    %95 = arith.addf %87, %94 : vector<16x8xf32>
    %96 = vector.extract_strided_slice %92 {offsets = [1, 0], sizes = [16, 8], strides = [1, 1]} : vector<18x8xbf16> to vector<16x8xbf16>
    %cst_65 = arith.constant dense<0.000000e+00> : vector<16x8xf32>
    %97 = tpu.matmul %96, %11, %cst_65 {dimension_numbers = #tpu.dot_dimension_numbers<[1], [0], [0], [1], [0, 0, 1, 1], [], []>} : vector<16x8xbf16>, vector<8x8xbf16>, vector<16x8xf32> -> vector<16x8xf32>
    %98 = arith.addf %95, %97 : vector<16x8xf32>
    %99 = vector.extract_strided_slice %92 {offsets = [2, 0], sizes = [16, 8], strides = [1, 1]} : vector<18x8xbf16> to vector<16x8xbf16>
    %cst_66 = arith.constant dense<0.000000e+00> : vector<16x8xf32>
    %100 = tpu.matmul %99, %13, %cst_66 {dimension_numbers = #tpu.dot_dimension_numbers<[1], [0], [0], [1], [0, 0, 1, 1], [], []>} : vector<16x8xbf16>, vector<8x8xbf16>, vector<16x8xf32> -> vector<16x8xf32>
    %101 = arith.addf %98, %100 : vector<16x8xf32>
    %c1_i32_67 = arith.constant 1 : i32
    %102 = arith.addi %0, %c1_i32_67 : i32
    %c2_i32_68 = arith.constant 2 : i32
    %103 = arith.addi %102, %c2_i32_68 : i32
    %c0_69 = arith.constant 0 : index
    %104 = arith.index_cast %103 : i32 to index
    %c0_70 = arith.constant 0 : index
    %c0_71 = arith.constant 0 : index
    %105 = vector.load %arg2[%c0_69, %104, %c0_70, %c0_71] : memref<1x18x18x8xbf16, #tpu.memory_space<vmem>>, vector<1x1x18x8xbf16>
    %106 = vector.shape_cast %105 : vector<1x1x18x8xbf16> to vector<18x8xbf16>
    %107 = vector.extract_strided_slice %106 {offsets = [0, 0], sizes = [16, 8], strides = [1, 1]} : vector<18x8xbf16> to vector<16x8xbf16>
    %cst_72 = arith.constant dense<0.000000e+00> : vector<16x8xf32>
    %108 = tpu.matmul %107, %15, %cst_72 {dimension_numbers = #tpu.dot_dimension_numbers<[1], [0], [0], [1], [0, 0, 1, 1], [], []>} : vector<16x8xbf16>, vector<8x8xbf16>, vector<16x8xf32> -> vector<16x8xf32>
    %109 = arith.addf %101, %108 : vector<16x8xf32>
    %110 = vector.extract_strided_slice %106 {offsets = [1, 0], sizes = [16, 8], strides = [1, 1]} : vector<18x8xbf16> to vector<16x8xbf16>
    %cst_73 = arith.constant dense<0.000000e+00> : vector<16x8xf32>
    %111 = tpu.matmul %110, %17, %cst_73 {dimension_numbers = #tpu.dot_dimension_numbers<[1], [0], [0], [1], [0, 0, 1, 1], [], []>} : vector<16x8xbf16>, vector<8x8xbf16>, vector<16x8xf32> -> vector<16x8xf32>
    %112 = arith.addf %109, %111 : vector<16x8xf32>
    %113 = vector.extract_strided_slice %106 {offsets = [2, 0], sizes = [16, 8], strides = [1, 1]} : vector<18x8xbf16> to vector<16x8xbf16>
    %cst_74 = arith.constant dense<0.000000e+00> : vector<16x8xf32>
    %114 = tpu.matmul %113, %19, %cst_74 {dimension_numbers = #tpu.dot_dimension_numbers<[1], [0], [0], [1], [0, 0, 1, 1], [], []>} : vector<16x8xbf16>, vector<8x8xbf16>, vector<16x8xf32> -> vector<16x8xf32>
    %115 = arith.addf %112, %114 : vector<16x8xf32>
    %116 = vector.broadcast %1 : vector<1x8xf32> to vector<16x8xf32>
    %117 = arith.addf %115, %116 : vector<16x8xf32>
    %cst_75 = arith.constant 0.000000e+00 : f32
    %118 = vector.broadcast %cst_75 : f32 to vector<16x8xf32>
    %119 = arith.maximumf %117, %118 : vector<16x8xf32>
    %c0_76 = arith.constant 0 : index
    %c1_77 = arith.constant 1 : index
    %c0_78 = arith.constant 0 : index
    %c0_79 = arith.constant 0 : index
    %120 = vector.load %arg3[%c0_76, %c1_77, %c0_78, %c0_79] : memref<1x16x16x8xf32, #tpu.memory_space<vmem>>, vector<1x1x16x8xf32>
    %121 = vector.shape_cast %120 : vector<1x1x16x8xf32> to vector<16x8xf32>
    %122 = arith.addf %119, %121 : vector<16x8xf32>
    %c0_80 = arith.constant 0 : index
    %c1_81 = arith.constant 1 : index
    %c0_82 = arith.constant 0 : index
    %c0_83 = arith.constant 0 : index
    %123 = vector.load %arg6[%c0_80, %c1_81, %c0_82, %c0_83] : memref<1x16x16x8xf32, #tpu.memory_space<vmem>>, vector<1x1x16x8xf32>
    %124 = vector.shape_cast %123 : vector<1x1x16x8xf32> to vector<16x8xf32>
    %125 = vector.shape_cast %122 : vector<16x8xf32> to vector<1x1x16x8xf32>
    tpu.vector_store %arg6[%c0_80, %c1_81, %c0_82, %c0_83], %125 {strides = array<i32>} : memref<1x16x16x8xf32, #tpu.memory_space<vmem>>, vector<1x1x16x8xf32>,
    %cst_84 = arith.constant 0.000000e+00 : f32
    %126 = vector.broadcast %cst_84 : f32 to vector<16x8xf32>
    %c2_i32_85 = arith.constant 2 : i32
    %127 = arith.addi %0, %c2_i32_85 : i32
    %c0_i32_86 = arith.constant 0 : i32
    %128 = arith.addi %127, %c0_i32_86 : i32
    %c0_87 = arith.constant 0 : index
    %129 = arith.index_cast %128 : i32 to index
    %c0_88 = arith.constant 0 : index
    %c0_89 = arith.constant 0 : index
    %130 = vector.load %arg2[%c0_87, %129, %c0_88, %c0_89] : memref<1x18x18x8xbf16, #tpu.memory_space<vmem>>, vector<1x1x18x8xbf16>
    %131 = vector.shape_cast %130 : vector<1x1x18x8xbf16> to vector<18x8xbf16>
    %132 = vector.extract_strided_slice %131 {offsets = [0, 0], sizes = [16, 8], strides = [1, 1]} : vector<18x8xbf16> to vector<16x8xbf16>
    %cst_90 = arith.constant dense<0.000000e+00> : vector<16x8xf32>
    %133 = tpu.matmul %132, %3, %cst_90 {dimension_numbers = #tpu.dot_dimension_numbers<[1], [0], [0], [1], [0, 0, 1, 1], [], []>} : vector<16x8xbf16>, vector<8x8xbf16>, vector<16x8xf32> -> vector<16x8xf32>
    %134 = arith.addf %126, %133 : vector<16x8xf32>
    %135 = vector.extract_strided_slice %131 {offsets = [1, 0], sizes = [16, 8], strides = [1, 1]} : vector<18x8xbf16> to vector<16x8xbf16>
    %cst_91 = arith.constant dense<0.000000e+00> : vector<16x8xf32>
    %136 = tpu.matmul %135, %5, %cst_91 {dimension_numbers = #tpu.dot_dimension_numbers<[1], [0], [0], [1], [0, 0, 1, 1], [], []>} : vector<16x8xbf16>, vector<8x8xbf16>, vector<16x8xf32> -> vector<16x8xf32>
    %137 = arith.addf %134, %136 : vector<16x8xf32>
    %138 = vector.extract_strided_slice %131 {offsets = [2, 0], sizes = [16, 8], strides = [1, 1]} : vector<18x8xbf16> to vector<16x8xbf16>
    %cst_92 = arith.constant dense<0.000000e+00> : vector<16x8xf32>
    %139 = tpu.matmul %138, %7, %cst_92 {dimension_numbers = #tpu.dot_dimension_numbers<[1], [0], [0], [1], [0, 0, 1, 1], [], []>} : vector<16x8xbf16>, vector<8x8xbf16>, vector<16x8xf32> -> vector<16x8xf32>
    %140 = arith.addf %137, %139 : vector<16x8xf32>
    %c2_i32_93 = arith.constant 2 : i32
    %141 = arith.addi %0, %c2_i32_93 : i32
    %c1_i32_94 = arith.constant 1 : i32
    %142 = arith.addi %141, %c1_i32_94 : i32
    %c0_95 = arith.constant 0 : index
    %143 = arith.index_cast %142 : i32 to index
    %c0_96 = arith.constant 0 : index
    %c0_97 = arith.constant 0 : index
    %144 = vector.load %arg2[%c0_95, %143, %c0_96, %c0_97] : memref<1x18x18x8xbf16, #tpu.memory_space<vmem>>, vector<1x1x18x8xbf16>
    %145 = vector.shape_cast %144 : vector<1x1x18x8xbf16> to vector<18x8xbf16>
    %146 = vector.extract_strided_slice %145 {offsets = [0, 0], sizes = [16, 8], strides = [1, 1]} : vector<18x8xbf16> to vector<16x8xbf16>
    %cst_98 = arith.constant dense<0.000000e+00> : vector<16x8xf32>
    %147 = tpu.matmul %146, %9, %cst_98 {dimension_numbers = #tpu.dot_dimension_numbers<[1], [0], [0], [1], [0, 0, 1, 1], [], []>} : vector<16x8xbf16>, vector<8x8xbf16>, vector<16x8xf32> -> vector<16x8xf32>
    %148 = arith.addf %140, %147 : vector<16x8xf32>
    %149 = vector.extract_strided_slice %145 {offsets = [1, 0], sizes = [16, 8], strides = [1, 1]} : vector<18x8xbf16> to vector<16x8xbf16>
    %cst_99 = arith.constant dense<0.000000e+00> : vector<16x8xf32>
    %150 = tpu.matmul %149, %11, %cst_99 {dimension_numbers = #tpu.dot_dimension_numbers<[1], [0], [0], [1], [0, 0, 1, 1], [], []>} : vector<16x8xbf16>, vector<8x8xbf16>, vector<16x8xf32> -> vector<16x8xf32>
    %151 = arith.addf %148, %150 : vector<16x8xf32>
    %152 = vector.extract_strided_slice %145 {offsets = [2, 0], sizes = [16, 8], strides = [1, 1]} : vector<18x8xbf16> to vector<16x8xbf16>
    %cst_100 = arith.constant dense<0.000000e+00> : vector<16x8xf32>
    %153 = tpu.matmul %152, %13, %cst_100 {dimension_numbers = #tpu.dot_dimension_numbers<[1], [0], [0], [1], [0, 0, 1, 1], [], []>} : vector<16x8xbf16>, vector<8x8xbf16>, vector<16x8xf32> -> vector<16x8xf32>
    %154 = arith.addf %151, %153 : vector<16x8xf32>
    %c2_i32_101 = arith.constant 2 : i32
    %155 = arith.addi %0, %c2_i32_101 : i32
    %c2_i32_102 = arith.constant 2 : i32
    %156 = arith.addi %155, %c2_i32_102 : i32
    %c0_103 = arith.constant 0 : index
    %157 = arith.index_cast %156 : i32 to index
    %c0_104 = arith.constant 0 : index
    %c0_105 = arith.constant 0 : index
    %158 = vector.load %arg2[%c0_103, %157, %c0_104, %c0_105] : memref<1x18x18x8xbf16, #tpu.memory_space<vmem>>, vector<1x1x18x8xbf16>
    %159 = vector.shape_cast %158 : vector<1x1x18x8xbf16> to vector<18x8xbf16>
    %160 = vector.extract_strided_slice %159 {offsets = [0, 0], sizes = [16, 8], strides = [1, 1]} : vector<18x8xbf16> to vector<16x8xbf16>
    %cst_106 = arith.constant dense<0.000000e+00> : vector<16x8xf32>
    %161 = tpu.matmul %160, %15, %cst_106 {dimension_numbers = #tpu.dot_dimension_numbers<[1], [0], [0], [1], [0, 0, 1, 1], [], []>} : vector<16x8xbf16>, vector<8x8xbf16>, vector<16x8xf32> -> vector<16x8xf32>
    %162 = arith.addf %154, %161 : vector<16x8xf32>
    %163 = vector.extract_strided_slice %159 {offsets = [1, 0], sizes = [16, 8], strides = [1, 1]} : vector<18x8xbf16> to vector<16x8xbf16>
    %cst_107 = arith.constant dense<0.000000e+00> : vector<16x8xf32>
    %164 = tpu.matmul %163, %17, %cst_107 {dimension_numbers = #tpu.dot_dimension_numbers<[1], [0], [0], [1], [0, 0, 1, 1], [], []>} : vector<16x8xbf16>, vector<8x8xbf16>, vector<16x8xf32> -> vector<16x8xf32>
    %165 = arith.addf %162, %164 : vector<16x8xf32>
    %166 = vector.extract_strided_slice %159 {offsets = [2, 0], sizes = [16, 8], strides = [1, 1]} : vector<18x8xbf16> to vector<16x8xbf16>
    %cst_108 = arith.constant dense<0.000000e+00> : vector<16x8xf32>
    %167 = tpu.matmul %166, %19, %cst_108 {dimension_numbers = #tpu.dot_dimension_numbers<[1], [0], [0], [1], [0, 0, 1, 1], [], []>} : vector<16x8xbf16>, vector<8x8xbf16>, vector<16x8xf32> -> vector<16x8xf32>
    %168 = arith.addf %165, %167 : vector<16x8xf32>
    %169 = vector.broadcast %1 : vector<1x8xf32> to vector<16x8xf32>
    %170 = arith.addf %168, %169 : vector<16x8xf32>
    %cst_109 = arith.constant 0.000000e+00 : f32
    %171 = vector.broadcast %cst_109 : f32 to vector<16x8xf32>
    %172 = arith.maximumf %170, %171 : vector<16x8xf32>
    %c0_110 = arith.constant 0 : index
    %c2_111 = arith.constant 2 : index
    %c0_112 = arith.constant 0 : index
    %c0_113 = arith.constant 0 : index
    %173 = vector.load %arg3[%c0_110, %c2_111, %c0_112, %c0_113] : memref<1x16x16x8xf32, #tpu.memory_space<vmem>>, vector<1x1x16x8xf32>
    %174 = vector.shape_cast %173 : vector<1x1x16x8xf32> to vector<16x8xf32>
    %175 = arith.addf %172, %174 : vector<16x8xf32>
    %c0_114 = arith.constant 0 : index
    %c2_115 = arith.constant 2 : index
    %c0_116 = arith.constant 0 : index
    %c0_117 = arith.constant 0 : index
    %176 = vector.load %arg6[%c0_114, %c2_115, %c0_116, %c0_117] : memref<1x16x16x8xf32, #tpu.memory_space<vmem>>, vector<1x1x16x8xf32>
    %177 = vector.shape_cast %176 : vector<1x1x16x8xf32> to vector<16x8xf32>
    %178 = vector.shape_cast %175 : vector<16x8xf32> to vector<1x1x16x8xf32>
    tpu.vector_store %arg6[%c0_114, %c2_115, %c0_116, %c0_117], %178 {strides = array<i32>} : memref<1x16x16x8xf32, #tpu.memory_space<vmem>>, vector<1x1x16x8xf32>,
    %cst_118 = arith.constant 0.000000e+00 : f32
    %179 = vector.broadcast %cst_118 : f32 to vector<16x8xf32>
    %c3_i32 = arith.constant 3 : i32
    %180 = arith.addi %0, %c3_i32 : i32
    %c0_i32_119 = arith.constant 0 : i32
    %181 = arith.addi %180, %c0_i32_119 : i32
    %c0_120 = arith.constant 0 : index
    %182 = arith.index_cast %181 : i32 to index
    %c0_121 = arith.constant 0 : index
    %c0_122 = arith.constant 0 : index
    %183 = vector.load %arg2[%c0_120, %182, %c0_121, %c0_122] : memref<1x18x18x8xbf16, #tpu.memory_space<vmem>>, vector<1x1x18x8xbf16>
    %184 = vector.shape_cast %183 : vector<1x1x18x8xbf16> to vector<18x8xbf16>
    %185 = vector.extract_strided_slice %184 {offsets = [0, 0], sizes = [16, 8], strides = [1, 1]} : vector<18x8xbf16> to vector<16x8xbf16>
    %cst_123 = arith.constant dense<0.000000e+00> : vector<16x8xf32>
    %186 = tpu.matmul %185, %3, %cst_123 {dimension_numbers = #tpu.dot_dimension_numbers<[1], [0], [0], [1], [0, 0, 1, 1], [], []>} : vector<16x8xbf16>, vector<8x8xbf16>, vector<16x8xf32> -> vector<16x8xf32>
    %187 = arith.addf %179, %186 : vector<16x8xf32>
    %188 = vector.extract_strided_slice %184 {offsets = [1, 0], sizes = [16, 8], strides = [1, 1]} : vector<18x8xbf16> to vector<16x8xbf16>
    %cst_124 = arith.constant dense<0.000000e+00> : vector<16x8xf32>
    %189 = tpu.matmul %188, %5, %cst_124 {dimension_numbers = #tpu.dot_dimension_numbers<[1], [0], [0], [1], [0, 0, 1, 1], [], []>} : vector<16x8xbf16>, vector<8x8xbf16>, vector<16x8xf32> -> vector<16x8xf32>
    %190 = arith.addf %187, %189 : vector<16x8xf32>
    %191 = vector.extract_strided_slice %184 {offsets = [2, 0], sizes = [16, 8], strides = [1, 1]} : vector<18x8xbf16> to vector<16x8xbf16>
    %cst_125 = arith.constant dense<0.000000e+00> : vector<16x8xf32>
    %192 = tpu.matmul %191, %7, %cst_125 {dimension_numbers = #tpu.dot_dimension_numbers<[1], [0], [0], [1], [0, 0, 1, 1], [], []>} : vector<16x8xbf16>, vector<8x8xbf16>, vector<16x8xf32> -> vector<16x8xf32>
    %193 = arith.addf %190, %192 : vector<16x8xf32>
    %c3_i32_126 = arith.constant 3 : i32
    %194 = arith.addi %0, %c3_i32_126 : i32
    %c1_i32_127 = arith.constant 1 : i32
    %195 = arith.addi %194, %c1_i32_127 : i32
    %c0_128 = arith.constant 0 : index
    %196 = arith.index_cast %195 : i32 to index
    %c0_129 = arith.constant 0 : index
    %c0_130 = arith.constant 0 : index
    %197 = vector.load %arg2[%c0_128, %196, %c0_129, %c0_130] : memref<1x18x18x8xbf16, #tpu.memory_space<vmem>>, vector<1x1x18x8xbf16>
    %198 = vector.shape_cast %197 : vector<1x1x18x8xbf16> to vector<18x8xbf16>
    %199 = vector.extract_strided_slice %198 {offsets = [0, 0], sizes = [16, 8], strides = [1, 1]} : vector<18x8xbf16> to vector<16x8xbf16>
    %cst_131 = arith.constant dense<0.000000e+00> : vector<16x8xf32>
    %200 = tpu.matmul %199, %9, %cst_131 {dimension_numbers = #tpu.dot_dimension_numbers<[1], [0], [0], [1], [0, 0, 1, 1], [], []>} : vector<16x8xbf16>, vector<8x8xbf16>, vector<16x8xf32> -> vector<16x8xf32>
    %201 = arith.addf %193, %200 : vector<16x8xf32>
    %202 = vector.extract_strided_slice %198 {offsets = [1, 0], sizes = [16, 8], strides = [1, 1]} : vector<18x8xbf16> to vector<16x8xbf16>
    %cst_132 = arith.constant dense<0.000000e+00> : vector<16x8xf32>
    %203 = tpu.matmul %202, %11, %cst_132 {dimension_numbers = #tpu.dot_dimension_numbers<[1], [0], [0], [1], [0, 0, 1, 1], [], []>} : vector<16x8xbf16>, vector<8x8xbf16>, vector<16x8xf32> -> vector<16x8xf32>
    %204 = arith.addf %201, %203 : vector<16x8xf32>
    %205 = vector.extract_strided_slice %198 {offsets = [2, 0], sizes = [16, 8], strides = [1, 1]} : vector<18x8xbf16> to vector<16x8xbf16>
    %cst_133 = arith.constant dense<0.000000e+00> : vector<16x8xf32>
    %206 = tpu.matmul %205, %13, %cst_133 {dimension_numbers = #tpu.dot_dimension_numbers<[1], [0], [0], [1], [0, 0, 1, 1], [], []>} : vector<16x8xbf16>, vector<8x8xbf16>, vector<16x8xf32> -> vector<16x8xf32>
    %207 = arith.addf %204, %206 : vector<16x8xf32>
    %c3_i32_134 = arith.constant 3 : i32
    %208 = arith.addi %0, %c3_i32_134 : i32
    %c2_i32_135 = arith.constant 2 : i32
    %209 = arith.addi %208, %c2_i32_135 : i32
    %c0_136 = arith.constant 0 : index
    %210 = arith.index_cast %209 : i32 to index
    %c0_137 = arith.constant 0 : index
    %c0_138 = arith.constant 0 : index
    %211 = vector.load %arg2[%c0_136, %210, %c0_137, %c0_138] : memref<1x18x18x8xbf16, #tpu.memory_space<vmem>>, vector<1x1x18x8xbf16>
    %212 = vector.shape_cast %211 : vector<1x1x18x8xbf16> to vector<18x8xbf16>
    %213 = vector.extract_strided_slice %212 {offsets = [0, 0], sizes = [16, 8], strides = [1, 1]} : vector<18x8xbf16> to vector<16x8xbf16>
    %cst_139 = arith.constant dense<0.000000e+00> : vector<16x8xf32>
    %214 = tpu.matmul %213, %15, %cst_139 {dimension_numbers = #tpu.dot_dimension_numbers<[1], [0], [0], [1], [0, 0, 1, 1], [], []>} : vector<16x8xbf16>, vector<8x8xbf16>, vector<16x8xf32> -> vector<16x8xf32>
    %215 = arith.addf %207, %214 : vector<16x8xf32>
    %216 = vector.extract_strided_slice %212 {offsets = [1, 0], sizes = [16, 8], strides = [1, 1]} : vector<18x8xbf16> to vector<16x8xbf16>
    %cst_140 = arith.constant dense<0.000000e+00> : vector<16x8xf32>
    %217 = tpu.matmul %216, %17, %cst_140 {dimension_numbers = #tpu.dot_dimension_numbers<[1], [0], [0], [1], [0, 0, 1, 1], [], []>} : vector<16x8xbf16>, vector<8x8xbf16>, vector<16x8xf32> -> vector<16x8xf32>
    %218 = arith.addf %215, %217 : vector<16x8xf32>
    %219 = vector.extract_strided_slice %212 {offsets = [2, 0], sizes = [16, 8], strides = [1, 1]} : vector<18x8xbf16> to vector<16x8xbf16>
    %cst_141 = arith.constant dense<0.000000e+00> : vector<16x8xf32>
    %220 = tpu.matmul %219, %19, %cst_141 {dimension_numbers = #tpu.dot_dimension_numbers<[1], [0], [0], [1], [0, 0, 1, 1], [], []>} : vector<16x8xbf16>, vector<8x8xbf16>, vector<16x8xf32> -> vector<16x8xf32>
    %221 = arith.addf %218, %220 : vector<16x8xf32>
    %222 = vector.broadcast %1 : vector<1x8xf32> to vector<16x8xf32>
    %223 = arith.addf %221, %222 : vector<16x8xf32>
    %cst_142 = arith.constant 0.000000e+00 : f32
    %224 = vector.broadcast %cst_142 : f32 to vector<16x8xf32>
    %225 = arith.maximumf %223, %224 : vector<16x8xf32>
    %c0_143 = arith.constant 0 : index
    %c3_144 = arith.constant 3 : index
    %c0_145 = arith.constant 0 : index
    %c0_146 = arith.constant 0 : index
    %226 = vector.load %arg3[%c0_143, %c3_144, %c0_145, %c0_146] : memref<1x16x16x8xf32, #tpu.memory_space<vmem>>, vector<1x1x16x8xf32>
    %227 = vector.shape_cast %226 : vector<1x1x16x8xf32> to vector<16x8xf32>
    %228 = arith.addf %225, %227 : vector<16x8xf32>
    %c0_147 = arith.constant 0 : index
    %c3_148 = arith.constant 3 : index
    %c0_149 = arith.constant 0 : index
    %c0_150 = arith.constant 0 : index
    %229 = vector.load %arg6[%c0_147, %c3_148, %c0_149, %c0_150] : memref<1x16x16x8xf32, #tpu.memory_space<vmem>>, vector<1x1x16x8xf32>
    %230 = vector.shape_cast %229 : vector<1x1x16x8xf32> to vector<16x8xf32>
    %231 = vector.shape_cast %228 : vector<16x8xf32> to vector<1x1x16x8xf32>
    tpu.vector_store %arg6[%c0_147, %c3_148, %c0_149, %c0_150], %231 {strides = array<i32>} : memref<1x16x16x8xf32, #tpu.memory_space<vmem>>, vector<1x1x16x8xf32>,
    %cst_151 = arith.constant 0.000000e+00 : f32
    %232 = vector.broadcast %cst_151 : f32 to vector<16x8xf32>
    %c4_i32 = arith.constant 4 : i32
    %233 = arith.addi %0, %c4_i32 : i32
    %c0_i32_152 = arith.constant 0 : i32
    %234 = arith.addi %233, %c0_i32_152 : i32
    %c0_153 = arith.constant 0 : index
    %235 = arith.index_cast %234 : i32 to index
    %c0_154 = arith.constant 0 : index
    %c0_155 = arith.constant 0 : index
    %236 = vector.load %arg2[%c0_153, %235, %c0_154, %c0_155] : memref<1x18x18x8xbf16, #tpu.memory_space<vmem>>, vector<1x1x18x8xbf16>
    %237 = vector.shape_cast %236 : vector<1x1x18x8xbf16> to vector<18x8xbf16>
    %238 = vector.extract_strided_slice %237 {offsets = [0, 0], sizes = [16, 8], strides = [1, 1]} : vector<18x8xbf16> to vector<16x8xbf16>
    %cst_156 = arith.constant dense<0.000000e+00> : vector<16x8xf32>
    %239 = tpu.matmul %238, %3, %cst_156 {dimension_numbers = #tpu.dot_dimension_numbers<[1], [0], [0], [1], [0, 0, 1, 1], [], []>} : vector<16x8xbf16>, vector<8x8xbf16>, vector<16x8xf32> -> vector<16x8xf32>
    %240 = arith.addf %232, %239 : vector<16x8xf32>
    %241 = vector.extract_strided_slice %237 {offsets = [1, 0], sizes = [16, 8], strides = [1, 1]} : vector<18x8xbf16> to vector<16x8xbf16>
    %cst_157 = arith.constant dense<0.000000e+00> : vector<16x8xf32>
    %242 = tpu.matmul %241, %5, %cst_157 {dimension_numbers = #tpu.dot_dimension_numbers<[1], [0], [0], [1], [0, 0, 1, 1], [], []>} : vector<16x8xbf16>, vector<8x8xbf16>, vector<16x8xf32> -> vector<16x8xf32>
    %243 = arith.addf %240, %242 : vector<16x8xf32>
    %244 = vector.extract_strided_slice %237 {offsets = [2, 0], sizes = [16, 8], strides = [1, 1]} : vector<18x8xbf16> to vector<16x8xbf16>
    %cst_158 = arith.constant dense<0.000000e+00> : vector<16x8xf32>
    %245 = tpu.matmul %244, %7, %cst_158 {dimension_numbers = #tpu.dot_dimension_numbers<[1], [0], [0], [1], [0, 0, 1, 1], [], []>} : vector<16x8xbf16>, vector<8x8xbf16>, vector<16x8xf32> -> vector<16x8xf32>
    %246 = arith.addf %243, %245 : vector<16x8xf32>
    %c4_i32_159 = arith.constant 4 : i32
    %247 = arith.addi %0, %c4_i32_159 : i32
    %c1_i32_160 = arith.constant 1 : i32
    %248 = arith.addi %247, %c1_i32_160 : i32
    %c0_161 = arith.constant 0 : index
    %249 = arith.index_cast %248 : i32 to index
    %c0_162 = arith.constant 0 : index
    %c0_163 = arith.constant 0 : index
    %250 = vector.load %arg2[%c0_161, %249, %c0_162, %c0_163] : memref<1x18x18x8xbf16, #tpu.memory_space<vmem>>, vector<1x1x18x8xbf16>
    %251 = vector.shape_cast %250 : vector<1x1x18x8xbf16> to vector<18x8xbf16>
    %252 = vector.extract_strided_slice %251 {offsets = [0, 0], sizes = [16, 8], strides = [1, 1]} : vector<18x8xbf16> to vector<16x8xbf16>
    %cst_164 = arith.constant dense<0.000000e+00> : vector<16x8xf32>
    %253 = tpu.matmul %252, %9, %cst_164 {dimension_numbers = #tpu.dot_dimension_numbers<[1], [0], [0], [1], [0, 0, 1, 1], [], []>} : vector<16x8xbf16>, vector<8x8xbf16>, vector<16x8xf32> -> vector<16x8xf32>
    %254 = arith.addf %246, %253 : vector<16x8xf32>
    %255 = vector.extract_strided_slice %251 {offsets = [1, 0], sizes = [16, 8], strides = [1, 1]} : vector<18x8xbf16> to vector<16x8xbf16>
    %cst_165 = arith.constant dense<0.000000e+00> : vector<16x8xf32>
    %256 = tpu.matmul %255, %11, %cst_165 {dimension_numbers = #tpu.dot_dimension_numbers<[1], [0], [0], [1], [0, 0, 1, 1], [], []>} : vector<16x8xbf16>, vector<8x8xbf16>, vector<16x8xf32> -> vector<16x8xf32>
    %257 = arith.addf %254, %256 : vector<16x8xf32>
    %258 = vector.extract_strided_slice %251 {offsets = [2, 0], sizes = [16, 8], strides = [1, 1]} : vector<18x8xbf16> to vector<16x8xbf16>
    %cst_166 = arith.constant dense<0.000000e+00> : vector<16x8xf32>
    %259 = tpu.matmul %258, %13, %cst_166 {dimension_numbers = #tpu.dot_dimension_numbers<[1], [0], [0], [1], [0, 0, 1, 1], [], []>} : vector<16x8xbf16>, vector<8x8xbf16>, vector<16x8xf32> -> vector<16x8xf32>
    %260 = arith.addf %257, %259 : vector<16x8xf32>
    %c4_i32_167 = arith.constant 4 : i32
    %261 = arith.addi %0, %c4_i32_167 : i32
    %c2_i32_168 = arith.constant 2 : i32
    %262 = arith.addi %261, %c2_i32_168 : i32
    %c0_169 = arith.constant 0 : index
    %263 = arith.index_cast %262 : i32 to index
    %c0_170 = arith.constant 0 : index
    %c0_171 = arith.constant 0 : index
    %264 = vector.load %arg2[%c0_169, %263, %c0_170, %c0_171] : memref<1x18x18x8xbf16, #tpu.memory_space<vmem>>, vector<1x1x18x8xbf16>
    %265 = vector.shape_cast %264 : vector<1x1x18x8xbf16> to vector<18x8xbf16>
    %266 = vector.extract_strided_slice %265 {offsets = [0, 0], sizes = [16, 8], strides = [1, 1]} : vector<18x8xbf16> to vector<16x8xbf16>
    %cst_172 = arith.constant dense<0.000000e+00> : vector<16x8xf32>
    %267 = tpu.matmul %266, %15, %cst_172 {dimension_numbers = #tpu.dot_dimension_numbers<[1], [0], [0], [1], [0, 0, 1, 1], [], []>} : vector<16x8xbf16>, vector<8x8xbf16>, vector<16x8xf32> -> vector<16x8xf32>
    %268 = arith.addf %260, %267 : vector<16x8xf32>
    %269 = vector.extract_strided_slice %265 {offsets = [1, 0], sizes = [16, 8], strides = [1, 1]} : vector<18x8xbf16> to vector<16x8xbf16>
    %cst_173 = arith.constant dense<0.000000e+00> : vector<16x8xf32>
    %270 = tpu.matmul %269, %17, %cst_173 {dimension_numbers = #tpu.dot_dimension_numbers<[1], [0], [0], [1], [0, 0, 1, 1], [], []>} : vector<16x8xbf16>, vector<8x8xbf16>, vector<16x8xf32> -> vector<16x8xf32>
    %271 = arith.addf %268, %270 : vector<16x8xf32>
    %272 = vector.extract_strided_slice %265 {offsets = [2, 0], sizes = [16, 8], strides = [1, 1]} : vector<18x8xbf16> to vector<16x8xbf16>
    %cst_174 = arith.constant dense<0.000000e+00> : vector<16x8xf32>
    %273 = tpu.matmul %272, %19, %cst_174 {dimension_numbers = #tpu.dot_dimension_numbers<[1], [0], [0], [1], [0, 0, 1, 1], [], []>} : vector<16x8xbf16>, vector<8x8xbf16>, vector<16x8xf32> -> vector<16x8xf32>
    %274 = arith.addf %271, %273 : vector<16x8xf32>
    %275 = vector.broadcast %1 : vector<1x8xf32> to vector<16x8xf32>
    %276 = arith.addf %274, %275 : vector<16x8xf32>
    %cst_175 = arith.constant 0.000000e+00 : f32
    %277 = vector.broadcast %cst_175 : f32 to vector<16x8xf32>
    %278 = arith.maximumf %276, %277 : vector<16x8xf32>
    %c0_176 = arith.constant 0 : index
    %c4_177 = arith.constant 4 : index
    %c0_178 = arith.constant 0 : index
    %c0_179 = arith.constant 0 : index
    %279 = vector.load %arg3[%c0_176, %c4_177, %c0_178, %c0_179] : memref<1x16x16x8xf32, #tpu.memory_space<vmem>>, vector<1x1x16x8xf32>
    %280 = vector.shape_cast %279 : vector<1x1x16x8xf32> to vector<16x8xf32>
    %281 = arith.addf %278, %280 : vector<16x8xf32>
    %c0_180 = arith.constant 0 : index
    %c4_181 = arith.constant 4 : index
    %c0_182 = arith.constant 0 : index
    %c0_183 = arith.constant 0 : index
    %282 = vector.load %arg6[%c0_180, %c4_181, %c0_182, %c0_183] : memref<1x16x16x8xf32, #tpu.memory_space<vmem>>, vector<1x1x16x8xf32>
    %283 = vector.shape_cast %282 : vector<1x1x16x8xf32> to vector<16x8xf32>
    %284 = vector.shape_cast %281 : vector<16x8xf32> to vector<1x1x16x8xf32>
    tpu.vector_store %arg6[%c0_180, %c4_181, %c0_182, %c0_183], %284 {strides = array<i32>} : memref<1x16x16x8xf32, #tpu.memory_space<vmem>>, vector<1x1x16x8xf32>,
    %cst_184 = arith.constant 0.000000e+00 : f32
    %285 = vector.broadcast %cst_184 : f32 to vector<16x8xf32>
    %c5_i32 = arith.constant 5 : i32
    %286 = arith.addi %0, %c5_i32 : i32
    %c0_i32_185 = arith.constant 0 : i32
    %287 = arith.addi %286, %c0_i32_185 : i32
    %c0_186 = arith.constant 0 : index
    %288 = arith.index_cast %287 : i32 to index
    %c0_187 = arith.constant 0 : index
    %c0_188 = arith.constant 0 : index
    %289 = vector.load %arg2[%c0_186, %288, %c0_187, %c0_188] : memref<1x18x18x8xbf16, #tpu.memory_space<vmem>>, vector<1x1x18x8xbf16>
    %290 = vector.shape_cast %289 : vector<1x1x18x8xbf16> to vector<18x8xbf16>
    %291 = vector.extract_strided_slice %290 {offsets = [0, 0], sizes = [16, 8], strides = [1, 1]} : vector<18x8xbf16> to vector<16x8xbf16>
    %cst_189 = arith.constant dense<0.000000e+00> : vector<16x8xf32>
    %292 = tpu.matmul %291, %3, %cst_189 {dimension_numbers = #tpu.dot_dimension_numbers<[1], [0], [0], [1], [0, 0, 1, 1], [], []>} : vector<16x8xbf16>, vector<8x8xbf16>, vector<16x8xf32> -> vector<16x8xf32>
    %293 = arith.addf %285, %292 : vector<16x8xf32>
    %294 = vector.extract_strided_slice %290 {offsets = [1, 0], sizes = [16, 8], strides = [1, 1]} : vector<18x8xbf16> to vector<16x8xbf16>
    %cst_190 = arith.constant dense<0.000000e+00> : vector<16x8xf32>
    %295 = tpu.matmul %294, %5, %cst_190 {dimension_numbers = #tpu.dot_dimension_numbers<[1], [0], [0], [1], [0, 0, 1, 1], [], []>} : vector<16x8xbf16>, vector<8x8xbf16>, vector<16x8xf32> -> vector<16x8xf32>
    %296 = arith.addf %293, %295 : vector<16x8xf32>
    %297 = vector.extract_strided_slice %290 {offsets = [2, 0], sizes = [16, 8], strides = [1, 1]} : vector<18x8xbf16> to vector<16x8xbf16>
    %cst_191 = arith.constant dense<0.000000e+00> : vector<16x8xf32>
    %298 = tpu.matmul %297, %7, %cst_191 {dimension_numbers = #tpu.dot_dimension_numbers<[1], [0], [0], [1], [0, 0, 1, 1], [], []>} : vector<16x8xbf16>, vector<8x8xbf16>, vector<16x8xf32> -> vector<16x8xf32>
    %299 = arith.addf %296, %298 : vector<16x8xf32>
    %c5_i32_192 = arith.constant 5 : i32
    %300 = arith.addi %0, %c5_i32_192 : i32
    %c1_i32_193 = arith.constant 1 : i32
    %301 = arith.addi %300, %c1_i32_193 : i32
    %c0_194 = arith.constant 0 : index
    %302 = arith.index_cast %301 : i32 to index
    %c0_195 = arith.constant 0 : index
    %c0_196 = arith.constant 0 : index
    %303 = vector.load %arg2[%c0_194, %302, %c0_195, %c0_196] : memref<1x18x18x8xbf16, #tpu.memory_space<vmem>>, vector<1x1x18x8xbf16>
    %304 = vector.shape_cast %303 : vector<1x1x18x8xbf16> to vector<18x8xbf16>
    %305 = vector.extract_strided_slice %304 {offsets = [0, 0], sizes = [16, 8], strides = [1, 1]} : vector<18x8xbf16> to vector<16x8xbf16>
    %cst_197 = arith.constant dense<0.000000e+00> : vector<16x8xf32>
    %306 = tpu.matmul %305, %9, %cst_197 {dimension_numbers = #tpu.dot_dimension_numbers<[1], [0], [0], [1], [0, 0, 1, 1], [], []>} : vector<16x8xbf16>, vector<8x8xbf16>, vector<16x8xf32> -> vector<16x8xf32>
    %307 = arith.addf %299, %306 : vector<16x8xf32>
    %308 = vector.extract_strided_slice %304 {offsets = [1, 0], sizes = [16, 8], strides = [1, 1]} : vector<18x8xbf16> to vector<16x8xbf16>
    %cst_198 = arith.constant dense<0.000000e+00> : vector<16x8xf32>
    %309 = tpu.matmul %308, %11, %cst_198 {dimension_numbers = #tpu.dot_dimension_numbers<[1], [0], [0], [1], [0, 0, 1, 1], [], []>} : vector<16x8xbf16>, vector<8x8xbf16>, vector<16x8xf32> -> vector<16x8xf32>
    %310 = arith.addf %307, %309 : vector<16x8xf32>
    %311 = vector.extract_strided_slice %304 {offsets = [2, 0], sizes = [16, 8], strides = [1, 1]} : vector<18x8xbf16> to vector<16x8xbf16>
    %cst_199 = arith.constant dense<0.000000e+00> : vector<16x8xf32>
    %312 = tpu.matmul %311, %13, %cst_199 {dimension_numbers = #tpu.dot_dimension_numbers<[1], [0], [0], [1], [0, 0, 1, 1], [], []>} : vector<16x8xbf16>, vector<8x8xbf16>, vector<16x8xf32> -> vector<16x8xf32>
    %313 = arith.addf %310, %312 : vector<16x8xf32>
    %c5_i32_200 = arith.constant 5 : i32
    %314 = arith.addi %0, %c5_i32_200 : i32
    %c2_i32_201 = arith.constant 2 : i32
    %315 = arith.addi %314, %c2_i32_201 : i32
    %c0_202 = arith.constant 0 : index
    %316 = arith.index_cast %315 : i32 to index
    %c0_203 = arith.constant 0 : index
    %c0_204 = arith.constant 0 : index
    %317 = vector.load %arg2[%c0_202, %316, %c0_203, %c0_204] : memref<1x18x18x8xbf16, #tpu.memory_space<vmem>>, vector<1x1x18x8xbf16>
    %318 = vector.shape_cast %317 : vector<1x1x18x8xbf16> to vector<18x8xbf16>
    %319 = vector.extract_strided_slice %318 {offsets = [0, 0], sizes = [16, 8], strides = [1, 1]} : vector<18x8xbf16> to vector<16x8xbf16>
    %cst_205 = arith.constant dense<0.000000e+00> : vector<16x8xf32>
    %320 = tpu.matmul %319, %15, %cst_205 {dimension_numbers = #tpu.dot_dimension_numbers<[1], [0], [0], [1], [0, 0, 1, 1], [], []>} : vector<16x8xbf16>, vector<8x8xbf16>, vector<16x8xf32> -> vector<16x8xf32>
    %321 = arith.addf %313, %320 : vector<16x8xf32>
    %322 = vector.extract_strided_slice %318 {offsets = [1, 0], sizes = [16, 8], strides = [1, 1]} : vector<18x8xbf16> to vector<16x8xbf16>
    %cst_206 = arith.constant dense<0.000000e+00> : vector<16x8xf32>
    %323 = tpu.matmul %322, %17, %cst_206 {dimension_numbers = #tpu.dot_dimension_numbers<[1], [0], [0], [1], [0, 0, 1, 1], [], []>} : vector<16x8xbf16>, vector<8x8xbf16>, vector<16x8xf32> -> vector<16x8xf32>
    %324 = arith.addf %321, %323 : vector<16x8xf32>
    %325 = vector.extract_strided_slice %318 {offsets = [2, 0], sizes = [16, 8], strides = [1, 1]} : vector<18x8xbf16> to vector<16x8xbf16>
    %cst_207 = arith.constant dense<0.000000e+00> : vector<16x8xf32>
    %326 = tpu.matmul %325, %19, %cst_207 {dimension_numbers = #tpu.dot_dimension_numbers<[1], [0], [0], [1], [0, 0, 1, 1], [], []>} : vector<16x8xbf16>, vector<8x8xbf16>, vector<16x8xf32> -> vector<16x8xf32>
    %327 = arith.addf %324, %326 : vector<16x8xf32>
    %328 = vector.broadcast %1 : vector<1x8xf32> to vector<16x8xf32>
    %329 = arith.addf %327, %328 : vector<16x8xf32>
    %cst_208 = arith.constant 0.000000e+00 : f32
    %330 = vector.broadcast %cst_208 : f32 to vector<16x8xf32>
    %331 = arith.maximumf %329, %330 : vector<16x8xf32>
    %c0_209 = arith.constant 0 : index
    %c5_210 = arith.constant 5 : index
    %c0_211 = arith.constant 0 : index
    %c0_212 = arith.constant 0 : index
    %332 = vector.load %arg3[%c0_209, %c5_210, %c0_211, %c0_212] : memref<1x16x16x8xf32, #tpu.memory_space<vmem>>, vector<1x1x16x8xf32>
    %333 = vector.shape_cast %332 : vector<1x1x16x8xf32> to vector<16x8xf32>
    %334 = arith.addf %331, %333 : vector<16x8xf32>
    %c0_213 = arith.constant 0 : index
    %c5_214 = arith.constant 5 : index
    %c0_215 = arith.constant 0 : index
    %c0_216 = arith.constant 0 : index
    %335 = vector.load %arg6[%c0_213, %c5_214, %c0_215, %c0_216] : memref<1x16x16x8xf32, #tpu.memory_space<vmem>>, vector<1x1x16x8xf32>
    %336 = vector.shape_cast %335 : vector<1x1x16x8xf32> to vector<16x8xf32>
    %337 = vector.shape_cast %334 : vector<16x8xf32> to vector<1x1x16x8xf32>
    tpu.vector_store %arg6[%c0_213, %c5_214, %c0_215, %c0_216], %337 {strides = array<i32>} : memref<1x16x16x8xf32, #tpu.memory_space<vmem>>, vector<1x1x16x8xf32>,
    %cst_217 = arith.constant 0.000000e+00 : f32
    %338 = vector.broadcast %cst_217 : f32 to vector<16x8xf32>
    %c6_i32 = arith.constant 6 : i32
    %339 = arith.addi %0, %c6_i32 : i32
    %c0_i32_218 = arith.constant 0 : i32
    %340 = arith.addi %339, %c0_i32_218 : i32
    %c0_219 = arith.constant 0 : index
    %341 = arith.index_cast %340 : i32 to index
    %c0_220 = arith.constant 0 : index
    %c0_221 = arith.constant 0 : index
    %342 = vector.load %arg2[%c0_219, %341, %c0_220, %c0_221] : memref<1x18x18x8xbf16, #tpu.memory_space<vmem>>, vector<1x1x18x8xbf16>
    %343 = vector.shape_cast %342 : vector<1x1x18x8xbf16> to vector<18x8xbf16>
    %344 = vector.extract_strided_slice %343 {offsets = [0, 0], sizes = [16, 8], strides = [1, 1]} : vector<18x8xbf16> to vector<16x8xbf16>
    %cst_222 = arith.constant dense<0.000000e+00> : vector<16x8xf32>
    %345 = tpu.matmul %344, %3, %cst_222 {dimension_numbers = #tpu.dot_dimension_numbers<[1], [0], [0], [1], [0, 0, 1, 1], [], []>} : vector<16x8xbf16>, vector<8x8xbf16>, vector<16x8xf32> -> vector<16x8xf32>
    %346 = arith.addf %338, %345 : vector<16x8xf32>
    %347 = vector.extract_strided_slice %343 {offsets = [1, 0], sizes = [16, 8], strides = [1, 1]} : vector<18x8xbf16> to vector<16x8xbf16>
    %cst_223 = arith.constant dense<0.000000e+00> : vector<16x8xf32>
    %348 = tpu.matmul %347, %5, %cst_223 {dimension_numbers = #tpu.dot_dimension_numbers<[1], [0], [0], [1], [0, 0, 1, 1], [], []>} : vector<16x8xbf16>, vector<8x8xbf16>, vector<16x8xf32> -> vector<16x8xf32>
    %349 = arith.addf %346, %348 : vector<16x8xf32>
    %350 = vector.extract_strided_slice %343 {offsets = [2, 0], sizes = [16, 8], strides = [1, 1]} : vector<18x8xbf16> to vector<16x8xbf16>
    %cst_224 = arith.constant dense<0.000000e+00> : vector<16x8xf32>
    %351 = tpu.matmul %350, %7, %cst_224 {dimension_numbers = #tpu.dot_dimension_numbers<[1], [0], [0], [1], [0, 0, 1, 1], [], []>} : vector<16x8xbf16>, vector<8x8xbf16>, vector<16x8xf32> -> vector<16x8xf32>
    %352 = arith.addf %349, %351 : vector<16x8xf32>
    %c6_i32_225 = arith.constant 6 : i32
    %353 = arith.addi %0, %c6_i32_225 : i32
    %c1_i32_226 = arith.constant 1 : i32
    %354 = arith.addi %353, %c1_i32_226 : i32
    %c0_227 = arith.constant 0 : index
    %355 = arith.index_cast %354 : i32 to index
    %c0_228 = arith.constant 0 : index
    %c0_229 = arith.constant 0 : index
    %356 = vector.load %arg2[%c0_227, %355, %c0_228, %c0_229] : memref<1x18x18x8xbf16, #tpu.memory_space<vmem>>, vector<1x1x18x8xbf16>
    %357 = vector.shape_cast %356 : vector<1x1x18x8xbf16> to vector<18x8xbf16>
    %358 = vector.extract_strided_slice %357 {offsets = [0, 0], sizes = [16, 8], strides = [1, 1]} : vector<18x8xbf16> to vector<16x8xbf16>
    %cst_230 = arith.constant dense<0.000000e+00> : vector<16x8xf32>
    %359 = tpu.matmul %358, %9, %cst_230 {dimension_numbers = #tpu.dot_dimension_numbers<[1], [0], [0], [1], [0, 0, 1, 1], [], []>} : vector<16x8xbf16>, vector<8x8xbf16>, vector<16x8xf32> -> vector<16x8xf32>
    %360 = arith.addf %352, %359 : vector<16x8xf32>
    %361 = vector.extract_strided_slice %357 {offsets = [1, 0], sizes = [16, 8], strides = [1, 1]} : vector<18x8xbf16> to vector<16x8xbf16>
    %cst_231 = arith.constant dense<0.000000e+00> : vector<16x8xf32>
    %362 = tpu.matmul %361, %11, %cst_231 {dimension_numbers = #tpu.dot_dimension_numbers<[1], [0], [0], [1], [0, 0, 1, 1], [], []>} : vector<16x8xbf16>, vector<8x8xbf16>, vector<16x8xf32> -> vector<16x8xf32>
    %363 = arith.addf %360, %362 : vector<16x8xf32>
    %364 = vector.extract_strided_slice %357 {offsets = [2, 0], sizes = [16, 8], strides = [1, 1]} : vector<18x8xbf16> to vector<16x8xbf16>
    %cst_232 = arith.constant dense<0.000000e+00> : vector<16x8xf32>
    %365 = tpu.matmul %364, %13, %cst_232 {dimension_numbers = #tpu.dot_dimension_numbers<[1], [0], [0], [1], [0, 0, 1, 1], [], []>} : vector<16x8xbf16>, vector<8x8xbf16>, vector<16x8xf32> -> vector<16x8xf32>
    %366 = arith.addf %363, %365 : vector<16x8xf32>
    %c6_i32_233 = arith.constant 6 : i32
    %367 = arith.addi %0, %c6_i32_233 : i32
    %c2_i32_234 = arith.constant 2 : i32
    %368 = arith.addi %367, %c2_i32_234 : i32
    %c0_235 = arith.constant 0 : index
    %369 = arith.index_cast %368 : i32 to index
    %c0_236 = arith.constant 0 : index
    %c0_237 = arith.constant 0 : index
    %370 = vector.load %arg2[%c0_235, %369, %c0_236, %c0_237] : memref<1x18x18x8xbf16, #tpu.memory_space<vmem>>, vector<1x1x18x8xbf16>
    %371 = vector.shape_cast %370 : vector<1x1x18x8xbf16> to vector<18x8xbf16>
    %372 = vector.extract_strided_slice %371 {offsets = [0, 0], sizes = [16, 8], strides = [1, 1]} : vector<18x8xbf16> to vector<16x8xbf16>
    %cst_238 = arith.constant dense<0.000000e+00> : vector<16x8xf32>
    %373 = tpu.matmul %372, %15, %cst_238 {dimension_numbers = #tpu.dot_dimension_numbers<[1], [0], [0], [1], [0, 0, 1, 1], [], []>} : vector<16x8xbf16>, vector<8x8xbf16>, vector<16x8xf32> -> vector<16x8xf32>
    %374 = arith.addf %366, %373 : vector<16x8xf32>
    %375 = vector.extract_strided_slice %371 {offsets = [1, 0], sizes = [16, 8], strides = [1, 1]} : vector<18x8xbf16> to vector<16x8xbf16>
    %cst_239 = arith.constant dense<0.000000e+00> : vector<16x8xf32>
    %376 = tpu.matmul %375, %17, %cst_239 {dimension_numbers = #tpu.dot_dimension_numbers<[1], [0], [0], [1], [0, 0, 1, 1], [], []>} : vector<16x8xbf16>, vector<8x8xbf16>, vector<16x8xf32> -> vector<16x8xf32>
    %377 = arith.addf %374, %376 : vector<16x8xf32>
    %378 = vector.extract_strided_slice %371 {offsets = [2, 0], sizes = [16, 8], strides = [1, 1]} : vector<18x8xbf16> to vector<16x8xbf16>
    %cst_240 = arith.constant dense<0.000000e+00> : vector<16x8xf32>
    %379 = tpu.matmul %378, %19, %cst_240 {dimension_numbers = #tpu.dot_dimension_numbers<[1], [0], [0], [1], [0, 0, 1, 1], [], []>} : vector<16x8xbf16>, vector<8x8xbf16>, vector<16x8xf32> -> vector<16x8xf32>
    %380 = arith.addf %377, %379 : vector<16x8xf32>
    %381 = vector.broadcast %1 : vector<1x8xf32> to vector<16x8xf32>
    %382 = arith.addf %380, %381 : vector<16x8xf32>
    %cst_241 = arith.constant 0.000000e+00 : f32
    %383 = vector.broadcast %cst_241 : f32 to vector<16x8xf32>
    %384 = arith.maximumf %382, %383 : vector<16x8xf32>
    %c0_242 = arith.constant 0 : index
    %c6_243 = arith.constant 6 : index
    %c0_244 = arith.constant 0 : index
    %c0_245 = arith.constant 0 : index
    %385 = vector.load %arg3[%c0_242, %c6_243, %c0_244, %c0_245] : memref<1x16x16x8xf32, #tpu.memory_space<vmem>>, vector<1x1x16x8xf32>
    %386 = vector.shape_cast %385 : vector<1x1x16x8xf32> to vector<16x8xf32>
    %387 = arith.addf %384, %386 : vector<16x8xf32>
    %c0_246 = arith.constant 0 : index
    %c6_247 = arith.constant 6 : index
    %c0_248 = arith.constant 0 : index
    %c0_249 = arith.constant 0 : index
    %388 = vector.load %arg6[%c0_246, %c6_247, %c0_248, %c0_249] : memref<1x16x16x8xf32, #tpu.memory_space<vmem>>, vector<1x1x16x8xf32>
    %389 = vector.shape_cast %388 : vector<1x1x16x8xf32> to vector<16x8xf32>
    %390 = vector.shape_cast %387 : vector<16x8xf32> to vector<1x1x16x8xf32>
    tpu.vector_store %arg6[%c0_246, %c6_247, %c0_248, %c0_249], %390 {strides = array<i32>} : memref<1x16x16x8xf32, #tpu.memory_space<vmem>>, vector<1x1x16x8xf32>,
    %cst_250 = arith.constant 0.000000e+00 : f32
    %391 = vector.broadcast %cst_250 : f32 to vector<16x8xf32>
    %c7_i32 = arith.constant 7 : i32
    %392 = arith.addi %0, %c7_i32 : i32
    %c0_i32_251 = arith.constant 0 : i32
    %393 = arith.addi %392, %c0_i32_251 : i32
    %c0_252 = arith.constant 0 : index
    %394 = arith.index_cast %393 : i32 to index
    %c0_253 = arith.constant 0 : index
    %c0_254 = arith.constant 0 : index
    %395 = vector.load %arg2[%c0_252, %394, %c0_253, %c0_254] : memref<1x18x18x8xbf16, #tpu.memory_space<vmem>>, vector<1x1x18x8xbf16>
    %396 = vector.shape_cast %395 : vector<1x1x18x8xbf16> to vector<18x8xbf16>
    %397 = vector.extract_strided_slice %396 {offsets = [0, 0], sizes = [16, 8], strides = [1, 1]} : vector<18x8xbf16> to vector<16x8xbf16>
    %cst_255 = arith.constant dense<0.000000e+00> : vector<16x8xf32>
    %398 = tpu.matmul %397, %3, %cst_255 {dimension_numbers = #tpu.dot_dimension_numbers<[1], [0], [0], [1], [0, 0, 1, 1], [], []>} : vector<16x8xbf16>, vector<8x8xbf16>, vector<16x8xf32> -> vector<16x8xf32>
    %399 = arith.addf %391, %398 : vector<16x8xf32>
    %400 = vector.extract_strided_slice %396 {offsets = [1, 0], sizes = [16, 8], strides = [1, 1]} : vector<18x8xbf16> to vector<16x8xbf16>
    %cst_256 = arith.constant dense<0.000000e+00> : vector<16x8xf32>
    %401 = tpu.matmul %400, %5, %cst_256 {dimension_numbers = #tpu.dot_dimension_numbers<[1], [0], [0], [1], [0, 0, 1, 1], [], []>} : vector<16x8xbf16>, vector<8x8xbf16>, vector<16x8xf32> -> vector<16x8xf32>
    %402 = arith.addf %399, %401 : vector<16x8xf32>
    %403 = vector.extract_strided_slice %396 {offsets = [2, 0], sizes = [16, 8], strides = [1, 1]} : vector<18x8xbf16> to vector<16x8xbf16>
    %cst_257 = arith.constant dense<0.000000e+00> : vector<16x8xf32>
    %404 = tpu.matmul %403, %7, %cst_257 {dimension_numbers = #tpu.dot_dimension_numbers<[1], [0], [0], [1], [0, 0, 1, 1], [], []>} : vector<16x8xbf16>, vector<8x8xbf16>, vector<16x8xf32> -> vector<16x8xf32>
    %405 = arith.addf %402, %404 : vector<16x8xf32>
    %c7_i32_258 = arith.constant 7 : i32
    %406 = arith.addi %0, %c7_i32_258 : i32
    %c1_i32_259 = arith.constant 1 : i32
    %407 = arith.addi %406, %c1_i32_259 : i32
    %c0_260 = arith.constant 0 : index
    %408 = arith.index_cast %407 : i32 to index
    %c0_261 = arith.constant 0 : index
    %c0_262 = arith.constant 0 : index
    %409 = vector.load %arg2[%c0_260, %408, %c0_261, %c0_262] : memref<1x18x18x8xbf16, #tpu.memory_space<vmem>>, vector<1x1x18x8xbf16>
    %410 = vector.shape_cast %409 : vector<1x1x18x8xbf16> to vector<18x8xbf16>
    %411 = vector.extract_strided_slice %410 {offsets = [0, 0], sizes = [16, 8], strides = [1, 1]} : vector<18x8xbf16> to vector<16x8xbf16>
    %cst_263 = arith.constant dense<0.000000e+00> : vector<16x8xf32>
    %412 = tpu.matmul %411, %9, %cst_263 {dimension_numbers = #tpu.dot_dimension_numbers<[1], [0], [0], [1], [0, 0, 1, 1], [], []>} : vector<16x8xbf16>, vector<8x8xbf16>, vector<16x8xf32> -> vector<16x8xf32>
    %413 = arith.addf %405, %412 : vector<16x8xf32>
    %414 = vector.extract_strided_slice %410 {offsets = [1, 0], sizes = [16, 8], strides = [1, 1]} : vector<18x8xbf16> to vector<16x8xbf16>
    %cst_264 = arith.constant dense<0.000000e+00> : vector<16x8xf32>
    %415 = tpu.matmul %414, %11, %cst_264 {dimension_numbers = #tpu.dot_dimension_numbers<[1], [0], [0], [1], [0, 0, 1, 1], [], []>} : vector<16x8xbf16>, vector<8x8xbf16>, vector<16x8xf32> -> vector<16x8xf32>
    %416 = arith.addf %413, %415 : vector<16x8xf32>
    %417 = vector.extract_strided_slice %410 {offsets = [2, 0], sizes = [16, 8], strides = [1, 1]} : vector<18x8xbf16> to vector<16x8xbf16>
    %cst_265 = arith.constant dense<0.000000e+00> : vector<16x8xf32>
    %418 = tpu.matmul %417, %13, %cst_265 {dimension_numbers = #tpu.dot_dimension_numbers<[1], [0], [0], [1], [0, 0, 1, 1], [], []>} : vector<16x8xbf16>, vector<8x8xbf16>, vector<16x8xf32> -> vector<16x8xf32>
    %419 = arith.addf %416, %418 : vector<16x8xf32>
    %c7_i32_266 = arith.constant 7 : i32
    %420 = arith.addi %0, %c7_i32_266 : i32
    %c2_i32_267 = arith.constant 2 : i32
    %421 = arith.addi %420, %c2_i32_267 : i32
    %c0_268 = arith.constant 0 : index
    %422 = arith.index_cast %421 : i32 to index
    %c0_269 = arith.constant 0 : index
    %c0_270 = arith.constant 0 : index
    %423 = vector.load %arg2[%c0_268, %422, %c0_269, %c0_270] : memref<1x18x18x8xbf16, #tpu.memory_space<vmem>>, vector<1x1x18x8xbf16>
    %424 = vector.shape_cast %423 : vector<1x1x18x8xbf16> to vector<18x8xbf16>
    %425 = vector.extract_strided_slice %424 {offsets = [0, 0], sizes = [16, 8], strides = [1, 1]} : vector<18x8xbf16> to vector<16x8xbf16>
    %cst_271 = arith.constant dense<0.000000e+00> : vector<16x8xf32>
    %426 = tpu.matmul %425, %15, %cst_271 {dimension_numbers = #tpu.dot_dimension_numbers<[1], [0], [0], [1], [0, 0, 1, 1], [], []>} : vector<16x8xbf16>, vector<8x8xbf16>, vector<16x8xf32> -> vector<16x8xf32>
    %427 = arith.addf %419, %426 : vector<16x8xf32>
    %428 = vector.extract_strided_slice %424 {offsets = [1, 0], sizes = [16, 8], strides = [1, 1]} : vector<18x8xbf16> to vector<16x8xbf16>
    %cst_272 = arith.constant dense<0.000000e+00> : vector<16x8xf32>
    %429 = tpu.matmul %428, %17, %cst_272 {dimension_numbers = #tpu.dot_dimension_numbers<[1], [0], [0], [1], [0, 0, 1, 1], [], []>} : vector<16x8xbf16>, vector<8x8xbf16>, vector<16x8xf32> -> vector<16x8xf32>
    %430 = arith.addf %427, %429 : vector<16x8xf32>
    %431 = vector.extract_strided_slice %424 {offsets = [2, 0], sizes = [16, 8], strides = [1, 1]} : vector<18x8xbf16> to vector<16x8xbf16>
    %cst_273 = arith.constant dense<0.000000e+00> : vector<16x8xf32>
    %432 = tpu.matmul %431, %19, %cst_273 {dimension_numbers = #tpu.dot_dimension_numbers<[1], [0], [0], [1], [0, 0, 1, 1], [], []>} : vector<16x8xbf16>, vector<8x8xbf16>, vector<16x8xf32> -> vector<16x8xf32>
    %433 = arith.addf %430, %432 : vector<16x8xf32>
    %434 = vector.broadcast %1 : vector<1x8xf32> to vector<16x8xf32>
    %435 = arith.addf %433, %434 : vector<16x8xf32>
    %cst_274 = arith.constant 0.000000e+00 : f32
    %436 = vector.broadcast %cst_274 : f32 to vector<16x8xf32>
    %437 = arith.maximumf %435, %436 : vector<16x8xf32>
    %c0_275 = arith.constant 0 : index
    %c7_276 = arith.constant 7 : index
    %c0_277 = arith.constant 0 : index
    %c0_278 = arith.constant 0 : index
    %438 = vector.load %arg3[%c0_275, %c7_276, %c0_277, %c0_278] : memref<1x16x16x8xf32, #tpu.memory_space<vmem>>, vector<1x1x16x8xf32>
    %439 = vector.shape_cast %438 : vector<1x1x16x8xf32> to vector<16x8xf32>
    %440 = arith.addf %437, %439 : vector<16x8xf32>
    %c0_279 = arith.constant 0 : index
    %c7_280 = arith.constant 7 : index
    %c0_281 = arith.constant 0 : index
    %c0_282 = arith.constant 0 : index
    %441 = vector.load %arg6[%c0_279, %c7_280, %c0_281, %c0_282] : memref<1x16x16x8xf32, #tpu.memory_space<vmem>>, vector<1x1x16x8xf32>
    %442 = vector.shape_cast %441 : vector<1x1x16x8xf32> to vector<16x8xf32>
    %443 = vector.shape_cast %440 : vector<16x8xf32> to vector<1x1x16x8xf32>
    tpu.vector_store %arg6[%c0_279, %c7_280, %c0_281, %c0_282], %443 {strides = array<i32>} : memref<1x16x16x8xf32, #tpu.memory_space<vmem>>, vector<1x1x16x8xf32>,
    %cst_283 = arith.constant 0.000000e+00 : f32
    %444 = vector.broadcast %cst_283 : f32 to vector<16x8xf32>
    %c8_i32 = arith.constant 8 : i32
    %445 = arith.addi %0, %c8_i32 : i32
    %c0_i32_284 = arith.constant 0 : i32
    %446 = arith.addi %445, %c0_i32_284 : i32
    %c0_285 = arith.constant 0 : index
    %447 = arith.index_cast %446 : i32 to index
    %c0_286 = arith.constant 0 : index
    %c0_287 = arith.constant 0 : index
    %448 = vector.load %arg2[%c0_285, %447, %c0_286, %c0_287] : memref<1x18x18x8xbf16, #tpu.memory_space<vmem>>, vector<1x1x18x8xbf16>
    %449 = vector.shape_cast %448 : vector<1x1x18x8xbf16> to vector<18x8xbf16>
    %450 = vector.extract_strided_slice %449 {offsets = [0, 0], sizes = [16, 8], strides = [1, 1]} : vector<18x8xbf16> to vector<16x8xbf16>
    %cst_288 = arith.constant dense<0.000000e+00> : vector<16x8xf32>
    %451 = tpu.matmul %450, %3, %cst_288 {dimension_numbers = #tpu.dot_dimension_numbers<[1], [0], [0], [1], [0, 0, 1, 1], [], []>} : vector<16x8xbf16>, vector<8x8xbf16>, vector<16x8xf32> -> vector<16x8xf32>
    %452 = arith.addf %444, %451 : vector<16x8xf32>
    %453 = vector.extract_strided_slice %449 {offsets = [1, 0], sizes = [16, 8], strides = [1, 1]} : vector<18x8xbf16> to vector<16x8xbf16>
    %cst_289 = arith.constant dense<0.000000e+00> : vector<16x8xf32>
    %454 = tpu.matmul %453, %5, %cst_289 {dimension_numbers = #tpu.dot_dimension_numbers<[1], [0], [0], [1], [0, 0, 1, 1], [], []>} : vector<16x8xbf16>, vector<8x8xbf16>, vector<16x8xf32> -> vector<16x8xf32>
    %455 = arith.addf %452, %454 : vector<16x8xf32>
    %456 = vector.extract_strided_slice %449 {offsets = [2, 0], sizes = [16, 8], strides = [1, 1]} : vector<18x8xbf16> to vector<16x8xbf16>
    %cst_290 = arith.constant dense<0.000000e+00> : vector<16x8xf32>
    %457 = tpu.matmul %456, %7, %cst_290 {dimension_numbers = #tpu.dot_dimension_numbers<[1], [0], [0], [1], [0, 0, 1, 1], [], []>} : vector<16x8xbf16>, vector<8x8xbf16>, vector<16x8xf32> -> vector<16x8xf32>
    %458 = arith.addf %455, %457 : vector<16x8xf32>
    %c8_i32_291 = arith.constant 8 : i32
    %459 = arith.addi %0, %c8_i32_291 : i32
    %c1_i32_292 = arith.constant 1 : i32
    %460 = arith.addi %459, %c1_i32_292 : i32
    %c0_293 = arith.constant 0 : index
    %461 = arith.index_cast %460 : i32 to index
    %c0_294 = arith.constant 0 : index
    %c0_295 = arith.constant 0 : index
    %462 = vector.load %arg2[%c0_293, %461, %c0_294, %c0_295] : memref<1x18x18x8xbf16, #tpu.memory_space<vmem>>, vector<1x1x18x8xbf16>
    %463 = vector.shape_cast %462 : vector<1x1x18x8xbf16> to vector<18x8xbf16>
    %464 = vector.extract_strided_slice %463 {offsets = [0, 0], sizes = [16, 8], strides = [1, 1]} : vector<18x8xbf16> to vector<16x8xbf16>
    %cst_296 = arith.constant dense<0.000000e+00> : vector<16x8xf32>
    %465 = tpu.matmul %464, %9, %cst_296 {dimension_numbers = #tpu.dot_dimension_numbers<[1], [0], [0], [1], [0, 0, 1, 1], [], []>} : vector<16x8xbf16>, vector<8x8xbf16>, vector<16x8xf32> -> vector<16x8xf32>
    %466 = arith.addf %458, %465 : vector<16x8xf32>
    %467 = vector.extract_strided_slice %463 {offsets = [1, 0], sizes = [16, 8], strides = [1, 1]} : vector<18x8xbf16> to vector<16x8xbf16>
    %cst_297 = arith.constant dense<0.000000e+00> : vector<16x8xf32>
    %468 = tpu.matmul %467, %11, %cst_297 {dimension_numbers = #tpu.dot_dimension_numbers<[1], [0], [0], [1], [0, 0, 1, 1], [], []>} : vector<16x8xbf16>, vector<8x8xbf16>, vector<16x8xf32> -> vector<16x8xf32>
    %469 = arith.addf %466, %468 : vector<16x8xf32>
    %470 = vector.extract_strided_slice %463 {offsets = [2, 0], sizes = [16, 8], strides = [1, 1]} : vector<18x8xbf16> to vector<16x8xbf16>
    %cst_298 = arith.constant dense<0.000000e+00> : vector<16x8xf32>
    %471 = tpu.matmul %470, %13, %cst_298 {dimension_numbers = #tpu.dot_dimension_numbers<[1], [0], [0], [1], [0, 0, 1, 1], [], []>} : vector<16x8xbf16>, vector<8x8xbf16>, vector<16x8xf32> -> vector<16x8xf32>
    %472 = arith.addf %469, %471 : vector<16x8xf32>
    %c8_i32_299 = arith.constant 8 : i32
    %473 = arith.addi %0, %c8_i32_299 : i32
    %c2_i32_300 = arith.constant 2 : i32
    %474 = arith.addi %473, %c2_i32_300 : i32
    %c0_301 = arith.constant 0 : index
    %475 = arith.index_cast %474 : i32 to index
    %c0_302 = arith.constant 0 : index
    %c0_303 = arith.constant 0 : index
    %476 = vector.load %arg2[%c0_301, %475, %c0_302, %c0_303] : memref<1x18x18x8xbf16, #tpu.memory_space<vmem>>, vector<1x1x18x8xbf16>
    %477 = vector.shape_cast %476 : vector<1x1x18x8xbf16> to vector<18x8xbf16>
    %478 = vector.extract_strided_slice %477 {offsets = [0, 0], sizes = [16, 8], strides = [1, 1]} : vector<18x8xbf16> to vector<16x8xbf16>
    %cst_304 = arith.constant dense<0.000000e+00> : vector<16x8xf32>
    %479 = tpu.matmul %478, %15, %cst_304 {dimension_numbers = #tpu.dot_dimension_numbers<[1], [0], [0], [1], [0, 0, 1, 1], [], []>} : vector<16x8xbf16>, vector<8x8xbf16>, vector<16x8xf32> -> vector<16x8xf32>
    %480 = arith.addf %472, %479 : vector<16x8xf32>
    %481 = vector.extract_strided_slice %477 {offsets = [1, 0], sizes = [16, 8], strides = [1, 1]} : vector<18x8xbf16> to vector<16x8xbf16>
    %cst_305 = arith.constant dense<0.000000e+00> : vector<16x8xf32>
    %482 = tpu.matmul %481, %17, %cst_305 {dimension_numbers = #tpu.dot_dimension_numbers<[1], [0], [0], [1], [0, 0, 1, 1], [], []>} : vector<16x8xbf16>, vector<8x8xbf16>, vector<16x8xf32> -> vector<16x8xf32>
    %483 = arith.addf %480, %482 : vector<16x8xf32>
    %484 = vector.extract_strided_slice %477 {offsets = [2, 0], sizes = [16, 8], strides = [1, 1]} : vector<18x8xbf16> to vector<16x8xbf16>
    %cst_306 = arith.constant dense<0.000000e+00> : vector<16x8xf32>
    %485 = tpu.matmul %484, %19, %cst_306 {dimension_numbers = #tpu.dot_dimension_numbers<[1], [0], [0], [1], [0, 0, 1, 1], [], []>} : vector<16x8xbf16>, vector<8x8xbf16>, vector<16x8xf32> -> vector<16x8xf32>
    %486 = arith.addf %483, %485 : vector<16x8xf32>
    %487 = vector.broadcast %1 : vector<1x8xf32> to vector<16x8xf32>
    %488 = arith.addf %486, %487 : vector<16x8xf32>
    %cst_307 = arith.constant 0.000000e+00 : f32
    %489 = vector.broadcast %cst_307 : f32 to vector<16x8xf32>
    %490 = arith.maximumf %488, %489 : vector<16x8xf32>
    %c0_308 = arith.constant 0 : index
    %c8_309 = arith.constant 8 : index
    %c0_310 = arith.constant 0 : index
    %c0_311 = arith.constant 0 : index
    %491 = vector.load %arg3[%c0_308, %c8_309, %c0_310, %c0_311] : memref<1x16x16x8xf32, #tpu.memory_space<vmem>>, vector<1x1x16x8xf32>
    %492 = vector.shape_cast %491 : vector<1x1x16x8xf32> to vector<16x8xf32>
    %493 = arith.addf %490, %492 : vector<16x8xf32>
    %c0_312 = arith.constant 0 : index
    %c8_313 = arith.constant 8 : index
    %c0_314 = arith.constant 0 : index
    %c0_315 = arith.constant 0 : index
    %494 = vector.load %arg6[%c0_312, %c8_313, %c0_314, %c0_315] : memref<1x16x16x8xf32, #tpu.memory_space<vmem>>, vector<1x1x16x8xf32>
    %495 = vector.shape_cast %494 : vector<1x1x16x8xf32> to vector<16x8xf32>
    %496 = vector.shape_cast %493 : vector<16x8xf32> to vector<1x1x16x8xf32>
    tpu.vector_store %arg6[%c0_312, %c8_313, %c0_314, %c0_315], %496 {strides = array<i32>} : memref<1x16x16x8xf32, #tpu.memory_space<vmem>>, vector<1x1x16x8xf32>,
    %cst_316 = arith.constant 0.000000e+00 : f32
    %497 = vector.broadcast %cst_316 : f32 to vector<16x8xf32>
    %c9_i32 = arith.constant 9 : i32
    %498 = arith.addi %0, %c9_i32 : i32
    %c0_i32_317 = arith.constant 0 : i32
    %499 = arith.addi %498, %c0_i32_317 : i32
    %c0_318 = arith.constant 0 : index
    %500 = arith.index_cast %499 : i32 to index
    %c0_319 = arith.constant 0 : index
    %c0_320 = arith.constant 0 : index
    %501 = vector.load %arg2[%c0_318, %500, %c0_319, %c0_320] : memref<1x18x18x8xbf16, #tpu.memory_space<vmem>>, vector<1x1x18x8xbf16>
    %502 = vector.shape_cast %501 : vector<1x1x18x8xbf16> to vector<18x8xbf16>
    %503 = vector.extract_strided_slice %502 {offsets = [0, 0], sizes = [16, 8], strides = [1, 1]} : vector<18x8xbf16> to vector<16x8xbf16>
    %cst_321 = arith.constant dense<0.000000e+00> : vector<16x8xf32>
    %504 = tpu.matmul %503, %3, %cst_321 {dimension_numbers = #tpu.dot_dimension_numbers<[1], [0], [0], [1], [0, 0, 1, 1], [], []>} : vector<16x8xbf16>, vector<8x8xbf16>, vector<16x8xf32> -> vector<16x8xf32>
    %505 = arith.addf %497, %504 : vector<16x8xf32>
    %506 = vector.extract_strided_slice %502 {offsets = [1, 0], sizes = [16, 8], strides = [1, 1]} : vector<18x8xbf16> to vector<16x8xbf16>
    %cst_322 = arith.constant dense<0.000000e+00> : vector<16x8xf32>
    %507 = tpu.matmul %506, %5, %cst_322 {dimension_numbers = #tpu.dot_dimension_numbers<[1], [0], [0], [1], [0, 0, 1, 1], [], []>} : vector<16x8xbf16>, vector<8x8xbf16>, vector<16x8xf32> -> vector<16x8xf32>
    %508 = arith.addf %505, %507 : vector<16x8xf32>
    %509 = vector.extract_strided_slice %502 {offsets = [2, 0], sizes = [16, 8], strides = [1, 1]} : vector<18x8xbf16> to vector<16x8xbf16>
    %cst_323 = arith.constant dense<0.000000e+00> : vector<16x8xf32>
    %510 = tpu.matmul %509, %7, %cst_323 {dimension_numbers = #tpu.dot_dimension_numbers<[1], [0], [0], [1], [0, 0, 1, 1], [], []>} : vector<16x8xbf16>, vector<8x8xbf16>, vector<16x8xf32> -> vector<16x8xf32>
    %511 = arith.addf %508, %510 : vector<16x8xf32>
    %c9_i32_324 = arith.constant 9 : i32
    %512 = arith.addi %0, %c9_i32_324 : i32
    %c1_i32_325 = arith.constant 1 : i32
    %513 = arith.addi %512, %c1_i32_325 : i32
    %c0_326 = arith.constant 0 : index
    %514 = arith.index_cast %513 : i32 to index
    %c0_327 = arith.constant 0 : index
    %c0_328 = arith.constant 0 : index
    %515 = vector.load %arg2[%c0_326, %514, %c0_327, %c0_328] : memref<1x18x18x8xbf16, #tpu.memory_space<vmem>>, vector<1x1x18x8xbf16>
    %516 = vector.shape_cast %515 : vector<1x1x18x8xbf16> to vector<18x8xbf16>
    %517 = vector.extract_strided_slice %516 {offsets = [0, 0], sizes = [16, 8], strides = [1, 1]} : vector<18x8xbf16> to vector<16x8xbf16>
    %cst_329 = arith.constant dense<0.000000e+00> : vector<16x8xf32>
    %518 = tpu.matmul %517, %9, %cst_329 {dimension_numbers = #tpu.dot_dimension_numbers<[1], [0], [0], [1], [0, 0, 1, 1], [], []>} : vector<16x8xbf16>, vector<8x8xbf16>, vector<16x8xf32> -> vector<16x8xf32>
    %519 = arith.addf %511, %518 : vector<16x8xf32>
    %520 = vector.extract_strided_slice %516 {offsets = [1, 0], sizes = [16, 8], strides = [1, 1]} : vector<18x8xbf16> to vector<16x8xbf16>
    %cst_330 = arith.constant dense<0.000000e+00> : vector<16x8xf32>
    %521 = tpu.matmul %520, %11, %cst_330 {dimension_numbers = #tpu.dot_dimension_numbers<[1], [0], [0], [1], [0, 0, 1, 1], [], []>} : vector<16x8xbf16>, vector<8x8xbf16>, vector<16x8xf32> -> vector<16x8xf32>
    %522 = arith.addf %519, %521 : vector<16x8xf32>
    %523 = vector.extract_strided_slice %516 {offsets = [2, 0], sizes = [16, 8], strides = [1, 1]} : vector<18x8xbf16> to vector<16x8xbf16>
    %cst_331 = arith.constant dense<0.000000e+00> : vector<16x8xf32>
    %524 = tpu.matmul %523, %13, %cst_331 {dimension_numbers = #tpu.dot_dimension_numbers<[1], [0], [0], [1], [0, 0, 1, 1], [], []>} : vector<16x8xbf16>, vector<8x8xbf16>, vector<16x8xf32> -> vector<16x8xf32>
    %525 = arith.addf %522, %524 : vector<16x8xf32>
    %c9_i32_332 = arith.constant 9 : i32
    %526 = arith.addi %0, %c9_i32_332 : i32
    %c2_i32_333 = arith.constant 2 : i32
    %527 = arith.addi %526, %c2_i32_333 : i32
    %c0_334 = arith.constant 0 : index
    %528 = arith.index_cast %527 : i32 to index
    %c0_335 = arith.constant 0 : index
    %c0_336 = arith.constant 0 : index
    %529 = vector.load %arg2[%c0_334, %528, %c0_335, %c0_336] : memref<1x18x18x8xbf16, #tpu.memory_space<vmem>>, vector<1x1x18x8xbf16>
    %530 = vector.shape_cast %529 : vector<1x1x18x8xbf16> to vector<18x8xbf16>
    %531 = vector.extract_strided_slice %530 {offsets = [0, 0], sizes = [16, 8], strides = [1, 1]} : vector<18x8xbf16> to vector<16x8xbf16>
    %cst_337 = arith.constant dense<0.000000e+00> : vector<16x8xf32>
    %532 = tpu.matmul %531, %15, %cst_337 {dimension_numbers = #tpu.dot_dimension_numbers<[1], [0], [0], [1], [0, 0, 1, 1], [], []>} : vector<16x8xbf16>, vector<8x8xbf16>, vector<16x8xf32> -> vector<16x8xf32>
    %533 = arith.addf %525, %532 : vector<16x8xf32>
    %534 = vector.extract_strided_slice %530 {offsets = [1, 0], sizes = [16, 8], strides = [1, 1]} : vector<18x8xbf16> to vector<16x8xbf16>
    %cst_338 = arith.constant dense<0.000000e+00> : vector<16x8xf32>
    %535 = tpu.matmul %534, %17, %cst_338 {dimension_numbers = #tpu.dot_dimension_numbers<[1], [0], [0], [1], [0, 0, 1, 1], [], []>} : vector<16x8xbf16>, vector<8x8xbf16>, vector<16x8xf32> -> vector<16x8xf32>
    %536 = arith.addf %533, %535 : vector<16x8xf32>
    %537 = vector.extract_strided_slice %530 {offsets = [2, 0], sizes = [16, 8], strides = [1, 1]} : vector<18x8xbf16> to vector<16x8xbf16>
    %cst_339 = arith.constant dense<0.000000e+00> : vector<16x8xf32>
    %538 = tpu.matmul %537, %19, %cst_339 {dimension_numbers = #tpu.dot_dimension_numbers<[1], [0], [0], [1], [0, 0, 1, 1], [], []>} : vector<16x8xbf16>, vector<8x8xbf16>, vector<16x8xf32> -> vector<16x8xf32>
    %539 = arith.addf %536, %538 : vector<16x8xf32>
    %540 = vector.broadcast %1 : vector<1x8xf32> to vector<16x8xf32>
    %541 = arith.addf %539, %540 : vector<16x8xf32>
    %cst_340 = arith.constant 0.000000e+00 : f32
    %542 = vector.broadcast %cst_340 : f32 to vector<16x8xf32>
    %543 = arith.maximumf %541, %542 : vector<16x8xf32>
    %c0_341 = arith.constant 0 : index
    %c9 = arith.constant 9 : index
    %c0_342 = arith.constant 0 : index
    %c0_343 = arith.constant 0 : index
    %544 = vector.load %arg3[%c0_341, %c9, %c0_342, %c0_343] : memref<1x16x16x8xf32, #tpu.memory_space<vmem>>, vector<1x1x16x8xf32>
    %545 = vector.shape_cast %544 : vector<1x1x16x8xf32> to vector<16x8xf32>
    %546 = arith.addf %543, %545 : vector<16x8xf32>
    %c0_344 = arith.constant 0 : index
    %c9_345 = arith.constant 9 : index
    %c0_346 = arith.constant 0 : index
    %c0_347 = arith.constant 0 : index
    %547 = vector.load %arg6[%c0_344, %c9_345, %c0_346, %c0_347] : memref<1x16x16x8xf32, #tpu.memory_space<vmem>>, vector<1x1x16x8xf32>
    %548 = vector.shape_cast %547 : vector<1x1x16x8xf32> to vector<16x8xf32>
    %549 = vector.shape_cast %546 : vector<16x8xf32> to vector<1x1x16x8xf32>
    tpu.vector_store %arg6[%c0_344, %c9_345, %c0_346, %c0_347], %549 {strides = array<i32>} : memref<1x16x16x8xf32, #tpu.memory_space<vmem>>, vector<1x1x16x8xf32>,
    %cst_348 = arith.constant 0.000000e+00 : f32
    %550 = vector.broadcast %cst_348 : f32 to vector<16x8xf32>
    %c10_i32 = arith.constant 10 : i32
    %551 = arith.addi %0, %c10_i32 : i32
    %c0_i32_349 = arith.constant 0 : i32
    %552 = arith.addi %551, %c0_i32_349 : i32
    %c0_350 = arith.constant 0 : index
    %553 = arith.index_cast %552 : i32 to index
    %c0_351 = arith.constant 0 : index
    %c0_352 = arith.constant 0 : index
    %554 = vector.load %arg2[%c0_350, %553, %c0_351, %c0_352] : memref<1x18x18x8xbf16, #tpu.memory_space<vmem>>, vector<1x1x18x8xbf16>
    %555 = vector.shape_cast %554 : vector<1x1x18x8xbf16> to vector<18x8xbf16>
    %556 = vector.extract_strided_slice %555 {offsets = [0, 0], sizes = [16, 8], strides = [1, 1]} : vector<18x8xbf16> to vector<16x8xbf16>
    %cst_353 = arith.constant dense<0.000000e+00> : vector<16x8xf32>
    %557 = tpu.matmul %556, %3, %cst_353 {dimension_numbers = #tpu.dot_dimension_numbers<[1], [0], [0], [1], [0, 0, 1, 1], [], []>} : vector<16x8xbf16>, vector<8x8xbf16>, vector<16x8xf32> -> vector<16x8xf32>
    %558 = arith.addf %550, %557 : vector<16x8xf32>
    %559 = vector.extract_strided_slice %555 {offsets = [1, 0], sizes = [16, 8], strides = [1, 1]} : vector<18x8xbf16> to vector<16x8xbf16>
    %cst_354 = arith.constant dense<0.000000e+00> : vector<16x8xf32>
    %560 = tpu.matmul %559, %5, %cst_354 {dimension_numbers = #tpu.dot_dimension_numbers<[1], [0], [0], [1], [0, 0, 1, 1], [], []>} : vector<16x8xbf16>, vector<8x8xbf16>, vector<16x8xf32> -> vector<16x8xf32>
    %561 = arith.addf %558, %560 : vector<16x8xf32>
    %562 = vector.extract_strided_slice %555 {offsets = [2, 0], sizes = [16, 8], strides = [1, 1]} : vector<18x8xbf16> to vector<16x8xbf16>
    %cst_355 = arith.constant dense<0.000000e+00> : vector<16x8xf32>
    %563 = tpu.matmul %562, %7, %cst_355 {dimension_numbers = #tpu.dot_dimension_numbers<[1], [0], [0], [1], [0, 0, 1, 1], [], []>} : vector<16x8xbf16>, vector<8x8xbf16>, vector<16x8xf32> -> vector<16x8xf32>
    %564 = arith.addf %561, %563 : vector<16x8xf32>
    %c10_i32_356 = arith.constant 10 : i32
    %565 = arith.addi %0, %c10_i32_356 : i32
    %c1_i32_357 = arith.constant 1 : i32
    %566 = arith.addi %565, %c1_i32_357 : i32
    %c0_358 = arith.constant 0 : index
    %567 = arith.index_cast %566 : i32 to index
    %c0_359 = arith.constant 0 : index
    %c0_360 = arith.constant 0 : index
    %568 = vector.load %arg2[%c0_358, %567, %c0_359, %c0_360] : memref<1x18x18x8xbf16, #tpu.memory_space<vmem>>, vector<1x1x18x8xbf16>
    %569 = vector.shape_cast %568 : vector<1x1x18x8xbf16> to vector<18x8xbf16>
    %570 = vector.extract_strided_slice %569 {offsets = [0, 0], sizes = [16, 8], strides = [1, 1]} : vector<18x8xbf16> to vector<16x8xbf16>
    %cst_361 = arith.constant dense<0.000000e+00> : vector<16x8xf32>
    %571 = tpu.matmul %570, %9, %cst_361 {dimension_numbers = #tpu.dot_dimension_numbers<[1], [0], [0], [1], [0, 0, 1, 1], [], []>} : vector<16x8xbf16>, vector<8x8xbf16>, vector<16x8xf32> -> vector<16x8xf32>
    %572 = arith.addf %564, %571 : vector<16x8xf32>
    %573 = vector.extract_strided_slice %569 {offsets = [1, 0], sizes = [16, 8], strides = [1, 1]} : vector<18x8xbf16> to vector<16x8xbf16>
    %cst_362 = arith.constant dense<0.000000e+00> : vector<16x8xf32>
    %574 = tpu.matmul %573, %11, %cst_362 {dimension_numbers = #tpu.dot_dimension_numbers<[1], [0], [0], [1], [0, 0, 1, 1], [], []>} : vector<16x8xbf16>, vector<8x8xbf16>, vector<16x8xf32> -> vector<16x8xf32>
    %575 = arith.addf %572, %574 : vector<16x8xf32>
    %576 = vector.extract_strided_slice %569 {offsets = [2, 0], sizes = [16, 8], strides = [1, 1]} : vector<18x8xbf16> to vector<16x8xbf16>
    %cst_363 = arith.constant dense<0.000000e+00> : vector<16x8xf32>
    %577 = tpu.matmul %576, %13, %cst_363 {dimension_numbers = #tpu.dot_dimension_numbers<[1], [0], [0], [1], [0, 0, 1, 1], [], []>} : vector<16x8xbf16>, vector<8x8xbf16>, vector<16x8xf32> -> vector<16x8xf32>
    %578 = arith.addf %575, %577 : vector<16x8xf32>
    %c10_i32_364 = arith.constant 10 : i32
    %579 = arith.addi %0, %c10_i32_364 : i32
    %c2_i32_365 = arith.constant 2 : i32
    %580 = arith.addi %579, %c2_i32_365 : i32
    %c0_366 = arith.constant 0 : index
    %581 = arith.index_cast %580 : i32 to index
    %c0_367 = arith.constant 0 : index
    %c0_368 = arith.constant 0 : index
    %582 = vector.load %arg2[%c0_366, %581, %c0_367, %c0_368] : memref<1x18x18x8xbf16, #tpu.memory_space<vmem>>, vector<1x1x18x8xbf16>
    %583 = vector.shape_cast %582 : vector<1x1x18x8xbf16> to vector<18x8xbf16>
    %584 = vector.extract_strided_slice %583 {offsets = [0, 0], sizes = [16, 8], strides = [1, 1]} : vector<18x8xbf16> to vector<16x8xbf16>
    %cst_369 = arith.constant dense<0.000000e+00> : vector<16x8xf32>
    %585 = tpu.matmul %584, %15, %cst_369 {dimension_numbers = #tpu.dot_dimension_numbers<[1], [0], [0], [1], [0, 0, 1, 1], [], []>} : vector<16x8xbf16>, vector<8x8xbf16>, vector<16x8xf32> -> vector<16x8xf32>
    %586 = arith.addf %578, %585 : vector<16x8xf32>
    %587 = vector.extract_strided_slice %583 {offsets = [1, 0], sizes = [16, 8], strides = [1, 1]} : vector<18x8xbf16> to vector<16x8xbf16>
    %cst_370 = arith.constant dense<0.000000e+00> : vector<16x8xf32>
    %588 = tpu.matmul %587, %17, %cst_370 {dimension_numbers = #tpu.dot_dimension_numbers<[1], [0], [0], [1], [0, 0, 1, 1], [], []>} : vector<16x8xbf16>, vector<8x8xbf16>, vector<16x8xf32> -> vector<16x8xf32>
    %589 = arith.addf %586, %588 : vector<16x8xf32>
    %590 = vector.extract_strided_slice %583 {offsets = [2, 0], sizes = [16, 8], strides = [1, 1]} : vector<18x8xbf16> to vector<16x8xbf16>
    %cst_371 = arith.constant dense<0.000000e+00> : vector<16x8xf32>
    %591 = tpu.matmul %590, %19, %cst_371 {dimension_numbers = #tpu.dot_dimension_numbers<[1], [0], [0], [1], [0, 0, 1, 1], [], []>} : vector<16x8xbf16>, vector<8x8xbf16>, vector<16x8xf32> -> vector<16x8xf32>
    %592 = arith.addf %589, %591 : vector<16x8xf32>
    %593 = vector.broadcast %1 : vector<1x8xf32> to vector<16x8xf32>
    %594 = arith.addf %592, %593 : vector<16x8xf32>
    %cst_372 = arith.constant 0.000000e+00 : f32
    %595 = vector.broadcast %cst_372 : f32 to vector<16x8xf32>
    %596 = arith.maximumf %594, %595 : vector<16x8xf32>
    %c0_373 = arith.constant 0 : index
    %c10 = arith.constant 10 : index
    %c0_374 = arith.constant 0 : index
    %c0_375 = arith.constant 0 : index
    %597 = vector.load %arg3[%c0_373, %c10, %c0_374, %c0_375] : memref<1x16x16x8xf32, #tpu.memory_space<vmem>>, vector<1x1x16x8xf32>
    %598 = vector.shape_cast %597 : vector<1x1x16x8xf32> to vector<16x8xf32>
    %599 = arith.addf %596, %598 : vector<16x8xf32>
    %c0_376 = arith.constant 0 : index
    %c10_377 = arith.constant 10 : index
    %c0_378 = arith.constant 0 : index
    %c0_379 = arith.constant 0 : index
    %600 = vector.load %arg6[%c0_376, %c10_377, %c0_378, %c0_379] : memref<1x16x16x8xf32, #tpu.memory_space<vmem>>, vector<1x1x16x8xf32>
    %601 = vector.shape_cast %600 : vector<1x1x16x8xf32> to vector<16x8xf32>
    %602 = vector.shape_cast %599 : vector<16x8xf32> to vector<1x1x16x8xf32>
    tpu.vector_store %arg6[%c0_376, %c10_377, %c0_378, %c0_379], %602 {strides = array<i32>} : memref<1x16x16x8xf32, #tpu.memory_space<vmem>>, vector<1x1x16x8xf32>,
    %cst_380 = arith.constant 0.000000e+00 : f32
    %603 = vector.broadcast %cst_380 : f32 to vector<16x8xf32>
    %c11_i32 = arith.constant 11 : i32
    %604 = arith.addi %0, %c11_i32 : i32
    %c0_i32_381 = arith.constant 0 : i32
    %605 = arith.addi %604, %c0_i32_381 : i32
    %c0_382 = arith.constant 0 : index
    %606 = arith.index_cast %605 : i32 to index
    %c0_383 = arith.constant 0 : index
    %c0_384 = arith.constant 0 : index
    %607 = vector.load %arg2[%c0_382, %606, %c0_383, %c0_384] : memref<1x18x18x8xbf16, #tpu.memory_space<vmem>>, vector<1x1x18x8xbf16>
    %608 = vector.shape_cast %607 : vector<1x1x18x8xbf16> to vector<18x8xbf16>
    %609 = vector.extract_strided_slice %608 {offsets = [0, 0], sizes = [16, 8], strides = [1, 1]} : vector<18x8xbf16> to vector<16x8xbf16>
    %cst_385 = arith.constant dense<0.000000e+00> : vector<16x8xf32>
    %610 = tpu.matmul %609, %3, %cst_385 {dimension_numbers = #tpu.dot_dimension_numbers<[1], [0], [0], [1], [0, 0, 1, 1], [], []>} : vector<16x8xbf16>, vector<8x8xbf16>, vector<16x8xf32> -> vector<16x8xf32>
    %611 = arith.addf %603, %610 : vector<16x8xf32>
    %612 = vector.extract_strided_slice %608 {offsets = [1, 0], sizes = [16, 8], strides = [1, 1]} : vector<18x8xbf16> to vector<16x8xbf16>
    %cst_386 = arith.constant dense<0.000000e+00> : vector<16x8xf32>
    %613 = tpu.matmul %612, %5, %cst_386 {dimension_numbers = #tpu.dot_dimension_numbers<[1], [0], [0], [1], [0, 0, 1, 1], [], []>} : vector<16x8xbf16>, vector<8x8xbf16>, vector<16x8xf32> -> vector<16x8xf32>
    %614 = arith.addf %611, %613 : vector<16x8xf32>
    %615 = vector.extract_strided_slice %608 {offsets = [2, 0], sizes = [16, 8], strides = [1, 1]} : vector<18x8xbf16> to vector<16x8xbf16>
    %cst_387 = arith.constant dense<0.000000e+00> : vector<16x8xf32>
    %616 = tpu.matmul %615, %7, %cst_387 {dimension_numbers = #tpu.dot_dimension_numbers<[1], [0], [0], [1], [0, 0, 1, 1], [], []>} : vector<16x8xbf16>, vector<8x8xbf16>, vector<16x8xf32> -> vector<16x8xf32>
    %617 = arith.addf %614, %616 : vector<16x8xf32>
    %c11_i32_388 = arith.constant 11 : i32
    %618 = arith.addi %0, %c11_i32_388 : i32
    %c1_i32_389 = arith.constant 1 : i32
    %619 = arith.addi %618, %c1_i32_389 : i32
    %c0_390 = arith.constant 0 : index
    %620 = arith.index_cast %619 : i32 to index
    %c0_391 = arith.constant 0 : index
    %c0_392 = arith.constant 0 : index
    %621 = vector.load %arg2[%c0_390, %620, %c0_391, %c0_392] : memref<1x18x18x8xbf16, #tpu.memory_space<vmem>>, vector<1x1x18x8xbf16>
    %622 = vector.shape_cast %621 : vector<1x1x18x8xbf16> to vector<18x8xbf16>
    %623 = vector.extract_strided_slice %622 {offsets = [0, 0], sizes = [16, 8], strides = [1, 1]} : vector<18x8xbf16> to vector<16x8xbf16>
    %cst_393 = arith.constant dense<0.000000e+00> : vector<16x8xf32>
    %624 = tpu.matmul %623, %9, %cst_393 {dimension_numbers = #tpu.dot_dimension_numbers<[1], [0], [0], [1], [0, 0, 1, 1], [], []>} : vector<16x8xbf16>, vector<8x8xbf16>, vector<16x8xf32> -> vector<16x8xf32>
    %625 = arith.addf %617, %624 : vector<16x8xf32>
    %626 = vector.extract_strided_slice %622 {offsets = [1, 0], sizes = [16, 8], strides = [1, 1]} : vector<18x8xbf16> to vector<16x8xbf16>
    %cst_394 = arith.constant dense<0.000000e+00> : vector<16x8xf32>
    %627 = tpu.matmul %626, %11, %cst_394 {dimension_numbers = #tpu.dot_dimension_numbers<[1], [0], [0], [1], [0, 0, 1, 1], [], []>} : vector<16x8xbf16>, vector<8x8xbf16>, vector<16x8xf32> -> vector<16x8xf32>
    %628 = arith.addf %625, %627 : vector<16x8xf32>
    %629 = vector.extract_strided_slice %622 {offsets = [2, 0], sizes = [16, 8], strides = [1, 1]} : vector<18x8xbf16> to vector<16x8xbf16>
    %cst_395 = arith.constant dense<0.000000e+00> : vector<16x8xf32>
    %630 = tpu.matmul %629, %13, %cst_395 {dimension_numbers = #tpu.dot_dimension_numbers<[1], [0], [0], [1], [0, 0, 1, 1], [], []>} : vector<16x8xbf16>, vector<8x8xbf16>, vector<16x8xf32> -> vector<16x8xf32>
    %631 = arith.addf %628, %630 : vector<16x8xf32>
    %c11_i32_396 = arith.constant 11 : i32
    %632 = arith.addi %0, %c11_i32_396 : i32
    %c2_i32_397 = arith.constant 2 : i32
    %633 = arith.addi %632, %c2_i32_397 : i32
    %c0_398 = arith.constant 0 : index
    %634 = arith.index_cast %633 : i32 to index
    %c0_399 = arith.constant 0 : index
    %c0_400 = arith.constant 0 : index
    %635 = vector.load %arg2[%c0_398, %634, %c0_399, %c0_400] : memref<1x18x18x8xbf16, #tpu.memory_space<vmem>>, vector<1x1x18x8xbf16>
    %636 = vector.shape_cast %635 : vector<1x1x18x8xbf16> to vector<18x8xbf16>
    %637 = vector.extract_strided_slice %636 {offsets = [0, 0], sizes = [16, 8], strides = [1, 1]} : vector<18x8xbf16> to vector<16x8xbf16>
    %cst_401 = arith.constant dense<0.000000e+00> : vector<16x8xf32>
    %638 = tpu.matmul %637, %15, %cst_401 {dimension_numbers = #tpu.dot_dimension_numbers<[1], [0], [0], [1], [0, 0, 1, 1], [], []>} : vector<16x8xbf16>, vector<8x8xbf16>, vector<16x8xf32> -> vector<16x8xf32>
    %639 = arith.addf %631, %638 : vector<16x8xf32>
    %640 = vector.extract_strided_slice %636 {offsets = [1, 0], sizes = [16, 8], strides = [1, 1]} : vector<18x8xbf16> to vector<16x8xbf16>
    %cst_402 = arith.constant dense<0.000000e+00> : vector<16x8xf32>
    %641 = tpu.matmul %640, %17, %cst_402 {dimension_numbers = #tpu.dot_dimension_numbers<[1], [0], [0], [1], [0, 0, 1, 1], [], []>} : vector<16x8xbf16>, vector<8x8xbf16>, vector<16x8xf32> -> vector<16x8xf32>
    %642 = arith.addf %639, %641 : vector<16x8xf32>
    %643 = vector.extract_strided_slice %636 {offsets = [2, 0], sizes = [16, 8], strides = [1, 1]} : vector<18x8xbf16> to vector<16x8xbf16>
    %cst_403 = arith.constant dense<0.000000e+00> : vector<16x8xf32>
    %644 = tpu.matmul %643, %19, %cst_403 {dimension_numbers = #tpu.dot_dimension_numbers<[1], [0], [0], [1], [0, 0, 1, 1], [], []>} : vector<16x8xbf16>, vector<8x8xbf16>, vector<16x8xf32> -> vector<16x8xf32>
    %645 = arith.addf %642, %644 : vector<16x8xf32>
    %646 = vector.broadcast %1 : vector<1x8xf32> to vector<16x8xf32>
    %647 = arith.addf %645, %646 : vector<16x8xf32>
    %cst_404 = arith.constant 0.000000e+00 : f32
    %648 = vector.broadcast %cst_404 : f32 to vector<16x8xf32>
    %649 = arith.maximumf %647, %648 : vector<16x8xf32>
    %c0_405 = arith.constant 0 : index
    %c11 = arith.constant 11 : index
    %c0_406 = arith.constant 0 : index
    %c0_407 = arith.constant 0 : index
    %650 = vector.load %arg3[%c0_405, %c11, %c0_406, %c0_407] : memref<1x16x16x8xf32, #tpu.memory_space<vmem>>, vector<1x1x16x8xf32>
    %651 = vector.shape_cast %650 : vector<1x1x16x8xf32> to vector<16x8xf32>
    %652 = arith.addf %649, %651 : vector<16x8xf32>
    %c0_408 = arith.constant 0 : index
    %c11_409 = arith.constant 11 : index
    %c0_410 = arith.constant 0 : index
    %c0_411 = arith.constant 0 : index
    %653 = vector.load %arg6[%c0_408, %c11_409, %c0_410, %c0_411] : memref<1x16x16x8xf32, #tpu.memory_space<vmem>>, vector<1x1x16x8xf32>
    %654 = vector.shape_cast %653 : vector<1x1x16x8xf32> to vector<16x8xf32>
    %655 = vector.shape_cast %652 : vector<16x8xf32> to vector<1x1x16x8xf32>
    tpu.vector_store %arg6[%c0_408, %c11_409, %c0_410, %c0_411], %655 {strides = array<i32>} : memref<1x16x16x8xf32, #tpu.memory_space<vmem>>, vector<1x1x16x8xf32>,
    %cst_412 = arith.constant 0.000000e+00 : f32
    %656 = vector.broadcast %cst_412 : f32 to vector<16x8xf32>
    %c12_i32 = arith.constant 12 : i32
    %657 = arith.addi %0, %c12_i32 : i32
    %c0_i32_413 = arith.constant 0 : i32
    %658 = arith.addi %657, %c0_i32_413 : i32
    %c0_414 = arith.constant 0 : index
    %659 = arith.index_cast %658 : i32 to index
    %c0_415 = arith.constant 0 : index
    %c0_416 = arith.constant 0 : index
    %660 = vector.load %arg2[%c0_414, %659, %c0_415, %c0_416] : memref<1x18x18x8xbf16, #tpu.memory_space<vmem>>, vector<1x1x18x8xbf16>
    %661 = vector.shape_cast %660 : vector<1x1x18x8xbf16> to vector<18x8xbf16>
    %662 = vector.extract_strided_slice %661 {offsets = [0, 0], sizes = [16, 8], strides = [1, 1]} : vector<18x8xbf16> to vector<16x8xbf16>
    %cst_417 = arith.constant dense<0.000000e+00> : vector<16x8xf32>
    %663 = tpu.matmul %662, %3, %cst_417 {dimension_numbers = #tpu.dot_dimension_numbers<[1], [0], [0], [1], [0, 0, 1, 1], [], []>} : vector<16x8xbf16>, vector<8x8xbf16>, vector<16x8xf32> -> vector<16x8xf32>
    %664 = arith.addf %656, %663 : vector<16x8xf32>
    %665 = vector.extract_strided_slice %661 {offsets = [1, 0], sizes = [16, 8], strides = [1, 1]} : vector<18x8xbf16> to vector<16x8xbf16>
    %cst_418 = arith.constant dense<0.000000e+00> : vector<16x8xf32>
    %666 = tpu.matmul %665, %5, %cst_418 {dimension_numbers = #tpu.dot_dimension_numbers<[1], [0], [0], [1], [0, 0, 1, 1], [], []>} : vector<16x8xbf16>, vector<8x8xbf16>, vector<16x8xf32> -> vector<16x8xf32>
    %667 = arith.addf %664, %666 : vector<16x8xf32>
    %668 = vector.extract_strided_slice %661 {offsets = [2, 0], sizes = [16, 8], strides = [1, 1]} : vector<18x8xbf16> to vector<16x8xbf16>
    %cst_419 = arith.constant dense<0.000000e+00> : vector<16x8xf32>
    %669 = tpu.matmul %668, %7, %cst_419 {dimension_numbers = #tpu.dot_dimension_numbers<[1], [0], [0], [1], [0, 0, 1, 1], [], []>} : vector<16x8xbf16>, vector<8x8xbf16>, vector<16x8xf32> -> vector<16x8xf32>
    %670 = arith.addf %667, %669 : vector<16x8xf32>
    %c12_i32_420 = arith.constant 12 : i32
    %671 = arith.addi %0, %c12_i32_420 : i32
    %c1_i32_421 = arith.constant 1 : i32
    %672 = arith.addi %671, %c1_i32_421 : i32
    %c0_422 = arith.constant 0 : index
    %673 = arith.index_cast %672 : i32 to index
    %c0_423 = arith.constant 0 : index
    %c0_424 = arith.constant 0 : index
    %674 = vector.load %arg2[%c0_422, %673, %c0_423, %c0_424] : memref<1x18x18x8xbf16, #tpu.memory_space<vmem>>, vector<1x1x18x8xbf16>
    %675 = vector.shape_cast %674 : vector<1x1x18x8xbf16> to vector<18x8xbf16>
    %676 = vector.extract_strided_slice %675 {offsets = [0, 0], sizes = [16, 8], strides = [1, 1]} : vector<18x8xbf16> to vector<16x8xbf16>
    %cst_425 = arith.constant dense<0.000000e+00> : vector<16x8xf32>
    %677 = tpu.matmul %676, %9, %cst_425 {dimension_numbers = #tpu.dot_dimension_numbers<[1], [0], [0], [1], [0, 0, 1, 1], [], []>} : vector<16x8xbf16>, vector<8x8xbf16>, vector<16x8xf32> -> vector<16x8xf32>
    %678 = arith.addf %670, %677 : vector<16x8xf32>
    %679 = vector.extract_strided_slice %675 {offsets = [1, 0], sizes = [16, 8], strides = [1, 1]} : vector<18x8xbf16> to vector<16x8xbf16>
    %cst_426 = arith.constant dense<0.000000e+00> : vector<16x8xf32>
    %680 = tpu.matmul %679, %11, %cst_426 {dimension_numbers = #tpu.dot_dimension_numbers<[1], [0], [0], [1], [0, 0, 1, 1], [], []>} : vector<16x8xbf16>, vector<8x8xbf16>, vector<16x8xf32> -> vector<16x8xf32>
    %681 = arith.addf %678, %680 : vector<16x8xf32>
    %682 = vector.extract_strided_slice %675 {offsets = [2, 0], sizes = [16, 8], strides = [1, 1]} : vector<18x8xbf16> to vector<16x8xbf16>
    %cst_427 = arith.constant dense<0.000000e+00> : vector<16x8xf32>
    %683 = tpu.matmul %682, %13, %cst_427 {dimension_numbers = #tpu.dot_dimension_numbers<[1], [0], [0], [1], [0, 0, 1, 1], [], []>} : vector<16x8xbf16>, vector<8x8xbf16>, vector<16x8xf32> -> vector<16x8xf32>
    %684 = arith.addf %681, %683 : vector<16x8xf32>
    %c12_i32_428 = arith.constant 12 : i32
    %685 = arith.addi %0, %c12_i32_428 : i32
    %c2_i32_429 = arith.constant 2 : i32
    %686 = arith.addi %685, %c2_i32_429 : i32
    %c0_430 = arith.constant 0 : index
    %687 = arith.index_cast %686 : i32 to index
    %c0_431 = arith.constant 0 : index
    %c0_432 = arith.constant 0 : index
    %688 = vector.load %arg2[%c0_430, %687, %c0_431, %c0_432] : memref<1x18x18x8xbf16, #tpu.memory_space<vmem>>, vector<1x1x18x8xbf16>
    %689 = vector.shape_cast %688 : vector<1x1x18x8xbf16> to vector<18x8xbf16>
    %690 = vector.extract_strided_slice %689 {offsets = [0, 0], sizes = [16, 8], strides = [1, 1]} : vector<18x8xbf16> to vector<16x8xbf16>
    %cst_433 = arith.constant dense<0.000000e+00> : vector<16x8xf32>
    %691 = tpu.matmul %690, %15, %cst_433 {dimension_numbers = #tpu.dot_dimension_numbers<[1], [0], [0], [1], [0, 0, 1, 1], [], []>} : vector<16x8xbf16>, vector<8x8xbf16>, vector<16x8xf32> -> vector<16x8xf32>
    %692 = arith.addf %684, %691 : vector<16x8xf32>
    %693 = vector.extract_strided_slice %689 {offsets = [1, 0], sizes = [16, 8], strides = [1, 1]} : vector<18x8xbf16> to vector<16x8xbf16>
    %cst_434 = arith.constant dense<0.000000e+00> : vector<16x8xf32>
    %694 = tpu.matmul %693, %17, %cst_434 {dimension_numbers = #tpu.dot_dimension_numbers<[1], [0], [0], [1], [0, 0, 1, 1], [], []>} : vector<16x8xbf16>, vector<8x8xbf16>, vector<16x8xf32> -> vector<16x8xf32>
    %695 = arith.addf %692, %694 : vector<16x8xf32>
    %696 = vector.extract_strided_slice %689 {offsets = [2, 0], sizes = [16, 8], strides = [1, 1]} : vector<18x8xbf16> to vector<16x8xbf16>
    %cst_435 = arith.constant dense<0.000000e+00> : vector<16x8xf32>
    %697 = tpu.matmul %696, %19, %cst_435 {dimension_numbers = #tpu.dot_dimension_numbers<[1], [0], [0], [1], [0, 0, 1, 1], [], []>} : vector<16x8xbf16>, vector<8x8xbf16>, vector<16x8xf32> -> vector<16x8xf32>
    %698 = arith.addf %695, %697 : vector<16x8xf32>
    %699 = vector.broadcast %1 : vector<1x8xf32> to vector<16x8xf32>
    %700 = arith.addf %698, %699 : vector<16x8xf32>
    %cst_436 = arith.constant 0.000000e+00 : f32
    %701 = vector.broadcast %cst_436 : f32 to vector<16x8xf32>
    %702 = arith.maximumf %700, %701 : vector<16x8xf32>
    %c0_437 = arith.constant 0 : index
    %c12 = arith.constant 12 : index
    %c0_438 = arith.constant 0 : index
    %c0_439 = arith.constant 0 : index
    %703 = vector.load %arg3[%c0_437, %c12, %c0_438, %c0_439] : memref<1x16x16x8xf32, #tpu.memory_space<vmem>>, vector<1x1x16x8xf32>
    %704 = vector.shape_cast %703 : vector<1x1x16x8xf32> to vector<16x8xf32>
    %705 = arith.addf %702, %704 : vector<16x8xf32>
    %c0_440 = arith.constant 0 : index
    %c12_441 = arith.constant 12 : index
    %c0_442 = arith.constant 0 : index
    %c0_443 = arith.constant 0 : index
    %706 = vector.load %arg6[%c0_440, %c12_441, %c0_442, %c0_443] : memref<1x16x16x8xf32, #tpu.memory_space<vmem>>, vector<1x1x16x8xf32>
    %707 = vector.shape_cast %706 : vector<1x1x16x8xf32> to vector<16x8xf32>
    %708 = vector.shape_cast %705 : vector<16x8xf32> to vector<1x1x16x8xf32>
    tpu.vector_store %arg6[%c0_440, %c12_441, %c0_442, %c0_443], %708 {strides = array<i32>} : memref<1x16x16x8xf32, #tpu.memory_space<vmem>>, vector<1x1x16x8xf32>,
    %cst_444 = arith.constant 0.000000e+00 : f32
    %709 = vector.broadcast %cst_444 : f32 to vector<16x8xf32>
    %c13_i32 = arith.constant 13 : i32
    %710 = arith.addi %0, %c13_i32 : i32
    %c0_i32_445 = arith.constant 0 : i32
    %711 = arith.addi %710, %c0_i32_445 : i32
    %c0_446 = arith.constant 0 : index
    %712 = arith.index_cast %711 : i32 to index
    %c0_447 = arith.constant 0 : index
    %c0_448 = arith.constant 0 : index
    %713 = vector.load %arg2[%c0_446, %712, %c0_447, %c0_448] : memref<1x18x18x8xbf16, #tpu.memory_space<vmem>>, vector<1x1x18x8xbf16>
    %714 = vector.shape_cast %713 : vector<1x1x18x8xbf16> to vector<18x8xbf16>
    %715 = vector.extract_strided_slice %714 {offsets = [0, 0], sizes = [16, 8], strides = [1, 1]} : vector<18x8xbf16> to vector<16x8xbf16>
    %cst_449 = arith.constant dense<0.000000e+00> : vector<16x8xf32>
    %716 = tpu.matmul %715, %3, %cst_449 {dimension_numbers = #tpu.dot_dimension_numbers<[1], [0], [0], [1], [0, 0, 1, 1], [], []>} : vector<16x8xbf16>, vector<8x8xbf16>, vector<16x8xf32> -> vector<16x8xf32>
    %717 = arith.addf %709, %716 : vector<16x8xf32>
    %718 = vector.extract_strided_slice %714 {offsets = [1, 0], sizes = [16, 8], strides = [1, 1]} : vector<18x8xbf16> to vector<16x8xbf16>
    %cst_450 = arith.constant dense<0.000000e+00> : vector<16x8xf32>
    %719 = tpu.matmul %718, %5, %cst_450 {dimension_numbers = #tpu.dot_dimension_numbers<[1], [0], [0], [1], [0, 0, 1, 1], [], []>} : vector<16x8xbf16>, vector<8x8xbf16>, vector<16x8xf32> -> vector<16x8xf32>
    %720 = arith.addf %717, %719 : vector<16x8xf32>
    %721 = vector.extract_strided_slice %714 {offsets = [2, 0], sizes = [16, 8], strides = [1, 1]} : vector<18x8xbf16> to vector<16x8xbf16>
    %cst_451 = arith.constant dense<0.000000e+00> : vector<16x8xf32>
    %722 = tpu.matmul %721, %7, %cst_451 {dimension_numbers = #tpu.dot_dimension_numbers<[1], [0], [0], [1], [0, 0, 1, 1], [], []>} : vector<16x8xbf16>, vector<8x8xbf16>, vector<16x8xf32> -> vector<16x8xf32>
    %723 = arith.addf %720, %722 : vector<16x8xf32>
    %c13_i32_452 = arith.constant 13 : i32
    %724 = arith.addi %0, %c13_i32_452 : i32
    %c1_i32_453 = arith.constant 1 : i32
    %725 = arith.addi %724, %c1_i32_453 : i32
    %c0_454 = arith.constant 0 : index
    %726 = arith.index_cast %725 : i32 to index
    %c0_455 = arith.constant 0 : index
    %c0_456 = arith.constant 0 : index
    %727 = vector.load %arg2[%c0_454, %726, %c0_455, %c0_456] : memref<1x18x18x8xbf16, #tpu.memory_space<vmem>>, vector<1x1x18x8xbf16>
    %728 = vector.shape_cast %727 : vector<1x1x18x8xbf16> to vector<18x8xbf16>
    %729 = vector.extract_strided_slice %728 {offsets = [0, 0], sizes = [16, 8], strides = [1, 1]} : vector<18x8xbf16> to vector<16x8xbf16>
    %cst_457 = arith.constant dense<0.000000e+00> : vector<16x8xf32>
    %730 = tpu.matmul %729, %9, %cst_457 {dimension_numbers = #tpu.dot_dimension_numbers<[1], [0], [0], [1], [0, 0, 1, 1], [], []>} : vector<16x8xbf16>, vector<8x8xbf16>, vector<16x8xf32> -> vector<16x8xf32>
    %731 = arith.addf %723, %730 : vector<16x8xf32>
    %732 = vector.extract_strided_slice %728 {offsets = [1, 0], sizes = [16, 8], strides = [1, 1]} : vector<18x8xbf16> to vector<16x8xbf16>
    %cst_458 = arith.constant dense<0.000000e+00> : vector<16x8xf32>
    %733 = tpu.matmul %732, %11, %cst_458 {dimension_numbers = #tpu.dot_dimension_numbers<[1], [0], [0], [1], [0, 0, 1, 1], [], []>} : vector<16x8xbf16>, vector<8x8xbf16>, vector<16x8xf32> -> vector<16x8xf32>
    %734 = arith.addf %731, %733 : vector<16x8xf32>
    %735 = vector.extract_strided_slice %728 {offsets = [2, 0], sizes = [16, 8], strides = [1, 1]} : vector<18x8xbf16> to vector<16x8xbf16>
    %cst_459 = arith.constant dense<0.000000e+00> : vector<16x8xf32>
    %736 = tpu.matmul %735, %13, %cst_459 {dimension_numbers = #tpu.dot_dimension_numbers<[1], [0], [0], [1], [0, 0, 1, 1], [], []>} : vector<16x8xbf16>, vector<8x8xbf16>, vector<16x8xf32> -> vector<16x8xf32>
    %737 = arith.addf %734, %736 : vector<16x8xf32>
    %c13_i32_460 = arith.constant 13 : i32
    %738 = arith.addi %0, %c13_i32_460 : i32
    %c2_i32_461 = arith.constant 2 : i32
    %739 = arith.addi %738, %c2_i32_461 : i32
    %c0_462 = arith.constant 0 : index
    %740 = arith.index_cast %739 : i32 to index
    %c0_463 = arith.constant 0 : index
    %c0_464 = arith.constant 0 : index
    %741 = vector.load %arg2[%c0_462, %740, %c0_463, %c0_464] : memref<1x18x18x8xbf16, #tpu.memory_space<vmem>>, vector<1x1x18x8xbf16>
    %742 = vector.shape_cast %741 : vector<1x1x18x8xbf16> to vector<18x8xbf16>
    %743 = vector.extract_strided_slice %742 {offsets = [0, 0], sizes = [16, 8], strides = [1, 1]} : vector<18x8xbf16> to vector<16x8xbf16>
    %cst_465 = arith.constant dense<0.000000e+00> : vector<16x8xf32>
    %744 = tpu.matmul %743, %15, %cst_465 {dimension_numbers = #tpu.dot_dimension_numbers<[1], [0], [0], [1], [0, 0, 1, 1], [], []>} : vector<16x8xbf16>, vector<8x8xbf16>, vector<16x8xf32> -> vector<16x8xf32>
    %745 = arith.addf %737, %744 : vector<16x8xf32>
    %746 = vector.extract_strided_slice %742 {offsets = [1, 0], sizes = [16, 8], strides = [1, 1]} : vector<18x8xbf16> to vector<16x8xbf16>
    %cst_466 = arith.constant dense<0.000000e+00> : vector<16x8xf32>
    %747 = tpu.matmul %746, %17, %cst_466 {dimension_numbers = #tpu.dot_dimension_numbers<[1], [0], [0], [1], [0, 0, 1, 1], [], []>} : vector<16x8xbf16>, vector<8x8xbf16>, vector<16x8xf32> -> vector<16x8xf32>
    %748 = arith.addf %745, %747 : vector<16x8xf32>
    %749 = vector.extract_strided_slice %742 {offsets = [2, 0], sizes = [16, 8], strides = [1, 1]} : vector<18x8xbf16> to vector<16x8xbf16>
    %cst_467 = arith.constant dense<0.000000e+00> : vector<16x8xf32>
    %750 = tpu.matmul %749, %19, %cst_467 {dimension_numbers = #tpu.dot_dimension_numbers<[1], [0], [0], [1], [0, 0, 1, 1], [], []>} : vector<16x8xbf16>, vector<8x8xbf16>, vector<16x8xf32> -> vector<16x8xf32>
    %751 = arith.addf %748, %750 : vector<16x8xf32>
    %752 = vector.broadcast %1 : vector<1x8xf32> to vector<16x8xf32>
    %753 = arith.addf %751, %752 : vector<16x8xf32>
    %cst_468 = arith.constant 0.000000e+00 : f32
    %754 = vector.broadcast %cst_468 : f32 to vector<16x8xf32>
    %755 = arith.maximumf %753, %754 : vector<16x8xf32>
    %c0_469 = arith.constant 0 : index
    %c13 = arith.constant 13 : index
    %c0_470 = arith.constant 0 : index
    %c0_471 = arith.constant 0 : index
    %756 = vector.load %arg3[%c0_469, %c13, %c0_470, %c0_471] : memref<1x16x16x8xf32, #tpu.memory_space<vmem>>, vector<1x1x16x8xf32>
    %757 = vector.shape_cast %756 : vector<1x1x16x8xf32> to vector<16x8xf32>
    %758 = arith.addf %755, %757 : vector<16x8xf32>
    %c0_472 = arith.constant 0 : index
    %c13_473 = arith.constant 13 : index
    %c0_474 = arith.constant 0 : index
    %c0_475 = arith.constant 0 : index
    %759 = vector.load %arg6[%c0_472, %c13_473, %c0_474, %c0_475] : memref<1x16x16x8xf32, #tpu.memory_space<vmem>>, vector<1x1x16x8xf32>
    %760 = vector.shape_cast %759 : vector<1x1x16x8xf32> to vector<16x8xf32>
    %761 = vector.shape_cast %758 : vector<16x8xf32> to vector<1x1x16x8xf32>
    tpu.vector_store %arg6[%c0_472, %c13_473, %c0_474, %c0_475], %761 {strides = array<i32>} : memref<1x16x16x8xf32, #tpu.memory_space<vmem>>, vector<1x1x16x8xf32>,
    %cst_476 = arith.constant 0.000000e+00 : f32
    %762 = vector.broadcast %cst_476 : f32 to vector<16x8xf32>
    %c14_i32 = arith.constant 14 : i32
    %763 = arith.addi %0, %c14_i32 : i32
    %c0_i32_477 = arith.constant 0 : i32
    %764 = arith.addi %763, %c0_i32_477 : i32
    %c0_478 = arith.constant 0 : index
    %765 = arith.index_cast %764 : i32 to index
    %c0_479 = arith.constant 0 : index
    %c0_480 = arith.constant 0 : index
    %766 = vector.load %arg2[%c0_478, %765, %c0_479, %c0_480] : memref<1x18x18x8xbf16, #tpu.memory_space<vmem>>, vector<1x1x18x8xbf16>
    %767 = vector.shape_cast %766 : vector<1x1x18x8xbf16> to vector<18x8xbf16>
    %768 = vector.extract_strided_slice %767 {offsets = [0, 0], sizes = [16, 8], strides = [1, 1]} : vector<18x8xbf16> to vector<16x8xbf16>
    %cst_481 = arith.constant dense<0.000000e+00> : vector<16x8xf32>
    %769 = tpu.matmul %768, %3, %cst_481 {dimension_numbers = #tpu.dot_dimension_numbers<[1], [0], [0], [1], [0, 0, 1, 1], [], []>} : vector<16x8xbf16>, vector<8x8xbf16>, vector<16x8xf32> -> vector<16x8xf32>
    %770 = arith.addf %762, %769 : vector<16x8xf32>
    %771 = vector.extract_strided_slice %767 {offsets = [1, 0], sizes = [16, 8], strides = [1, 1]} : vector<18x8xbf16> to vector<16x8xbf16>
    %cst_482 = arith.constant dense<0.000000e+00> : vector<16x8xf32>
    %772 = tpu.matmul %771, %5, %cst_482 {dimension_numbers = #tpu.dot_dimension_numbers<[1], [0], [0], [1], [0, 0, 1, 1], [], []>} : vector<16x8xbf16>, vector<8x8xbf16>, vector<16x8xf32> -> vector<16x8xf32>
    %773 = arith.addf %770, %772 : vector<16x8xf32>
    %774 = vector.extract_strided_slice %767 {offsets = [2, 0], sizes = [16, 8], strides = [1, 1]} : vector<18x8xbf16> to vector<16x8xbf16>
    %cst_483 = arith.constant dense<0.000000e+00> : vector<16x8xf32>
    %775 = tpu.matmul %774, %7, %cst_483 {dimension_numbers = #tpu.dot_dimension_numbers<[1], [0], [0], [1], [0, 0, 1, 1], [], []>} : vector<16x8xbf16>, vector<8x8xbf16>, vector<16x8xf32> -> vector<16x8xf32>
    %776 = arith.addf %773, %775 : vector<16x8xf32>
    %c14_i32_484 = arith.constant 14 : i32
    %777 = arith.addi %0, %c14_i32_484 : i32
    %c1_i32_485 = arith.constant 1 : i32
    %778 = arith.addi %777, %c1_i32_485 : i32
    %c0_486 = arith.constant 0 : index
    %779 = arith.index_cast %778 : i32 to index
    %c0_487 = arith.constant 0 : index
    %c0_488 = arith.constant 0 : index
    %780 = vector.load %arg2[%c0_486, %779, %c0_487, %c0_488] : memref<1x18x18x8xbf16, #tpu.memory_space<vmem>>, vector<1x1x18x8xbf16>
    %781 = vector.shape_cast %780 : vector<1x1x18x8xbf16> to vector<18x8xbf16>
    %782 = vector.extract_strided_slice %781 {offsets = [0, 0], sizes = [16, 8], strides = [1, 1]} : vector<18x8xbf16> to vector<16x8xbf16>
    %cst_489 = arith.constant dense<0.000000e+00> : vector<16x8xf32>
    %783 = tpu.matmul %782, %9, %cst_489 {dimension_numbers = #tpu.dot_dimension_numbers<[1], [0], [0], [1], [0, 0, 1, 1], [], []>} : vector<16x8xbf16>, vector<8x8xbf16>, vector<16x8xf32> -> vector<16x8xf32>
    %784 = arith.addf %776, %783 : vector<16x8xf32>
    %785 = vector.extract_strided_slice %781 {offsets = [1, 0], sizes = [16, 8], strides = [1, 1]} : vector<18x8xbf16> to vector<16x8xbf16>
    %cst_490 = arith.constant dense<0.000000e+00> : vector<16x8xf32>
    %786 = tpu.matmul %785, %11, %cst_490 {dimension_numbers = #tpu.dot_dimension_numbers<[1], [0], [0], [1], [0, 0, 1, 1], [], []>} : vector<16x8xbf16>, vector<8x8xbf16>, vector<16x8xf32> -> vector<16x8xf32>
    %787 = arith.addf %784, %786 : vector<16x8xf32>
    %788 = vector.extract_strided_slice %781 {offsets = [2, 0], sizes = [16, 8], strides = [1, 1]} : vector<18x8xbf16> to vector<16x8xbf16>
    %cst_491 = arith.constant dense<0.000000e+00> : vector<16x8xf32>
    %789 = tpu.matmul %788, %13, %cst_491 {dimension_numbers = #tpu.dot_dimension_numbers<[1], [0], [0], [1], [0, 0, 1, 1], [], []>} : vector<16x8xbf16>, vector<8x8xbf16>, vector<16x8xf32> -> vector<16x8xf32>
    %790 = arith.addf %787, %789 : vector<16x8xf32>
    %c14_i32_492 = arith.constant 14 : i32
    %791 = arith.addi %0, %c14_i32_492 : i32
    %c2_i32_493 = arith.constant 2 : i32
    %792 = arith.addi %791, %c2_i32_493 : i32
    %c0_494 = arith.constant 0 : index
    %793 = arith.index_cast %792 : i32 to index
    %c0_495 = arith.constant 0 : index
    %c0_496 = arith.constant 0 : index
    %794 = vector.load %arg2[%c0_494, %793, %c0_495, %c0_496] : memref<1x18x18x8xbf16, #tpu.memory_space<vmem>>, vector<1x1x18x8xbf16>
    %795 = vector.shape_cast %794 : vector<1x1x18x8xbf16> to vector<18x8xbf16>
    %796 = vector.extract_strided_slice %795 {offsets = [0, 0], sizes = [16, 8], strides = [1, 1]} : vector<18x8xbf16> to vector<16x8xbf16>
    %cst_497 = arith.constant dense<0.000000e+00> : vector<16x8xf32>
    %797 = tpu.matmul %796, %15, %cst_497 {dimension_numbers = #tpu.dot_dimension_numbers<[1], [0], [0], [1], [0, 0, 1, 1], [], []>} : vector<16x8xbf16>, vector<8x8xbf16>, vector<16x8xf32> -> vector<16x8xf32>
    %798 = arith.addf %790, %797 : vector<16x8xf32>
    %799 = vector.extract_strided_slice %795 {offsets = [1, 0], sizes = [16, 8], strides = [1, 1]} : vector<18x8xbf16> to vector<16x8xbf16>
    %cst_498 = arith.constant dense<0.000000e+00> : vector<16x8xf32>
    %800 = tpu.matmul %799, %17, %cst_498 {dimension_numbers = #tpu.dot_dimension_numbers<[1], [0], [0], [1], [0, 0, 1, 1], [], []>} : vector<16x8xbf16>, vector<8x8xbf16>, vector<16x8xf32> -> vector<16x8xf32>
    %801 = arith.addf %798, %800 : vector<16x8xf32>
    %802 = vector.extract_strided_slice %795 {offsets = [2, 0], sizes = [16, 8], strides = [1, 1]} : vector<18x8xbf16> to vector<16x8xbf16>
    %cst_499 = arith.constant dense<0.000000e+00> : vector<16x8xf32>
    %803 = tpu.matmul %802, %19, %cst_499 {dimension_numbers = #tpu.dot_dimension_numbers<[1], [0], [0], [1], [0, 0, 1, 1], [], []>} : vector<16x8xbf16>, vector<8x8xbf16>, vector<16x8xf32> -> vector<16x8xf32>
    %804 = arith.addf %801, %803 : vector<16x8xf32>
    %805 = vector.broadcast %1 : vector<1x8xf32> to vector<16x8xf32>
    %806 = arith.addf %804, %805 : vector<16x8xf32>
    %cst_500 = arith.constant 0.000000e+00 : f32
    %807 = vector.broadcast %cst_500 : f32 to vector<16x8xf32>
    %808 = arith.maximumf %806, %807 : vector<16x8xf32>
    %c0_501 = arith.constant 0 : index
    %c14 = arith.constant 14 : index
    %c0_502 = arith.constant 0 : index
    %c0_503 = arith.constant 0 : index
    %809 = vector.load %arg3[%c0_501, %c14, %c0_502, %c0_503] : memref<1x16x16x8xf32, #tpu.memory_space<vmem>>, vector<1x1x16x8xf32>
    %810 = vector.shape_cast %809 : vector<1x1x16x8xf32> to vector<16x8xf32>
    %811 = arith.addf %808, %810 : vector<16x8xf32>
    %c0_504 = arith.constant 0 : index
    %c14_505 = arith.constant 14 : index
    %c0_506 = arith.constant 0 : index
    %c0_507 = arith.constant 0 : index
    %812 = vector.load %arg6[%c0_504, %c14_505, %c0_506, %c0_507] : memref<1x16x16x8xf32, #tpu.memory_space<vmem>>, vector<1x1x16x8xf32>
    %813 = vector.shape_cast %812 : vector<1x1x16x8xf32> to vector<16x8xf32>
    %814 = vector.shape_cast %811 : vector<16x8xf32> to vector<1x1x16x8xf32>
    tpu.vector_store %arg6[%c0_504, %c14_505, %c0_506, %c0_507], %814 {strides = array<i32>} : memref<1x16x16x8xf32, #tpu.memory_space<vmem>>, vector<1x1x16x8xf32>,
    %cst_508 = arith.constant 0.000000e+00 : f32
    %815 = vector.broadcast %cst_508 : f32 to vector<16x8xf32>
    %c15_i32 = arith.constant 15 : i32
    %816 = arith.addi %0, %c15_i32 : i32
    %c0_i32_509 = arith.constant 0 : i32
    %817 = arith.addi %816, %c0_i32_509 : i32
    %c0_510 = arith.constant 0 : index
    %818 = arith.index_cast %817 : i32 to index
    %c0_511 = arith.constant 0 : index
    %c0_512 = arith.constant 0 : index
    %819 = vector.load %arg2[%c0_510, %818, %c0_511, %c0_512] : memref<1x18x18x8xbf16, #tpu.memory_space<vmem>>, vector<1x1x18x8xbf16>
    %820 = vector.shape_cast %819 : vector<1x1x18x8xbf16> to vector<18x8xbf16>
    %821 = vector.extract_strided_slice %820 {offsets = [0, 0], sizes = [16, 8], strides = [1, 1]} : vector<18x8xbf16> to vector<16x8xbf16>
    %cst_513 = arith.constant dense<0.000000e+00> : vector<16x8xf32>
    %822 = tpu.matmul %821, %3, %cst_513 {dimension_numbers = #tpu.dot_dimension_numbers<[1], [0], [0], [1], [0, 0, 1, 1], [], []>} : vector<16x8xbf16>, vector<8x8xbf16>, vector<16x8xf32> -> vector<16x8xf32>
    %823 = arith.addf %815, %822 : vector<16x8xf32>
    %824 = vector.extract_strided_slice %820 {offsets = [1, 0], sizes = [16, 8], strides = [1, 1]} : vector<18x8xbf16> to vector<16x8xbf16>
    %cst_514 = arith.constant dense<0.000000e+00> : vector<16x8xf32>
    %825 = tpu.matmul %824, %5, %cst_514 {dimension_numbers = #tpu.dot_dimension_numbers<[1], [0], [0], [1], [0, 0, 1, 1], [], []>} : vector<16x8xbf16>, vector<8x8xbf16>, vector<16x8xf32> -> vector<16x8xf32>
    %826 = arith.addf %823, %825 : vector<16x8xf32>
    %827 = vector.extract_strided_slice %820 {offsets = [2, 0], sizes = [16, 8], strides = [1, 1]} : vector<18x8xbf16> to vector<16x8xbf16>
    %cst_515 = arith.constant dense<0.000000e+00> : vector<16x8xf32>
    %828 = tpu.matmul %827, %7, %cst_515 {dimension_numbers = #tpu.dot_dimension_numbers<[1], [0], [0], [1], [0, 0, 1, 1], [], []>} : vector<16x8xbf16>, vector<8x8xbf16>, vector<16x8xf32> -> vector<16x8xf32>
    %829 = arith.addf %826, %828 : vector<16x8xf32>
    %c15_i32_516 = arith.constant 15 : i32
    %830 = arith.addi %0, %c15_i32_516 : i32
    %c1_i32_517 = arith.constant 1 : i32
    %831 = arith.addi %830, %c1_i32_517 : i32
    %c0_518 = arith.constant 0 : index
    %832 = arith.index_cast %831 : i32 to index
    %c0_519 = arith.constant 0 : index
    %c0_520 = arith.constant 0 : index
    %833 = vector.load %arg2[%c0_518, %832, %c0_519, %c0_520] : memref<1x18x18x8xbf16, #tpu.memory_space<vmem>>, vector<1x1x18x8xbf16>
    %834 = vector.shape_cast %833 : vector<1x1x18x8xbf16> to vector<18x8xbf16>
    %835 = vector.extract_strided_slice %834 {offsets = [0, 0], sizes = [16, 8], strides = [1, 1]} : vector<18x8xbf16> to vector<16x8xbf16>
    %cst_521 = arith.constant dense<0.000000e+00> : vector<16x8xf32>
    %836 = tpu.matmul %835, %9, %cst_521 {dimension_numbers = #tpu.dot_dimension_numbers<[1], [0], [0], [1], [0, 0, 1, 1], [], []>} : vector<16x8xbf16>, vector<8x8xbf16>, vector<16x8xf32> -> vector<16x8xf32>
    %837 = arith.addf %829, %836 : vector<16x8xf32>
    %838 = vector.extract_strided_slice %834 {offsets = [1, 0], sizes = [16, 8], strides = [1, 1]} : vector<18x8xbf16> to vector<16x8xbf16>
    %cst_522 = arith.constant dense<0.000000e+00> : vector<16x8xf32>
    %839 = tpu.matmul %838, %11, %cst_522 {dimension_numbers = #tpu.dot_dimension_numbers<[1], [0], [0], [1], [0, 0, 1, 1], [], []>} : vector<16x8xbf16>, vector<8x8xbf16>, vector<16x8xf32> -> vector<16x8xf32>
    %840 = arith.addf %837, %839 : vector<16x8xf32>
    %841 = vector.extract_strided_slice %834 {offsets = [2, 0], sizes = [16, 8], strides = [1, 1]} : vector<18x8xbf16> to vector<16x8xbf16>
    %cst_523 = arith.constant dense<0.000000e+00> : vector<16x8xf32>
    %842 = tpu.matmul %841, %13, %cst_523 {dimension_numbers = #tpu.dot_dimension_numbers<[1], [0], [0], [1], [0, 0, 1, 1], [], []>} : vector<16x8xbf16>, vector<8x8xbf16>, vector<16x8xf32> -> vector<16x8xf32>
    %843 = arith.addf %840, %842 : vector<16x8xf32>
    %c15_i32_524 = arith.constant 15 : i32
    %844 = arith.addi %0, %c15_i32_524 : i32
    %c2_i32_525 = arith.constant 2 : i32
    %845 = arith.addi %844, %c2_i32_525 : i32
    %c0_526 = arith.constant 0 : index
    %846 = arith.index_cast %845 : i32 to index
    %c0_527 = arith.constant 0 : index
    %c0_528 = arith.constant 0 : index
    %847 = vector.load %arg2[%c0_526, %846, %c0_527, %c0_528] : memref<1x18x18x8xbf16, #tpu.memory_space<vmem>>, vector<1x1x18x8xbf16>
    %848 = vector.shape_cast %847 : vector<1x1x18x8xbf16> to vector<18x8xbf16>
    %849 = vector.extract_strided_slice %848 {offsets = [0, 0], sizes = [16, 8], strides = [1, 1]} : vector<18x8xbf16> to vector<16x8xbf16>
    %cst_529 = arith.constant dense<0.000000e+00> : vector<16x8xf32>
    %850 = tpu.matmul %849, %15, %cst_529 {dimension_numbers = #tpu.dot_dimension_numbers<[1], [0], [0], [1], [0, 0, 1, 1], [], []>} : vector<16x8xbf16>, vector<8x8xbf16>, vector<16x8xf32> -> vector<16x8xf32>
    %851 = arith.addf %843, %850 : vector<16x8xf32>
    %852 = vector.extract_strided_slice %848 {offsets = [1, 0], sizes = [16, 8], strides = [1, 1]} : vector<18x8xbf16> to vector<16x8xbf16>
    %cst_530 = arith.constant dense<0.000000e+00> : vector<16x8xf32>
    %853 = tpu.matmul %852, %17, %cst_530 {dimension_numbers = #tpu.dot_dimension_numbers<[1], [0], [0], [1], [0, 0, 1, 1], [], []>} : vector<16x8xbf16>, vector<8x8xbf16>, vector<16x8xf32> -> vector<16x8xf32>
    %854 = arith.addf %851, %853 : vector<16x8xf32>
    %855 = vector.extract_strided_slice %848 {offsets = [2, 0], sizes = [16, 8], strides = [1, 1]} : vector<18x8xbf16> to vector<16x8xbf16>
    %cst_531 = arith.constant dense<0.000000e+00> : vector<16x8xf32>
    %856 = tpu.matmul %855, %19, %cst_531 {dimension_numbers = #tpu.dot_dimension_numbers<[1], [0], [0], [1], [0, 0, 1, 1], [], []>} : vector<16x8xbf16>, vector<8x8xbf16>, vector<16x8xf32> -> vector<16x8xf32>
    %857 = arith.addf %854, %856 : vector<16x8xf32>
    %858 = vector.broadcast %1 : vector<1x8xf32> to vector<16x8xf32>
    %859 = arith.addf %857, %858 : vector<16x8xf32>
    %cst_532 = arith.constant 0.000000e+00 : f32
    %860 = vector.broadcast %cst_532 : f32 to vector<16x8xf32>
    %861 = arith.maximumf %859, %860 : vector<16x8xf32>
    %c0_533 = arith.constant 0 : index
    %c15 = arith.constant 15 : index
    %c0_534 = arith.constant 0 : index
    %c0_535 = arith.constant 0 : index
    %862 = vector.load %arg3[%c0_533, %c15, %c0_534, %c0_535] : memref<1x16x16x8xf32, #tpu.memory_space<vmem>>, vector<1x1x16x8xf32>
    %863 = vector.shape_cast %862 : vector<1x1x16x8xf32> to vector<16x8xf32>
    %864 = arith.addf %861, %863 : vector<16x8xf32>
    %c0_536 = arith.constant 0 : index
    %c15_537 = arith.constant 15 : index
    %c0_538 = arith.constant 0 : index
    %c0_539 = arith.constant 0 : index
    %865 = vector.load %arg6[%c0_536, %c15_537, %c0_538, %c0_539] : memref<1x16x16x8xf32, #tpu.memory_space<vmem>>, vector<1x1x16x8xf32>
    %866 = vector.shape_cast %865 : vector<1x1x16x8xf32> to vector<16x8xf32>
    %867 = vector.shape_cast %864 : vector<16x8xf32> to vector<1x1x16x8xf32>
    tpu.vector_store %arg6[%c0_536, %c15_537, %c0_538, %c0_539], %867 {strides = array<i32>} : memref<1x16x16x8xf32, #tpu.memory_space<vmem>>, vector<1x1x16x8xf32>,
    return
  }
  func.func @transform_0(%arg0: i32, %arg1: i32) -> (i32, i32, i32, i32) {
    %c0_i32 = arith.constant 0 : i32
    %c0_i32_0 = arith.constant 0 : i32
    %c0_i32_1 = arith.constant 0 : i32
    %c0_i32_2 = arith.constant 0 : i32
    return %arg0, %c0_i32, %c0_i32_0, %c0_i32_1 : i32, i32, i32, i32
  }
  func.func @transform_1(%arg0: i32, %arg1: i32) -> (i32, i32, i32, i32) {
    %c0_i32 = arith.constant 0 : i32
    %c0_i32_0 = arith.constant 0 : i32
    %c0_i32_1 = arith.constant 0 : i32
    return %arg0, %arg1, %c0_i32, %c0_i32_0 : i32, i32, i32, i32
  }
  func.func @transform_2(%arg0: i32, %arg1: i32) -> (i32, i32, i32) {
    %c0_i32 = arith.constant 0 : i32
    %c0_i32_0 = arith.constant 0 : i32
    %c0_i32_1 = arith.constant 0 : i32
    %c0_i32_2 = arith.constant 0 : i32
    return %c0_i32, %c0_i32_0, %c0_i32_1 : i32, i32, i32
  }
  func.func @transform_3(%arg0: i32, %arg1: i32) -> (i32, i32) {
    %c0_i32 = arith.constant 0 : i32
    %c0_i32_0 = arith.constant 0 : i32
    %c0_i32_1 = arith.constant 0 : i32
    return %c0_i32, %c0_i32_0 : i32, i32
  }
  func.func @transform_4(%arg0: i32, %arg1: i32) -> (i32, i32, i32, i32) {
    %c0_i32 = arith.constant 0 : i32
    %c0_i32_0 = arith.constant 0 : i32
    %c0_i32_1 = arith.constant 0 : i32
    return %arg0, %arg1, %c0_i32, %c0_i32_0 : i32, i32, i32, i32
  }
}

</mosaic_0001>

<bundles_post_ra>
// kernel: block_encoder_forward.9
= control target key start
LH: loop header
LB: loop body
LE: loop exit
PB: predicated region body
PF: predicated region fallthrough
CT: control target
= control target key end

     0   :  { %s1999_s13 = smov 0   ;;  %s2359_s0 = inlined_call_operand.vmem [shape: bf16[2,256,2], index: 0, kind: input, shape index: {}]   ;;  %s2360_s1 = inlined_call_operand.vmem [shape: bf16[2,256,4], index: 1, kind: input, shape index: {}]   ;;  %s2361_s2 = inlined_call_operand.vmem [shape: f32[2,256,8], index: 2, kind: input, shape index: {}]   ;;  %s2362_s3 = inlined_call_operand.vmem [shape: f32[2,256,8], index: 3, kind: input, shape index: {}]   ;;  %s2363_s4 = inlined_call_operand.vmem [shape: f32[2,2], index: 4, kind: input, shape index: {}]   ;;  %s2364_s5 = inlined_call_operand.vmem [shape: f32[2,1], index: 5, kind: input, shape index: {}]   ;;  %s2365_s6 = inlined_call_operand.vmem [shape: f32[4,4], index: 6, kind: input, shape index: {}]   ;;  %s2366_s7 = inlined_call_operand.vmem [shape: f32[1,4], index: 7, kind: input, shape index: {}]   ;;  %s2367_s8 = inlined_call_operand.vmem [shape: bf16[4,8], index: 8, kind: input, shape index: {}]   ;;  %s2368_s9 = inlined_call_operand.vmem [shape: f32[1,8], index: 9, kind: input, shape index: {}]   ;;  %s2369_s10 = inlined_call_operand.vmem [shape: f32[2,256,8], index: 10, kind: output, shape index: {}]  }
   0x1 LB: > { %s1650_s14 = sadd.s32 4294967295, %s1939_s13   ;;  %p1654_p0 = scmp.ge.s32.totalorder %s1939_s13, 1  ;;  %s1939_s13 = sphi %s1999_s13, %s20_s13  }
   0x2   : > { %p342_p1 = scmp.lt.s32.totalorder %s1939_s13, 3 }
   0x4   : > { %p343_p2 = pnand %p1654_p0, %p342_p1 }
   0x5   : > { %p395_p3 = scmp.lt.s32.totalorder (!%p343_p2), %s1650_s14, 1 }
   0x6   : > { %346 = sbr.rel (%p343_p2) target bundleno = 1513 (0x5e9), region = 60 }
   0xb   : > { %s2371_s14 = smov (!%p395_p3, %s1650_s14), 1  ;;  %vm749_vm0 = vcmask 25600   ;;  %vm753_vm1 = vcmask 1041408   ;;  %v1941_v52 = vmov 0.0   ;;  %vm1942_vm2 = vmmov 0  }
   0xc   : > { %s1737_s15 = sshll.u32 %s2371_s14, 7  ;;  %1802 = vmatprep.subr.mxu1 %v1941_v52  ;;  %1804 = vmatprep.mubr.msk.f32.mxu1 %vm1942_vm2, %v1941_v52  ;;  %v777_v53 = vld [vmem:[%s2364_s5] sm:$0x3]  ;;  %v1943_v54 = vmov 0   ;;  %vm783_vm3 = vcmask 15360   ;;  %vm874_vm4 = vcmask 1043456  }
   0xd   : > { %s2013_s18 = scalar_lea.vmem %s2359_s0, %s1737_s15  ;;  %s2048_s21 = scalar_lea.vmem %s2360_s1, %s1737_s15  ;;  %vm870_vm5 = vcmask 31744   ;;  %vm997_vm6 = vcmask 1040384   ;;  %vm1526_vm7 = vcmask 64512  }
   0xe   : > { %v2016_v0 = vld [vmem:[%s2013_s18 + $0x40] sm:$0xff]   ;;  %v2023_v2 = vld [vmem:[%s2013_s18 + $0x48] sm:$0xff]   ;;  %v2031_v4 = vld [vmem:[%s2013_s18 + $0x50] sm:$0xff]   ;;  %s1739_s12 = sshll.u32 %s2371_s14, 8 }
   0xf   : > { %v2019_v1 = vld [vmem:[%s2013_s18] sm:$0xff]   ;;  %597 = vxpose.xlu0.c.b16.start [1/8] (narrow) %v2016_v0, 16  ;;  %v2027_v3 = vld [vmem:[%s2013_s18 + $0x8] sm:$0xff]   ;;  %v2035_v5 = vld [vmem:[%s2013_s18 + $0x10] sm:$0xff]   ;;  %s2179_s17 = scalar_lea.vmem %s2361_s2, %s1739_s12  ;;  %s2184_s20 = scalar_lea.vmem %s2362_s3, %s1739_s12 }
  0x10   : > { %581 = vxpose.xlu1.c.b16.start [1/8] (narrow) %v2019_v1, 16  ;;  %v2039_v6 = vld [vmem:[%s2013_s18 + $0x58] sm:$0xff]   ;;  %v2052_v8 = vld [vmem:[%s2013_s18 + $0x60] sm:$0xff]   ;;  %v2059_v10 = vld [vmem:[%s2013_s18 + $0x68] sm:$0xff]   ;;  %s2201_s24 = scalar_lea.vmem %s2369_s10, %s1739_s12 }
  0x11   : > { %v2043_v7 = vld [vmem:[%s2013_s18 + $0x18] sm:$0xff]   ;;  %v2056_v9 = vld [vmem:[%s2013_s18 + $0x20] sm:$0xff]   ;;  %v2063_v12 = vld [vmem:[%s2013_s18 + $0x28] sm:$0xff]  }
  0x12   : > { %v1913_v11 = vld [vmem:[%s2048_s21 + $0x78] sm:$0xff]   ;;  %v1915_v14 = vld [vmem:[%s2048_s21 + $0x70] sm:$0xff]   ;;  %v1917_v16 = vld [vmem:[%s2048_s21 + $0x68] sm:$0xff]  }
  0x13   : > { %598 = vxpose.xlu0.c.b16.cont [2/8] (narrow) %v2023_v2, 16  ;;  %v1914_v13 = vld [vmem:[%s2048_s21 + $0x38] sm:$0xff]   ;;  %1742 = vmatprep.subr.bf16.mxu0 %v1913_v11  ;;  %v1916_v15 = vld [vmem:[%s2048_s21 + $0x30] sm:$0xff]   ;;  %v1918_v19 = vld [vmem:[%s2048_s21 + $0x28] sm:$0xff]  }
  0x14   : > { %582 = vxpose.xlu1.c.b16.cont [2/8] (narrow) %v2027_v3, 16  ;;  %1743 = vmatpush3.bf16.msra.mxu0 %v1914_v13  ;;  %v2072_v17 = vld [vmem:[%s2013_s18 + $0x70] sm:$0xff]   ;;  %v1919_v20 = vld [vmem:[%s2048_s21 + $0x60] sm:$0xff]   ;;  %v2082_v21 = vld [vmem:[%s2013_s18 + $0x78] sm:$0xff]  }
  0x15   : > { %1744 = vmatprep.subr.bf16.mxu0 %v1915_v14  ;;  %v2076_v18 = vld [vmem:[%s2013_s18 + $0x30] sm:$0xff]   ;;  %v2086_v22 = vld [vmem:[%s2013_s18 + $0x38] sm:$0xff]   ;;  %v1920_v23 = vld [vmem:[%s2048_s21 + $0x20] sm:$0xff]  }
  0x16   : > { %v1921_v24 = vld [vmem:[%s2048_s21 + $0x58] sm:$0xff]   ;;  %v1923_v26 = vld [vmem:[%s2048_s21 + $0x50] sm:$0xff]   ;;  %v1925_v28 = vld [vmem:[%s2048_s21 + $0x48] sm:$0xff]  }
  0x17   : > { %599 = vxpose.xlu0.c.b16.cont [3/8] (narrow) %v2031_v4, 16  ;;  %v1922_v25 = vld [vmem:[%s2048_s21 + $0x18] sm:$0xff]   ;;  %v1924_v27 = vld [vmem:[%s2048_s21 + $0x10] sm:$0xff]   ;;  %v1926_v29 = vld [vmem:[%s2048_s21 + $0x8] sm:$0xff]  }
  0x18   : > { %583 = vxpose.xlu1.c.b16.cont [3/8] (narrow) %v2035_v5, 16  ;;  %1745 = vmatpush3.bf16.msra.mxu0 %v1916_v15  ;;  %v1927_v30 = vld [vmem:[%s2048_s21 + $0x40] sm:$0xff]  }
  0x19   : > { %1746 = vmatprep.subr.bf16.mxu0 %v1917_v16  ;;  %v1928_v31 = vld [vmem:[%s2048_s21] sm:$0xff]  }
  0x1a   : > { %v776_v13 = vld [vmem:[%s2363_s4] sm:$0x3] }
  0x1b   : > { %600 = vxpose.xlu0.c.b16.cont [4/8] (narrow) %v2039_v6, 16  ;;  %v862_v14 = vld [vmem:[%s2365_s6] sm:$0xf] }
  0x1c   : > { %584 = vxpose.xlu1.c.b16.cont [4/8] (narrow) %v2043_v7, 16  ;;  %1747 = vmatpush3.bf16.msra.mxu0 %v1918_v19 }
  0x1d   : > { %1748 = vmatprep.subr.bf16.mxu0 %v1919_v20 }
  0x1f   : > { %601 = vxpose.xlu0.c.b16.cont [5/8] (narrow) %v2052_v8, 16 }
  0x20   : > { %585 = vxpose.xlu1.c.b16.cont [5/8] (narrow) %v2056_v9, 16  ;;  %1749 = vmatpush3.bf16.msra.mxu0 %v1920_v23 }
  0x21   : > { %1750 = vmatprep.subr.bf16.mxu0 %v1921_v24 }
  0x23   : > { %602 = vxpose.xlu0.c.b16.cont [6/8] (narrow) %v2059_v10, 16 }
  0x24   : > { %586 = vxpose.xlu1.c.b16.cont [6/8] (narrow) %v2063_v12, 16  ;;  %1751 = vmatpush3.bf16.msra.mxu0 %v1922_v25  ;;  %v1699_v25 = vld [vmem:[%s2366_s7] ss:$0 sm:$0xff] }
  0x25   : > { %1752 = vmatprep.subr.bf16.mxu0 %v1923_v26 }
  0x27   : > { %603 = vxpose.xlu0.c.b16.cont [7/8] (narrow) %v2072_v17, 16 }
  0x28   : > { %587 = vxpose.xlu1.c.b16.cont [7/8] (narrow) %v2076_v18, 16  ;;  %1753 = vmatpush3.bf16.msra.mxu0 %v1924_v27 }
  0x29   : > { %1754 = vmatprep.subr.bf16.mxu0 %v1925_v28 }
  0x2b   : > { %604 = vxpose.xlu0.c.b16.end [8/8] (narrow) %v2082_v21, 16 }
  0x2c   : > { %588 = vxpose.xlu1.c.b16.end [8/8] (narrow) %v2086_v22, 16  ;;  %1755 = vmatpush3.bf16.msra.mxu0 %v1926_v29 }
  0x2d   : > { %1756 = vmatprep.subr.bf16.mxu0 %v1927_v30 }
  0x30   : > { %1757 = vmatpush3.bf16.msra.mxu0 %v1928_v31 }
  0x34   : > { %1896 = vset.pattern.permute.xlu0 %v1943_v54 }
  0x71   : > { %v605_v32 = vpop.trf.xlu0 }
  0x72   : > { %741 = vmatprep.mubr.bf16.mxu0 %v605_v32  ;;  %v589_v33 = vpop.trf.xlu1 }
  0x73   : > { %742 = vmatmul.mubr.bf16.vlgmr.msra.gmra.mxu0 %v589_v33 }
 0x133   : > { %v1758_v34 = vpop.f32.mrf.mxu0 }
 0x135   : > { %v1759_v35 = vpop.f32.mrf.mxu0 }
 0x136   : > { %v1760_v36 = vadd.f32 %v1759_v35, %v1758_v34 }
 0x137   : > { %v1761_v37 = vpop.f32.mrf.mxu0 }
 0x138   : > { %v750_v38 = vsel %vm749_vm0, %v1760_v36, -inf }
 0x139   : > { %v1762_v39 = vpop.f32.mrf.mxu0  ;;  %751 = vmax.xlane.f32.xlu0 %v750_v38 }
 0x14f   : > { %780 = vperm.xlu0 %1896, %v777_v53  }
 0x1c2   : > { %v752_v40 = vpop.xlane.xlu0 %751 }
 0x1c3   : > { %v754_v41 = vsel %vm753_vm1, %v752_v40, -inf }
 0x1c4   : > { %v755_v42 = vrot.slane %v754_v41, 4 }
 0x1c6   : > { %v756_v43 = vmax.f32 %v754_v41, %v755_v42 }
 0x1c8   : > { %v757_v44 = vrot.slane %v756_v43, 2 }
 0x1ca   : > { %v758_v45 = vmax.f32 %v756_v43, %v757_v44  ;;  %v781_v15 = vpop.permute.xlu0 %780 }
 0x1cc   : > { %v759_v46 = vrot.slane %v758_v45, 1 }
 0x1ce   : > { %v760_v47 = vmax.f32 %v758_v45, %v759_v46 }
 0x1d0   : > { %v761_v48 = vsub.f32 %v1760_v36, %v760_v47 }
 0x1d2   : > { %v762_v49 = vmul.f32 1.442695, %v761_v48 }
 0x1d4   : > { %1929 = vpow2.f32 %v762_v49 }
 0x1e1   : > { %v1930_v50 = vpop.eup %1929 }
 0x1e2   : > { %v764_v51 = vsel %vm749_vm0, %v1930_v50, 0.0 }
 0x1e3   : > { %765 = vadd.xlane.f32.xlu1 %v764_v51 }
 0x26c   : > { %v766_v55 = vpop.xlane.xlu1 %765 }
 0x26d   : > { %v767_v56 = vsel %vm753_vm1, %v766_v55, 0.0 }
 0x26e   : > { %v768_v57 = vrot.slane %v767_v56, 4 }
 0x270   : > { %v769_v58 = vadd.f32 %v768_v57, %v767_v56 }
 0x272   : > { %v770_v59 = vrot.slane %v769_v58, 2 }
 0x274   : > { %v771_v60 = vadd.f32 %v770_v59, %v769_v58 }
 0x276   : > { %v772_v61 = vrot.slane %v771_v60, 1 }
 0x278   : > { %v773_v62 = vadd.f32 %v772_v61, %v771_v60 }
 0x27a   : > { %1931 = vrcp.f32 %v773_v62 }
 0x287   : > { %v1932_v63 = vpop.eup %1931 }
 0x288   : > { %v775_v11 = vmul.f32 %v1932_v63, %v1930_v50 }
 0x28a   : > { %1803 = vmatpush3.msk.msra.mxu1 %vm753_vm1, %v775_v11 }
 0x28b   : > { %1805 = vmatmul.mubr.msk.f32.vlgmr.msra.gmra.mxu1 %vm783_vm3, %v776_v13  ;;  %1807 = vmatprep.subr.mxu1 %v1941_v52  ;;  %v1400_v13 = vld [vmem:[%s2184_s20 + $0x10] sm:$0xff] }
 0x28c   : > { %1809 = vmatprep.mubr.msk.f32.mxu1 %vm1942_vm2, %v1941_v52  ;;  %1808 = vmatpush3.msk.msra.mxu1 %vm874_vm4, %v862_v14  ;;  %v1432_v14 = vld [vmem:[%s2179_s17 + $0x10] sm:$0xff] }
 0x34b   : > { %v856_v16 = vpop.f32.mrf.mxu1 }
 0x34c   : > { %v857_v19 = vadd.f32 %v856_v16, %v781_v15  ;;  %v2191_v15 = vld [vmem:[%s2368_s9] ss:$0 sm:$0xff] }
 0x34d   : > { %v1806_v20 = vpop.f32.mrf.mxu1  ;;  %v1398_v16 = vld [vmem:[%s2184_s20] sm:$0xff] }
 0x34e   : > { %v860_v23 = vadd.f32 %v857_v19, %v775_v11  ;;  %v1430_v19 = vld [vmem:[%s2179_s17] sm:$0xff]  ;;  %v1464_v20 = vadd.f32 %v1432_v14, %v1400_v13 }
 0x350   : > { %v861_v24 = vmax.f32 %v860_v23, 0.0 }
 0x352   : > { %1810 = vmatmul.mubr.msk.f32.vlgmr.msra.gmra.mxu1 %vm870_vm5, %v861_v24  ;;  %v1401_v24 = vld [vmem:[%s2184_s20 + $0x18] sm:$0xff] }
 0x353   : > { %1814 = vmatprep.mubr.msk.bf16.mxu1 %vm783_vm3, %v2019_v1 }
 0x412   : > { %v944_v26 = vpop.f32.mrf.mxu1 }
 0x413   : > { %v945_v27 = vadd.f32 %v1699_v25, %v944_v26  ;;  %v1433_v25 = vld [vmem:[%s2179_s17 + $0x18] sm:$0xff] }
 0x414   : > { %v1811_v28 = vpop.f32.mrf.mxu1 }
 0x415   : > { %v948_v29 = vpack.c.bf16 %v945_v27, %v945_v27  ;;  %v1462_v27 = vadd.f32 %v1430_v19, %v1398_v16  ;;  %v1412_v16 = vld [vmem:[%s2184_s20 + $0x70] sm:$0xff] }
 0x416   : > { %v1444_v19 = vld [vmem:[%s2179_s17 + $0x70] sm:$0xff] }
 0x417   : > { %v999_v30 = vsel %vm997_vm6, %v948_v29, 0  ;;  %1882 = vmatprep.subr.msk.bf16.mxu1 %vm997_vm6, %v948_v29  ;;  %v1399_v29 = vld [vmem:[%s2184_s20 + $0x8] sm:$0xff] }
 0x418   : > { %1813 = vmatpush3.bf16.msra.mxu1 %v999_v30  ;;  %v1431_v30 = vld [vmem:[%s2179_s17 + $0x8] sm:$0xff] }
 0x41b   : > { %1815 = vmatmul.mubr.msk.bf16.vlgmr.msra.gmra.mxu1 %vm783_vm3, %v2027_v3 }
 0x41c   : > { %1818 = vmatprep.mubr.msk.bf16.mxu1 %vm783_vm3, %v2035_v5 }
 0x423   : > { %1819 = vmatmul.mubr.msk.bf16.gmra.mxu1 %vm783_vm3, %v2043_v7 }
 0x424   : > { %1822 = vmatprep.mubr.msk.bf16.mxu1 %vm783_vm3, %v2056_v9 }
 0x42b   : > { %1823 = vmatmul.mubr.msk.bf16.gmra.mxu1 %vm783_vm3, %v2063_v12 }
 0x42c   : > { %1826 = vmatprep.mubr.msk.bf16.mxu1 %vm783_vm3, %v2076_v18 }
 0x433   : > { %1827 = vmatmul.mubr.msk.bf16.gmra.mxu1 %vm783_vm3, %v2086_v22 }
 0x434   : > { %1830 = vmatprep.mubr.msk.bf16.mxu1 %vm783_vm3, %v2016_v0  ;;  %v1178_v0 = vld [vmem:[%s2367_s8] sm:$0x3] }
 0x435   : > { %1884 = vmatprep.subr.msk.bf16.mxu1 %vm753_vm1, %v1178_v0  ;;  %v1235_v1 = vsel %vm753_vm1, %v1178_v0, 0  ;;  %1883 = vmatprep.subr.msk.bf16.mxu0 %vm753_vm1, %v1178_v0 }
 0x436   : > { %1881 = vmatpush3.bf16.msra.mxu1 %v1235_v1  ;;  %1847 = vmatpush3.bf16.msra.mxu0 %v1235_v1 }
 0x43b   : > { %1831 = vmatmul.mubr.msk.bf16.gmra.mxu1 %vm783_vm3, %v2023_v2 }
 0x43c   : > { %1834 = vmatprep.mubr.msk.bf16.mxu1 %vm783_vm3, %v2031_v4 }
 0x443   : > { %1835 = vmatmul.mubr.msk.bf16.gmra.mxu1 %vm783_vm3, %v2039_v6 }
 0x444   : > { %1838 = vmatprep.mubr.msk.bf16.mxu1 %vm783_vm3, %v2052_v8 }
 0x44b   : > { %1839 = vmatmul.mubr.msk.bf16.gmra.mxu1 %vm783_vm3, %v2059_v10 }
 0x44c   : > { %1842 = vmatprep.mubr.msk.bf16.mxu1 %vm783_vm3, %v2072_v17 }
 0x453   : > { %1843 = vmatmul.mubr.msk.bf16.gmra.mxu1 %vm783_vm3, %v2082_v21 }
 0x4db   : > { %v1816_v2 = vpop.f32.mrf.mxu1 }
 0x4dd   : > { %v1035_v3 = vpop.f32.mrf.mxu1 }
 0x4df   : > { %v1817_v4 = vpop.f32.mrf.mxu1 }
 0x4e0   : > { %v1163_v7 = vpack.c.bf16 %v1817_v4, %v1816_v2  ;;  %v1465_v2 = vadd.f32 %v1433_v25, %v1401_v24  ;;  %v1404_v4 = vld [vmem:[%s2184_s20 + $0x30] sm:$0xff] }
 0x4e1   : > { %v1038_v5 = vpop.f32.mrf.mxu1 }
 0x4e2   : > { %v1162_v6 = vpack.c.bf16 %v1038_v5, %v1035_v3  ;;  %v1436_v5 = vld [vmem:[%s2179_s17 + $0x30] sm:$0xff] }
 0x4e3   : > { %v1820_v8 = vpop.f32.mrf.mxu1 }
 0x4e4   : > { %1848 = vmatprep.mubr.msk.bf16.mxu0 %vm870_vm5, %v1162_v6 }
 0x4e5   : > { %v1051_v9 = vpop.f32.mrf.mxu1  ;;  %1849 = vmatmul.mubr.msk.bf16.vlgmr.msra.gmra.mxu0 %vm870_vm5, %v1163_v7 }
 0x4e7   : > { %v1821_v10 = vpop.f32.mrf.mxu1 }
 0x4e8   : > { %v1165_v18 = vpack.c.bf16 %v1821_v10, %v1820_v8  ;;  %v1463_v8 = vadd.f32 %v1431_v30, %v1399_v29  ;;  %v1402_v10 = vld [vmem:[%s2184_s20 + $0x20] sm:$0xff]  ;;  %v1476_v30 = vadd.f32 %v1444_v19, %v1412_v16 }
 0x4e9   : > { %v1054_v12 = vpop.f32.mrf.mxu1 }
 0x4ea   : > { %v1164_v17 = vpack.c.bf16 %v1054_v12, %v1051_v9  ;;  %v1434_v12 = vld [vmem:[%s2179_s17 + $0x20] sm:$0xff] }
 0x4eb   : > { %v1824_v21 = vpop.f32.mrf.mxu1 }
 0x4ec   : > { %1852 = vmatprep.mubr.msk.bf16.mxu0 %vm870_vm5, %v1164_v17 }
 0x4ed   : > { %v1067_v22 = vpop.f32.mrf.mxu1  ;;  %1853 = vmatmul.mubr.msk.bf16.gmra.mxu0 %vm870_vm5, %v1165_v18 }
 0x4ef   : > { %v1825_v31 = vpop.f32.mrf.mxu1 }
 0x4f0   : > { %v1167_v34 = vpack.c.bf16 %v1825_v31, %v1824_v21  ;;  %v1468_v21 = vadd.f32 %v1436_v5, %v1404_v4  ;;  %v1405_v31 = vld [vmem:[%s2184_s20 + $0x38] sm:$0xff] }
 0x4f1   : > { %v1070_v32 = vpop.f32.mrf.mxu1 }
 0x4f2   : > { %v1166_v33 = vpack.c.bf16 %v1070_v32, %v1067_v22  ;;  %v1437_v32 = vld [vmem:[%s2179_s17 + $0x38] sm:$0xff] }
 0x4f3   : > { %v1828_v35 = vpop.f32.mrf.mxu1 }
 0x4f4   : > { %1856 = vmatprep.mubr.msk.bf16.mxu0 %vm870_vm5, %v1166_v33 }
 0x4f5   : > { %v1083_v36 = vpop.f32.mrf.mxu1  ;;  %1857 = vmatmul.mubr.msk.bf16.gmra.mxu0 %vm870_vm5, %v1167_v34 }
 0x4f7   : > { %v1829_v37 = vpop.f32.mrf.mxu1 }
 0x4f8   : > { %v1169_v40 = vpack.c.bf16 %v1829_v37, %v1828_v35  ;;  %v1466_v35 = vadd.f32 %v1434_v12, %v1402_v10  ;;  %v1403_v37 = vld [vmem:[%s2184_s20 + $0x28] sm:$0xff] }
 0x4f9   : > { %v1086_v38 = vpop.f32.mrf.mxu1 }
 0x4fa   : > { %v1168_v39 = vpack.c.bf16 %v1086_v38, %v1083_v36  ;;  %v1435_v38 = vld [vmem:[%s2179_s17 + $0x28] sm:$0xff] }
 0x4fb   : > { %v1832_v41 = vpop.f32.mrf.mxu1 }
 0x4fc   : > { %1860 = vmatprep.mubr.msk.bf16.mxu0 %vm870_vm5, %v1168_v39 }
 0x4fd   : > { %v1099_v42 = vpop.f32.mrf.mxu1  ;;  %1861 = vmatmul.mubr.msk.bf16.gmra.mxu0 %vm870_vm5, %v1169_v40 }
 0x4ff   : > { %v1833_v43 = vpop.f32.mrf.mxu1 }
 0x500   : > { %v1171_v46 = vpack.c.bf16 %v1833_v43, %v1832_v41  ;;  %v1469_v41 = vadd.f32 %v1437_v32, %v1405_v31  ;;  %v1408_v43 = vld [vmem:[%s2184_s20 + $0x50] sm:$0xff] }
 0x501   : > { %v1102_v44 = vpop.f32.mrf.mxu1 }
 0x502   : > { %v1170_v45 = vpack.c.bf16 %v1102_v44, %v1099_v42  ;;  %v1440_v44 = vld [vmem:[%s2179_s17 + $0x50] sm:$0xff] }
 0x503   : > { %v1836_v47 = vpop.f32.mrf.mxu1 }
 0x504   : > { %1864 = vmatprep.mubr.msk.bf16.mxu0 %vm870_vm5, %v1170_v45 }
 0x505   : > { %v1115_v48 = vpop.f32.mrf.mxu1  ;;  %1865 = vmatmul.mubr.msk.bf16.gmra.mxu0 %vm870_vm5, %v1171_v46 }
 0x507   : > { %v1837_v49 = vpop.f32.mrf.mxu1 }
 0x508   : > { %v1173_v52 = vpack.c.bf16 %v1837_v49, %v1836_v47  ;;  %v1467_v47 = vadd.f32 %v1435_v38, %v1403_v37  ;;  %v1406_v49 = vld [vmem:[%s2184_s20 + $0x40] sm:$0xff] }
 0x509   : > { %v1118_v50 = vpop.f32.mrf.mxu1 }
 0x50a   : > { %v1172_v51 = vpack.c.bf16 %v1118_v50, %v1115_v48  ;;  %v1438_v50 = vld [vmem:[%s2179_s17 + $0x40] sm:$0xff] }
 0x50b   : > { %v1840_v53 = vpop.f32.mrf.mxu1 }
 0x50c   : > { %1868 = vmatprep.mubr.msk.bf16.mxu0 %vm870_vm5, %v1172_v51 }
 0x50d   : > { %v1131_v54 = vpop.f32.mrf.mxu1  ;;  %1869 = vmatmul.mubr.msk.bf16.gmra.mxu0 %vm870_vm5, %v1173_v52 }
 0x50f   : > { %v1841_v55 = vpop.f32.mrf.mxu1 }
 0x510   : > { %v1175_v58 = vpack.c.bf16 %v1841_v55, %v1840_v53  ;;  %v1472_v53 = vadd.f32 %v1440_v44, %v1408_v43  ;;  %v1409_v55 = vld [vmem:[%s2184_s20 + $0x58] sm:$0xff] }
 0x511   : > { %v1134_v56 = vpop.f32.mrf.mxu1 }
 0x512   : > { %v1174_v57 = vpack.c.bf16 %v1134_v56, %v1131_v54  ;;  %v1441_v56 = vld [vmem:[%s2179_s17 + $0x58] sm:$0xff] }
 0x513   : > { %v1844_v59 = vpop.f32.mrf.mxu1  ;;  %v1473_v13 = vadd.f32 %v1441_v56, %v1409_v55 }
 0x514   : > { %1872 = vmatprep.mubr.msk.bf16.mxu0 %vm870_vm5, %v1174_v57 }
 0x515   : > { %v1147_v60 = vpop.f32.mrf.mxu1  ;;  %1873 = vmatmul.mubr.msk.bf16.gmra.mxu0 %vm870_vm5, %v1175_v58 }
 0x517   : > { %v1845_v61 = vpop.f32.mrf.mxu1 }
 0x518   : > { %v1177_v11 = vpack.c.bf16 %v1845_v61, %v1844_v59  ;;  %v1470_v59 = vadd.f32 %v1438_v50, %v1406_v49  ;;  %v1407_v61 = vld [vmem:[%s2184_s20 + $0x48] sm:$0xff] }
 0x519   : > { %v1150_v62 = vpop.f32.mrf.mxu1 }
 0x51a   : > { %v1176_v63 = vpack.c.bf16 %v1150_v62, %v1147_v60  ;;  %v1439_v62 = vld [vmem:[%s2179_s17 + $0x48] sm:$0xff] }
 0x51b   : > { %v1471_v24 = vadd.f32 %v1439_v62, %v1407_v61 }
 0x51c   : > { %1876 = vmatprep.mubr.msk.bf16.mxu1 %vm870_vm5, %v1176_v63 }
 0x51d   : > { %1877 = vmatmul.mubr.msk.bf16.vlgmr.msra.gmra.mxu1 %vm870_vm5, %v1177_v11 }
 0x5a5   : > { %v1850_v23 = vpop.f32.mrf.mxu0 }
 0x5a6   : > { %v1280_v26 = vadd.f32 %v1850_v23, %v2191_v15 }
 0x5a7   : > { %v1271_v28 = vpop.f32.mrf.mxu0 }
 0x5a8   : > { %v1496_v0 = vadd.f32 %v1464_v20, %v1280_v26  ;;  %v1272_v1 = vadd.f32 %v2191_v15, %v1271_v28  ;;  %v1410_v26 = vld [vmem:[%s2184_s20 + $0x60] sm:$0xff] }
 0x5a9   : > { %v1851_v3 = vpop.f32.mrf.mxu0 }
 0x5aa   : > { %1529 = vst.msk [vmem:[%s2201_s24 + $0x10] sm:$0xff] %vm1526_vm7, %v1496_v0  ;;  %v1494_v6 = vadd.f32 %v1462_v27, %v1272_v1  ;;  %v1283_v7 = vadd.f32 %v1851_v3, %v2191_v15  ;;  %v1442_v27 = vld [vmem:[%s2179_s17 + $0x60] sm:$0xff]  ;;  %v1413_v1 = vld [vmem:[%s2184_s20 + $0x78] sm:$0xff] }
 0x5ab   : > { %v1274_v9 = vpop.f32.mrf.mxu0  ;;  %v1474_v5 = vadd.f32 %v1442_v27, %v1410_v26 }
 0x5ac   : > { %1527 = vst.msk [vmem:[%s2201_s24] sm:$0xff] %vm1526_vm7, %v1494_v6  ;;  %v1497_v17 = vadd.f32 %v1465_v2, %v1283_v7  ;;  %v1275_v18 = vadd.f32 %v2191_v15, %v1274_v9  ;;  %v1445_v2 = vld [vmem:[%s2179_s17 + $0x78] sm:$0xff]  ;;  %v1411_v7 = vld [vmem:[%s2184_s20 + $0x68] sm:$0xff] }
 0x5ad   : > { %v1854_v22 = vpop.f32.mrf.mxu0  ;;  %v1477_v12 = vadd.f32 %v1445_v2, %v1413_v1 }
 0x5ae   : > { %1530 = vst.msk [vmem:[%s2201_s24 + $0x18] sm:$0xff] %vm1526_vm7, %v1497_v17  ;;  %v1495_v33 = vadd.f32 %v1463_v8, %v1275_v18  ;;  %v1296_v34 = vadd.f32 %v1854_v22, %v2191_v15  ;;  %v1443_v8 = vld [vmem:[%s2179_s17 + $0x68] sm:$0xff]  ;;  %v1416_v18 = vld [vmem:[%s2184_s20 + $0x90] sm:$0xff] }
 0x5af   : > { %v1287_v36 = vpop.f32.mrf.mxu0  ;;  %v1475_v32 = vadd.f32 %v1443_v8, %v1411_v7 }
 0x5b0   : > { %1528 = vst.msk [vmem:[%s2201_s24 + $0x8] sm:$0xff] %vm1526_vm7, %v1495_v33  ;;  %v1500_v39 = vadd.f32 %v1468_v21, %v1296_v34  ;;  %v1288_v40 = vadd.f32 %v2191_v15, %v1287_v36  ;;  %v1448_v21 = vld [vmem:[%s2179_s17 + $0x90] sm:$0xff]  ;;  %v1414_v34 = vld [vmem:[%s2184_s20 + $0x80] sm:$0xff] }
 0x5b1   : > { %v1855_v42 = vpop.f32.mrf.mxu0  ;;  %v1480_v38 = vadd.f32 %v1448_v21, %v1416_v18 }
 0x5b2   : > { %1533 = vst.msk [vmem:[%s2201_s24 + $0x30] sm:$0xff] %vm1526_vm7, %v1500_v39  ;;  %v1498_v45 = vadd.f32 %v1466_v35, %v1288_v40  ;;  %v1299_v46 = vadd.f32 %v1855_v42, %v2191_v15  ;;  %v1446_v35 = vld [vmem:[%s2179_s17 + $0x80] sm:$0xff]  ;;  %v1417_v40 = vld [vmem:[%s2184_s20 + $0x98] sm:$0xff] }
 0x5b3   : > { %v1290_v48 = vpop.f32.mrf.mxu0  ;;  %v1478_v44 = vadd.f32 %v1446_v35, %v1414_v34 }
 0x5b4   : > { %1531 = vst.msk [vmem:[%s2201_s24 + $0x20] sm:$0xff] %vm1526_vm7, %v1498_v45  ;;  %v1501_v51 = vadd.f32 %v1469_v41, %v1299_v46  ;;  %v1291_v52 = vadd.f32 %v2191_v15, %v1290_v48  ;;  %v1449_v41 = vld [vmem:[%s2179_s17 + $0x98] sm:$0xff]  ;;  %v1415_v46 = vld [vmem:[%s2184_s20 + $0x88] sm:$0xff] }
 0x5b5   : > { %v1858_v54 = vpop.f32.mrf.mxu0  ;;  %v1481_v50 = vadd.f32 %v1449_v41, %v1417_v40 }
 0x5b6   : > { %1534 = vst.msk [vmem:[%s2201_s24 + $0x38] sm:$0xff] %vm1526_vm7, %v1501_v51  ;;  %v1499_v57 = vadd.f32 %v1467_v47, %v1291_v52  ;;  %v1312_v58 = vadd.f32 %v1858_v54, %v2191_v15  ;;  %v1447_v47 = vld [vmem:[%s2179_s17 + $0x88] sm:$0xff]  ;;  %v1420_v52 = vld [vmem:[%s2184_s20 + $0xb0] sm:$0xff] }
 0x5b7   : > { %v1303_v60 = vpop.f32.mrf.mxu0  ;;  %v1479_v56 = vadd.f32 %v1447_v47, %v1415_v46 }
 0x5b8   : > { %1532 = vst.msk [vmem:[%s2201_s24 + $0x28] sm:$0xff] %vm1526_vm7, %v1499_v57  ;;  %v1504_v63 = vadd.f32 %v1472_v53, %v1312_v58  ;;  %v1304_v11 = vadd.f32 %v2191_v15, %v1303_v60  ;;  %v1452_v53 = vld [vmem:[%s2179_s17 + $0xb0] sm:$0xff]  ;;  %v1418_v58 = vld [vmem:[%s2184_s20 + $0xa0] sm:$0xff] }
 0x5b9   : > { %v1859_v14 = vpop.f32.mrf.mxu0  ;;  %v1484_v62 = vadd.f32 %v1452_v53, %v1420_v52 }
 0x5ba   : > { %1537 = vst.msk [vmem:[%s2201_s24 + $0x50] sm:$0xff] %vm1526_vm7, %v1504_v63  ;;  %v1502_v20 = vadd.f32 %v1470_v59, %v1304_v11  ;;  %v1315_v23 = vadd.f32 %v1859_v14, %v2191_v15  ;;  %v1450_v59 = vld [vmem:[%s2179_s17 + $0xa0] sm:$0xff]  ;;  %v1421_v11 = vld [vmem:[%s2184_s20 + $0xb8] sm:$0xff] }
 0x5bb   : > { %v1306_v25 = vpop.f32.mrf.mxu0  ;;  %v1482_v19 = vadd.f32 %v1450_v59, %v1418_v58 }
 0x5bc   : > { %1535 = vst.msk [vmem:[%s2201_s24 + $0x40] sm:$0xff] %vm1526_vm7, %v1502_v20  ;;  %v1505_v28 = vadd.f32 %v1473_v13, %v1315_v23  ;;  %v1307_v29 = vadd.f32 %v2191_v15, %v1306_v25  ;;  %v1453_v13 = vld [vmem:[%s2179_s17 + $0xb8] sm:$0xff]  ;;  %v1419_v23 = vld [vmem:[%s2184_s20 + $0xa8] sm:$0xff] }
 0x5bd   : > { %v1862_v0 = vpop.f32.mrf.mxu0  ;;  %v1485_v27 = vadd.f32 %v1453_v13, %v1421_v11 }
 0x5be   : > { %1538 = vst.msk [vmem:[%s2201_s24 + $0x58] sm:$0xff] %vm1526_vm7, %v1505_v28  ;;  %v1503_v3 = vadd.f32 %v1471_v24, %v1307_v29  ;;  %v1328_v4 = vadd.f32 %v1862_v0, %v2191_v15  ;;  %v1451_v24 = vld [vmem:[%s2179_s17 + $0xa8] sm:$0xff]  ;;  %v1424_v29 = vld [vmem:[%s2184_s20 + $0xd0] sm:$0xff] }
 0x5bf   : > { %v1319_v6 = vpop.f32.mrf.mxu0  ;;  %v1483_v2 = vadd.f32 %v1451_v24, %v1419_v23 }
 0x5c0   : > { %1536 = vst.msk [vmem:[%s2201_s24 + $0x48] sm:$0xff] %vm1526_vm7, %v1503_v3  ;;  %v1508_v9 = vadd.f32 %v1476_v30, %v1328_v4  ;;  %v1320_v10 = vadd.f32 %v2191_v15, %v1319_v6  ;;  %v1456_v30 = vld [vmem:[%s2179_s17 + $0xd0] sm:$0xff]  ;;  %v1422_v4 = vld [vmem:[%s2184_s20 + $0xc0] sm:$0xff] }
 0x5c1   : > { %v1863_v17 = vpop.f32.mrf.mxu0  ;;  %v1488_v8 = vadd.f32 %v1456_v30, %v1424_v29 }
 0x5c2   : > { %1541 = vst.msk [vmem:[%s2201_s24 + $0x70] sm:$0xff] %vm1526_vm7, %v1508_v9  ;;  %v1506_v22 = vadd.f32 %v1474_v5, %v1320_v10  ;;  %v1331_v31 = vadd.f32 %v1863_v17, %v2191_v15  ;;  %v1454_v5 = vld [vmem:[%s2179_s17 + $0xc0] sm:$0xff]  ;;  %v1425_v10 = vld [vmem:[%s2184_s20 + $0xd8] sm:$0xff] }
 0x5c3   : > { %v1322_v33 = vpop.f32.mrf.mxu0  ;;  %v1486_v21 = vadd.f32 %v1454_v5, %v1422_v4 }
 0x5c4   : > { %1539 = vst.msk [vmem:[%s2201_s24 + $0x60] sm:$0xff] %vm1526_vm7, %v1506_v22  ;;  %v1509_v36 = vadd.f32 %v1477_v12, %v1331_v31  ;;  %v1323_v37 = vadd.f32 %v2191_v15, %v1322_v33  ;;  %v1457_v12 = vld [vmem:[%s2179_s17 + $0xd8] sm:$0xff]  ;;  %v1423_v31 = vld [vmem:[%s2184_s20 + $0xc8] sm:$0xff] }
 0x5c5   : > { %v1866_v39 = vpop.f32.mrf.mxu0  ;;  %v1489_v35 = vadd.f32 %v1457_v12, %v1425_v10 }
 0x5c6   : > { %1542 = vst.msk [vmem:[%s2201_s24 + $0x78] sm:$0xff] %vm1526_vm7, %v1509_v36  ;;  %v1507_v42 = vadd.f32 %v1475_v32, %v1323_v37  ;;  %v1344_v43 = vadd.f32 %v1866_v39, %v2191_v15  ;;  %v1455_v32 = vld [vmem:[%s2179_s17 + $0xc8] sm:$0xff]  ;;  %v1428_v37 = vld [vmem:[%s2184_s20 + $0xf0] sm:$0xff] }
 0x5c7   : > { %v1335_v45 = vpop.f32.mrf.mxu0  ;;  %v1487_v41 = vadd.f32 %v1455_v32, %v1423_v31 }
 0x5c8   : > { %1540 = vst.msk [vmem:[%s2201_s24 + $0x68] sm:$0xff] %vm1526_vm7, %v1507_v42  ;;  %v1512_v48 = vadd.f32 %v1480_v38, %v1344_v43  ;;  %v1336_v49 = vadd.f32 %v2191_v15, %v1335_v45  ;;  %v1460_v38 = vld [vmem:[%s2179_s17 + $0xf0] sm:$0xff]  ;;  %v1426_v43 = vld [vmem:[%s2184_s20 + $0xe0] sm:$0xff] }
 0x5c9   : > { %v1867_v51 = vpop.f32.mrf.mxu0  ;;  %v1492_v47 = vadd.f32 %v1460_v38, %v1428_v37 }
 0x5ca   : > { %1545 = vst.msk [vmem:[%s2201_s24 + $0x90] sm:$0xff] %vm1526_vm7, %v1512_v48  ;;  %v1510_v54 = vadd.f32 %v1478_v44, %v1336_v49  ;;  %v1347_v55 = vadd.f32 %v1867_v51, %v2191_v15  ;;  %v1458_v44 = vld [vmem:[%s2179_s17 + $0xe0] sm:$0xff]  ;;  %v1429_v49 = vld [vmem:[%s2184_s20 + $0xf8] sm:$0xff] }
 0x5cb   : > { %v1338_v57 = vpop.f32.mrf.mxu0  ;;  %v1490_v53 = vadd.f32 %v1458_v44, %v1426_v43 }
 0x5cc   : > { %1543 = vst.msk [vmem:[%s2201_s24 + $0x80] sm:$0xff] %vm1526_vm7, %v1510_v54  ;;  %v1513_v60 = vadd.f32 %v1481_v50, %v1347_v55  ;;  %v1339_v61 = vadd.f32 %v2191_v15, %v1338_v57  ;;  %v1461_v50 = vld [vmem:[%s2179_s17 + $0xf8] sm:$0xff]  ;;  %v1427_v55 = vld [vmem:[%s2184_s20 + $0xe8] sm:$0xff] }
 0x5cd   : > { %v1870_v63 = vpop.f32.mrf.mxu0  ;;  %v1493_v59 = vadd.f32 %v1461_v50, %v1429_v49 }
 0x5ce   : > { %1546 = vst.msk [vmem:[%s2201_s24 + $0x98] sm:$0xff] %vm1526_vm7, %v1513_v60  ;;  %v1511_v14 = vadd.f32 %v1479_v56, %v1339_v61  ;;  %v1360_v16 = vadd.f32 %v1870_v63, %v2191_v15  ;;  %v1459_v56 = vld [vmem:[%s2179_s17 + $0xe8] sm:$0xff] }
 0x5cf   : > { %v1351_v20 = vpop.f32.mrf.mxu0  ;;  %v1491_v63 = vadd.f32 %v1459_v56, %v1427_v55 }
 0x5d0   : > { %1544 = vst.msk [vmem:[%s2201_s24 + $0x88] sm:$0xff] %vm1526_vm7, %v1511_v14  ;;  %v1516_v25 = vadd.f32 %v1484_v62, %v1360_v16  ;;  %v1352_v26 = vadd.f32 %v2191_v15, %v1351_v20 }
 0x5d1   : > { %v1871_v28 = vpop.f32.mrf.mxu0 }
 0x5d2   : > { %1549 = vst.msk [vmem:[%s2201_s24 + $0xb0] sm:$0xff] %vm1526_vm7, %v1516_v25  ;;  %v1514_v0 = vadd.f32 %v1482_v19, %v1352_v26  ;;  %v1363_v1 = vadd.f32 %v1871_v28, %v2191_v15 }
 0x5d3   : > { %v1354_v3 = vpop.f32.mrf.mxu0 }
 0x5d4   : > { %1547 = vst.msk [vmem:[%s2201_s24 + $0xa0] sm:$0xff] %vm1526_vm7, %v1514_v0  ;;  %v1517_v6 = vadd.f32 %v1485_v27, %v1363_v1  ;;  %v1355_v7 = vadd.f32 %v2191_v15, %v1354_v3 }
 0x5d5   : > { %v1874_v9 = vpop.f32.mrf.mxu0 }
 0x5d6   : > { %1550 = vst.msk [vmem:[%s2201_s24 + $0xb8] sm:$0xff] %vm1526_vm7, %v1517_v6  ;;  %v1515_v17 = vadd.f32 %v1483_v2, %v1355_v7  ;;  %v1376_v18 = vadd.f32 %v1874_v9, %v2191_v15 }
 0x5d7   : > { %v1367_v22 = vpop.f32.mrf.mxu0 }
 0x5d8   : > { %1548 = vst.msk [vmem:[%s2201_s24 + $0xa8] sm:$0xff] %vm1526_vm7, %v1515_v17  ;;  %v1520_v33 = vadd.f32 %v1488_v8, %v1376_v18  ;;  %v1368_v34 = vadd.f32 %v2191_v15, %v1367_v22 }
 0x5d9   : > { %v1875_v36 = vpop.f32.mrf.mxu0 }
 0x5da   : > { %1553 = vst.msk [vmem:[%s2201_s24 + $0xd0] sm:$0xff] %vm1526_vm7, %v1520_v33  ;;  %v1518_v39 = vadd.f32 %v1486_v21, %v1368_v34  ;;  %v1379_v40 = vadd.f32 %v1875_v36, %v2191_v15 }
 0x5db   : > { %v1370_v42 = vpop.f32.mrf.mxu0 }
 0x5dc   : > { %1551 = vst.msk [vmem:[%s2201_s24 + $0xc0] sm:$0xff] %vm1526_vm7, %v1518_v39  ;;  %v1521_v45 = vadd.f32 %v1489_v35, %v1379_v40  ;;  %v1371_v46 = vadd.f32 %v2191_v15, %v1370_v42 }
 0x5dd   : > { %v1878_v48 = vpop.f32.mrf.mxu1 }
 0x5de   : > { %1554 = vst.msk [vmem:[%s2201_s24 + $0xd8] sm:$0xff] %vm1526_vm7, %v1521_v45  ;;  %v1519_v51 = vadd.f32 %v1487_v41, %v1371_v46  ;;  %v1392_v52 = vadd.f32 %v1878_v48, %v2191_v15 }
 0x5df   : > { %v1383_v54 = vpop.f32.mrf.mxu1 }
 0x5e0   : > { %1552 = vst.msk [vmem:[%s2201_s24 + $0xc8] sm:$0xff] %vm1526_vm7, %v1519_v51  ;;  %v1524_v57 = vadd.f32 %v1492_v47, %v1392_v52  ;;  %v1384_v58 = vadd.f32 %v2191_v15, %v1383_v54 }
 0x5e1   : > { %v1879_v60 = vpop.f32.mrf.mxu1 }
 0x5e2   : > { %1557 = vst.msk [vmem:[%s2201_s24 + $0xf0] sm:$0xff] %vm1526_vm7, %v1524_v57  ;;  %v1522_v61 = vadd.f32 %v1490_v53, %v1384_v58  ;;  %v1395_v62 = vadd.f32 %v1879_v60, %v2191_v15 }
 0x5e3   : > { %v1386_v11 = vpop.f32.mrf.mxu1 }
 0x5e4   : > { %1555 = vst.msk [vmem:[%s2201_s24 + $0xe0] sm:$0xff] %vm1526_vm7, %v1522_v61  ;;  %v1525_v13 = vadd.f32 %v1493_v59, %v1395_v62  ;;  %v1387_v14 = vadd.f32 %v2191_v15, %v1386_v11 }
 0x5e6   : > { %1558 = vst.msk [vmem:[%s2201_s24 + $0xf8] sm:$0xff] %vm1526_vm7, %v1525_v13  ;;  %v1523_v16 = vadd.f32 %v1491_v63, %v1387_v14 }
 0x5e8   : > { %1556 = vst.msk [vmem:[%s2201_s24 + $0xe8] sm:$0xff] %vm1526_vm7, %v1523_v16 }
 0x5e9 PF: > { %s20_s13 = sadd.s32 1, %s1939_s13  }
 0x5ea   : > { %p17_p4 = scmp.ge.s32.totalorder %s20_s13, 4  }
 0x5ec   :  { %19 = sbr.rel (!%p17_p4) target bundleno = 1 (0x1), region = 99 }

// kernel: block_encoder_forward.8
= control target key start
LH: loop header
LB: loop body
LE: loop exit
PB: predicated region body
PF: predicated region fallthrough
CT: control target
= control target key end

     0   :  { %vm231_vm0 = vcmask 1043456   ;;  %vm134_vm1 = vcmask 64512   ;;  %vm1272_vm2 = vcmask 11264   ;;  %vm1893_vm3 = vcmask 27648   ;;  %s4065_s1 = inlined_call_operand.vmem [shape: bf16[8,8], index: 1, kind: input, shape index: {}]   ;;  %s4066_s0 = inlined_call_operand.vmem [shape: f32[512,8], index: 0, kind: input, shape index: {}]   ;;  %s4067_s3 = inlined_call_operand.vmem [shape: bf16[8,2], index: 3, kind: input, shape index: {}]   ;;  %s4068_s5 = inlined_call_operand.vmem [shape: bf16[8,4], index: 5, kind: input, shape index: {}]   ;;  %s4069_s2 = inlined_call_operand.vmem [shape: f32[1,8], index: 2, kind: input, shape index: {}]   ;;  %s4070_s7 = inlined_call_operand.vmem [shape: f32[512,8], index: 7, kind: output, shape index: {0}]   ;;  %s4071_s4 = inlined_call_operand.vmem [shape: f32[1,2], index: 4, kind: input, shape index: {}]   ;;  %s4072_s6 = inlined_call_operand.vmem [shape: f32[1,4], index: 6, kind: input, shape index: {}]   ;;  %s4073_s8 = inlined_call_operand.vmem [shape: bf16[512,2], index: 8, kind: output, shape index: {1}]   ;;  %s4074_s9 = inlined_call_operand.vmem [shape: bf16[512,4], index: 9, kind: output, shape index: {2}]  }
   0x1   :  { %v126_v0 = vld [vmem:[%s4065_s1] sm:$0xf]  ;;  %v31_v2 = vld [vmem:[%s4066_s0 + $0x8] sm:$0xff]  ;;  %v32_v5 = vld [vmem:[%s4066_s0 + $0x10] sm:$0xff] }
   0x2   :  { %v30_v1 = vld [vmem:[%s4066_s0] sm:$0xff]  ;;  %2624 = vmatprep.subr.msk.bf16.mxu0 %vm231_vm0, %v126_v0  ;;  %v233_v3 = vsel %vm231_vm0, %v126_v0, 0  ;;  %v33_v6 = vld [vmem:[%s4066_s0 + $0x18] sm:$0xff]  ;;  %2625 = vmatprep.subr.msk.bf16.mxu1 %vm231_vm0, %v126_v0  ;;  %v35_v9 = vld [vmem:[%s4066_s0 + $0x28] sm:$0xff] }
   0x3   :  { %v94_v4 = vpack.c.bf16 %v31_v2, %v30_v1  ;;  %v34_v7 = vld [vmem:[%s4066_s0 + $0x20] sm:$0xff]  ;;  %2425 = vmatpush3.bf16.msra.mxu0 %v233_v3  ;;  %v95_v8 = vpack.c.bf16 %v33_v6, %v32_v5  ;;  %2623 = vmatpush3.bf16.msra.mxu1 %v233_v3  ;;  %v36_v11 = vld [vmem:[%s4066_s0 + $0x30] sm:$0xff]  ;;  %v37_v12 = vld [vmem:[%s4066_s0 + $0x38] sm:$0xff] }
   0x4   :  { %v96_v10 = vpack.c.bf16 %v35_v9, %v34_v7  ;;  %v38_v13 = vld [vmem:[%s4066_s0 + $0x40] sm:$0xff]  ;;  %v39_v14 = vld [vmem:[%s4066_s0 + $0x48] sm:$0xff]  ;;  %v97_v15 = vpack.c.bf16 %v37_v12, %v36_v11  ;;  %v64_v19 = vld [vmem:[%s4066_s0 + $0x110] sm:$0xff] }
   0x5   :  { %2426 = vmatprep.mubr.msk.bf16.mxu0 %vm134_vm1, %v94_v4  ;;  %v98_v16 = vpack.c.bf16 %v39_v14, %v38_v13  ;;  %v62_v17 = vld [vmem:[%s4066_s0 + $0x100] sm:$0xff]  ;;  %v63_v18 = vld [vmem:[%s4066_s0 + $0x108] sm:$0xff]  ;;  %v65_v21 = vld [vmem:[%s4066_s0 + $0x118] sm:$0xff] }
   0x6   :  { %2427 = vmatmul.mubr.msk.bf16.vlgmr.msra.gmra.mxu0 %vm134_vm1, %v95_v8  ;;  %v110_v20 = vpack.c.bf16 %v63_v18, %v62_v17  ;;  %v66_v22 = vld [vmem:[%s4066_s0 + $0x120] sm:$0xff]  ;;  %v67_v23 = vld [vmem:[%s4066_s0 + $0x128] sm:$0xff]  ;;  %v111_v24 = vpack.c.bf16 %v65_v21, %v64_v19  ;;  %v40_v26 = vld [vmem:[%s4066_s0 + $0x50] sm:$0xff] }
   0x7   :  { %2430 = vmatprep.mubr.msk.bf16.mxu0 %vm134_vm1, %v96_v10  ;;  %v112_v25 = vpack.c.bf16 %v67_v23, %v66_v22  ;;  %v41_v27 = vld [vmem:[%s4066_s0 + $0x58] sm:$0xff]  ;;  %v42_v28 = vld [vmem:[%s4066_s0 + $0x60] sm:$0xff]  ;;  %v43_v29 = vld [vmem:[%s4066_s0 + $0x68] sm:$0xff] }
   0x8   :  { %2458 = vmatprep.mubr.msk.bf16.mxu1 %vm134_vm1, %v110_v20  ;;  %v68_v30 = vld [vmem:[%s4066_s0 + $0x130] sm:$0xff]  ;;  %v69_v31 = vld [vmem:[%s4066_s0 + $0x138] sm:$0xff]  ;;  %v99_v32 = vpack.c.bf16 %v41_v27, %v40_v26  ;;  %v70_v33 = vld [vmem:[%s4066_s0 + $0x140] sm:$0xff]  ;;  %v100_v35 = vpack.c.bf16 %v43_v29, %v42_v28 }
   0x9   :  { %2459 = vmatmul.mubr.msk.bf16.vlgmr.msra.gmra.mxu1 %vm134_vm1, %v111_v24  ;;  %v71_v34 = vld [vmem:[%s4066_s0 + $0x148] sm:$0xff]  ;;  %v113_v36 = vpack.c.bf16 %v69_v31, %v68_v30  ;;  %v620_v38 = vld [vmem:[%s4067_s3] sm:$0xf]  ;;  %v44_v39 = vld [vmem:[%s4066_s0 + $0x70] sm:$0xff] }
   0xa   :  { %2462 = vmatprep.mubr.msk.bf16.mxu1 %vm134_vm1, %v112_v25  ;;  %v114_v37 = vpack.c.bf16 %v71_v34, %v70_v33  ;;  %v45_v40 = vld [vmem:[%s4066_s0 + $0x78] sm:$0xff]  ;;  %2626 = vmatprep.subr.msk.bf16.mxu1 %vm231_vm0, %v620_v38  ;;  %v1337_v41 = vld [vmem:[%s4068_s5] sm:$0xf]  ;;  %v725_v42 = vsel %vm231_vm0, %v620_v38, 0  ;;  %v47_v44 = vld [vmem:[%s4066_s0 + $0x88] sm:$0xff] }
   0xb   :  { %v46_v43 = vld [vmem:[%s4066_s0 + $0x80] sm:$0xff]  ;;  %2627 = vmatprep.subr.msk.bf16.mxu0 %vm231_vm0, %v1337_v41  ;;  %v1346_v45 = vsel %vm231_vm0, %v1337_v41, 0  ;;  %v72_v46 = vld [vmem:[%s4066_s0 + $0x150] sm:$0xff]  ;;  %v73_v47 = vld [vmem:[%s4066_s0 + $0x158] sm:$0xff]  ;;  %2491 = vmatpush3.bf16.msra.mxu1 %v725_v42  ;;  %v101_v48 = vpack.c.bf16 %v45_v40, %v44_v39 }
   0xc   :  { %v74_v49 = vld [vmem:[%s4066_s0 + $0x160] sm:$0xff]  ;;  %v75_v50 = vld [vmem:[%s4066_s0 + $0x168] sm:$0xff]  ;;  %2557 = vmatpush3.bf16.msra.mxu0 %v1346_v45  ;;  %v102_v51 = vpack.c.bf16 %v47_v44, %v46_v43  ;;  %v115_v52 = vpack.c.bf16 %v73_v47, %v72_v46  ;;  %v48_v54 = vld [vmem:[%s4066_s0 + $0x90] sm:$0xff] }
   0xd   :  { %v116_v53 = vpack.c.bf16 %v75_v50, %v74_v49  ;;  %v49_v55 = vld [vmem:[%s4066_s0 + $0x98] sm:$0xff]  ;;  %v50_v56 = vld [vmem:[%s4066_s0 + $0xa0] sm:$0xff]  ;;  %v51_v57 = vld [vmem:[%s4066_s0 + $0xa8] sm:$0xff] }
   0xe   :  { %2431 = vmatmul.mubr.msk.bf16.gmra.mxu0 %vm134_vm1, %v97_v15  ;;  %v76_v58 = vld [vmem:[%s4066_s0 + $0x170] sm:$0xff]  ;;  %v77_v59 = vld [vmem:[%s4066_s0 + $0x178] sm:$0xff]  ;;  %v103_v60 = vpack.c.bf16 %v49_v55, %v48_v54  ;;  %v78_v61 = vld [vmem:[%s4066_s0 + $0x180] sm:$0xff]  ;;  %v104_v63 = vpack.c.bf16 %v51_v57, %v50_v56 }
   0xf   :  { %2434 = vmatprep.mubr.msk.bf16.mxu0 %vm134_vm1, %v98_v16  ;;  %v79_v62 = vld [vmem:[%s4066_s0 + $0x188] sm:$0xff]  ;;  %v117_v0 = vpack.c.bf16 %v77_v59, %v76_v58  ;;  %v52_v2 = vld [vmem:[%s4066_s0 + $0xb0] sm:$0xff]  ;;  %v53_v3 = vld [vmem:[%s4066_s0 + $0xb8] sm:$0xff] }
  0x10   :  { %v118_v1 = vpack.c.bf16 %v79_v62, %v78_v61  ;;  %v54_v4 = vld [vmem:[%s4066_s0 + $0xc0] sm:$0xff]  ;;  %v55_v5 = vld [vmem:[%s4066_s0 + $0xc8] sm:$0xff]  ;;  %v80_v6 = vld [vmem:[%s4066_s0 + $0x190] sm:$0xff]  ;;  %v105_v8 = vpack.c.bf16 %v53_v3, %v52_v2 }
  0x11   :  { %2463 = vmatmul.mubr.msk.bf16.gmra.mxu1 %vm134_vm1, %v113_v36  ;;  %v81_v7 = vld [vmem:[%s4066_s0 + $0x198] sm:$0xff]  ;;  %v82_v9 = vld [vmem:[%s4066_s0 + $0x1a0] sm:$0xff]  ;;  %v83_v10 = vld [vmem:[%s4066_s0 + $0x1a8] sm:$0xff]  ;;  %v106_v11 = vpack.c.bf16 %v55_v5, %v54_v4 }
  0x12   :  { %2466 = vmatprep.mubr.msk.bf16.mxu1 %vm134_vm1, %v114_v37  ;;  %v119_v12 = vpack.c.bf16 %v81_v7, %v80_v6  ;;  %v120_v13 = vpack.c.bf16 %v83_v10, %v82_v9  ;;  %v56_v14 = vld [vmem:[%s4066_s0 + $0xd0] sm:$0xff]  ;;  %v57_v15 = vld [vmem:[%s4066_s0 + $0xd8] sm:$0xff]  ;;  %v58_v16 = vld [vmem:[%s4066_s0 + $0xe0] sm:$0xff] }
  0x13   :  { %v59_v17 = vld [vmem:[%s4066_s0 + $0xe8] sm:$0xff]  ;;  %v84_v18 = vld [vmem:[%s4066_s0 + $0x1b0] sm:$0xff]  ;;  %v85_v19 = vld [vmem:[%s4066_s0 + $0x1b8] sm:$0xff]  ;;  %v107_v20 = vpack.c.bf16 %v57_v15, %v56_v14 }
  0x14   :  { %v86_v21 = vld [vmem:[%s4066_s0 + $0x1c0] sm:$0xff]  ;;  %v87_v22 = vld [vmem:[%s4066_s0 + $0x1c8] sm:$0xff]  ;;  %v108_v23 = vpack.c.bf16 %v59_v17, %v58_v16  ;;  %v121_v24 = vpack.c.bf16 %v85_v19, %v84_v18  ;;  %v60_v26 = vld [vmem:[%s4066_s0 + $0xf0] sm:$0xff] }
  0x15   :  { %v122_v25 = vpack.c.bf16 %v87_v22, %v86_v21  ;;  %v61_v27 = vld [vmem:[%s4066_s0 + $0xf8] sm:$0xff]  ;;  %v88_v28 = vld [vmem:[%s4066_s0 + $0x1d0] sm:$0xff]  ;;  %v90_v31 = vld [vmem:[%s4066_s0 + $0x1e0] sm:$0xff] }
  0x16   :  { %2435 = vmatmul.mubr.msk.bf16.gmra.mxu0 %vm134_vm1, %v99_v32  ;;  %v89_v29 = vld [vmem:[%s4066_s0 + $0x1d8] sm:$0xff]  ;;  %v109_v30 = vpack.c.bf16 %v61_v27, %v60_v26  ;;  %v91_v32 = vld [vmem:[%s4066_s0 + $0x1e8] sm:$0xff]  ;;  %v2921_v38 = vld [vmem:[%s4069_s2] ss:$0 sm:$0xff] }
  0x17   :  { %2438 = vmatprep.mubr.msk.bf16.mxu0 %vm134_vm1, %v100_v35  ;;  %v123_v33 = vpack.c.bf16 %v89_v29, %v88_v28  ;;  %v124_v34 = vpack.c.bf16 %v91_v32, %v90_v31  ;;  %v92_v35 = vld [vmem:[%s4066_s0 + $0x1f0] sm:$0xff]  ;;  %v93_v36 = vld [vmem:[%s4066_s0 + $0x1f8] sm:$0xff] }
  0x18   :  { %v125_v37 = vpack.c.bf16 %v93_v36, %v92_v35 }
  0x19   :  { %2467 = vmatmul.mubr.msk.bf16.gmra.mxu1 %vm134_vm1, %v115_v52 }
  0x1a   :  { %2470 = vmatprep.mubr.msk.bf16.mxu1 %vm134_vm1, %v116_v53 }
  0x1e   :  { %2439 = vmatmul.mubr.msk.bf16.gmra.mxu0 %vm134_vm1, %v101_v48 }
  0x1f   :  { %2442 = vmatprep.mubr.msk.bf16.mxu0 %vm134_vm1, %v102_v51 }
  0x21   :  { %2471 = vmatmul.mubr.msk.bf16.gmra.mxu1 %vm134_vm1, %v117_v0 }
  0x22   :  { %2474 = vmatprep.mubr.msk.bf16.mxu1 %vm134_vm1, %v118_v1 }
  0x26   :  { %2443 = vmatmul.mubr.msk.bf16.gmra.mxu0 %vm134_vm1, %v103_v60 }
  0x27   :  { %2446 = vmatprep.mubr.msk.bf16.mxu0 %vm134_vm1, %v104_v63 }
  0x29   :  { %2475 = vmatmul.mubr.msk.bf16.gmra.mxu1 %vm134_vm1, %v119_v12 }
  0x2a   :  { %2478 = vmatprep.mubr.msk.bf16.mxu1 %vm134_vm1, %v120_v13 }
  0x2e   :  { %2447 = vmatmul.mubr.msk.bf16.gmra.mxu0 %vm134_vm1, %v105_v8 }
  0x2f   :  { %2450 = vmatprep.mubr.msk.bf16.mxu0 %vm134_vm1, %v106_v11 }
  0x31   :  { %2479 = vmatmul.mubr.msk.bf16.gmra.mxu1 %vm134_vm1, %v121_v24 }
  0x32   :  { %2482 = vmatprep.mubr.msk.bf16.mxu1 %vm134_vm1, %v122_v25 }
  0x36   :  { %2451 = vmatmul.mubr.msk.bf16.gmra.mxu0 %vm134_vm1, %v107_v20 }
  0x37   :  { %2454 = vmatprep.mubr.msk.bf16.mxu0 %vm134_vm1, %v108_v23 }
  0x39   :  { %2483 = vmatmul.mubr.msk.bf16.gmra.mxu1 %vm134_vm1, %v123_v33 }
  0x3a   :  { %2486 = vmatprep.mubr.msk.bf16.mxu1 %vm134_vm1, %v124_v34 }
  0x3e   :  { %2455 = vmatmul.mubr.msk.bf16.gmra.mxu0 %vm134_vm1, %v109_v30 }
  0x41   :  { %2487 = vmatmul.mubr.msk.bf16.gmra.mxu1 %vm134_vm1, %v125_v37 }
  0xc6   :  { %v2428_v39 = vpop.f32.mrf.mxu0 }
  0xc7   :  { %v278_v40 = vadd.f32 %v2428_v39, %v2921_v38 }
  0xc8   :  { %v269_v41 = vpop.f32.mrf.mxu0 }
  0xc9   :  { %526 = vst.msk [vmem:[%s4070_s7 + $0x10] sm:$0xff] %vm134_vm1, %v278_v40  ;;  %v270_v42 = vadd.f32 %v2921_v38, %v269_v41  ;;  %v2460_v52 = vpop.f32.mrf.mxu1 }
  0xca   :  { %v2429_v43 = vpop.f32.mrf.mxu0  ;;  %v2952_v54 = vadd.f32 %v2460_v52, %v2921_v38 }
  0xcb   :  { %524 = vst.msk [vmem:[%s4070_s7] sm:$0xff] %vm134_vm1, %v270_v42  ;;  %v281_v44 = vadd.f32 %v2429_v43, %v2921_v38  ;;  %v397_v56 = vpop.f32.mrf.mxu1 }
  0xcc   :  { %v272_v45 = vpop.f32.mrf.mxu0  ;;  %558 = vst.msk [vmem:[%s4070_s7 + $0x110] sm:$0xff] %vm134_vm1, %v2952_v54  ;;  %v2967_v58 = vadd.f32 %v2921_v38, %v397_v56 }
  0xcd   :  { %527 = vst.msk [vmem:[%s4070_s7 + $0x18] sm:$0xff] %vm134_vm1, %v281_v44  ;;  %v273_v46 = vadd.f32 %v2921_v38, %v272_v45  ;;  %v589_v50 = vpack.c.bf16 %v281_v44, %v278_v40  ;;  %v2461_v60 = vpop.f32.mrf.mxu1 }
  0xce   :  { %v2432_v47 = vpop.f32.mrf.mxu0  ;;  %556 = vst.msk [vmem:[%s4070_s7 + $0x100] sm:$0xff] %vm134_vm1, %v2967_v58  ;;  %v2980_v62 = vadd.f32 %v2461_v60, %v2921_v38 }
  0xcf   :  { %525 = vst.msk [vmem:[%s4070_s7 + $0x8] sm:$0xff] %vm134_vm1, %v273_v46  ;;  %v588_v48 = vpack.c.bf16 %v273_v46, %v270_v42  ;;  %v294_v49 = vadd.f32 %v2432_v47, %v2921_v38  ;;  %v400_v0 = vpop.f32.mrf.mxu1 }
  0xd0   :  { %v285_v51 = vpop.f32.mrf.mxu0  ;;  %559 = vst.msk [vmem:[%s4070_s7 + $0x118] sm:$0xff] %vm134_vm1, %v2980_v62  ;;  %v2993_v3 = vadd.f32 %v2921_v38, %v400_v0 }
  0xd1   :  { %530 = vst.msk [vmem:[%s4070_s7 + $0x30] sm:$0xff] %vm134_vm1, %v294_v49  ;;  %v286_v53 = vadd.f32 %v2921_v38, %v285_v51  ;;  %2492 = vmatprep.mubr.msk.bf16.mxu1 %vm134_vm1, %v588_v48  ;;  %2558 = vmatprep.mubr.msk.bf16.mxu0 %vm134_vm1, %v588_v48  ;;  %v2464_v6 = vpop.f32.mrf.mxu1 }
  0xd2   :  { %v2433_v55 = vpop.f32.mrf.mxu0  ;;  %2493 = vmatmul.mubr.msk.bf16.vlgmr.msra.gmra.mxu1 %vm134_vm1, %v589_v50  ;;  %2559 = vmatmul.mubr.msk.bf16.vlgmr.msra.gmra.mxu0 %vm134_vm1, %v589_v50  ;;  %557 = vst.msk [vmem:[%s4070_s7 + $0x108] sm:$0xff] %vm134_vm1, %v2993_v3  ;;  %v3008_v8 = vadd.f32 %v2464_v6, %v2921_v38 }
  0xd3   :  { %528 = vst.msk [vmem:[%s4070_s7 + $0x20] sm:$0xff] %vm134_vm1, %v286_v53  ;;  %v297_v57 = vadd.f32 %v2433_v55, %v2921_v38  ;;  %v413_v10 = vpop.f32.mrf.mxu1 }
  0xd4   :  { %v288_v59 = vpop.f32.mrf.mxu0  ;;  %562 = vst.msk [vmem:[%s4070_s7 + $0x130] sm:$0xff] %vm134_vm1, %v3008_v8  ;;  %v3023_v12 = vadd.f32 %v2921_v38, %v413_v10 }
  0xd5   :  { %531 = vst.msk [vmem:[%s4070_s7 + $0x38] sm:$0xff] %vm134_vm1, %v297_v57  ;;  %v289_v61 = vadd.f32 %v2921_v38, %v288_v59  ;;  %v591_v4 = vpack.c.bf16 %v297_v57, %v294_v49  ;;  %v2465_v14 = vpop.f32.mrf.mxu1 }
  0xd6   :  { %v2436_v63 = vpop.f32.mrf.mxu0  ;;  %560 = vst.msk [vmem:[%s4070_s7 + $0x120] sm:$0xff] %vm134_vm1, %v3023_v12  ;;  %v3036_v16 = vadd.f32 %v2465_v14, %v2921_v38 }
  0xd7   :  { %529 = vst.msk [vmem:[%s4070_s7 + $0x28] sm:$0xff] %vm134_vm1, %v289_v61  ;;  %v590_v1 = vpack.c.bf16 %v289_v61, %v286_v53  ;;  %v310_v2 = vadd.f32 %v2436_v63, %v2921_v38  ;;  %v416_v18 = vpop.f32.mrf.mxu1 }
  0xd8   :  { %v301_v5 = vpop.f32.mrf.mxu0  ;;  %563 = vst.msk [vmem:[%s4070_s7 + $0x138] sm:$0xff] %vm134_vm1, %v3036_v16  ;;  %v3049_v21 = vadd.f32 %v2921_v38, %v416_v18 }
  0xd9   :  { %534 = vst.msk [vmem:[%s4070_s7 + $0x50] sm:$0xff] %vm134_vm1, %v310_v2  ;;  %v302_v7 = vadd.f32 %v2921_v38, %v301_v5  ;;  %2496 = vmatprep.mubr.msk.bf16.mxu1 %vm134_vm1, %v590_v1  ;;  %2562 = vmatprep.mubr.msk.bf16.mxu0 %vm134_vm1, %v590_v1  ;;  %v2468_v24 = vpop.f32.mrf.mxu1 }
  0xda   :  { %v2437_v9 = vpop.f32.mrf.mxu0  ;;  %2497 = vmatmul.mubr.msk.bf16.gmra.mxu1 %vm134_vm1, %v591_v4  ;;  %2563 = vmatmul.mubr.msk.bf16.gmra.mxu0 %vm134_vm1, %v591_v4  ;;  %561 = vst.msk [vmem:[%s4070_s7 + $0x128] sm:$0xff] %vm134_vm1, %v3049_v21  ;;  %v3064_v26 = vadd.f32 %v2468_v24, %v2921_v38 }
  0xdb   :  { %532 = vst.msk [vmem:[%s4070_s7 + $0x40] sm:$0xff] %vm134_vm1, %v302_v7  ;;  %v313_v11 = vadd.f32 %v2437_v9, %v2921_v38  ;;  %v429_v28 = vpop.f32.mrf.mxu1 }
  0xdc   :  { %v304_v13 = vpop.f32.mrf.mxu0  ;;  %566 = vst.msk [vmem:[%s4070_s7 + $0x150] sm:$0xff] %vm134_vm1, %v3064_v26  ;;  %v3079_v30 = vadd.f32 %v2921_v38, %v429_v28 }
  0xdd   :  { %535 = vst.msk [vmem:[%s4070_s7 + $0x58] sm:$0xff] %vm134_vm1, %v313_v11  ;;  %v305_v15 = vadd.f32 %v2921_v38, %v304_v13  ;;  %v593_v22 = vpack.c.bf16 %v313_v11, %v310_v2  ;;  %v2469_v32 = vpop.f32.mrf.mxu1 }
  0xde   :  { %v2440_v17 = vpop.f32.mrf.mxu0  ;;  %564 = vst.msk [vmem:[%s4070_s7 + $0x140] sm:$0xff] %vm134_vm1, %v3079_v30  ;;  %v3092_v34 = vadd.f32 %v2469_v32, %v2921_v38 }
  0xdf   :  { %533 = vst.msk [vmem:[%s4070_s7 + $0x48] sm:$0xff] %vm134_vm1, %v305_v15  ;;  %v592_v19 = vpack.c.bf16 %v305_v15, %v302_v7  ;;  %v326_v20 = vadd.f32 %v2440_v17, %v2921_v38  ;;  %v432_v36 = vpop.f32.mrf.mxu1 }
  0xe0   :  { %v317_v23 = vpop.f32.mrf.mxu0  ;;  %567 = vst.msk [vmem:[%s4070_s7 + $0x158] sm:$0xff] %vm134_vm1, %v3092_v34  ;;  %v3105_v40 = vadd.f32 %v2921_v38, %v432_v36 }
  0xe1   :  { %538 = vst.msk [vmem:[%s4070_s7 + $0x70] sm:$0xff] %vm134_vm1, %v326_v20  ;;  %v318_v25 = vadd.f32 %v2921_v38, %v317_v23  ;;  %2500 = vmatprep.mubr.msk.bf16.mxu1 %vm134_vm1, %v592_v19  ;;  %2566 = vmatprep.mubr.msk.bf16.mxu0 %vm134_vm1, %v592_v19  ;;  %v2472_v43 = vpop.f32.mrf.mxu1 }
  0xe2   :  { %v2441_v27 = vpop.f32.mrf.mxu0  ;;  %2501 = vmatmul.mubr.msk.bf16.gmra.mxu1 %vm134_vm1, %v593_v22  ;;  %2567 = vmatmul.mubr.msk.bf16.gmra.mxu0 %vm134_vm1, %v593_v22  ;;  %565 = vst.msk [vmem:[%s4070_s7 + $0x148] sm:$0xff] %vm134_vm1, %v3105_v40  ;;  %v3120_v45 = vadd.f32 %v2472_v43, %v2921_v38 }
  0xe3   :  { %536 = vst.msk [vmem:[%s4070_s7 + $0x60] sm:$0xff] %vm134_vm1, %v318_v25  ;;  %v329_v29 = vadd.f32 %v2441_v27, %v2921_v38  ;;  %v445_v47 = vpop.f32.mrf.mxu1 }
  0xe4   :  { %v320_v31 = vpop.f32.mrf.mxu0  ;;  %570 = vst.msk [vmem:[%s4070_s7 + $0x170] sm:$0xff] %vm134_vm1, %v3120_v45  ;;  %v3135_v49 = vadd.f32 %v2921_v38, %v445_v47 }
  0xe5   :  { %539 = vst.msk [vmem:[%s4070_s7 + $0x78] sm:$0xff] %vm134_vm1, %v329_v29  ;;  %v321_v33 = vadd.f32 %v2921_v38, %v320_v31  ;;  %v595_v41 = vpack.c.bf16 %v329_v29, %v326_v20  ;;  %v2473_v51 = vpop.f32.mrf.mxu1 }
  0xe6   :  { %v2444_v35 = vpop.f32.mrf.mxu0  ;;  %568 = vst.msk [vmem:[%s4070_s7 + $0x160] sm:$0xff] %vm134_vm1, %v3135_v49  ;;  %v3148_v53 = vadd.f32 %v2473_v51, %v2921_v38 }
  0xe7   :  { %537 = vst.msk [vmem:[%s4070_s7 + $0x68] sm:$0xff] %vm134_vm1, %v321_v33  ;;  %v594_v37 = vpack.c.bf16 %v321_v33, %v318_v25  ;;  %v342_v39 = vadd.f32 %v2444_v35, %v2921_v38  ;;  %v448_v56 = vpop.f32.mrf.mxu1 }
  0xe8   :  { %v333_v42 = vpop.f32.mrf.mxu0  ;;  %571 = vst.msk [vmem:[%s4070_s7 + $0x178] sm:$0xff] %vm134_vm1, %v3148_v53  ;;  %v3161_v60 = vadd.f32 %v2921_v38, %v448_v56 }
  0xe9   :  { %542 = vst.msk [vmem:[%s4070_s7 + $0x90] sm:$0xff] %vm134_vm1, %v342_v39  ;;  %v334_v44 = vadd.f32 %v2921_v38, %v333_v42  ;;  %2504 = vmatprep.mubr.msk.bf16.mxu1 %vm134_vm1, %v594_v37  ;;  %2570 = vmatprep.mubr.msk.bf16.mxu0 %vm134_vm1, %v594_v37  ;;  %v2476_v0 = vpop.f32.mrf.mxu1 }
  0xea   :  { %v2445_v46 = vpop.f32.mrf.mxu0  ;;  %2505 = vmatmul.mubr.msk.bf16.gmra.mxu1 %vm134_vm1, %v595_v41  ;;  %2571 = vmatmul.mubr.msk.bf16.gmra.mxu0 %vm134_vm1, %v595_v41  ;;  %569 = vst.msk [vmem:[%s4070_s7 + $0x168] sm:$0xff] %vm134_vm1, %v3161_v60  ;;  %v3176_v2 = vadd.f32 %v2476_v0, %v2921_v38 }
  0xeb   :  { %540 = vst.msk [vmem:[%s4070_s7 + $0x80] sm:$0xff] %vm134_vm1, %v334_v44  ;;  %v345_v48 = vadd.f32 %v2445_v46, %v2921_v38  ;;  %v461_v5 = vpop.f32.mrf.mxu1 }
  0xec   :  { %v336_v50 = vpop.f32.mrf.mxu0  ;;  %574 = vst.msk [vmem:[%s4070_s7 + $0x190] sm:$0xff] %vm134_vm1, %v3176_v2  ;;  %v3191_v7 = vadd.f32 %v2921_v38, %v461_v5 }
  0xed   :  { %543 = vst.msk [vmem:[%s4070_s7 + $0x98] sm:$0xff] %vm134_vm1, %v345_v48  ;;  %v337_v52 = vadd.f32 %v2921_v38, %v336_v50  ;;  %v597_v61 = vpack.c.bf16 %v345_v48, %v342_v39  ;;  %v2477_v10 = vpop.f32.mrf.mxu1 }
  0xee   :  { %v2448_v55 = vpop.f32.mrf.mxu0  ;;  %572 = vst.msk [vmem:[%s4070_s7 + $0x180] sm:$0xff] %vm134_vm1, %v3191_v7  ;;  %v3204_v13 = vadd.f32 %v2477_v10, %v2921_v38 }
  0xef   :  { %541 = vst.msk [vmem:[%s4070_s7 + $0x88] sm:$0xff] %vm134_vm1, %v337_v52  ;;  %v596_v57 = vpack.c.bf16 %v337_v52, %v334_v44  ;;  %v358_v59 = vadd.f32 %v2448_v55, %v2921_v38  ;;  %v464_v15 = vpop.f32.mrf.mxu1 }
  0xf0   :  { %v349_v63 = vpop.f32.mrf.mxu0  ;;  %575 = vst.msk [vmem:[%s4070_s7 + $0x198] sm:$0xff] %vm134_vm1, %v3204_v13  ;;  %v3217_v19 = vadd.f32 %v2921_v38, %v464_v15 }
  0xf1   :  { %546 = vst.msk [vmem:[%s4070_s7 + $0xb0] sm:$0xff] %vm134_vm1, %v358_v59  ;;  %v350_v1 = vadd.f32 %v2921_v38, %v349_v63  ;;  %2508 = vmatprep.mubr.msk.bf16.mxu1 %vm134_vm1, %v596_v57  ;;  %2574 = vmatprep.mubr.msk.bf16.mxu0 %vm134_vm1, %v596_v57  ;;  %v2480_v23 = vpop.f32.mrf.mxu1 }
  0xf2   :  { %v2449_v4 = vpop.f32.mrf.mxu0  ;;  %2509 = vmatmul.mubr.msk.bf16.gmra.mxu1 %vm134_vm1, %v597_v61  ;;  %2575 = vmatmul.mubr.msk.bf16.gmra.mxu0 %vm134_vm1, %v597_v61  ;;  %573 = vst.msk [vmem:[%s4070_s7 + $0x188] sm:$0xff] %vm134_vm1, %v3217_v19  ;;  %v3232_v25 = vadd.f32 %v2480_v23, %v2921_v38 }
  0xf3   :  { %544 = vst.msk [vmem:[%s4070_s7 + $0xa0] sm:$0xff] %vm134_vm1, %v350_v1  ;;  %v361_v6 = vadd.f32 %v2449_v4, %v2921_v38  ;;  %v477_v28 = vpop.f32.mrf.mxu1  ;;  %v604_v4 = vpack.c.bf16 %v2993_v3, %v2967_v58 }
  0xf4   :  { %v352_v9 = vpop.f32.mrf.mxu0  ;;  %578 = vst.msk [vmem:[%s4070_s7 + $0x1b0] sm:$0xff] %vm134_vm1, %v3232_v25  ;;  %v3247_v31 = vadd.f32 %v2921_v38, %v477_v28 }
  0xf5   :  { %547 = vst.msk [vmem:[%s4070_s7 + $0xb8] sm:$0xff] %vm134_vm1, %v361_v6  ;;  %v353_v11 = vadd.f32 %v2921_v38, %v352_v9  ;;  %v599_v20 = vpack.c.bf16 %v361_v6, %v358_v59  ;;  %v2481_v33 = vpop.f32.mrf.mxu1 }
  0xf6   :  { %v2452_v14 = vpop.f32.mrf.mxu0  ;;  %576 = vst.msk [vmem:[%s4070_s7 + $0x1a0] sm:$0xff] %vm134_vm1, %v3247_v31  ;;  %v3260_v36 = vadd.f32 %v2481_v33, %v2921_v38 }
  0xf7   :  { %545 = vst.msk [vmem:[%s4070_s7 + $0xa8] sm:$0xff] %vm134_vm1, %v353_v11  ;;  %v598_v17 = vpack.c.bf16 %v353_v11, %v350_v1  ;;  %v374_v18 = vadd.f32 %v2452_v14, %v2921_v38  ;;  %v480_v39 = vpop.f32.mrf.mxu1 }
  0xf8   :  { %v365_v22 = vpop.f32.mrf.mxu0  ;;  %579 = vst.msk [vmem:[%s4070_s7 + $0x1b8] sm:$0xff] %vm134_vm1, %v3260_v36  ;;  %v3273_v43 = vadd.f32 %v2921_v38, %v480_v39 }
  0xf9   :  { %550 = vst.msk [vmem:[%s4070_s7 + $0xd0] sm:$0xff] %vm134_vm1, %v374_v18  ;;  %v366_v24 = vadd.f32 %v2921_v38, %v365_v22  ;;  %2512 = vmatprep.mubr.msk.bf16.mxu1 %vm134_vm1, %v598_v17  ;;  %2578 = vmatprep.mubr.msk.bf16.mxu0 %vm134_vm1, %v598_v17  ;;  %v2484_v47 = vpop.f32.mrf.mxu1  ;;  %v606_v17 = vpack.c.bf16 %v3049_v21, %v3023_v12 }
  0xfa   :  { %v2453_v27 = vpop.f32.mrf.mxu0  ;;  %2513 = vmatmul.mubr.msk.bf16.gmra.mxu1 %vm134_vm1, %v599_v20  ;;  %2579 = vmatmul.mubr.msk.bf16.gmra.mxu0 %vm134_vm1, %v599_v20  ;;  %577 = vst.msk [vmem:[%s4070_s7 + $0x1a8] sm:$0xff] %vm134_vm1, %v3273_v43  ;;  %v3288_v50 = vadd.f32 %v2484_v47, %v2921_v38  ;;  %v605_v20 = vpack.c.bf16 %v2980_v62, %v2952_v54 }
  0xfb   :  { %548 = vst.msk [vmem:[%s4070_s7 + $0xc0] sm:$0xff] %vm134_vm1, %v366_v24  ;;  %v377_v29 = vadd.f32 %v2453_v27, %v2921_v38  ;;  %v493_v52 = vpop.f32.mrf.mxu1  ;;  %v608_v12 = vpack.c.bf16 %v3105_v40, %v3079_v30  ;;  %v610_v54 = vpack.c.bf16 %v3161_v60, %v3135_v49  ;;  %v609_v62 = vpack.c.bf16 %v3092_v34, %v3064_v26  ;;  %v3423_v60 = vld [vmem:[%s4072_s6] ss:$0 sm:$0xff] }
  0xfc   :  { %v368_v32 = vpop.f32.mrf.mxu0  ;;  %582 = vst.msk [vmem:[%s4070_s7 + $0x1d0] sm:$0xff] %vm134_vm1, %v3288_v50  ;;  %v3303_v56 = vadd.f32 %v2921_v38, %v493_v52  ;;  %v614_v21 = vpack.c.bf16 %v3273_v43, %v3247_v31  ;;  %v613_v26 = vpack.c.bf16 %v3204_v13, %v3176_v2  ;;  %v615_v34 = vpack.c.bf16 %v3260_v36, %v3232_v25 }
  0xfd   :  { %551 = vst.msk [vmem:[%s4070_s7 + $0xd8] sm:$0xff] %vm134_vm1, %v377_v29  ;;  %v369_v35 = vadd.f32 %v2921_v38, %v368_v32  ;;  %v601_v44 = vpack.c.bf16 %v377_v29, %v374_v18  ;;  %v2485_v59 = vpop.f32.mrf.mxu1 }
  0xfe   :  { %v2456_v37 = vpop.f32.mrf.mxu0  ;;  %580 = vst.msk [vmem:[%s4070_s7 + $0x1c0] sm:$0xff] %vm134_vm1, %v3303_v56  ;;  %v3316_v63 = vadd.f32 %v2485_v59, %v2921_v38 }
  0xff   :  { %549 = vst.msk [vmem:[%s4070_s7 + $0xc8] sm:$0xff] %vm134_vm1, %v369_v35  ;;  %v600_v41 = vpack.c.bf16 %v369_v35, %v366_v24  ;;  %v390_v42 = vadd.f32 %v2456_v37, %v2921_v38  ;;  %v496_v0 = vpop.f32.mrf.mxu1 }
 0x100   :  { %v381_v46 = vpop.f32.mrf.mxu0  ;;  %583 = vst.msk [vmem:[%s4070_s7 + $0x1d8] sm:$0xff] %vm134_vm1, %v3316_v63  ;;  %v497_v5 = vadd.f32 %v2921_v38, %v496_v0 }
 0x101   :  { %554 = vst.msk [vmem:[%s4070_s7 + $0xf0] sm:$0xff] %vm134_vm1, %v390_v42  ;;  %v382_v48 = vadd.f32 %v2921_v38, %v381_v46  ;;  %2516 = vmatprep.mubr.msk.bf16.mxu1 %vm134_vm1, %v600_v41  ;;  %2582 = vmatprep.mubr.msk.bf16.mxu0 %vm134_vm1, %v600_v41  ;;  %v2488_v9 = vpop.f32.mrf.mxu1 }
 0x102   :  { %v2457_v51 = vpop.f32.mrf.mxu0  ;;  %2517 = vmatmul.mubr.msk.bf16.gmra.mxu1 %vm134_vm1, %v601_v44  ;;  %2583 = vmatmul.mubr.msk.bf16.gmra.mxu0 %vm134_vm1, %v601_v44  ;;  %581 = vst.msk [vmem:[%s4070_s7 + $0x1c8] sm:$0xff] %vm134_vm1, %v497_v5  ;;  %v518_v58 = vadd.f32 %v2488_v9, %v2921_v38  ;;  %v616_v30 = vpack.c.bf16 %v497_v5, %v3303_v56 }
 0x103   :  { %552 = vst.msk [vmem:[%s4070_s7 + $0xe0] sm:$0xff] %vm134_vm1, %v382_v48  ;;  %v393_v55 = vadd.f32 %v2457_v51, %v2921_v38  ;;  %v509_v3 = vpop.f32.mrf.mxu1 }
 0x104   :  { %v384_v57 = vpop.f32.mrf.mxu0  ;;  %586 = vst.msk [vmem:[%s4070_s7 + $0x1f0] sm:$0xff] %vm134_vm1, %v518_v58  ;;  %v510_v10 = vadd.f32 %v2921_v38, %v509_v3 }
 0x105   :  { %555 = vst.msk [vmem:[%s4070_s7 + $0xf8] sm:$0xff] %vm134_vm1, %v393_v55  ;;  %v385_v61 = vadd.f32 %v2921_v38, %v384_v57  ;;  %v603_v6 = vpack.c.bf16 %v393_v55, %v390_v42  ;;  %v2489_v11 = vpop.f32.mrf.mxu1 }
 0x106   :  { %584 = vst.msk [vmem:[%s4070_s7 + $0x1e0] sm:$0xff] %vm134_vm1, %v510_v10  ;;  %v521_v14 = vadd.f32 %v2489_v11, %v2921_v38 }
 0x107   :  { %553 = vst.msk [vmem:[%s4070_s7 + $0xe8] sm:$0xff] %vm134_vm1, %v385_v61  ;;  %v602_v1 = vpack.c.bf16 %v385_v61, %v382_v48  ;;  %v512_v15 = vpop.f32.mrf.mxu1 }
 0x108   :  { %587 = vst.msk [vmem:[%s4070_s7 + $0x1f8] sm:$0xff] %vm134_vm1, %v521_v14  ;;  %v513_v18 = vadd.f32 %v2921_v38, %v512_v15  ;;  %v607_v38 = vpack.c.bf16 %v3036_v16, %v3008_v8  ;;  %v612_v8 = vpack.c.bf16 %v3217_v19, %v3191_v7  ;;  %v611_v16 = vpack.c.bf16 %v3148_v53, %v3120_v45  ;;  %v3418_v53 = vld [vmem:[%s4071_s4] ss:$0 sm:$0xff] }
 0x109   :  { %2520 = vmatprep.mubr.msk.bf16.mxu1 %vm134_vm1, %v602_v1  ;;  %2586 = vmatprep.mubr.msk.bf16.mxu0 %vm134_vm1, %v602_v1  ;;  %v617_v45 = vpack.c.bf16 %v3316_v63, %v3288_v50  ;;  %v619_v49 = vpack.c.bf16 %v521_v14, %v518_v58 }
 0x10a   :  { %2521 = vmatmul.mubr.msk.bf16.gmra.mxu1 %vm134_vm1, %v603_v6  ;;  %2587 = vmatmul.mubr.msk.bf16.gmra.mxu0 %vm134_vm1, %v603_v6  ;;  %585 = vst.msk [vmem:[%s4070_s7 + $0x1e8] sm:$0xff] %vm134_vm1, %v513_v18  ;;  %v618_v40 = vpack.c.bf16 %v513_v18, %v510_v10 }
 0x10b   :  { %2524 = vmatprep.mubr.msk.bf16.mxu1 %vm134_vm1, %v604_v4  ;;  %2590 = vmatprep.mubr.msk.bf16.mxu0 %vm134_vm1, %v604_v4 }
 0x112   :  { %2525 = vmatmul.mubr.msk.bf16.gmra.mxu1 %vm134_vm1, %v605_v20  ;;  %2591 = vmatmul.mubr.msk.bf16.gmra.mxu0 %vm134_vm1, %v605_v20 }
 0x113   :  { %2528 = vmatprep.mubr.msk.bf16.mxu1 %vm134_vm1, %v606_v17  ;;  %2594 = vmatprep.mubr.msk.bf16.mxu0 %vm134_vm1, %v606_v17 }
 0x11a   :  { %2529 = vmatmul.mubr.msk.bf16.gmra.mxu1 %vm134_vm1, %v607_v38  ;;  %2595 = vmatmul.mubr.msk.bf16.gmra.mxu0 %vm134_vm1, %v607_v38 }
 0x11b   :  { %2532 = vmatprep.mubr.msk.bf16.mxu1 %vm134_vm1, %v608_v12  ;;  %2598 = vmatprep.mubr.msk.bf16.mxu0 %vm134_vm1, %v608_v12 }
 0x122   :  { %2533 = vmatmul.mubr.msk.bf16.gmra.mxu1 %vm134_vm1, %v609_v62  ;;  %2599 = vmatmul.mubr.msk.bf16.gmra.mxu0 %vm134_vm1, %v609_v62 }
 0x123   :  { %2536 = vmatprep.mubr.msk.bf16.mxu1 %vm134_vm1, %v610_v54  ;;  %2602 = vmatprep.mubr.msk.bf16.mxu0 %vm134_vm1, %v610_v54 }
 0x12a   :  { %2537 = vmatmul.mubr.msk.bf16.gmra.mxu1 %vm134_vm1, %v611_v16  ;;  %2603 = vmatmul.mubr.msk.bf16.gmra.mxu0 %vm134_vm1, %v611_v16 }
 0x12b   :  { %2540 = vmatprep.mubr.msk.bf16.mxu1 %vm134_vm1, %v612_v8  ;;  %2606 = vmatprep.mubr.msk.bf16.mxu0 %vm134_vm1, %v612_v8 }
 0x132   :  { %2541 = vmatmul.mubr.msk.bf16.gmra.mxu1 %vm134_vm1, %v613_v26  ;;  %2607 = vmatmul.mubr.msk.bf16.gmra.mxu0 %vm134_vm1, %v613_v26 }
 0x133   :  { %2544 = vmatprep.mubr.msk.bf16.mxu1 %vm134_vm1, %v614_v21  ;;  %2610 = vmatprep.mubr.msk.bf16.mxu0 %vm134_vm1, %v614_v21 }
 0x13a   :  { %2545 = vmatmul.mubr.msk.bf16.gmra.mxu1 %vm134_vm1, %v615_v34  ;;  %2611 = vmatmul.mubr.msk.bf16.gmra.mxu0 %vm134_vm1, %v615_v34 }
 0x13b   :  { %2548 = vmatprep.mubr.msk.bf16.mxu1 %vm134_vm1, %v616_v30  ;;  %2614 = vmatprep.mubr.msk.bf16.mxu0 %vm134_vm1, %v616_v30 }
 0x142   :  { %2549 = vmatmul.mubr.msk.bf16.gmra.mxu1 %vm134_vm1, %v617_v45  ;;  %2615 = vmatmul.mubr.msk.bf16.gmra.mxu0 %vm134_vm1, %v617_v45 }
 0x143   :  { %2552 = vmatprep.mubr.msk.bf16.mxu1 %vm134_vm1, %v618_v40  ;;  %2618 = vmatprep.mubr.msk.bf16.mxu0 %vm134_vm1, %v618_v40 }
 0x14a   :  { %2553 = vmatmul.mubr.msk.bf16.gmra.mxu1 %vm134_vm1, %v619_v49  ;;  %2619 = vmatmul.mubr.msk.bf16.gmra.mxu0 %vm134_vm1, %v619_v49 }
 0x192   :  { %v2494_v2 = vpop.f32.mrf.mxu1  ;;  %v2560_v7 = vpop.f32.mrf.mxu0 }
 0x193   :  { %v770_v13 = vadd.f32 %v2494_v2, %v3418_v53  ;;  %v1391_v19 = vadd.f32 %v2560_v7, %v3423_v60 }
 0x194   :  { %v761_v22 = vpop.f32.mrf.mxu1  ;;  %v1382_v23 = vpop.f32.mrf.mxu0 }
 0x195   :  { %v2199_v24 = vpack.c.bf16 %v770_v13, %v770_v13  ;;  %v2263_v25 = vpack.c.bf16 %v1391_v19, %v1391_v19  ;;  %v762_v27 = vadd.f32 %v3418_v53, %v761_v22  ;;  %v1383_v28 = vadd.f32 %v3423_v60, %v1382_v23 }
 0x196   :  { %v2495_v29 = vpop.f32.mrf.mxu1  ;;  %v2561_v31 = vpop.f32.mrf.mxu0 }
 0x197   :  { %1275 = vst.msk [vmem:[%s4073_s8 + $0x8] sm:$0xf] %vm1272_vm2, %v2199_v24  ;;  %v2197_v32 = vpack.c.bf16 %v762_v27, %v762_v27  ;;  %v2261_v33 = vpack.c.bf16 %v1383_v28, %v1383_v28  ;;  %v773_v35 = vadd.f32 %v2495_v29, %v3418_v53  ;;  %v1394_v36 = vadd.f32 %v2561_v31, %v3423_v60 }
 0x198   :  { %1896 = vst.msk [vmem:[%s4074_s9 + $0x8] sm:$0xf] %vm1893_vm3, %v2263_v25  ;;  %v764_v37 = vpop.f32.mrf.mxu1  ;;  %v1385_v39 = vpop.f32.mrf.mxu0 }
 0x199   :  { %1273 = vst.msk [vmem:[%s4073_s8] sm:$0xf] %vm1272_vm2, %v2197_v32  ;;  %v2200_v41 = vpack.c.bf16 %v773_v35, %v773_v35  ;;  %v2264_v42 = vpack.c.bf16 %v1394_v36, %v1394_v36  ;;  %v765_v43 = vadd.f32 %v3418_v53, %v764_v37  ;;  %v1386_v44 = vadd.f32 %v3423_v60, %v1385_v39 }
 0x19a   :  { %1894 = vst.msk [vmem:[%s4074_s9] sm:$0xf] %vm1893_vm3, %v2261_v33  ;;  %v2498_v46 = vpop.f32.mrf.mxu1  ;;  %v2564_v47 = vpop.f32.mrf.mxu0 }
 0x19b   :  { %1276 = vst.msk [vmem:[%s4073_s8 + $0xc] sm:$0xf] %vm1272_vm2, %v2200_v41  ;;  %v2198_v48 = vpack.c.bf16 %v765_v43, %v765_v43  ;;  %v2262_v50 = vpack.c.bf16 %v1386_v44, %v1386_v44  ;;  %v786_v51 = vadd.f32 %v2498_v46, %v3418_v53  ;;  %v1407_v52 = vadd.f32 %v2564_v47, %v3423_v60 }
 0x19c   :  { %1897 = vst.msk [vmem:[%s4074_s9 + $0xc] sm:$0xf] %vm1893_vm3, %v2264_v42  ;;  %v777_v55 = vpop.f32.mrf.mxu1  ;;  %v1398_v56 = vpop.f32.mrf.mxu0 }
 0x19d   :  { %1274 = vst.msk [vmem:[%s4073_s8 + $0x4] sm:$0xf] %vm1272_vm2, %v2198_v48  ;;  %v2203_v57 = vpack.c.bf16 %v786_v51, %v786_v51  ;;  %v2267_v59 = vpack.c.bf16 %v1407_v52, %v1407_v52  ;;  %v778_v61 = vadd.f32 %v3418_v53, %v777_v55  ;;  %v1399_v63 = vadd.f32 %v3423_v60, %v1398_v56 }
 0x19e   :  { %1895 = vst.msk [vmem:[%s4074_s9 + $0x4] sm:$0xf] %vm1893_vm3, %v2262_v50  ;;  %v2499_v0 = vpop.f32.mrf.mxu1  ;;  %v2565_v1 = vpop.f32.mrf.mxu0 }
 0x19f   :  { %1279 = vst.msk [vmem:[%s4073_s8 + $0x18] sm:$0xf] %vm1272_vm2, %v2203_v57  ;;  %v2201_v4 = vpack.c.bf16 %v778_v61, %v778_v61  ;;  %v2265_v5 = vpack.c.bf16 %v1399_v63, %v1399_v63  ;;  %v789_v6 = vadd.f32 %v2499_v0, %v3418_v53  ;;  %v1410_v9 = vadd.f32 %v2565_v1, %v3423_v60 }
 0x1a0   :  { %1900 = vst.msk [vmem:[%s4074_s9 + $0x18] sm:$0xf] %vm1893_vm3, %v2267_v59  ;;  %v780_v58 = vpop.f32.mrf.mxu1  ;;  %v1401_v3 = vpop.f32.mrf.mxu0 }
 0x1a1   :  { %1277 = vst.msk [vmem:[%s4073_s8 + $0x10] sm:$0xf] %vm1272_vm2, %v2201_v4  ;;  %v2204_v10 = vpack.c.bf16 %v789_v6, %v789_v6  ;;  %v2268_v11 = vpack.c.bf16 %v1410_v9, %v1410_v9  ;;  %v781_v14 = vadd.f32 %v3418_v53, %v780_v58  ;;  %v1402_v15 = vadd.f32 %v3423_v60, %v1401_v3 }
 0x1a2   :  { %1898 = vst.msk [vmem:[%s4074_s9 + $0x10] sm:$0xf] %vm1893_vm3, %v2265_v5  ;;  %v2502_v17 = vpop.f32.mrf.mxu1  ;;  %v2568_v18 = vpop.f32.mrf.mxu0 }
 0x1a3   :  { %1280 = vst.msk [vmem:[%s4073_s8 + $0x1c] sm:$0xf] %vm1272_vm2, %v2204_v10  ;;  %v2202_v20 = vpack.c.bf16 %v781_v14, %v781_v14  ;;  %v2266_v12 = vpack.c.bf16 %v1402_v15, %v1402_v15  ;;  %v802_v38 = vadd.f32 %v2502_v17, %v3418_v53  ;;  %v1423_v54 = vadd.f32 %v2568_v18, %v3423_v60 }
 0x1a4   :  { %1901 = vst.msk [vmem:[%s4074_s9 + $0x1c] sm:$0xf] %vm1893_vm3, %v2268_v11  ;;  %v793_v62 = vpop.f32.mrf.mxu1  ;;  %v1414_v8 = vpop.f32.mrf.mxu0 }
 0x1a5   :  { %1278 = vst.msk [vmem:[%s4073_s8 + $0x14] sm:$0xf] %vm1272_vm2, %v2202_v20  ;;  %v2207_v16 = vpack.c.bf16 %v802_v38, %v802_v38  ;;  %v2271_v21 = vpack.c.bf16 %v1423_v54, %v1423_v54  ;;  %v794_v26 = vadd.f32 %v3418_v53, %v793_v62  ;;  %v1415_v30 = vadd.f32 %v3423_v60, %v1414_v8 }
 0x1a6   :  { %1899 = vst.msk [vmem:[%s4074_s9 + $0x14] sm:$0xf] %vm1893_vm3, %v2266_v12  ;;  %v2503_v34 = vpop.f32.mrf.mxu1  ;;  %v2569_v40 = vpop.f32.mrf.mxu0 }
 0x1a7   :  { %1283 = vst.msk [vmem:[%s4073_s8 + $0x28] sm:$0xf] %vm1272_vm2, %v2207_v16  ;;  %v2205_v45 = vpack.c.bf16 %v794_v26, %v794_v26  ;;  %v2269_v49 = vpack.c.bf16 %v1415_v30, %v1415_v30  ;;  %v805_v2 = vadd.f32 %v2503_v34, %v3418_v53  ;;  %v1426_v7 = vadd.f32 %v2569_v40, %v3423_v60 }
 0x1a8   :  { %1904 = vst.msk [vmem:[%s4074_s9 + $0x28] sm:$0xf] %vm1893_vm3, %v2271_v21  ;;  %v796_v13 = vpop.f32.mrf.mxu1  ;;  %v1417_v19 = vpop.f32.mrf.mxu0 }
 0x1a9   :  { %1281 = vst.msk [vmem:[%s4073_s8 + $0x20] sm:$0xf] %vm1272_vm2, %v2205_v45  ;;  %v2208_v22 = vpack.c.bf16 %v805_v2, %v805_v2  ;;  %v2272_v23 = vpack.c.bf16 %v1426_v7, %v1426_v7  ;;  %v797_v24 = vadd.f32 %v3418_v53, %v796_v13  ;;  %v1418_v25 = vadd.f32 %v3423_v60, %v1417_v19 }
 0x1aa   :  { %1902 = vst.msk [vmem:[%s4074_s9 + $0x20] sm:$0xf] %vm1893_vm3, %v2269_v49  ;;  %v2506_v27 = vpop.f32.mrf.mxu1  ;;  %v2572_v28 = vpop.f32.mrf.mxu0 }
 0x1ab   :  { %1284 = vst.msk [vmem:[%s4073_s8 + $0x2c] sm:$0xf] %vm1272_vm2, %v2208_v22  ;;  %v2206_v29 = vpack.c.bf16 %v797_v24, %v797_v24  ;;  %v2270_v31 = vpack.c.bf16 %v1418_v25, %v1418_v25  ;;  %v818_v32 = vadd.f32 %v2506_v27, %v3418_v53  ;;  %v1439_v33 = vadd.f32 %v2572_v28, %v3423_v60 }
 0x1ac   :  { %1905 = vst.msk [vmem:[%s4074_s9 + $0x2c] sm:$0xf] %vm1893_vm3, %v2272_v23  ;;  %v809_v35 = vpop.f32.mrf.mxu1  ;;  %v1430_v36 = vpop.f32.mrf.mxu0 }
 0x1ad   :  { %1282 = vst.msk [vmem:[%s4073_s8 + $0x24] sm:$0xf] %vm1272_vm2, %v2206_v29  ;;  %v2211_v37 = vpack.c.bf16 %v818_v32, %v818_v32  ;;  %v2275_v39 = vpack.c.bf16 %v1439_v33, %v1439_v33  ;;  %v810_v41 = vadd.f32 %v3418_v53, %v809_v35  ;;  %v1431_v42 = vadd.f32 %v3423_v60, %v1430_v36 }
 0x1ae   :  { %1903 = vst.msk [vmem:[%s4074_s9 + $0x24] sm:$0xf] %vm1893_vm3, %v2270_v31  ;;  %v2507_v43 = vpop.f32.mrf.mxu1  ;;  %v2573_v44 = vpop.f32.mrf.mxu0 }
 0x1af   :  { %1287 = vst.msk [vmem:[%s4073_s8 + $0x38] sm:$0xf] %vm1272_vm2, %v2211_v37  ;;  %v2209_v46 = vpack.c.bf16 %v810_v41, %v810_v41  ;;  %v2273_v47 = vpack.c.bf16 %v1431_v42, %v1431_v42  ;;  %v821_v48 = vadd.f32 %v2507_v43, %v3418_v53  ;;  %v1442_v50 = vadd.f32 %v2573_v44, %v3423_v60 }
 0x1b0   :  { %1908 = vst.msk [vmem:[%s4074_s9 + $0x38] sm:$0xf] %vm1893_vm3, %v2275_v39  ;;  %v812_v51 = vpop.f32.mrf.mxu1  ;;  %v1433_v52 = vpop.f32.mrf.mxu0 }
 0x1b1   :  { %1285 = vst.msk [vmem:[%s4073_s8 + $0x30] sm:$0xf] %vm1272_vm2, %v2209_v46  ;;  %v2212_v55 = vpack.c.bf16 %v821_v48, %v821_v48  ;;  %v2276_v56 = vpack.c.bf16 %v1442_v50, %v1442_v50  ;;  %v813_v57 = vadd.f32 %v3418_v53, %v812_v51  ;;  %v1434_v59 = vadd.f32 %v3423_v60, %v1433_v52 }
 0x1b2   :  { %1906 = vst.msk [vmem:[%s4074_s9 + $0x30] sm:$0xf] %vm1893_vm3, %v2273_v47  ;;  %v2510_v61 = vpop.f32.mrf.mxu1  ;;  %v2576_v63 = vpop.f32.mrf.mxu0 }
 0x1b3   :  { %1288 = vst.msk [vmem:[%s4073_s8 + $0x3c] sm:$0xf] %vm1272_vm2, %v2212_v55  ;;  %v2210_v0 = vpack.c.bf16 %v813_v57, %v813_v57  ;;  %v2274_v1 = vpack.c.bf16 %v1434_v59, %v1434_v59  ;;  %v834_v4 = vadd.f32 %v2510_v61, %v3418_v53  ;;  %v1455_v5 = vadd.f32 %v2576_v63, %v3423_v60 }
 0x1b4   :  { %1909 = vst.msk [vmem:[%s4074_s9 + $0x3c] sm:$0xf] %vm1893_vm3, %v2276_v56  ;;  %v825_v6 = vpop.f32.mrf.mxu1  ;;  %v1446_v9 = vpop.f32.mrf.mxu0 }
 0x1b5   :  { %1286 = vst.msk [vmem:[%s4073_s8 + $0x34] sm:$0xf] %vm1272_vm2, %v2210_v0  ;;  %v2215_v58 = vpack.c.bf16 %v834_v4, %v834_v4  ;;  %v2279_v3 = vpack.c.bf16 %v1455_v5, %v1455_v5  ;;  %v826_v10 = vadd.f32 %v3418_v53, %v825_v6  ;;  %v1447_v11 = vadd.f32 %v3423_v60, %v1446_v9 }
 0x1b6   :  { %1907 = vst.msk [vmem:[%s4074_s9 + $0x34] sm:$0xf] %vm1893_vm3, %v2274_v1  ;;  %v2511_v14 = vpop.f32.mrf.mxu1  ;;  %v2577_v15 = vpop.f32.mrf.mxu0 }
 0x1b7   :  { %1291 = vst.msk [vmem:[%s4073_s8 + $0x48] sm:$0xf] %vm1272_vm2, %v2215_v58  ;;  %v2213_v17 = vpack.c.bf16 %v826_v10, %v826_v10  ;;  %v2277_v18 = vpack.c.bf16 %v1447_v11, %v1447_v11  ;;  %v837_v20 = vadd.f32 %v2511_v14, %v3418_v53  ;;  %v1458_v12 = vadd.f32 %v2577_v15, %v3423_v60 }
 0x1b8   :  { %1912 = vst.msk [vmem:[%s4074_s9 + $0x48] sm:$0xf] %vm1893_vm3, %v2279_v3  ;;  %v828_v38 = vpop.f32.mrf.mxu1  ;;  %v1449_v54 = vpop.f32.mrf.mxu0 }
 0x1b9   :  { %1289 = vst.msk [vmem:[%s4073_s8 + $0x40] sm:$0xf] %vm1272_vm2, %v2213_v17  ;;  %v2216_v62 = vpack.c.bf16 %v837_v20, %v837_v20  ;;  %v2280_v8 = vpack.c.bf16 %v1458_v12, %v1458_v12  ;;  %v829_v16 = vadd.f32 %v3418_v53, %v828_v38  ;;  %v1450_v21 = vadd.f32 %v3423_v60, %v1449_v54 }
 0x1ba   :  { %1910 = vst.msk [vmem:[%s4074_s9 + $0x40] sm:$0xf] %vm1893_vm3, %v2277_v18  ;;  %v2514_v26 = vpop.f32.mrf.mxu1  ;;  %v2580_v30 = vpop.f32.mrf.mxu0 }
 0x1bb   :  { %1292 = vst.msk [vmem:[%s4073_s8 + $0x4c] sm:$0xf] %vm1272_vm2, %v2216_v62  ;;  %v2214_v34 = vpack.c.bf16 %v829_v16, %v829_v16  ;;  %v2278_v40 = vpack.c.bf16 %v1450_v21, %v1450_v21  ;;  %v850_v45 = vadd.f32 %v2514_v26, %v3418_v53  ;;  %v1471_v49 = vadd.f32 %v2580_v30, %v3423_v60 }
 0x1bc   :  { %1913 = vst.msk [vmem:[%s4074_s9 + $0x4c] sm:$0xf] %vm1893_vm3, %v2280_v8  ;;  %v841_v2 = vpop.f32.mrf.mxu1  ;;  %v1462_v7 = vpop.f32.mrf.mxu0 }
 0x1bd   :  { %1290 = vst.msk [vmem:[%s4073_s8 + $0x44] sm:$0xf] %vm1272_vm2, %v2214_v34  ;;  %v2219_v13 = vpack.c.bf16 %v850_v45, %v850_v45  ;;  %v2283_v19 = vpack.c.bf16 %v1471_v49, %v1471_v49  ;;  %v842_v22 = vadd.f32 %v3418_v53, %v841_v2  ;;  %v1463_v23 = vadd.f32 %v3423_v60, %v1462_v7 }
 0x1be   :  { %1911 = vst.msk [vmem:[%s4074_s9 + $0x44] sm:$0xf] %vm1893_vm3, %v2278_v40  ;;  %v2515_v24 = vpop.f32.mrf.mxu1  ;;  %v2581_v25 = vpop.f32.mrf.mxu0 }
 0x1bf   :  { %1295 = vst.msk [vmem:[%s4073_s8 + $0x58] sm:$0xf] %vm1272_vm2, %v2219_v13  ;;  %v2217_v27 = vpack.c.bf16 %v842_v22, %v842_v22  ;;  %v2281_v28 = vpack.c.bf16 %v1463_v23, %v1463_v23  ;;  %v853_v29 = vadd.f32 %v2515_v24, %v3418_v53  ;;  %v1474_v31 = vadd.f32 %v2581_v25, %v3423_v60 }
 0x1c0   :  { %1916 = vst.msk [vmem:[%s4074_s9 + $0x58] sm:$0xf] %vm1893_vm3, %v2283_v19  ;;  %v844_v32 = vpop.f32.mrf.mxu1  ;;  %v1465_v33 = vpop.f32.mrf.mxu0 }
 0x1c1   :  { %1293 = vst.msk [vmem:[%s4073_s8 + $0x50] sm:$0xf] %vm1272_vm2, %v2217_v27  ;;  %v2220_v35 = vpack.c.bf16 %v853_v29, %v853_v29  ;;  %v2284_v36 = vpack.c.bf16 %v1474_v31, %v1474_v31  ;;  %v845_v37 = vadd.f32 %v3418_v53, %v844_v32  ;;  %v1466_v39 = vadd.f32 %v3423_v60, %v1465_v33 }
 0x1c2   :  { %1914 = vst.msk [vmem:[%s4074_s9 + $0x50] sm:$0xf] %vm1893_vm3, %v2281_v28  ;;  %v2518_v41 = vpop.f32.mrf.mxu1  ;;  %v2584_v42 = vpop.f32.mrf.mxu0 }
 0x1c3   :  { %1296 = vst.msk [vmem:[%s4073_s8 + $0x5c] sm:$0xf] %vm1272_vm2, %v2220_v35  ;;  %v2218_v43 = vpack.c.bf16 %v845_v37, %v845_v37  ;;  %v2282_v44 = vpack.c.bf16 %v1466_v39, %v1466_v39  ;;  %v866_v46 = vadd.f32 %v2518_v41, %v3418_v53  ;;  %v1487_v47 = vadd.f32 %v2584_v42, %v3423_v60 }
 0x1c4   :  { %1917 = vst.msk [vmem:[%s4074_s9 + $0x5c] sm:$0xf] %vm1893_vm3, %v2284_v36  ;;  %v857_v48 = vpop.f32.mrf.mxu1  ;;  %v1478_v50 = vpop.f32.mrf.mxu0 }
 0x1c5   :  { %1294 = vst.msk [vmem:[%s4073_s8 + $0x54] sm:$0xf] %vm1272_vm2, %v2218_v43  ;;  %v2223_v51 = vpack.c.bf16 %v866_v46, %v866_v46  ;;  %v2287_v52 = vpack.c.bf16 %v1487_v47, %v1487_v47  ;;  %v858_v55 = vadd.f32 %v3418_v53, %v857_v48  ;;  %v1479_v56 = vadd.f32 %v3423_v60, %v1478_v50 }
 0x1c6   :  { %1915 = vst.msk [vmem:[%s4074_s9 + $0x54] sm:$0xf] %vm1893_vm3, %v2282_v44  ;;  %v2519_v57 = vpop.f32.mrf.mxu1  ;;  %v2585_v59 = vpop.f32.mrf.mxu0 }
 0x1c7   :  { %1299 = vst.msk [vmem:[%s4073_s8 + $0x68] sm:$0xf] %vm1272_vm2, %v2223_v51  ;;  %v2221_v61 = vpack.c.bf16 %v858_v55, %v858_v55  ;;  %v2285_v63 = vpack.c.bf16 %v1479_v56, %v1479_v56  ;;  %v869_v0 = vadd.f32 %v2519_v57, %v3418_v53  ;;  %v1490_v1 = vadd.f32 %v2585_v59, %v3423_v60 }
 0x1c8   :  { %1920 = vst.msk [vmem:[%s4074_s9 + $0x68] sm:$0xf] %vm1893_vm3, %v2287_v52  ;;  %v860_v4 = vpop.f32.mrf.mxu1  ;;  %v1481_v5 = vpop.f32.mrf.mxu0 }
 0x1c9   :  { %1297 = vst.msk [vmem:[%s4073_s8 + $0x60] sm:$0xf] %vm1272_vm2, %v2221_v61  ;;  %v2224_v6 = vpack.c.bf16 %v869_v0, %v869_v0  ;;  %v2288_v9 = vpack.c.bf16 %v1490_v1, %v1490_v1  ;;  %v861_v58 = vadd.f32 %v3418_v53, %v860_v4  ;;  %v1482_v3 = vadd.f32 %v3423_v60, %v1481_v5 }
 0x1ca   :  { %1918 = vst.msk [vmem:[%s4074_s9 + $0x60] sm:$0xf] %vm1893_vm3, %v2285_v63  ;;  %v2522_v10 = vpop.f32.mrf.mxu1  ;;  %v2588_v11 = vpop.f32.mrf.mxu0 }
 0x1cb   :  { %1300 = vst.msk [vmem:[%s4073_s8 + $0x6c] sm:$0xf] %vm1272_vm2, %v2224_v6  ;;  %v2222_v14 = vpack.c.bf16 %v861_v58, %v861_v58  ;;  %v2286_v15 = vpack.c.bf16 %v1482_v3, %v1482_v3  ;;  %v882_v17 = vadd.f32 %v2522_v10, %v3418_v53  ;;  %v1503_v18 = vadd.f32 %v2588_v11, %v3423_v60 }
 0x1cc   :  { %1921 = vst.msk [vmem:[%s4074_s9 + $0x6c] sm:$0xf] %vm1893_vm3, %v2288_v9  ;;  %v873_v20 = vpop.f32.mrf.mxu1  ;;  %v1494_v12 = vpop.f32.mrf.mxu0 }
 0x1cd   :  { %1298 = vst.msk [vmem:[%s4073_s8 + $0x64] sm:$0xf] %vm1272_vm2, %v2222_v14  ;;  %v2227_v38 = vpack.c.bf16 %v882_v17, %v882_v17  ;;  %v2291_v54 = vpack.c.bf16 %v1503_v18, %v1503_v18  ;;  %v874_v62 = vadd.f32 %v3418_v53, %v873_v20  ;;  %v1495_v8 = vadd.f32 %v3423_v60, %v1494_v12 }
 0x1ce   :  { %1919 = vst.msk [vmem:[%s4074_s9 + $0x64] sm:$0xf] %vm1893_vm3, %v2286_v15  ;;  %v2523_v16 = vpop.f32.mrf.mxu1  ;;  %v2589_v21 = vpop.f32.mrf.mxu0 }
 0x1cf   :  { %1303 = vst.msk [vmem:[%s4073_s8 + $0x78] sm:$0xf] %vm1272_vm2, %v2227_v38  ;;  %v2225_v26 = vpack.c.bf16 %v874_v62, %v874_v62  ;;  %v2289_v30 = vpack.c.bf16 %v1495_v8, %v1495_v8  ;;  %v885_v34 = vadd.f32 %v2523_v16, %v3418_v53  ;;  %v1506_v40 = vadd.f32 %v2589_v21, %v3423_v60 }
 0x1d0   :  { %1924 = vst.msk [vmem:[%s4074_s9 + $0x78] sm:$0xf] %vm1893_vm3, %v2291_v54  ;;  %v876_v45 = vpop.f32.mrf.mxu1  ;;  %v1497_v49 = vpop.f32.mrf.mxu0 }
 0x1d1   :  { %1301 = vst.msk [vmem:[%s4073_s8 + $0x70] sm:$0xf] %vm1272_vm2, %v2225_v26  ;;  %v2228_v2 = vpack.c.bf16 %v885_v34, %v885_v34  ;;  %v2292_v7 = vpack.c.bf16 %v1506_v40, %v1506_v40  ;;  %v877_v13 = vadd.f32 %v3418_v53, %v876_v45  ;;  %v1498_v19 = vadd.f32 %v3423_v60, %v1497_v49 }
 0x1d2   :  { %1922 = vst.msk [vmem:[%s4074_s9 + $0x70] sm:$0xf] %vm1893_vm3, %v2289_v30  ;;  %v2526_v22 = vpop.f32.mrf.mxu1  ;;  %v2592_v23 = vpop.f32.mrf.mxu0 }
 0x1d3   :  { %1304 = vst.msk [vmem:[%s4073_s8 + $0x7c] sm:$0xf] %vm1272_vm2, %v2228_v2  ;;  %v2226_v24 = vpack.c.bf16 %v877_v13, %v877_v13  ;;  %v2290_v25 = vpack.c.bf16 %v1498_v19, %v1498_v19  ;;  %v898_v27 = vadd.f32 %v2526_v22, %v3418_v53  ;;  %v1519_v28 = vadd.f32 %v2592_v23, %v3423_v60 }
 0x1d4   :  { %1925 = vst.msk [vmem:[%s4074_s9 + $0x7c] sm:$0xf] %vm1893_vm3, %v2292_v7  ;;  %v889_v29 = vpop.f32.mrf.mxu1  ;;  %v1510_v31 = vpop.f32.mrf.mxu0 }
 0x1d5   :  { %1302 = vst.msk [vmem:[%s4073_s8 + $0x74] sm:$0xf] %vm1272_vm2, %v2226_v24  ;;  %v2231_v32 = vpack.c.bf16 %v898_v27, %v898_v27  ;;  %v2295_v33 = vpack.c.bf16 %v1519_v28, %v1519_v28  ;;  %v890_v35 = vadd.f32 %v3418_v53, %v889_v29  ;;  %v1511_v36 = vadd.f32 %v3423_v60, %v1510_v31 }
 0x1d6   :  { %1923 = vst.msk [vmem:[%s4074_s9 + $0x74] sm:$0xf] %vm1893_vm3, %v2290_v25  ;;  %v2527_v37 = vpop.f32.mrf.mxu1  ;;  %v2593_v39 = vpop.f32.mrf.mxu0 }
 0x1d7   :  { %1307 = vst.msk [vmem:[%s4073_s8 + $0x88] sm:$0xf] %vm1272_vm2, %v2231_v32  ;;  %v2229_v41 = vpack.c.bf16 %v890_v35, %v890_v35  ;;  %v2293_v42 = vpack.c.bf16 %v1511_v36, %v1511_v36  ;;  %v901_v43 = vadd.f32 %v2527_v37, %v3418_v53  ;;  %v1522_v44 = vadd.f32 %v2593_v39, %v3423_v60 }
 0x1d8   :  { %1928 = vst.msk [vmem:[%s4074_s9 + $0x88] sm:$0xf] %vm1893_vm3, %v2295_v33  ;;  %v892_v46 = vpop.f32.mrf.mxu1  ;;  %v1513_v47 = vpop.f32.mrf.mxu0 }
 0x1d9   :  { %1305 = vst.msk [vmem:[%s4073_s8 + $0x80] sm:$0xf] %vm1272_vm2, %v2229_v41  ;;  %v2232_v48 = vpack.c.bf16 %v901_v43, %v901_v43  ;;  %v2296_v50 = vpack.c.bf16 %v1522_v44, %v1522_v44  ;;  %v893_v51 = vadd.f32 %v3418_v53, %v892_v46  ;;  %v1514_v52 = vadd.f32 %v3423_v60, %v1513_v47 }
 0x1da   :  { %1926 = vst.msk [vmem:[%s4074_s9 + $0x80] sm:$0xf] %vm1893_vm3, %v2293_v42  ;;  %v2530_v55 = vpop.f32.mrf.mxu1  ;;  %v2596_v56 = vpop.f32.mrf.mxu0 }
 0x1db   :  { %1308 = vst.msk [vmem:[%s4073_s8 + $0x8c] sm:$0xf] %vm1272_vm2, %v2232_v48  ;;  %v2230_v57 = vpack.c.bf16 %v893_v51, %v893_v51  ;;  %v2294_v59 = vpack.c.bf16 %v1514_v52, %v1514_v52  ;;  %v914_v61 = vadd.f32 %v2530_v55, %v3418_v53  ;;  %v1535_v63 = vadd.f32 %v2596_v56, %v3423_v60 }
 0x1dc   :  { %1929 = vst.msk [vmem:[%s4074_s9 + $0x8c] sm:$0xf] %vm1893_vm3, %v2296_v50  ;;  %v905_v0 = vpop.f32.mrf.mxu1  ;;  %v1526_v1 = vpop.f32.mrf.mxu0 }
 0x1dd   :  { %1306 = vst.msk [vmem:[%s4073_s8 + $0x84] sm:$0xf] %vm1272_vm2, %v2230_v57  ;;  %v2235_v4 = vpack.c.bf16 %v914_v61, %v914_v61  ;;  %v2299_v5 = vpack.c.bf16 %v1535_v63, %v1535_v63  ;;  %v906_v6 = vadd.f32 %v3418_v53, %v905_v0  ;;  %v1527_v9 = vadd.f32 %v3423_v60, %v1526_v1 }
 0x1de   :  { %1927 = vst.msk [vmem:[%s4074_s9 + $0x84] sm:$0xf] %vm1893_vm3, %v2294_v59  ;;  %v2531_v58 = vpop.f32.mrf.mxu1  ;;  %v2597_v3 = vpop.f32.mrf.mxu0 }
 0x1df   :  { %1311 = vst.msk [vmem:[%s4073_s8 + $0x98] sm:$0xf] %vm1272_vm2, %v2235_v4  ;;  %v2233_v10 = vpack.c.bf16 %v906_v6, %v906_v6  ;;  %v2297_v11 = vpack.c.bf16 %v1527_v9, %v1527_v9  ;;  %v917_v14 = vadd.f32 %v2531_v58, %v3418_v53  ;;  %v1538_v15 = vadd.f32 %v2597_v3, %v3423_v60 }
 0x1e0   :  { %1932 = vst.msk [vmem:[%s4074_s9 + $0x98] sm:$0xf] %vm1893_vm3, %v2299_v5  ;;  %v908_v17 = vpop.f32.mrf.mxu1  ;;  %v1529_v18 = vpop.f32.mrf.mxu0 }
 0x1e1   :  { %1309 = vst.msk [vmem:[%s4073_s8 + $0x90] sm:$0xf] %vm1272_vm2, %v2233_v10  ;;  %v2236_v20 = vpack.c.bf16 %v917_v14, %v917_v14  ;;  %v2300_v12 = vpack.c.bf16 %v1538_v15, %v1538_v15  ;;  %v909_v38 = vadd.f32 %v3418_v53, %v908_v17  ;;  %v1530_v54 = vadd.f32 %v3423_v60, %v1529_v18 }
 0x1e2   :  { %1930 = vst.msk [vmem:[%s4074_s9 + $0x90] sm:$0xf] %vm1893_vm3, %v2297_v11  ;;  %v2534_v62 = vpop.f32.mrf.mxu1  ;;  %v2600_v8 = vpop.f32.mrf.mxu0 }
 0x1e3   :  { %1312 = vst.msk [vmem:[%s4073_s8 + $0x9c] sm:$0xf] %vm1272_vm2, %v2236_v20  ;;  %v2234_v16 = vpack.c.bf16 %v909_v38, %v909_v38  ;;  %v2298_v21 = vpack.c.bf16 %v1530_v54, %v1530_v54  ;;  %v930_v26 = vadd.f32 %v2534_v62, %v3418_v53  ;;  %v1551_v30 = vadd.f32 %v2600_v8, %v3423_v60 }
 0x1e4   :  { %1933 = vst.msk [vmem:[%s4074_s9 + $0x9c] sm:$0xf] %vm1893_vm3, %v2300_v12  ;;  %v921_v34 = vpop.f32.mrf.mxu1  ;;  %v1542_v40 = vpop.f32.mrf.mxu0 }
 0x1e5   :  { %1310 = vst.msk [vmem:[%s4073_s8 + $0x94] sm:$0xf] %vm1272_vm2, %v2234_v16  ;;  %v2239_v45 = vpack.c.bf16 %v930_v26, %v930_v26  ;;  %v2303_v49 = vpack.c.bf16 %v1551_v30, %v1551_v30  ;;  %v922_v2 = vadd.f32 %v3418_v53, %v921_v34  ;;  %v1543_v7 = vadd.f32 %v3423_v60, %v1542_v40 }
 0x1e6   :  { %1931 = vst.msk [vmem:[%s4074_s9 + $0x94] sm:$0xf] %vm1893_vm3, %v2298_v21  ;;  %v2535_v13 = vpop.f32.mrf.mxu1  ;;  %v2601_v19 = vpop.f32.mrf.mxu0 }
 0x1e7   :  { %1315 = vst.msk [vmem:[%s4073_s8 + $0xa8] sm:$0xf] %vm1272_vm2, %v2239_v45  ;;  %v2237_v22 = vpack.c.bf16 %v922_v2, %v922_v2  ;;  %v2301_v23 = vpack.c.bf16 %v1543_v7, %v1543_v7  ;;  %v933_v24 = vadd.f32 %v2535_v13, %v3418_v53  ;;  %v1554_v25 = vadd.f32 %v2601_v19, %v3423_v60 }
 0x1e8   :  { %1936 = vst.msk [vmem:[%s4074_s9 + $0xa8] sm:$0xf] %vm1893_vm3, %v2303_v49  ;;  %v924_v27 = vpop.f32.mrf.mxu1  ;;  %v1545_v28 = vpop.f32.mrf.mxu0 }
 0x1e9   :  { %1313 = vst.msk [vmem:[%s4073_s8 + $0xa0] sm:$0xf] %vm1272_vm2, %v2237_v22  ;;  %v2240_v29 = vpack.c.bf16 %v933_v24, %v933_v24  ;;  %v2304_v31 = vpack.c.bf16 %v1554_v25, %v1554_v25  ;;  %v925_v32 = vadd.f32 %v3418_v53, %v924_v27  ;;  %v1546_v33 = vadd.f32 %v3423_v60, %v1545_v28 }
 0x1ea   :  { %1934 = vst.msk [vmem:[%s4074_s9 + $0xa0] sm:$0xf] %vm1893_vm3, %v2301_v23  ;;  %v2538_v35 = vpop.f32.mrf.mxu1  ;;  %v2604_v36 = vpop.f32.mrf.mxu0 }
 0x1eb   :  { %1316 = vst.msk [vmem:[%s4073_s8 + $0xac] sm:$0xf] %vm1272_vm2, %v2240_v29  ;;  %v2238_v37 = vpack.c.bf16 %v925_v32, %v925_v32  ;;  %v2302_v39 = vpack.c.bf16 %v1546_v33, %v1546_v33  ;;  %v946_v41 = vadd.f32 %v2538_v35, %v3418_v53  ;;  %v1567_v42 = vadd.f32 %v2604_v36, %v3423_v60 }
 0x1ec   :  { %1937 = vst.msk [vmem:[%s4074_s9 + $0xac] sm:$0xf] %vm1893_vm3, %v2304_v31  ;;  %v937_v43 = vpop.f32.mrf.mxu1  ;;  %v1558_v44 = vpop.f32.mrf.mxu0 }
 0x1ed   :  { %1314 = vst.msk [vmem:[%s4073_s8 + $0xa4] sm:$0xf] %vm1272_vm2, %v2238_v37  ;;  %v2243_v46 = vpack.c.bf16 %v946_v41, %v946_v41  ;;  %v2307_v47 = vpack.c.bf16 %v1567_v42, %v1567_v42  ;;  %v938_v48 = vadd.f32 %v3418_v53, %v937_v43  ;;  %v1559_v50 = vadd.f32 %v3423_v60, %v1558_v44 }
 0x1ee   :  { %1935 = vst.msk [vmem:[%s4074_s9 + $0xa4] sm:$0xf] %vm1893_vm3, %v2302_v39  ;;  %v2539_v51 = vpop.f32.mrf.mxu1  ;;  %v2605_v52 = vpop.f32.mrf.mxu0 }
 0x1ef   :  { %1319 = vst.msk [vmem:[%s4073_s8 + $0xb8] sm:$0xf] %vm1272_vm2, %v2243_v46  ;;  %v2241_v55 = vpack.c.bf16 %v938_v48, %v938_v48  ;;  %v2305_v56 = vpack.c.bf16 %v1559_v50, %v1559_v50  ;;  %v949_v57 = vadd.f32 %v2539_v51, %v3418_v53  ;;  %v1570_v59 = vadd.f32 %v2605_v52, %v3423_v60 }
 0x1f0   :  { %1940 = vst.msk [vmem:[%s4074_s9 + $0xb8] sm:$0xf] %vm1893_vm3, %v2307_v47  ;;  %v940_v61 = vpop.f32.mrf.mxu1  ;;  %v1561_v63 = vpop.f32.mrf.mxu0 }
 0x1f1   :  { %1317 = vst.msk [vmem:[%s4073_s8 + $0xb0] sm:$0xf] %vm1272_vm2, %v2241_v55  ;;  %v2244_v0 = vpack.c.bf16 %v949_v57, %v949_v57  ;;  %v2308_v1 = vpack.c.bf16 %v1570_v59, %v1570_v59  ;;  %v941_v4 = vadd.f32 %v3418_v53, %v940_v61  ;;  %v1562_v5 = vadd.f32 %v3423_v60, %v1561_v63 }
 0x1f2   :  { %1938 = vst.msk [vmem:[%s4074_s9 + $0xb0] sm:$0xf] %vm1893_vm3, %v2305_v56  ;;  %v2542_v6 = vpop.f32.mrf.mxu1  ;;  %v2608_v9 = vpop.f32.mrf.mxu0 }
 0x1f3   :  { %1320 = vst.msk [vmem:[%s4073_s8 + $0xbc] sm:$0xf] %vm1272_vm2, %v2244_v0  ;;  %v2242_v58 = vpack.c.bf16 %v941_v4, %v941_v4  ;;  %v2306_v3 = vpack.c.bf16 %v1562_v5, %v1562_v5  ;;  %v962_v10 = vadd.f32 %v2542_v6, %v3418_v53  ;;  %v1583_v11 = vadd.f32 %v2608_v9, %v3423_v60 }
 0x1f4   :  { %1941 = vst.msk [vmem:[%s4074_s9 + $0xbc] sm:$0xf] %vm1893_vm3, %v2308_v1  ;;  %v953_v14 = vpop.f32.mrf.mxu1  ;;  %v1574_v15 = vpop.f32.mrf.mxu0 }
 0x1f5   :  { %1318 = vst.msk [vmem:[%s4073_s8 + $0xb4] sm:$0xf] %vm1272_vm2, %v2242_v58  ;;  %v2247_v17 = vpack.c.bf16 %v962_v10, %v962_v10  ;;  %v2311_v18 = vpack.c.bf16 %v1583_v11, %v1583_v11  ;;  %v954_v20 = vadd.f32 %v3418_v53, %v953_v14  ;;  %v1575_v12 = vadd.f32 %v3423_v60, %v1574_v15 }
 0x1f6   :  { %1939 = vst.msk [vmem:[%s4074_s9 + $0xb4] sm:$0xf] %vm1893_vm3, %v2306_v3  ;;  %v2543_v38 = vpop.f32.mrf.mxu1  ;;  %v2609_v54 = vpop.f32.mrf.mxu0 }
 0x1f7   :  { %1323 = vst.msk [vmem:[%s4073_s8 + $0xc8] sm:$0xf] %vm1272_vm2, %v2247_v17  ;;  %v2245_v62 = vpack.c.bf16 %v954_v20, %v954_v20  ;;  %v2309_v8 = vpack.c.bf16 %v1575_v12, %v1575_v12  ;;  %v965_v16 = vadd.f32 %v2543_v38, %v3418_v53  ;;  %v1586_v21 = vadd.f32 %v2609_v54, %v3423_v60 }
 0x1f8   :  { %1944 = vst.msk [vmem:[%s4074_s9 + $0xc8] sm:$0xf] %vm1893_vm3, %v2311_v18  ;;  %v956_v26 = vpop.f32.mrf.mxu1  ;;  %v1577_v30 = vpop.f32.mrf.mxu0 }
 0x1f9   :  { %1321 = vst.msk [vmem:[%s4073_s8 + $0xc0] sm:$0xf] %vm1272_vm2, %v2245_v62  ;;  %v2248_v34 = vpack.c.bf16 %v965_v16, %v965_v16  ;;  %v2312_v40 = vpack.c.bf16 %v1586_v21, %v1586_v21  ;;  %v957_v45 = vadd.f32 %v3418_v53, %v956_v26  ;;  %v1578_v49 = vadd.f32 %v3423_v60, %v1577_v30 }
 0x1fa   :  { %1942 = vst.msk [vmem:[%s4074_s9 + $0xc0] sm:$0xf] %vm1893_vm3, %v2309_v8  ;;  %v2546_v2 = vpop.f32.mrf.mxu1  ;;  %v2612_v7 = vpop.f32.mrf.mxu0 }
 0x1fb   :  { %1324 = vst.msk [vmem:[%s4073_s8 + $0xcc] sm:$0xf] %vm1272_vm2, %v2248_v34  ;;  %v2246_v13 = vpack.c.bf16 %v957_v45, %v957_v45  ;;  %v2310_v19 = vpack.c.bf16 %v1578_v49, %v1578_v49  ;;  %v978_v22 = vadd.f32 %v2546_v2, %v3418_v53  ;;  %v1599_v23 = vadd.f32 %v2612_v7, %v3423_v60 }
 0x1fc   :  { %1945 = vst.msk [vmem:[%s4074_s9 + $0xcc] sm:$0xf] %vm1893_vm3, %v2312_v40  ;;  %v969_v24 = vpop.f32.mrf.mxu1  ;;  %v1590_v25 = vpop.f32.mrf.mxu0 }
 0x1fd   :  { %1322 = vst.msk [vmem:[%s4073_s8 + $0xc4] sm:$0xf] %vm1272_vm2, %v2246_v13  ;;  %v2251_v27 = vpack.c.bf16 %v978_v22, %v978_v22  ;;  %v2315_v28 = vpack.c.bf16 %v1599_v23, %v1599_v23  ;;  %v970_v29 = vadd.f32 %v3418_v53, %v969_v24  ;;  %v1591_v31 = vadd.f32 %v3423_v60, %v1590_v25 }
 0x1fe   :  { %1943 = vst.msk [vmem:[%s4074_s9 + $0xc4] sm:$0xf] %vm1893_vm3, %v2310_v19  ;;  %v2547_v32 = vpop.f32.mrf.mxu1  ;;  %v2613_v33 = vpop.f32.mrf.mxu0 }
 0x1ff   :  { %1327 = vst.msk [vmem:[%s4073_s8 + $0xd8] sm:$0xf] %vm1272_vm2, %v2251_v27  ;;  %v2249_v35 = vpack.c.bf16 %v970_v29, %v970_v29  ;;  %v2313_v36 = vpack.c.bf16 %v1591_v31, %v1591_v31  ;;  %v981_v37 = vadd.f32 %v2547_v32, %v3418_v53  ;;  %v1602_v39 = vadd.f32 %v2613_v33, %v3423_v60 }
 0x200   :  { %1948 = vst.msk [vmem:[%s4074_s9 + $0xd8] sm:$0xf] %vm1893_vm3, %v2315_v28  ;;  %v972_v41 = vpop.f32.mrf.mxu1  ;;  %v1593_v42 = vpop.f32.mrf.mxu0 }
 0x201   :  { %1325 = vst.msk [vmem:[%s4073_s8 + $0xd0] sm:$0xf] %vm1272_vm2, %v2249_v35  ;;  %v2252_v43 = vpack.c.bf16 %v981_v37, %v981_v37  ;;  %v2316_v44 = vpack.c.bf16 %v1602_v39, %v1602_v39  ;;  %v973_v46 = vadd.f32 %v3418_v53, %v972_v41  ;;  %v1594_v47 = vadd.f32 %v3423_v60, %v1593_v42 }
 0x202   :  { %1946 = vst.msk [vmem:[%s4074_s9 + $0xd0] sm:$0xf] %vm1893_vm3, %v2313_v36  ;;  %v2550_v48 = vpop.f32.mrf.mxu1  ;;  %v2616_v50 = vpop.f32.mrf.mxu0 }
 0x203   :  { %1328 = vst.msk [vmem:[%s4073_s8 + $0xdc] sm:$0xf] %vm1272_vm2, %v2252_v43  ;;  %v2250_v51 = vpack.c.bf16 %v973_v46, %v973_v46  ;;  %v2314_v52 = vpack.c.bf16 %v1594_v47, %v1594_v47  ;;  %v994_v55 = vadd.f32 %v2550_v48, %v3418_v53  ;;  %v1615_v56 = vadd.f32 %v2616_v50, %v3423_v60 }
 0x204   :  { %1949 = vst.msk [vmem:[%s4074_s9 + $0xdc] sm:$0xf] %vm1893_vm3, %v2316_v44  ;;  %v985_v57 = vpop.f32.mrf.mxu1  ;;  %v1606_v59 = vpop.f32.mrf.mxu0 }
 0x205   :  { %1326 = vst.msk [vmem:[%s4073_s8 + $0xd4] sm:$0xf] %vm1272_vm2, %v2250_v51  ;;  %v2255_v61 = vpack.c.bf16 %v994_v55, %v994_v55  ;;  %v2319_v63 = vpack.c.bf16 %v1615_v56, %v1615_v56  ;;  %v986_v0 = vadd.f32 %v3418_v53, %v985_v57  ;;  %v1607_v1 = vadd.f32 %v3423_v60, %v1606_v59 }
 0x206   :  { %1947 = vst.msk [vmem:[%s4074_s9 + $0xd4] sm:$0xf] %vm1893_vm3, %v2314_v52  ;;  %v2551_v4 = vpop.f32.mrf.mxu1  ;;  %v2617_v5 = vpop.f32.mrf.mxu0 }
 0x207   :  { %1331 = vst.msk [vmem:[%s4073_s8 + $0xe8] sm:$0xf] %vm1272_vm2, %v2255_v61  ;;  %v2253_v6 = vpack.c.bf16 %v986_v0, %v986_v0  ;;  %v2317_v9 = vpack.c.bf16 %v1607_v1, %v1607_v1  ;;  %v997_v58 = vadd.f32 %v2551_v4, %v3418_v53  ;;  %v1618_v3 = vadd.f32 %v2617_v5, %v3423_v60 }
 0x208   :  { %1952 = vst.msk [vmem:[%s4074_s9 + $0xe8] sm:$0xf] %vm1893_vm3, %v2319_v63  ;;  %v988_v10 = vpop.f32.mrf.mxu1  ;;  %v1609_v11 = vpop.f32.mrf.mxu0 }
 0x209   :  { %1329 = vst.msk [vmem:[%s4073_s8 + $0xe0] sm:$0xf] %vm1272_vm2, %v2253_v6  ;;  %v2256_v14 = vpack.c.bf16 %v997_v58, %v997_v58  ;;  %v2320_v15 = vpack.c.bf16 %v1618_v3, %v1618_v3  ;;  %v989_v17 = vadd.f32 %v3418_v53, %v988_v10  ;;  %v1610_v18 = vadd.f32 %v3423_v60, %v1609_v11 }
 0x20a   :  { %1950 = vst.msk [vmem:[%s4074_s9 + $0xe0] sm:$0xf] %vm1893_vm3, %v2317_v9  ;;  %v2554_v20 = vpop.f32.mrf.mxu1  ;;  %v2620_v12 = vpop.f32.mrf.mxu0 }
 0x20b   :  { %1332 = vst.msk [vmem:[%s4073_s8 + $0xec] sm:$0xf] %vm1272_vm2, %v2256_v14  ;;  %v2254_v38 = vpack.c.bf16 %v989_v17, %v989_v17  ;;  %v2318_v54 = vpack.c.bf16 %v1610_v18, %v1610_v18  ;;  %v1010_v62 = vadd.f32 %v2554_v20, %v3418_v53  ;;  %v1631_v8 = vadd.f32 %v2620_v12, %v3423_v60 }
 0x20c   :  { %1953 = vst.msk [vmem:[%s4074_s9 + $0xec] sm:$0xf] %vm1893_vm3, %v2320_v15  ;;  %v1001_v16 = vpop.f32.mrf.mxu1  ;;  %v1622_v21 = vpop.f32.mrf.mxu0 }
 0x20d   :  { %1330 = vst.msk [vmem:[%s4073_s8 + $0xe4] sm:$0xf] %vm1272_vm2, %v2254_v38  ;;  %v2259_v26 = vpack.c.bf16 %v1010_v62, %v1010_v62  ;;  %v2323_v30 = vpack.c.bf16 %v1631_v8, %v1631_v8  ;;  %v1002_v34 = vadd.f32 %v3418_v53, %v1001_v16  ;;  %v1623_v40 = vadd.f32 %v3423_v60, %v1622_v21 }
 0x20e   :  { %1951 = vst.msk [vmem:[%s4074_s9 + $0xe4] sm:$0xf] %vm1893_vm3, %v2318_v54  ;;  %v2555_v45 = vpop.f32.mrf.mxu1  ;;  %v2621_v49 = vpop.f32.mrf.mxu0 }
 0x20f   :  { %1335 = vst.msk [vmem:[%s4073_s8 + $0xf8] sm:$0xf] %vm1272_vm2, %v2259_v26  ;;  %v2257_v2 = vpack.c.bf16 %v1002_v34, %v1002_v34  ;;  %v2321_v7 = vpack.c.bf16 %v1623_v40, %v1623_v40  ;;  %v1013_v13 = vadd.f32 %v2555_v45, %v3418_v53  ;;  %v1634_v19 = vadd.f32 %v2621_v49, %v3423_v60 }
 0x210   :  { %1956 = vst.msk [vmem:[%s4074_s9 + $0xf8] sm:$0xf] %vm1893_vm3, %v2323_v30  ;;  %v1004_v22 = vpop.f32.mrf.mxu1  ;;  %v1625_v23 = vpop.f32.mrf.mxu0 }
 0x211   :  { %1333 = vst.msk [vmem:[%s4073_s8 + $0xf0] sm:$0xf] %vm1272_vm2, %v2257_v2  ;;  %v2260_v24 = vpack.c.bf16 %v1013_v13, %v1013_v13  ;;  %v2324_v25 = vpack.c.bf16 %v1634_v19, %v1634_v19  ;;  %v1005_v27 = vadd.f32 %v3418_v53, %v1004_v22  ;;  %v1626_v28 = vadd.f32 %v3423_v60, %v1625_v23 }
 0x212   :  { %1954 = vst.msk [vmem:[%s4074_s9 + $0xf0] sm:$0xf] %vm1893_vm3, %v2321_v7 }
 0x213   :  { %1336 = vst.msk [vmem:[%s4073_s8 + $0xfc] sm:$0xf] %vm1272_vm2, %v2260_v24  ;;  %v2258_v29 = vpack.c.bf16 %v1005_v27, %v1005_v27  ;;  %v2322_v31 = vpack.c.bf16 %v1626_v28, %v1626_v28 }
 0x214   :  { %1957 = vst.msk [vmem:[%s4074_s9 + $0xfc] sm:$0xf] %vm1893_vm3, %v2324_v25 }
 0x215   :  { %1334 = vst.msk [vmem:[%s4073_s8 + $0xf4] sm:$0xf] %vm1272_vm2, %v2258_v29 }
 0x216   :  { %1955 = vst.msk [vmem:[%s4074_s9 + $0xf4] sm:$0xf] %vm1893_vm3, %v2322_v31 }

// kernel: block_encoder_forward.5
= control target key start
LH: loop header
LB: loop body
LE: loop exit
PB: predicated region body
PF: predicated region fallthrough
CT: control target
= control target key end

     0   :  { %s10311_s15 = smov 0   ;;  %s10313_s16 = smov 0   ;;  %s11825_s0 = inlined_call_operand.vmem [shape: bf16[2,18,18,8], index: 0, kind: input, shape index: {}]   ;;  %s11826_s1 = inlined_call_operand.vmem [shape: f32[2,16,16,8], index: 1, kind: input, shape index: {}]   ;;  %s11827_s2 = inlined_call_operand.vmem [shape: bf16[9,8,8], index: 2, kind: input, shape index: {}]   ;;  %s11828_s3 = inlined_call_operand.vmem [shape: f32[1,8], index: 3, kind: input, shape index: {}]   ;;  %s11829_s4 = inlined_call_operand.vmem [shape: f32[2,16,16,8], index: 4, kind: output, shape index: {}]  }
   0x1   :  { %s10315_s17 = smov 0  }
   0x2 LB: > { %s26_s18 = sadd.s32 1, %s10278_s16  ;;  %p8522_p0 = scmp.ge.s32.totalorder %s10282_s17, 1  ;;  %s10282_s17 = sphi %s10315_s17, %s14_s17   ;;  %s10278_s16 = sphi %s10313_s16, %s11831_s16   ;;  %s10274_s15 = sphi %s10311_s15, %s11830_s15  }
   0x3   : > { %p28_p1 = scmp.ge.s32.totalorder %s26_s18, 2  ;;  %p194_p2 = scmp.lt.s32.totalorder %s10282_s17, 3 }
   0x5   : > { %s11833_s18 = smov (%p28_p1, %s26_s18), 0  ;;  %p195_p3 = pnand %p8522_p0, %p194_p2 }
   0x6   : > { %p235_p4 = scmp.lt.s32.totalorder (!%p195_p3), %s10274_s15, 1 }
   0x7   : > { %198 = sbr.rel (%p195_p3) target bundleno = 801 (0x321), region = 36 }
   0xc   : > { %v265_v0 = vld [vmem:[%s11827_s2] sm:$0xf]  ;;  %vm313_vm0 = vcmask 1043456   ;;  %v10284_v1 = vmov 0.0   ;;  %v8528_v3 = vld [vmem:[%s11827_s2 + $0x4] sm:$0xf] }
   0xd   : > { %9276 = vmatprep.subr.bf16.mxu1 %v10284_v1  ;;  %v10334_v2 = vsel %vm313_vm0, %v265_v0, 0  ;;  %9270 = vmatprep.subr.bf16.mxu0 %v10284_v1  ;;  %vm10285_vm1 = vmmov 0   ;;  %v10344_v4 = vsel %vm313_vm0, %v8528_v3, 0  ;;  %s11835_s15 = smov (!%p235_p4, %s10274_s15), 1  ;;  %v8530_v5 = vld [vmem:[%s11827_s2 + $0xc] sm:$0xf] }
   0xe   : > { %9277 = vmatpush3.bf16.msra.mxu1 %v10334_v2  ;;  %9278 = vmatprep.mubr.msk.bf16.mxu1 %vm10285_vm1, %v10284_v1  ;;  %s10134_s23 = smul.u32 216, %s11835_s15  ;;  %vm309_vm2 = vcmask 64512   ;;  %v10364_v7 = vsel %vm313_vm0, %v8530_v5, 0  ;;  %vm296_vm3 = vsmask.f32 7424  ;;  %vm404_vm4 = vcmask 1046528  }
   0xf   : > { %9271 = vmatpush3.bf16.msra.mxu0 %v10344_v4  ;;  %9272 = vmatprep.mubr.msk.bf16.mxu0 %vm10285_vm1, %v10284_v1  ;;  %v8529_v13 = vld [vmem:[%s11827_s2 + $0x8] sm:$0xf]  ;;  %v8532_v17 = vld [vmem:[%s11827_s2 + $0x14] sm:$0xf]  ;;  %v8531_v22 = vld [vmem:[%s11827_s2 + $0x10] sm:$0xf] }
  0x10   : > { %9282 = vmatprep.subr.bf16.mxu0 %v10284_v1  ;;  %9288 = vmatprep.subr.bf16.mxu1 %v10284_v1  ;;  %s10360_s28 = scalar_lea.vmem %s11825_s0, %s10134_s23  ;;  %v10380_v18 = vsel %vm313_vm0, %v8529_v13, 0  ;;  %v10392_v23 = vsel %vm313_vm0, %v8532_v17, 0  ;;  %v10404_v31 = vsel %vm313_vm0, %v8531_v22, 0  ;;  %v8534_v34 = vld [vmem:[%s11827_s2 + $0x1c] sm:$0xf]  ;;  %s8980_s19 = sshll.u32 %s11835_s15, 8 }
  0x11   : > { %v10161_v6 = vld [vmem:[%s10360_s28] sm:$0xff]   ;;  %v10162_v8 = vld [vmem:[%s10360_s28 + $0x8] ss:$0 sps:$4 sm:$0x11]   ;;  %v10163_v16 = vld [vmem:[%s10360_s28 + $0xc] sm:$0xff]   ;;  %v10422_v42 = vsel %vm313_vm0, %v8534_v34, 0  ;;  %s10851_s24 = scalar_lea.vmem %s11826_s1, %s8980_s19  ;;  %s10879_s27 = scalar_lea.vmem %s11829_s4, %s8980_s19 }
  0x12   : > { %9279 = vmatmul.mubr.msk.bf16.vlgmr.msra.gmra.mxu1 %vm309_vm2, %v10161_v6  ;;  %v298_v9 = vshrl.u32 %v10161_v6, 16  ;;  %v300_v10 = vshll.u32 %v10161_v6, 16  ;;  %v305_v11 = vshll.u32 %v10162_v8, 16  ;;  %v10164_v19 = vld [vmem:[%s10360_s28 + $0x14] ss:$0 sps:$4 sm:$0x11]  }
  0x13   : > { %9289 = vmatpush3.bf16.msra.mxu1 %v10364_v7  ;;  %9290 = vmatprep.mubr.msk.bf16.mxu1 %vm10285_vm1, %v10284_v1  ;;  %v10384_v20 = vld [vmem:[%s10360_s28 + $0x18] sm:$0xff]   ;;  %v523_v24 = vshll.u32 %v10163_v16, 16  ;;  %v405_v25 = vrot.slane %v10161_v6, 1  ;;  %v406_v26 = vrot.slane %v10162_v8, 1  ;;  %v581_v27 = vrot.slane %v10163_v16, 1  ;;  %v10415_v37 = vld [vmem:[%s10360_s28 + $0xc] sm:$0xff]  }
  0x14   : > { %v302_v12 = vrot.slane %v300_v10, 1  ;;  %9300 = vmatprep.subr.bf16.mxu1 %v10284_v1  ;;  %v307_v14 = vrot.slane %v305_v11, 1  ;;  %v10397_v28 = vld [vmem:[%s10360_s28 + $0x20] ss:$0 sps:$4 sm:$0x11]   ;;  %v582_v29 = vrot.slane %v10164_v19, 1 }
  0x15   : > { %v699_v30 = vshll.u32 %v10384_v20, 16  ;;  %v521_v32 = vshrl.u32 %v10163_v16, 16  ;;  %v525_v33 = vrot.slane %v523_v24, 1  ;;  %v407_v35 = vsel %vm404_vm4, %v405_v25, %v406_v26  ;;  %v8533_v45 = vld [vmem:[%s11827_s2 + $0x18] sm:$0xf] }
  0x16   : > { %v303_v15 = vor.u32 %v302_v12, %v298_v9  ;;  %v528_v36 = vshll.u32 %v10164_v19, 16  ;;  %v583_v38 = vsel %vm404_vm4, %v581_v27, %v582_v29  ;;  %v697_v39 = vshrl.u32 %v10384_v20, 16  ;;  %v10168_v49 = vld [vmem:[%s10360_s28 + $0x14] ss:$0 sps:$4 sm:$0x11]   ;;  %v10169_v61 = vld [vmem:[%s10360_s28 + $0x18] sm:$0xff]  }
  0x17   : > { %v701_v40 = vrot.slane %v699_v30, 1  ;;  %v704_v41 = vshll.u32 %v10397_v28, 16  ;;  %v526_v43 = vor.u32 %v525_v33, %v521_v32  ;;  %v839_v46 = vshll.u32 %v10415_v37, 16  ;;  %v8535_v58 = vld [vmem:[%s11827_s2 + $0x20] sm:$0xf]  ;;  %v10173_v26 = vld [vmem:[%s10360_s28 + $0x18] sm:$0xff]  }
  0x18   : > { %v308_v21 = vsel %vm296_vm3, %v303_v15, %v307_v14  ;;  %v530_v44 = vrot.slane %v528_v36, 1  ;;  %v10440_v51 = vsel %vm313_vm0, %v8533_v45, 0  ;;  %v837_v52 = vshrl.u32 %v10415_v37, 16  ;;  %v10170_v5 = vld [vmem:[%s10360_s28 + $0x20] ss:$0 sps:$4 sm:$0x11]  }
  0x19   : > { %9273 = vmatmul.mubr.msk.bf16.vlgmr.msra.gmra.mxu0 %vm309_vm2, %v308_v21  ;;  %v702_v47 = vor.u32 %v701_v40, %v697_v39  ;;  %v706_v48 = vrot.slane %v704_v41, 1  ;;  %v841_v54 = vrot.slane %v839_v46, 1  ;;  %v844_v55 = vshll.u32 %v10168_v49, 16  ;;  %v10172_v22 = vld [vmem:[%s10360_s28 + $0x2c] ss:$0 sps:$4 sm:$0x11]  }
  0x1a   : > { %9283 = vmatpush3.bf16.msra.mxu0 %v10380_v18  ;;  %9291 = vmatmul.mubr.msk.bf16.vlgmr.msra.gmra.mxu1 %vm309_vm2, %v10163_v16  ;;  %v531_v50 = vsel %vm296_vm3, %v526_v43, %v530_v44  ;;  %v10458_v59 = vsel %vm313_vm0, %v8535_v58, 0  ;;  %v757_v62 = vrot.slane %v10384_v20, 1  ;;  %v758_v63 = vrot.slane %v10397_v28, 1  ;;  %v10171_v16 = vld [vmem:[%s10360_s28 + $0x24] sm:$0xff]   ;;  %v10542_v46 = vld [vmem:[%s10360_s28 + $0x30] sm:$0xff]  }
  0x1b   : > { %9284 = vmatprep.mubr.msk.bf16.mxu0 %vm10285_vm1, %v10284_v1  ;;  %9294 = vmatprep.subr.bf16.mxu0 %v10284_v1  ;;  %v707_v53 = vsel %vm296_vm3, %v702_v47, %v706_v48  ;;  %v842_v56 = vor.u32 %v841_v54, %v837_v52  ;;  %v846_v57 = vrot.slane %v844_v55, 1  ;;  %v935_v0 = vrot.slane %v10415_v37, 1  ;;  %v10174_v24 = vld [vmem:[%s10360_s28 + $0x20] ss:$0 sps:$4 sm:$0x11]   ;;  %v10175_v43 = vld [vmem:[%s10360_s28 + $0x24] sm:$0xff]  }
  0x1c   : > { %9301 = vmatpush3.bf16.msra.mxu1 %v10392_v23  ;;  %9302 = vmatprep.mubr.msk.bf16.mxu1 %vm10285_vm1, %v10284_v1  ;;  %v936_v3 = vrot.slane %v10168_v49, 1  ;;  %v1043_v6 = vshll.u32 %v10169_v61, 16  ;;  %v759_v8 = vsel %vm404_vm4, %v757_v62, %v758_v63  ;;  %v1041_v9 = vshrl.u32 %v10169_v61, 16  ;;  %v10176_v44 = vld [vmem:[%s10360_s28 + $0x2c] ss:$0 sps:$4 sm:$0x11]  }
  0x1d   : > { %9312 = vmatprep.subr.bf16.mxu1 %v10284_v1  ;;  %v847_v60 = vsel %vm296_vm3, %v842_v56, %v846_v57  ;;  %v1048_v12 = vshll.u32 %v10170_v5, 16  ;;  %v1098_v17 = vrot.slane %v10169_v61, 1  ;;  %v1099_v19 = vrot.slane %v10170_v5, 1 }
  0x1e   : > { %v937_v10 = vsel %vm404_vm4, %v935_v0, %v936_v3  ;;  %v1045_v11 = vrot.slane %v1043_v6, 1  ;;  %v1210_v21 = vshll.u32 %v10171_v16, 16  ;;  %v1266_v25 = vrot.slane %v10172_v22, 1  ;;  %v10560_v0 = vld [vmem:[%s10360_s28 + $0x24] sm:$0xff]  }
  0x1f   : > { %v1050_v14 = vrot.slane %v1048_v12, 1  ;;  %v1208_v27 = vshrl.u32 %v10171_v16, 16  ;;  %v1215_v28 = vshll.u32 %v10172_v22, 16  ;;  %v1100_v29 = vsel %vm404_vm4, %v1098_v17, %v1099_v19 }
  0x20   : > { %v1046_v13 = vor.u32 %v1045_v11, %v1041_v9  ;;  %v1212_v30 = vrot.slane %v1210_v21, 1  ;;  %v1340_v32 = vshll.u32 %v10173_v26, 16  ;;  %v1345_v33 = vshll.u32 %v10174_v24, 16  ;;  %v10180_v9 = vld [vmem:[%s10360_s28 + $0x2c] ss:$0 sps:$4 sm:$0x11]  }
  0x21   : > { %9285 = vmatmul.mubr.msk.bf16.vlgmr.msra.gmra.mxu0 %vm309_vm2, %v407_v35  ;;  %v1217_v35 = vrot.slane %v1215_v28, 1  ;;  %v1338_v36 = vshrl.u32 %v10173_v26, 16  ;;  %v1436_v47 = vrot.slane %v10173_v26, 1  ;;  %v1437_v48 = vrot.slane %v10174_v24, 1 }
  0x22   : > { %9295 = vmatpush3.bf16.msra.mxu0 %v10404_v31  ;;  %9303 = vmatmul.mubr.msk.bf16.vlgmr.msra.gmra.mxu1 %vm309_vm2, %v583_v38  ;;  %v1051_v15 = vsel %vm296_vm3, %v1046_v13, %v1050_v14  ;;  %v1342_v38 = vrot.slane %v1340_v32, 1  ;;  %v1347_v39 = vrot.slane %v1345_v33, 1  ;;  %v1544_v49 = vshll.u32 %v10175_v43, 16 }
  0x23   : > { %9296 = vmatprep.mubr.msk.bf16.mxu0 %vm10285_vm1, %v10284_v1  ;;  %9306 = vmatprep.subr.bf16.mxu0 %v10284_v1  ;;  %v1600_v52 = vrot.slane %v10176_v44, 1  ;;  %v1711_v54 = vshll.u32 %v10542_v46, 16  ;;  %v1438_v55 = vsel %vm404_vm4, %v1436_v47, %v1437_v48  ;;  %v1542_v56 = vshrl.u32 %v10175_v43, 16 }
  0x24   : > { %9313 = vmatpush3.bf16.msra.mxu1 %v10422_v42  ;;  %9314 = vmatprep.mubr.msk.bf16.mxu1 %vm10285_vm1, %v10284_v1  ;;  %v1343_v41 = vor.u32 %v1342_v38, %v1338_v36  ;;  %v1546_v57 = vrot.slane %v1544_v49, 1  ;;  %v1549_v58 = vshll.u32 %v10176_v44, 16  ;;  %v1839_v13 = vshrl.u32 %v10560_v0, 16  ;;  %v10184_v38 = vld [vmem:[%s10360_s28 + $0x44] ss:$0 sps:$4 sm:$0x11]  }
  0x25   : > { %9324 = vmatprep.subr.bf16.mxu1 %v10284_v1  ;;  %v1713_v62 = vrot.slane %v1711_v54, 1  ;;  %v1766_v21 = vrot.slane %v10542_v46, 1  ;;  %v1937_v24 = vrot.slane %v10560_v0, 1  ;;  %v2268_v44 = vrot.slane %v10184_v38, 1  ;;  %v10185_v49 = vld [vmem:[%s10360_s28 + $0x30] sm:$0xff]  }
  0x26   : > { %v1348_v45 = vsel %vm296_vm3, %v1343_v41, %v1347_v39  ;;  %v1547_v3 = vor.u32 %v1546_v57, %v1542_v56  ;;  %v1551_v5 = vrot.slane %v1549_v58, 1  ;;  %v2217_v48 = vshll.u32 %v10184_v38, 16  ;;  %v10186_v54 = vld [vmem:[%s10360_s28 + $0x38] ss:$0 sps:$4 sm:$0x11]  }
  0x27   : > { %v2340_v57 = vshrl.u32 %v10185_v49, 16 }
  0x28   : > { %v1552_v11 = vsel %vm296_vm3, %v1547_v3, %v1551_v5  ;;  %v10188_v3 = vld [vmem:[%s10360_s28 + $0x44] ss:$0 sps:$4 sm:$0x11]   ;;  %v10668_v5 = vld [vmem:[%s10360_s28 + $0x48] sm:$0xff]  }
  0x29   : > { %9297 = vmatmul.mubr.msk.bf16.vlgmr.msra.gmra.mxu0 %vm309_vm2, %v531_v50  ;;  %v1599_v50 = vrot.slane %v10175_v43, 1 }
  0x2a   : > { %9307 = vmatpush3.bf16.msra.mxu0 %v10440_v51  ;;  %9315 = vmatmul.mubr.msk.bf16.vlgmr.msra.gmra.mxu1 %vm309_vm2, %v707_v53  ;;  %v10178_v53 = vld [vmem:[%s10360_s28 + $0x38] ss:$0 sps:$4 sm:$0x11]  }
  0x2b   : > { %9308 = vmatprep.mubr.msk.bf16.mxu0 %vm10285_vm1, %v10284_v1  ;;  %9318 = vmatprep.subr.bf16.mxu0 %v10284_v1  ;;  %v1716_v63 = vshll.u32 %v10178_v53, 16  ;;  %v1767_v22 = vrot.slane %v10178_v53, 1  ;;  %v2219_v53 = vrot.slane %v2217_v48, 1 }
  0x2c   : > { %9325 = vmatpush3.bf16.msra.mxu1 %v10344_v4  ;;  %9326 = vmatprep.mubr.msk.bf16.mxu1 %vm10285_vm1, %v10284_v1 }
  0x2d   : > { %9336 = vmatprep.subr.bf16.mxu1 %v10284_v1  ;;  %v1768_v28 = vsel %vm404_vm4, %v1766_v21, %v1767_v22 }
  0x31   : > { %9309 = vmatmul.mubr.msk.bf16.vlgmr.msra.gmra.mxu0 %vm309_vm2, %v10384_v20  ;;  %v1265_v20 = vrot.slane %v10171_v16, 1 }
  0x32   : > { %9319 = vmatpush3.bf16.msra.mxu0 %v10458_v59  ;;  %9327 = vmatmul.mubr.msk.bf16.vlgmr.msra.gmra.mxu1 %vm309_vm2, %v847_v60  ;;  %v1601_v60 = vsel %vm404_vm4, %v1599_v50, %v1600_v52 }
  0x33   : > { %9320 = vmatprep.mubr.msk.bf16.mxu0 %vm10285_vm1, %v10284_v1  ;;  %9330 = vmatprep.subr.bf16.mxu0 %v10284_v1  ;;  %v1267_v34 = vsel %vm404_vm4, %v1265_v20, %v1266_v25  ;;  %v10181_v20 = vld [vmem:[%s10360_s28 + $0x30] sm:$0xff]   ;;  %v1938_v25 = vrot.slane %v10180_v9, 1 }
  0x34   : > { %9337 = vmatpush3.bf16.msra.mxu1 %v10380_v18  ;;  %9338 = vmatprep.mubr.msk.bf16.mxu1 %vm10285_vm1, %v10284_v1  ;;  %v2100_v39 = vrot.slane %v10181_v20, 1 }
  0x35   : > { %9348 = vmatprep.subr.bf16.mxu1 %v10284_v1 }
  0x39   : > { %9321 = vmatmul.mubr.msk.bf16.vlgmr.msra.gmra.mxu0 %vm309_vm2, %v759_v8  ;;  %v1718_v8 = vrot.slane %v1716_v63, 1 }
  0x3a   : > { %9331 = vmatpush3.bf16.msra.mxu0 %v10334_v2  ;;  %9339 = vmatmul.mubr.msk.bf16.vlgmr.msra.gmra.mxu1 %vm309_vm2, %v937_v10  ;;  %v1841_v10 = vshll.u32 %v10560_v0, 16 }
  0x3b   : > { %9332 = vmatprep.mubr.msk.bf16.mxu0 %vm10285_vm1, %v10284_v1  ;;  %9342 = vmatprep.subr.bf16.mxu0 %v10284_v1 }
  0x3c   : > { %9349 = vmatpush3.bf16.msra.mxu1 %v10404_v31  ;;  %9350 = vmatprep.mubr.msk.bf16.mxu1 %vm10285_vm1, %v10284_v1  ;;  %v1843_v14 = vrot.slane %v1841_v10, 1 }
  0x3d   : > { %9360 = vmatprep.subr.bf16.mxu1 %v10284_v1 }
  0x41   : > { %9333 = vmatmul.mubr.msk.bf16.vlgmr.msra.gmra.mxu0 %vm309_vm2, %v10415_v37  ;;  %v1213_v37 = vor.u32 %v1212_v30, %v1208_v27  ;;  %v2045_v27 = vshll.u32 %v10181_v20, 16  ;;  %v2043_v30 = vshrl.u32 %v10181_v20, 16 }
  0x42   : > { %9343 = vmatpush3.bf16.msra.mxu0 %v10364_v7  ;;  %9351 = vmatmul.mubr.msk.bf16.vlgmr.msra.gmra.mxu1 %vm309_vm2, %v1051_v15  ;;  %v1846_v15 = vshll.u32 %v10180_v9, 16 }
  0x43   : > { %9344 = vmatprep.mubr.msk.bf16.mxu0 %vm10285_vm1, %v10284_v1  ;;  %9354 = vmatprep.subr.bf16.mxu0 %v10284_v1  ;;  %v1218_v40 = vsel %vm296_vm3, %v1213_v37, %v1217_v35  ;;  %v2047_v32 = vrot.slane %v2045_v27, 1  ;;  %v10183_v37 = vld [vmem:[%s10360_s28 + $0x3c] sm:$0xff]  }
  0x44   : > { %9361 = vmatpush3.bf16.msra.mxu1 %v10440_v51  ;;  %9362 = vmatprep.mubr.msk.bf16.mxu1 %vm10285_vm1, %v10284_v1  ;;  %v1848_v17 = vrot.slane %v1846_v15, 1  ;;  %v2212_v41 = vshll.u32 %v10183_v37, 16 }
  0x45   : > { %9372 = vmatprep.subr.bf16.mxu1 %v10284_v1 }
  0x46   : > { %v2214_v47 = vrot.slane %v2212_v41, 1  ;;  %v2768_v41 = vrot.slane %v10668_v5, 1 }
  0x49   : > { %9345 = vmatmul.mubr.msk.bf16.vlgmr.msra.gmra.mxu0 %vm309_vm2, %v10169_v61  ;;  %v1709_v61 = vshrl.u32 %v10542_v46, 16 }
  0x4a   : > { %9355 = vmatpush3.bf16.msra.mxu0 %v10392_v23  ;;  %9363 = vmatmul.mubr.msk.bf16.vlgmr.msra.gmra.mxu1 %vm309_vm2, %v10171_v16  ;;  %v1844_v16 = vor.u32 %v1843_v14, %v1839_v13  ;;  %v2713_v13 = vshll.u32 %v10668_v5, 16 }
  0x4b   : > { %9356 = vmatprep.mubr.msk.bf16.mxu0 %vm10285_vm1, %v10284_v1  ;;  %9366 = vmatprep.subr.bf16.mxu0 %v10284_v1  ;;  %v1714_v6 = vor.u32 %v1713_v62, %v1709_v61 }
  0x4c   : > { %9373 = vmatpush3.bf16.msra.mxu1 %v10458_v59  ;;  %9374 = vmatprep.mubr.msk.bf16.mxu1 %vm10285_vm1, %v10284_v1  ;;  %v1849_v19 = vsel %vm296_vm3, %v1844_v16, %v1848_v17  ;;  %v2551_v17 = vshll.u32 %v10188_v3, 16  ;;  %v2715_v21 = vrot.slane %v2713_v13, 1 }
  0x4d   : > { %9384 = vmatprep.subr.bf16.mxu1 %v10284_v1  ;;  %v1719_v12 = vsel %vm296_vm3, %v1714_v6, %v1718_v8  ;;  %v2438_v6 = vrot.slane %v10185_v49, 1  ;;  %v2439_v8 = vrot.slane %v10186_v54, 1 }
  0x4f   : > { %v2440_v14 = vsel %vm404_vm4, %v2438_v6, %v2439_v8 }
  0x51   : > { %9357 = vmatmul.mubr.msk.bf16.vlgmr.msra.gmra.mxu0 %vm309_vm2, %v1100_v29  ;;  %v1939_v29 = vsel %vm404_vm4, %v1937_v24, %v1938_v25  ;;  %v10686_v24 = vld [vmem:[%s10360_s28 + $0x3c] sm:$0xff]  }
  0x52   : > { %9367 = vmatpush3.bf16.msra.mxu0 %v10422_v42  ;;  %9375 = vmatmul.mubr.msk.bf16.vlgmr.msra.gmra.mxu1 %vm309_vm2, %v1267_v34  ;;  %v2048_v34 = vor.u32 %v2047_v32, %v2043_v30  ;;  %v2843_v30 = vshll.u32 %v10686_v24, 16 }
  0x53   : > { %9368 = vmatprep.mubr.msk.bf16.mxu0 %vm10285_vm1, %v10284_v1  ;;  %9378 = vmatprep.subr.bf16.mxu0 %v10284_v1 }
  0x54   : > { %9385 = vmatpush3.bf16.msra.mxu1 %v10334_v2  ;;  %9386 = vmatprep.mubr.msk.bf16.mxu1 %vm10285_vm1, %v10284_v1 }
  0x55   : > { %9396 = vmatprep.subr.bf16.mxu1 %v10284_v1 }
  0x59   : > { %9369 = vmatmul.mubr.msk.bf16.vlgmr.msra.gmra.mxu0 %vm309_vm2, %v1218_v40 }
  0x5a   : > { %9379 = vmatpush3.bf16.msra.mxu0 %v10344_v4  ;;  %9387 = vmatmul.mubr.msk.bf16.vlgmr.msra.gmra.mxu1 %vm309_vm2, %v10173_v26  ;;  %v10182_v26 = vld [vmem:[%s10360_s28 + $0x38] ss:$0 sps:$4 sm:$0x11]  }
  0x5b   : > { %9380 = vmatprep.mubr.msk.bf16.mxu0 %vm10285_vm1, %v10284_v1  ;;  %9390 = vmatprep.subr.bf16.mxu0 %v10284_v1  ;;  %v2050_v33 = vshll.u32 %v10182_v26, 16  ;;  %v2101_v40 = vrot.slane %v10182_v26, 1  ;;  %v2553_v26 = vrot.slane %v2551_v17, 1 }
  0x5c   : > { %9397 = vmatpush3.bf16.msra.mxu1 %v10364_v7  ;;  %9398 = vmatprep.mubr.msk.bf16.mxu1 %vm10285_vm1, %v10284_v1 }
  0x5d   : > { %9408 = vmatprep.subr.bf16.mxu1 %v10284_v1  ;;  %v2052_v35 = vrot.slane %v2050_v33, 1 }
  0x5f   : > { %v2053_v36 = vsel %vm296_vm3, %v2048_v34, %v2052_v35  ;;  %v2841_v34 = vshrl.u32 %v10686_v24, 16  ;;  %v2845_v35 = vrot.slane %v2843_v30, 1 }
  0x61   : > { %9381 = vmatmul.mubr.msk.bf16.vlgmr.msra.gmra.mxu0 %vm309_vm2, %v1348_v45  ;;  %v2102_v45 = vsel %vm404_vm4, %v2100_v39, %v2101_v40  ;;  %v10715_v40 = vld [vmem:[%s10360_s28 + $0x48] sm:$0xff]  }
  0x62   : > { %9391 = vmatpush3.bf16.msra.mxu0 %v10380_v18  ;;  %9399 = vmatmul.mubr.msk.bf16.vlgmr.msra.gmra.mxu1 %vm309_vm2, %v10175_v43  ;;  %v2267_v43 = vrot.slane %v10183_v37, 1  ;;  %v3102_v6 = vrot.slane %v10715_v40, 1 }
  0x63   : > { %9392 = vmatprep.mubr.msk.bf16.mxu0 %vm10285_vm1, %v10284_v1  ;;  %9402 = vmatprep.subr.bf16.mxu0 %v10284_v1 }
  0x64   : > { %9409 = vmatpush3.bf16.msra.mxu1 %v10392_v23  ;;  %9410 = vmatprep.mubr.msk.bf16.mxu1 %vm10285_vm1, %v10284_v1  ;;  %v2269_v50 = vsel %vm404_vm4, %v2267_v43, %v2268_v44  ;;  %v2939_v44 = vrot.slane %v10686_v24, 1 }
  0x65   : > { %9420 = vmatprep.subr.bf16.mxu1 %v10284_v1 }
  0x69   : > { %9393 = vmatmul.mubr.msk.bf16.vlgmr.msra.gmra.mxu0 %vm309_vm2, %v1438_v55  ;;  %v2342_v55 = vshll.u32 %v10185_v49, 16 }
  0x6a   : > { %9403 = vmatpush3.bf16.msra.mxu0 %v10404_v31  ;;  %9411 = vmatmul.mubr.msk.bf16.vlgmr.msra.gmra.mxu1 %vm309_vm2, %v1601_v60  ;;  %v2347_v60 = vshll.u32 %v10186_v54, 16 }
  0x6b   : > { %9404 = vmatprep.mubr.msk.bf16.mxu0 %vm10285_vm1, %v10284_v1  ;;  %9414 = vmatprep.subr.bf16.mxu0 %v10284_v1  ;;  %v2344_v58 = vrot.slane %v2342_v55, 1 }
  0x6c   : > { %9421 = vmatpush3.bf16.msra.mxu1 %v10422_v42  ;;  %9422 = vmatprep.mubr.msk.bf16.mxu1 %vm10285_vm1, %v10284_v1  ;;  %v2349_v62 = vrot.slane %v2347_v60, 1 }
  0x6d   : > { %9432 = vmatprep.subr.bf16.mxu1 %v10284_v1  ;;  %v2345_v61 = vor.u32 %v2344_v58, %v2340_v57 }
  0x6f   : > { %v2350_v63 = vsel %vm296_vm3, %v2345_v61, %v2349_v62  ;;  %v10195_v61 = vld [vmem:[%s10360_s28 + $0x54] sm:$0xff]   ;;  %v10196_v62 = vld [vmem:[%s10360_s28 + $0x5c] ss:$0 sps:$4 sm:$0x11]  }
  0x71   : > { %9405 = vmatmul.mubr.msk.bf16.vlgmr.msra.gmra.mxu0 %vm309_vm2, %v1552_v11  ;;  %v2602_v11 = vrot.slane %v10188_v3, 1  ;;  %v3214_v3 = vshll.u32 %v10195_v61, 16 }
  0x72   : > { %9415 = vmatpush3.bf16.msra.mxu0 %v10440_v51  ;;  %9423 = vmatmul.mubr.msk.bf16.vlgmr.msra.gmra.mxu1 %vm309_vm2, %v1719_v12  ;;  %v10190_v12 = vld [vmem:[%s10360_s28 + $0x50] ss:$0 sps:$4 sm:$0x11]  }
  0x73   : > { %9416 = vmatprep.mubr.msk.bf16.mxu0 %vm10285_vm1, %v10284_v1  ;;  %9426 = vmatprep.subr.bf16.mxu0 %v10284_v1  ;;  %v2718_v22 = vshll.u32 %v10190_v12, 16  ;;  %v2769_v43 = vrot.slane %v10190_v12, 1 }
  0x74   : > { %9433 = vmatpush3.bf16.msra.mxu1 %v10344_v4  ;;  %9434 = vmatprep.mubr.msk.bf16.mxu1 %vm10285_vm1, %v10284_v1 }
  0x75   : > { %9444 = vmatprep.subr.bf16.mxu1 %v10284_v1  ;;  %v2770_v48 = vsel %vm404_vm4, %v2768_v41, %v2769_v43 }
  0x79   : > { %9417 = vmatmul.mubr.msk.bf16.vlgmr.msra.gmra.mxu0 %vm309_vm2, %v10542_v46  ;;  %v2210_v46 = vshrl.u32 %v10183_v37, 16 }
  0x7a   : > { %9427 = vmatpush3.bf16.msra.mxu0 %v10458_v59  ;;  %9435 = vmatmul.mubr.msk.bf16.vlgmr.msra.gmra.mxu1 %vm309_vm2, %v1849_v19 }
  0x7b   : > { %9428 = vmatprep.mubr.msk.bf16.mxu0 %vm10285_vm1, %v10284_v1  ;;  %9438 = vmatprep.subr.bf16.mxu0 %v10284_v1  ;;  %v2215_v52 = vor.u32 %v2214_v47, %v2210_v46  ;;  %v10194_v46 = vld [vmem:[%s10360_s28 + $0x50] ss:$0 sps:$4 sm:$0x11]   ;;  %v3047_v47 = vshll.u32 %v10715_v40, 16 }
  0x7c   : > { %9445 = vmatpush3.bf16.msra.mxu1 %v10380_v18  ;;  %9446 = vmatprep.mubr.msk.bf16.mxu1 %vm10285_vm1, %v10284_v1  ;;  %v3103_v8 = vrot.slane %v10194_v46, 1 }
  0x7d   : > { %9456 = vmatprep.subr.bf16.mxu1 %v10284_v1  ;;  %v2220_v56 = vsel %vm296_vm3, %v2215_v52, %v2219_v53  ;;  %v3049_v52 = vrot.slane %v3047_v47, 1  ;;  %v3052_v53 = vshll.u32 %v10194_v46, 16 }
  0x7f   : > { %v3054_v55 = vrot.slane %v3052_v53, 1 }
  0x81   : > { %9429 = vmatmul.mubr.msk.bf16.vlgmr.msra.gmra.mxu0 %vm309_vm2, %v1768_v28  ;;  %v2720_v28 = vrot.slane %v2718_v22, 1 }
  0x82   : > { %9439 = vmatpush3.bf16.msra.mxu0 %v10334_v2  ;;  %9447 = vmatmul.mubr.msk.bf16.vlgmr.msra.gmra.mxu1 %vm309_vm2, %v1939_v29  ;;  %v10192_v29 = vld [vmem:[%s10360_s28 + $0x44] ss:$0 sps:$4 sm:$0x11]  }
  0x83   : > { %9440 = vmatprep.mubr.msk.bf16.mxu0 %vm10285_vm1, %v10284_v1  ;;  %9450 = vmatprep.subr.bf16.mxu0 %v10284_v1 }
  0x84   : > { %9457 = vmatpush3.bf16.msra.mxu1 %v10404_v31  ;;  %9458 = vmatprep.mubr.msk.bf16.mxu1 %vm10285_vm1, %v10284_v1 }
  0x85   : > { %9468 = vmatprep.subr.bf16.mxu1 %v10284_v1 }
  0x89   : > { %9441 = vmatmul.mubr.msk.bf16.vlgmr.msra.gmra.mxu0 %vm309_vm2, %v10560_v0  ;;  %v10187_v0 = vld [vmem:[%s10360_s28 + $0x3c] sm:$0xff]  }
  0x8a   : > { %9451 = vmatpush3.bf16.msra.mxu0 %v10364_v7  ;;  %9459 = vmatmul.mubr.msk.bf16.vlgmr.msra.gmra.mxu1 %vm309_vm2, %v2053_v36  ;;  %v2546_v9 = vshll.u32 %v10187_v0, 16  ;;  %v2601_v10 = vrot.slane %v10187_v0, 1  ;;  %v2544_v15 = vshrl.u32 %v10187_v0, 16  ;;  %v2848_v36 = vshll.u32 %v10192_v29, 16 }
  0x8b   : > { %9452 = vmatprep.mubr.msk.bf16.mxu0 %vm10285_vm1, %v10284_v1  ;;  %9462 = vmatprep.subr.bf16.mxu0 %v10284_v1 }
  0x8c   : > { %9469 = vmatpush3.bf16.msra.mxu1 %v10440_v51  ;;  %9470 = vmatprep.mubr.msk.bf16.mxu1 %vm10285_vm1, %v10284_v1  ;;  %v2548_v16 = vrot.slane %v2546_v9, 1  ;;  %v2603_v19 = vsel %vm404_vm4, %v2601_v10, %v2602_v11  ;;  %v2850_v38 = vrot.slane %v2848_v36, 1  ;;  %v3269_v10 = vrot.slane %v10195_v61, 1 }
  0x8d   : > { %9480 = vmatprep.subr.bf16.mxu1 %v10284_v1  ;;  %v3270_v11 = vrot.slane %v10196_v62, 1 }
  0x8e   : > { %v2549_v25 = vor.u32 %v2548_v16, %v2544_v15  ;;  %v3216_v15 = vrot.slane %v3214_v3, 1  ;;  %v3219_v16 = vshll.u32 %v10196_v62, 16  ;;  %v10200_v62 = vld [vmem:[%s10360_s28 + $0x5c] ss:$0 sps:$4 sm:$0x11]  }
  0x8f   : > { %v3271_v22 = vsel %vm404_vm4, %v3269_v10, %v3270_v11 }
  0x90   : > { %v2554_v32 = vsel %vm296_vm3, %v2549_v25, %v2553_v26 }
  0x91   : > { %9453 = vmatmul.mubr.msk.bf16.vlgmr.msra.gmra.mxu0 %vm309_vm2, %v10181_v20  ;;  %v2711_v20 = vshrl.u32 %v10668_v5, 16 }
  0x92   : > { %9463 = vmatpush3.bf16.msra.mxu0 %v10392_v23  ;;  %9471 = vmatmul.mubr.msk.bf16.vlgmr.msra.gmra.mxu1 %vm309_vm2, %v10183_v37  ;;  %v2846_v37 = vor.u32 %v2845_v35, %v2841_v34 }
  0x93   : > { %9464 = vmatprep.mubr.msk.bf16.mxu0 %vm10285_vm1, %v10284_v1  ;;  %9474 = vmatprep.subr.bf16.mxu0 %v10284_v1  ;;  %v2716_v27 = vor.u32 %v2715_v21, %v2711_v20  ;;  %v10773_v20 = vld [vmem:[%s10360_s28 + $0x48] sm:$0xff]  }
  0x94   : > { %9481 = vmatpush3.bf16.msra.mxu1 %v10458_v59  ;;  %9482 = vmatprep.mubr.msk.bf16.mxu1 %vm10285_vm1, %v10284_v1  ;;  %v2851_v39 = vsel %vm296_vm3, %v2846_v37, %v2850_v38  ;;  %v3344_v30 = vshll.u32 %v10773_v20, 16  ;;  %v3342_v38 = vshrl.u32 %v10773_v20, 16 }
  0x95   : > { %9492 = vmatprep.subr.bf16.mxu1 %v10284_v1  ;;  %v2721_v33 = vsel %vm296_vm3, %v2716_v27, %v2720_v28  ;;  %v3221_v27 = vrot.slane %v3219_v16, 1  ;;  %v10823_v16 = vld [vmem:[%s10360_s28 + $0x68] ss:$0 sps:$4 sm:$0x11]  }
  0x99   : > { %9465 = vmatmul.mubr.msk.bf16.vlgmr.msra.gmra.mxu0 %vm309_vm2, %v2102_v45  ;;  %v2940_v45 = vrot.slane %v10192_v29, 1  ;;  %v10780_v29 = vld [vmem:[%s10360_s28 + $0x50] ss:$0 sps:$4 sm:$0x11]  }
  0x9a   : > { %9475 = vmatpush3.bf16.msra.mxu0 %v10422_v42  ;;  %9483 = vmatmul.mubr.msk.bf16.vlgmr.msra.gmra.mxu1 %vm309_vm2, %v2269_v50  ;;  %v3045_v50 = vshrl.u32 %v10715_v40, 16 }
  0x9b   : > { %9476 = vmatprep.mubr.msk.bf16.mxu0 %vm10285_vm1, %v10284_v1  ;;  %9486 = vmatprep.subr.bf16.mxu0 %v10284_v1 }
  0x9c   : > { %9493 = vmatpush3.bf16.msra.mxu1 %v10334_v2  ;;  %9494 = vmatprep.mubr.msk.bf16.mxu1 %vm10285_vm1, %v10284_v1  ;;  %v3050_v54 = vor.u32 %v3049_v52, %v3045_v50 }
  0x9d   : > { %9504 = vmatprep.subr.bf16.mxu1 %v10284_v1 }
  0xa1   : > { %9477 = vmatmul.mubr.msk.bf16.vlgmr.msra.gmra.mxu0 %vm309_vm2, %v2220_v56  ;;  %v3055_v56 = vsel %vm296_vm3, %v3050_v54, %v3054_v55 }
  0xa2   : > { %9487 = vmatpush3.bf16.msra.mxu0 %v10344_v4  ;;  %9495 = vmatmul.mubr.msk.bf16.vlgmr.msra.gmra.mxu1 %vm309_vm2, %v10185_v49  ;;  %v2941_v49 = vsel %vm404_vm4, %v2939_v44, %v2940_v45 }
  0xa3   : > { %9488 = vmatprep.mubr.msk.bf16.mxu0 %vm10285_vm1, %v10284_v1  ;;  %9498 = vmatprep.subr.bf16.mxu0 %v10284_v1 }
  0xa4   : > { %9505 = vmatpush3.bf16.msra.mxu1 %v10364_v7  ;;  %9506 = vmatprep.mubr.msk.bf16.mxu1 %vm10285_vm1, %v10284_v1 }
  0xa5   : > { %9516 = vmatprep.subr.bf16.mxu1 %v10284_v1 }
  0xa9   : > { %9489 = vmatmul.mubr.msk.bf16.vlgmr.msra.gmra.mxu0 %vm309_vm2, %v2350_v63 }
  0xaa   : > { %9499 = vmatpush3.bf16.msra.mxu0 %v10380_v18  ;;  %9507 = vmatmul.mubr.msk.bf16.vlgmr.msra.gmra.mxu1 %vm309_vm2, %v10187_v0 }
  0xab   : > { %9500 = vmatprep.mubr.msk.bf16.mxu0 %vm10285_vm1, %v10284_v1  ;;  %9510 = vmatprep.subr.bf16.mxu0 %v10284_v1 }
  0xac   : > { %9517 = vmatpush3.bf16.msra.mxu1 %v10392_v23  ;;  %9518 = vmatprep.mubr.msk.bf16.mxu1 %vm10285_vm1, %v10284_v1 }
  0xad   : > { %9528 = vmatprep.subr.bf16.mxu1 %v10284_v1 }
  0xb1   : > { %9501 = vmatmul.mubr.msk.bf16.vlgmr.msra.gmra.mxu0 %vm309_vm2, %v2440_v14  ;;  %v3212_v14 = vshrl.u32 %v10195_v61, 16 }
  0xb2   : > { %9511 = vmatpush3.bf16.msra.mxu0 %v10404_v31  ;;  %9519 = vmatmul.mubr.msk.bf16.vlgmr.msra.gmra.mxu1 %vm309_vm2, %v2603_v19  ;;  %v3104_v19 = vsel %vm404_vm4, %v3102_v6, %v3103_v8  ;;  %v3440_v6 = vrot.slane %v10773_v20, 1  ;;  %v3441_v8 = vrot.slane %v10780_v29, 1 }
  0xb3   : > { %9512 = vmatprep.mubr.msk.bf16.mxu0 %vm10285_vm1, %v10284_v1  ;;  %9522 = vmatprep.subr.bf16.mxu0 %v10284_v1  ;;  %v3217_v26 = vor.u32 %v3216_v15, %v3212_v14  ;;  %v3604_v15 = vrot.slane %v10200_v62, 1 }
  0xb4   : > { %9529 = vmatpush3.bf16.msra.mxu1 %v10422_v42  ;;  %9530 = vmatprep.mubr.msk.bf16.mxu1 %vm10285_vm1, %v10284_v1 }
  0xb5   : > { %9540 = vmatprep.subr.bf16.mxu1 %v10284_v1  ;;  %v3222_v35 = vsel %vm296_vm3, %v3217_v26, %v3221_v27 }
  0xb9   : > { %9513 = vmatmul.mubr.msk.bf16.vlgmr.msra.gmra.mxu0 %vm309_vm2, %v2554_v32 }
  0xba   : > { %9523 = vmatpush3.bf16.msra.mxu0 %v10440_v51  ;;  %9531 = vmatmul.mubr.msk.bf16.vlgmr.msra.gmra.mxu1 %vm309_vm2, %v2721_v33 }
  0xbb   : > { %9524 = vmatprep.mubr.msk.bf16.mxu0 %vm10285_vm1, %v10284_v1  ;;  %9534 = vmatprep.subr.bf16.mxu0 %v10284_v1 }
  0xbc   : > { %9541 = vmatpush3.bf16.msra.mxu1 %v10344_v4  ;;  %9542 = vmatprep.mubr.msk.bf16.mxu1 %vm10285_vm1, %v10284_v1 }
  0xbd   : > { %9552 = vmatprep.subr.bf16.mxu1 %v10284_v1 }
  0xc1   : > { %9525 = vmatmul.mubr.msk.bf16.vlgmr.msra.gmra.mxu0 %vm309_vm2, %v10668_v5 }
  0xc2   : > { %9535 = vmatpush3.bf16.msra.mxu0 %v10458_v59  ;;  %9543 = vmatmul.mubr.msk.bf16.vlgmr.msra.gmra.mxu1 %vm309_vm2, %v2851_v39  ;;  %v3346_v39 = vrot.slane %v3344_v30, 1 }
  0xc3   : > { %9536 = vmatprep.mubr.msk.bf16.mxu0 %vm10285_vm1, %v10284_v1  ;;  %9546 = vmatprep.subr.bf16.mxu0 %v10284_v1 }
  0xc4   : > { %9553 = vmatpush3.bf16.msra.mxu1 %v10380_v18  ;;  %9554 = vmatprep.mubr.msk.bf16.mxu1 %vm10285_vm1, %v10284_v1 }
  0xc5   : > { %9564 = vmatprep.subr.bf16.mxu1 %v10284_v1 }
  0xc9   : > { %9537 = vmatmul.mubr.msk.bf16.vlgmr.msra.gmra.mxu0 %vm309_vm2, %v2770_v48  ;;  %v3347_v48 = vor.u32 %v3346_v39, %v3342_v38  ;;  %v10843_v39 = vld [vmem:[%s11828_s3] ss:$0 sm:$0xff] }
  0xca   : > { %9547 = vmatpush3.bf16.msra.mxu0 %v10334_v2  ;;  %9555 = vmatmul.mubr.msk.bf16.vlgmr.msra.gmra.mxu1 %vm309_vm2, %v2941_v49 }
  0xcb   : > { %9548 = vmatprep.mubr.msk.bf16.mxu0 %vm10285_vm1, %v10284_v1  ;;  %9558 = vmatprep.subr.bf16.mxu0 %v10284_v1 }
  0xcc   : > { %9565 = vmatpush3.bf16.msra.mxu1 %v10404_v31  ;;  %9566 = vmatprep.mubr.msk.bf16.mxu1 %vm10285_vm1, %v10284_v1 }
  0xcd   : > { %9576 = vmatprep.subr.bf16.mxu1 %v10284_v1 }
  0xd1   : > { %9549 = vmatmul.mubr.msk.bf16.vlgmr.msra.gmra.mxu0 %vm309_vm2, %v10686_v24 }
  0xd2   : > { %9559 = vmatpush3.bf16.msra.mxu0 %v10364_v7  ;;  %v397_v57 = vpop.f32.mrf.mxu1  ;;  %9567 = vmatmul.mubr.msk.bf16.vlgmr.msra.gmra.mxu1 %vm309_vm2, %v3055_v56 }
  0xd3   : > { %9560 = vmatprep.mubr.msk.bf16.mxu0 %vm10285_vm1, %v10284_v1  ;;  %9570 = vmatprep.subr.bf16.mxu0 %v10284_v1 }
  0xd4   : > { %v9280_v58 = vpop.f32.mrf.mxu1  ;;  %9577 = vmatpush3.bf16.msra.mxu1 %v10440_v51  ;;  %9578 = vmatprep.mubr.msk.bf16.mxu1 %vm10285_vm1, %v10284_v1 }
  0xd5   : > { %9588 = vmatprep.subr.bf16.mxu1 %v10284_v1 }
  0xd6   : > { %v400_v60 = vpop.f32.mrf.mxu1 }
  0xd8   : > { %v9281_v63 = vpop.f32.mrf.mxu1 }
  0xd9   : > { %v351_v0 = vpop.f32.mrf.mxu0  ;;  %9561 = vmatmul.mubr.msk.bf16.vlgmr.msra.gmra.mxu0 %vm309_vm2, %v10715_v40  ;;  %v3349_v40 = vshll.u32 %v10780_v29, 16  ;;  %v10810_v63 = vld [vmem:[%s10360_s28 + $0x60] sm:$0xff]  }
  0xda   : > { %9571 = vmatpush3.bf16.msra.mxu0 %v10392_v23  ;;  %v509_v5 = vpop.f32.mrf.mxu1  ;;  %9579 = vmatmul.mubr.msk.bf16.vlgmr.msra.gmra.mxu1 %vm309_vm2, %v10195_v61  ;;  %v398_v36 = vadd.f32 %v397_v57, %v351_v0 }
  0xdb   : > { %v9274_v9 = vpop.f32.mrf.mxu0  ;;  %9572 = vmatprep.mubr.msk.bf16.mxu0 %vm10285_vm1, %v10284_v1  ;;  %9582 = vmatprep.subr.bf16.mxu0 %v10284_v1  ;;  %v3351_v49 = vrot.slane %v3349_v40, 1 }
  0xdc   : > { %v9292_v12 = vpop.f32.mrf.mxu1  ;;  %9589 = vmatpush3.bf16.msra.mxu1 %v10458_v59  ;;  %9590 = vmatprep.mubr.msk.bf16.mxu1 %vm10285_vm1, %v10284_v1 }
  0xdd   : > { %v354_v13 = vpop.f32.mrf.mxu0  ;;  %9600 = vmatprep.subr.bf16.mxu1 %v10284_v1  ;;  %v3352_v58 = vsel %vm296_vm3, %v3347_v48, %v3351_v49  ;;  %v10861_v49 = vld [vmem:[%s10360_s28 + $0x5c] ss:$0 sps:$4 sm:$0x11]  }
  0xde   : > { %v512_v17 = vpop.f32.mrf.mxu1  ;;  %v401_v46 = vadd.f32 %v400_v60, %v354_v13  ;;  %v10199_v60 = vld [vmem:[%s10360_s28 + $0x54] sm:$0xff]  }
  0xdf   : > { %v9275_v21 = vpop.f32.mrf.mxu0  ;;  %v3548_v12 = vshll.u32 %v10199_v60, 16  ;;  %v3603_v14 = vrot.slane %v10199_v60, 1  ;;  %v3546_v26 = vshrl.u32 %v10199_v60, 16 }
  0xe0   : > { %v9293_v24 = vpop.f32.mrf.mxu1 }
  0xe1   : > { %v448_v25 = vpop.f32.mrf.mxu0  ;;  %9573 = vmatmul.mubr.msk.bf16.vlgmr.msra.gmra.mxu0 %vm309_vm2, %v3104_v19  ;;  %v3550_v27 = vrot.slane %v3548_v12, 1  ;;  %v3605_v30 = vsel %vm404_vm4, %v3603_v14, %v3604_v15  ;;  %v820_v12 = vld [vmem:[%s10851_s24 + $0x8] sm:$0xff] }
  0xe2   : > { %9583 = vmatpush3.bf16.msra.mxu0 %v10422_v42  ;;  %v624_v28 = vpop.f32.mrf.mxu1  ;;  %9591 = vmatmul.mubr.msk.bf16.vlgmr.msra.gmra.mxu1 %vm309_vm2, %v3271_v22  ;;  %v455_v43 = vadd.f32 %v448_v25, %v398_v36  ;;  %v3442_v22 = vsel %vm404_vm4, %v3440_v6, %v3441_v8  ;;  %v3850_v6 = vshll.u32 %v10861_v49, 16 }
  0xe3   : > { %v9286_v32 = vpop.f32.mrf.mxu0  ;;  %9584 = vmatprep.mubr.msk.bf16.mxu0 %vm10285_vm1, %v10284_v1  ;;  %9594 = vmatprep.subr.bf16.mxu0 %v10284_v1 }
  0xe4   : > { %v9304_v33 = vpop.f32.mrf.mxu1  ;;  %9601 = vmatpush3.bf16.msra.mxu1 %v10334_v2  ;;  %9602 = vmatprep.mubr.msk.bf16.mxu1 %vm10285_vm1, %v10284_v1  ;;  %v516_v53 = vadd.f32 %v509_v5, %v455_v43  ;;  %v3713_v32 = vshrl.u32 %v10810_v63, 16 }
  0xe5   : > { %v451_v34 = vpop.f32.mrf.mxu0  ;;  %9612 = vmatprep.subr.bf16.mxu1 %v10284_v1 }
  0xe6   : > { %v627_v37 = vpop.f32.mrf.mxu1  ;;  %v456_v52 = vadd.f32 %v451_v34, %v401_v46  ;;  %v3720_v34 = vshll.u32 %v10823_v16, 16 }
  0xe7   : > { %v9287_v41 = vpop.f32.mrf.mxu0 }
  0xe8   : > { %v9305_v44 = vpop.f32.mrf.mxu1  ;;  %v517_v0 = vadd.f32 %v512_v17, %v456_v52  ;;  %v3715_v17 = vshll.u32 %v10810_v63, 16  ;;  %v3722_v48 = vrot.slane %v3720_v34, 1 }
  0xe9   : > { %v572_v45 = vpop.f32.mrf.mxu0  ;;  %9585 = vmatmul.mubr.msk.bf16.vlgmr.msra.gmra.mxu0 %vm309_vm2, %v3222_v35  ;;  %v10838_v35 = vld [vmem:[%s10360_s28 + $0x54] sm:$0xff]   ;;  %v3551_v44 = vor.u32 %v3550_v27, %v3546_v26 }
  0xea   : > { %9595 = vmatpush3.bf16.msra.mxu0 %v10344_v4  ;;  %v748_v47 = vpop.f32.mrf.mxu1  ;;  %9603 = vmatmul.mubr.msk.bf16.vlgmr.msra.gmra.mxu1 %vm309_vm2, %v10773_v20  ;;  %v579_v56 = vadd.f32 %v572_v45, %v516_v53  ;;  %v3717_v33 = vrot.slane %v3715_v17, 1 }
  0xeb   : > { %v9298_v50 = vpop.f32.mrf.mxu0  ;;  %9596 = vmatprep.mubr.msk.bf16.mxu0 %vm10285_vm1, %v10284_v1  ;;  %9606 = vmatprep.subr.bf16.mxu0 %v10284_v1 }
  0xec   : > { %v9316_v54 = vpop.f32.mrf.mxu1  ;;  %9613 = vmatpush3.bf16.msra.mxu1 %v10364_v7  ;;  %9614 = vmatprep.mubr.msk.bf16.mxu1 %vm10285_vm1, %v10284_v1  ;;  %v631_v10 = vadd.f32 %v624_v28, %v579_v56  ;;  %v3553_v28 = vshll.u32 %v10200_v62, 16  ;;  %v3845_v50 = vshll.u32 %v10838_v35, 16 }
  0xed   : > { %v575_v55 = vpop.f32.mrf.mxu0  ;;  %9624 = vmatprep.subr.bf16.mxu1 %v10284_v1 }
  0xee   : > { %v10804_v57 = vpop.f32.mrf.mxu1  ;;  %v580_v9 = vadd.f32 %v575_v55, %v517_v0  ;;  %v3555_v45 = vrot.slane %v3553_v28, 1  ;;  %v819_v55 = vld [vmem:[%s10851_s24] sm:$0xff] }
  0xef   : > { %v9299_v61 = vpop.f32.mrf.mxu0 }
  0xf0   : > { %v9317_v3 = vpop.f32.mrf.mxu1  ;;  %v632_v24 = vadd.f32 %v627_v37, %v580_v9  ;;  %v3556_v62 = vsel %vm296_vm3, %v3551_v44, %v3555_v45 }
  0xf1   : > { %v685_v5 = vpop.f32.mrf.mxu0  ;;  %9597 = vmatmul.mubr.msk.bf16.vlgmr.msra.gmra.mxu0 %vm309_vm2, %v3352_v58  ;;  %v3843_v3 = vshrl.u32 %v10838_v35, 16 }
  0xf2   : > { %9607 = vmatpush3.bf16.msra.mxu0 %v10380_v18  ;;  %v10816_v11 = vpop.f32.mrf.mxu1  ;;  %9615 = vmatmul.mubr.msk.bf16.vlgmr.msra.gmra.mxu1 %vm309_vm2, %v10199_v60  ;;  %v692_v19 = vadd.f32 %v685_v5, %v631_v10  ;;  %v3847_v5 = vrot.slane %v3845_v50, 1 }
  0xf3   : > { %v9310_v13 = vpop.f32.mrf.mxu0  ;;  %9608 = vmatprep.mubr.msk.bf16.mxu0 %vm10285_vm1, %v10284_v1  ;;  %9618 = vmatprep.subr.bf16.mxu0 %v10284_v1 }
  0xf4   : > { %v9328_v20 = vpop.f32.mrf.mxu1  ;;  %9625 = vmatpush3.bf16.msra.mxu1 %v10392_v23  ;;  %9626 = vmatprep.mubr.msk.bf16.mxu1 %vm10285_vm1, %v10284_v1  ;;  %v755_v38 = vadd.f32 %v748_v47, %v692_v19  ;;  %v3718_v47 = vor.u32 %v3717_v33, %v3713_v32  ;;  %v3848_v19 = vor.u32 %v3847_v5, %v3843_v3 }
  0xf5   : > { %v688_v21 = vpop.f32.mrf.mxu0  ;;  %9636 = vmatprep.subr.bf16.mxu1 %v10284_v1  ;;  %v3852_v20 = vrot.slane %v3850_v6, 1 }
  0xf6   : > { %v10831_v25 = vpop.f32.mrf.mxu1  ;;  %v693_v36 = vadd.f32 %v688_v21, %v632_v24  ;;  %v3723_v0 = vsel %vm296_vm3, %v3718_v47, %v3722_v48 }
  0xf7   : > { %v9311_v29 = vpop.f32.mrf.mxu0  ;;  %v3853_v28 = vsel %vm296_vm3, %v3848_v19, %v3852_v20 }
  0xf8   : > { %v9329_v37 = vpop.f32.mrf.mxu1  ;;  %v756_v53 = vadd.f32 %v10804_v57, %v693_v36  ;;  %v10902_v29 = vld [vmem:[%s10360_s28 + $0x60] sm:$0xff]   ;;  %v3770_v36 = vrot.slane %v10810_v63, 1 }
  0xf9   : > { %v800_v40 = vpop.f32.mrf.mxu0  ;;  %9609 = vmatmul.mubr.msk.bf16.vlgmr.msra.gmra.mxu0 %vm309_vm2, %v3442_v22  ;;  %v4049_v44 = vshll.u32 %v10902_v29, 16 }
  0xfa   : > { %v807_v41 = vadd.f32 %v800_v40, %v755_v38  ;;  %9619 = vmatpush3.bf16.msra.mxu0 %v10404_v31  ;;  %v10854_v43 = vpop.f32.mrf.mxu1  ;;  %9627 = vmatmul.mubr.msk.bf16.vlgmr.msra.gmra.mxu1 %vm309_vm2, %v3605_v30  ;;  %v3771_v38 = vrot.slane %v10823_v16, 1  ;;  %v3942_v40 = vrot.slane %v10861_v49, 1 }
  0xfb   : > { %v9322_v46 = vpop.f32.mrf.mxu0  ;;  %9620 = vmatprep.mubr.msk.bf16.mxu0 %vm10285_vm1, %v10284_v1  ;;  %9630 = vmatprep.subr.bf16.mxu0 %v10284_v1 }
  0xfc   : > { %v815_v52 = vadd.f32 %v10843_v39, %v807_v41  ;;  %v9340_v54 = vpop.f32.mrf.mxu1  ;;  %9637 = vmatpush3.bf16.msra.mxu1 %v10422_v42  ;;  %9638 = vmatprep.mubr.msk.bf16.mxu1 %vm10285_vm1, %v10284_v1  ;;  %v10917_v41 = vld [vmem:[%s10360_s28 + $0x68] ss:$0 sps:$4 sm:$0x11]   ;;  %v3772_v49 = vsel %vm404_vm4, %v3770_v36, %v3771_v38  ;;  %v10208_v36 = vld [vmem:[%s10360_s28 + $0x74] ss:$0 sps:$4 sm:$0x11]  }
  0xfd   : > { %v803_v56 = vpop.f32.mrf.mxu0  ;;  %9648 = vmatprep.subr.bf16.mxu1 %v10284_v1 }
  0xfe   : > { %v817_v58 = vmax.f32 %v815_v52, 0.0  ;;  %v808_v60 = vadd.f32 %v803_v56, %v756_v53  ;;  %v10871_v61 = vpop.f32.mrf.mxu1  ;;  %v4051_v53 = vrot.slane %v4049_v44, 1 }
  0xff   : > { %v9323_v57 = vpop.f32.mrf.mxu0 }
 0x100   : > { %v821_v8 = vadd.f32 %v819_v55, %v817_v58  ;;  %v816_v9 = vadd.f32 %v10843_v39, %v808_v60  ;;  %v9341_v10 = vpop.f32.mrf.mxu1 }
 0x101   : > { %v928_v13 = vpop.f32.mrf.mxu0  ;;  %9621 = vmatmul.mubr.msk.bf16.vlgmr.msra.gmra.mxu0 %vm309_vm2, %v3556_v62 }
 0x102   : > { %823 = vst.msk [vmem:[%s10879_s27] sm:$0xff] %vm309_vm2, %v821_v8  ;;  %v818_v14 = vmax.f32 %v816_v9, 0.0  ;;  %9631 = vmatpush3.bf16.msra.mxu0 %v10440_v51  ;;  %v1089_v15 = vpop.f32.mrf.mxu1  ;;  %9639 = vmatmul.mubr.msk.bf16.vlgmr.msra.gmra.mxu1 %vm309_vm2, %v3723_v0  ;;  %v929_v30 = vadd.f32 %v928_v13, %v10816_v11  ;;  %v3941_v11 = vrot.slane %v10838_v35, 1 }
 0x103   : > { %v9334_v17 = vpop.f32.mrf.mxu0  ;;  %9632 = vmatprep.mubr.msk.bf16.mxu0 %vm10285_vm1, %v10284_v1  ;;  %9642 = vmatprep.subr.bf16.mxu0 %v10284_v1 }
 0x104   : > { %v822_v21 = vadd.f32 %v820_v12, %v818_v14  ;;  %v9352_v22 = vpop.f32.mrf.mxu1  ;;  %9649 = vmatpush3.bf16.msra.mxu1 %v10344_v4  ;;  %9650 = vmatprep.mubr.msk.bf16.mxu1 %vm10285_vm1, %v10284_v1  ;;  %v3943_v52 = vsel %vm404_vm4, %v3941_v11, %v3942_v40 }
 0x105   : > { %v931_v24 = vpop.f32.mrf.mxu0  ;;  %9660 = vmatprep.subr.bf16.mxu1 %v10284_v1 }
 0x106   : > { %824 = vst.msk [vmem:[%s10879_s27 + $0x8] sm:$0xff] %vm309_vm2, %v822_v21  ;;  %v1092_v26 = vpop.f32.mrf.mxu1  ;;  %v932_v45 = vadd.f32 %v931_v24, %v10831_v25  ;;  %v4047_v25 = vshrl.u32 %v10902_v29, 16 }
 0x107   : > { %v9335_v27 = vpop.f32.mrf.mxu0 }
 0x108   : > { %v9353_v32 = vpop.f32.mrf.mxu1  ;;  %v983_v54 = vadd.f32 %v10871_v61, %v932_v45  ;;  %v4052_v0 = vor.u32 %v4051_v53, %v4047_v25 }
 0x109   : > { %v1029_v33 = vpop.f32.mrf.mxu0  ;;  %9633 = vmatmul.mubr.msk.bf16.vlgmr.msra.gmra.mxu0 %vm309_vm2, %v10810_v63  ;;  %v982_v63 = vadd.f32 %v10854_v43, %v929_v30  ;;  %v4054_v43 = vshll.u32 %v10917_v41, 16  ;;  %v10207_v32 = vld [vmem:[%s10360_s28 + $0x6c] sm:$0xff]  }
 0x10a   : > { %9643 = vmatpush3.bf16.msra.mxu0 %v10458_v59  ;;  %v1196_v34 = vpop.f32.mrf.mxu1  ;;  %9651 = vmatmul.mubr.msk.bf16.vlgmr.msra.gmra.mxu1 %vm309_vm2, %v3853_v28  ;;  %v4216_v44 = vshll.u32 %v10207_v32, 16 }
 0x10b   : > { %v9346_v37 = vpop.f32.mrf.mxu0  ;;  %9644 = vmatprep.mubr.msk.bf16.mxu0 %vm10285_vm1, %v10284_v1  ;;  %9654 = vmatprep.subr.bf16.mxu0 %v10284_v1  ;;  %v1036_v47 = vadd.f32 %v1029_v33, %v982_v63  ;;  %v4056_v3 = vrot.slane %v4054_v43, 1  ;;  %v8582_v33 = vld [vmem:[%s10851_s24 + $0x10] sm:$0xff] }
 0x10c   : > { %v9364_v46 = vpop.f32.mrf.mxu1  ;;  %9661 = vmatpush3.bf16.msra.mxu1 %v10380_v18  ;;  %9662 = vmatprep.mubr.msk.bf16.mxu1 %vm10285_vm1, %v10284_v1  ;;  %v4218_v43 = vrot.slane %v4216_v44, 1 }
 0x10d   : > { %v1032_v16 = vpop.f32.mrf.mxu0  ;;  %9672 = vmatprep.subr.bf16.mxu1 %v10284_v1  ;;  %v1096_v60 = vadd.f32 %v1089_v15, %v1036_v47  ;;  %v4057_v12 = vsel %vm296_vm3, %v4052_v0, %v4056_v3  ;;  %v4105_v47 = vrot.slane %v10917_v41, 1  ;;  %v4214_v41 = vshrl.u32 %v10207_v32, 16 }
 0x10e   : > { %v1199_v48 = vpop.f32.mrf.mxu1  ;;  %v1037_v58 = vadd.f32 %v1032_v16, %v983_v54  ;;  %v4104_v16 = vrot.slane %v10902_v29, 1  ;;  %v4221_v54 = vshll.u32 %v10208_v36, 16 }
 0x10f   : > { %v9347_v50 = vpop.f32.mrf.mxu0 }
 0x110   : > { %v9365_v55 = vpop.f32.mrf.mxu1  ;;  %v1097_v8 = vadd.f32 %v1092_v26, %v1037_v58  ;;  %v4271_v50 = vrot.slane %v10207_v32, 1  ;;  %v4106_v58 = vsel %vm404_vm4, %v4104_v16, %v4105_v47  ;;  %v10212_v16 = vld [vmem:[%s10360_s28 + $0x74] ss:$0 sps:$4 sm:$0x11]   ;;  %v11022_v47 = vld [vmem:[%s10360_s28 + $0x78] sm:$0xff]  }
 0x111   : > { %v1138_v56 = vpop.f32.mrf.mxu0  ;;  %9645 = vmatmul.mubr.msk.bf16.vlgmr.msra.gmra.mxu0 %vm309_vm2, %v3772_v49 }
 0x112   : > { %9655 = vmatpush3.bf16.msra.mxu0 %v10334_v2  ;;  %v1305_v62 = vpop.f32.mrf.mxu1  ;;  %9663 = vmatmul.mubr.msk.bf16.vlgmr.msra.gmra.mxu1 %vm309_vm2, %v3943_v52  ;;  %v1145_v61 = vadd.f32 %v1138_v56, %v1096_v60  ;;  %v4272_v52 = vrot.slane %v10208_v36, 1  ;;  %v10982_v60 = vld [vmem:[%s10360_s28 + $0x60] sm:$0xff]  }
 0x113   : > { %v9358_v57 = vpop.f32.mrf.mxu0  ;;  %9656 = vmatprep.mubr.msk.bf16.mxu0 %vm10285_vm1, %v10284_v1  ;;  %9666 = vmatprep.subr.bf16.mxu0 %v10284_v1 }
 0x114   : > { %v9376_v5 = vpop.f32.mrf.mxu1  ;;  %9673 = vmatpush3.bf16.msra.mxu1 %v10404_v31  ;;  %9674 = vmatprep.mubr.msk.bf16.mxu1 %vm10285_vm1, %v10284_v1  ;;  %v1203_v14 = vadd.f32 %v1196_v34, %v1145_v61  ;;  %v4273_v57 = vsel %vm404_vm4, %v4271_v50, %v4272_v52  ;;  %v4219_v61 = vor.u32 %v4218_v43, %v4214_v41  ;;  %v4442_v50 = vrot.slane %v10982_v60, 1 }
 0x115   : > { %v1141_v6 = vpop.f32.mrf.mxu0  ;;  %9684 = vmatprep.subr.bf16.mxu1 %v10284_v1  ;;  %v4223_v5 = vrot.slane %v4221_v54, 1 }
 0x116   : > { %v1308_v9 = vpop.f32.mrf.mxu1  ;;  %v1146_v13 = vadd.f32 %v1141_v6, %v1097_v8  ;;  %v10991_v8 = vld [vmem:[%s10360_s28 + $0x68] ss:$0 sps:$4 sm:$0x11]  }
 0x117   : > { %v9359_v10 = vpop.f32.mrf.mxu0  ;;  %v4443_v52 = vrot.slane %v10991_v8, 1 }
 0x118   : > { %v9377_v15 = vpop.f32.mrf.mxu1  ;;  %v1204_v24 = vadd.f32 %v1199_v48, %v1146_v13  ;;  %v8583_v48 = vld [vmem:[%s10851_s24 + $0x18] sm:$0xff] }
 0x119   : > { %v1256_v17 = vpop.f32.mrf.mxu0  ;;  %9657 = vmatmul.mubr.msk.bf16.vlgmr.msra.gmra.mxu0 %vm309_vm2, %v10838_v35 }
 0x11a   : > { %v1263_v19 = vadd.f32 %v1256_v17, %v1203_v14  ;;  %9667 = vmatpush3.bf16.msra.mxu0 %v10364_v7  ;;  %v10945_v20 = vpop.f32.mrf.mxu1  ;;  %9675 = vmatmul.mubr.msk.bf16.vlgmr.msra.gmra.mxu1 %vm309_vm2, %v4057_v12  ;;  %v4224_v14 = vsel %vm296_vm3, %v4219_v61, %v4223_v5 }
 0x11b   : > { %v9370_v21 = vpop.f32.mrf.mxu0  ;;  %9668 = vmatprep.mubr.msk.bf16.mxu0 %vm10285_vm1, %v10284_v1  ;;  %9678 = vmatprep.subr.bf16.mxu0 %v10284_v1 }
 0x11c   : > { %v1312_v22 = vadd.f32 %v1305_v62, %v1263_v19  ;;  %v9388_v26 = vpop.f32.mrf.mxu1  ;;  %9685 = vmatpush3.bf16.msra.mxu1 %v10440_v51  ;;  %9686 = vmatprep.mubr.msk.bf16.mxu1 %vm10285_vm1, %v10284_v1  ;;  %v4344_v19 = vshrl.u32 %v10982_v60, 16 }
 0x11d   : > { %v1259_v35 = vpop.f32.mrf.mxu0  ;;  %9696 = vmatprep.subr.bf16.mxu1 %v10284_v1 }
 0x11e   : > { %v1314_v27 = vadd.f32 %v10843_v39, %v1312_v22  ;;  %v1264_v28 = vadd.f32 %v1259_v35, %v1204_v24  ;;  %v10956_v30 = vpop.f32.mrf.mxu1  ;;  %v4351_v22 = vshll.u32 %v10991_v8, 16  ;;  %v4555_v8 = vshll.u32 %v10212_v16, 16 }
 0x11f   : > { %v9371_v34 = vpop.f32.mrf.mxu0 }
 0x120   : > { %v1316_v38 = vmax.f32 %v1314_v27, 0.0  ;;  %v1313_v37 = vadd.f32 %v1308_v9, %v1264_v28  ;;  %v9389_v11 = vpop.f32.mrf.mxu1  ;;  %v4346_v9 = vshll.u32 %v10982_v60, 16 }
 0x121   : > { %v1386_v40 = vpop.f32.mrf.mxu0  ;;  %9669 = vmatmul.mubr.msk.bf16.vlgmr.msra.gmra.mxu0 %vm309_vm2, %v10902_v29 }
 0x122   : > { %v1321_v45 = vadd.f32 %v8582_v33, %v1316_v38  ;;  %v1315_v63 = vadd.f32 %v10843_v39, %v1313_v37  ;;  %9679 = vmatpush3.bf16.msra.mxu0 %v10392_v23  ;;  %v10965_v46 = vpop.f32.mrf.mxu1  ;;  %9687 = vmatmul.mubr.msk.bf16.vlgmr.msra.gmra.mxu1 %vm309_vm2, %v10207_v32  ;;  %v1430_v15 = vadd.f32 %v10945_v20, %v1386_v40  ;;  %v4348_v21 = vrot.slane %v4346_v9, 1 }
 0x123   : > { %v9382_v49 = vpop.f32.mrf.mxu0  ;;  %9680 = vmatprep.mubr.msk.bf16.mxu0 %vm10285_vm1, %v10284_v1  ;;  %9690 = vmatprep.subr.bf16.mxu0 %v10284_v1  ;;  %v4353_v33 = vrot.slane %v4351_v22, 1 }
 0x124   : > { %8584 = vst.msk [vmem:[%s10879_s27 + $0x10] sm:$0xff] %vm309_vm2, %v1321_v45  ;;  %v1317_v25 = vmax.f32 %v1315_v63, 0.0  ;;  %v9400_v53 = vpop.f32.mrf.mxu1  ;;  %9697 = vmatpush3.bf16.msra.mxu1 %v10458_v59  ;;  %9698 = vmatprep.mubr.msk.bf16.mxu1 %vm10285_vm1, %v10284_v1  ;;  %v4349_v20 = vor.u32 %v4348_v21, %v4344_v19  ;;  %v10211_v45 = vld [vmem:[%s10360_s28 + $0x6c] sm:$0xff]  }
 0x125   : > { %v1389_v29 = vpop.f32.mrf.mxu0  ;;  %9708 = vmatprep.subr.bf16.mxu1 %v10284_v1  ;;  %v4550_v41 = vshll.u32 %v10211_v45, 16  ;;  %v4605_v54 = vrot.slane %v10211_v45, 1  ;;  %v4548_v5 = vshrl.u32 %v10211_v45, 16 }
 0x126   : > { %v1322_v55 = vadd.f32 %v8583_v48, %v1317_v25  ;;  %v1533_v56 = vpop.f32.mrf.mxu1  ;;  %v1433_v28 = vadd.f32 %v10956_v30, %v1389_v29  ;;  %v4354_v44 = vsel %vm296_vm3, %v4349_v20, %v4353_v33  ;;  %v11060_v33 = vld [vmem:[%s10360_s28 + $0x74] ss:$0 sps:$4 sm:$0x11]  }
 0x127   : > { %v9383_v62 = vpop.f32.mrf.mxu0 }
 0x128   : > { %8585 = vst.msk [vmem:[%s10879_s27 + $0x18] sm:$0xff] %vm309_vm2, %v1322_v55  ;;  %v9401_v0 = vpop.f32.mrf.mxu1  ;;  %v4606_v55 = vrot.slane %v10212_v16, 1 }
 0x129   : > { %v1476_v3 = vpop.f32.mrf.mxu0  ;;  %9681 = vmatmul.mubr.msk.bf16.vlgmr.msra.gmra.mxu0 %vm309_vm2, %v4106_v58  ;;  %v4717_v58 = vshll.u32 %v11022_v47, 16  ;;  %v4444_v0 = vsel %vm404_vm4, %v4442_v50, %v4443_v52  ;;  %v4852_v50 = vshll.u32 %v11060_v33, 16 }
 0x12a   : > { %9691 = vmatpush3.bf16.msra.mxu0 %v10422_v42  ;;  %v1639_v6 = vpop.f32.mrf.mxu1  ;;  %9699 = vmatmul.mubr.msk.bf16.vlgmr.msra.gmra.mxu1 %vm309_vm2, %v4273_v57  ;;  %v1483_v26 = vadd.f32 %v1476_v3, %v1430_v15  ;;  %v11049_v15 = vld [vmem:[%s10360_s28 + $0x6c] sm:$0xff]  }
 0x12b   : > { %v9394_v10 = vpop.f32.mrf.mxu0  ;;  %9692 = vmatprep.mubr.msk.bf16.mxu0 %vm10285_vm1, %v10284_v1  ;;  %9702 = vmatprep.subr.bf16.mxu0 %v10284_v1 }
 0x12c   : > { %v9412_v12 = vpop.f32.mrf.mxu1  ;;  %9709 = vmatpush3.bf16.msra.mxu1 %v10334_v2  ;;  %9710 = vmatprep.mubr.msk.bf16.mxu1 %vm10285_vm1, %v10284_v1  ;;  %v1537_v30 = vadd.f32 %v10965_v46, %v1483_v26  ;;  %v4607_v10 = vsel %vm404_vm4, %v4605_v54, %v4606_v55 }
 0x12d   : > { %v1479_v13 = vpop.f32.mrf.mxu0  ;;  %9720 = vmatprep.subr.bf16.mxu1 %v10284_v1  ;;  %v4715_v12 = vshrl.u32 %v11022_v47, 16 }
 0x12e   : > { %v1642_v17 = vpop.f32.mrf.mxu1  ;;  %v1484_v36 = vadd.f32 %v1479_v13, %v1433_v28  ;;  %v4719_v13 = vrot.slane %v4717_v58, 1 }
 0x12f   : > { %v9395_v24 = vpop.f32.mrf.mxu0 }
 0x130   : > { %v9413_v35 = vpop.f32.mrf.mxu1  ;;  %v1538_v48 = vadd.f32 %v1533_v56, %v1484_v36  ;;  %v11035_v56 = vld [vmem:[%s10360_s28 + $0x80] ss:$0 sps:$4 sm:$0x11]  }
 0x131   : > { %v1590_v27 = vpop.f32.mrf.mxu0  ;;  %9693 = vmatmul.mubr.msk.bf16.vlgmr.msra.gmra.mxu0 %vm309_vm2, %v4224_v14  ;;  %v4722_v14 = vshll.u32 %v11035_v56, 16 }
 0x132   : > { %9703 = vmatpush3.bf16.msra.mxu0 %v10344_v4  ;;  %v1757_v32 = vpop.f32.mrf.mxu1  ;;  %9711 = vmatmul.mubr.msk.bf16.vlgmr.msra.gmra.mxu1 %vm309_vm2, %v10982_v60  ;;  %v1597_v11 = vadd.f32 %v1590_v27, %v1537_v30  ;;  %v4557_v27 = vrot.slane %v4555_v8, 1 }
 0x133   : > { %v9406_v34 = vpop.f32.mrf.mxu0  ;;  %9704 = vmatprep.mubr.msk.bf16.mxu0 %vm10285_vm1, %v10284_v1  ;;  %9714 = vmatprep.subr.bf16.mxu0 %v10284_v1  ;;  %v4724_v20 = vrot.slane %v4722_v14, 1 }
 0x134   : > { %v9424_v38 = vpop.f32.mrf.mxu1  ;;  %9721 = vmatpush3.bf16.msra.mxu1 %v10364_v7  ;;  %9722 = vmatprep.mubr.msk.bf16.mxu1 %vm10285_vm1, %v10284_v1  ;;  %v1646_v53 = vadd.f32 %v1639_v6, %v1597_v11  ;;  %v4552_v6 = vrot.slane %v4550_v41, 1  ;;  %v4847_v34 = vshll.u32 %v11049_v15, 16  ;;  %v8611_v41 = vld [vmem:[%s10851_s24 + $0x28] sm:$0xff] }
 0x135   : > { %v1593_v37 = vpop.f32.mrf.mxu0  ;;  %9732 = vmatprep.subr.bf16.mxu1 %v10284_v1 }
 0x136   : > { %v1760_v40 = vpop.f32.mrf.mxu1  ;;  %v1598_v25 = vadd.f32 %v1593_v37, %v1538_v48  ;;  %v4553_v35 = vor.u32 %v4552_v6, %v4548_v5  ;;  %v8610_v37 = vld [vmem:[%s10851_s24 + $0x20] sm:$0xff] }
 0x137   : > { %v9407_v63 = vpop.f32.mrf.mxu0 }
 0x138   : > { %v9425_v46 = vpop.f32.mrf.mxu1  ;;  %v1647_v3 = vadd.f32 %v1642_v17, %v1598_v25  ;;  %v4558_v16 = vsel %vm296_vm3, %v4553_v35, %v4557_v27 }
 0x139   : > { %v1697_v49 = vpop.f32.mrf.mxu0  ;;  %9705 = vmatmul.mubr.msk.bf16.vlgmr.msra.gmra.mxu0 %vm309_vm2, %v4354_v44  ;;  %v4845_v46 = vshrl.u32 %v11049_v15, 16 }
 0x13a   : > { %9715 = vmatpush3.bf16.msra.mxu0 %v10380_v18  ;;  %v11028_v29 = vpop.f32.mrf.mxu1  ;;  %9723 = vmatmul.mubr.msk.bf16.vlgmr.msra.gmra.mxu1 %vm309_vm2, %v10211_v45  ;;  %v1704_v60 = vadd.f32 %v1697_v49, %v1646_v53  ;;  %v4849_v49 = vrot.slane %v4847_v34, 1 }
 0x13b   : > { %v9418_v43 = vpop.f32.mrf.mxu0  ;;  %9716 = vmatprep.mubr.msk.bf16.mxu0 %vm10285_vm1, %v10284_v1  ;;  %9726 = vmatprep.subr.bf16.mxu0 %v10284_v1 }
 0x13c   : > { %v9436_v62 = vpop.f32.mrf.mxu1  ;;  %9733 = vmatpush3.bf16.msra.mxu1 %v10392_v23  ;;  %9734 = vmatprep.mubr.msk.bf16.mxu1 %vm10285_vm1, %v10284_v1  ;;  %v1764_v21 = vadd.f32 %v1757_v32, %v1704_v60  ;;  %v4720_v32 = vor.u32 %v4719_v13, %v4715_v12  ;;  %v4850_v60 = vor.u32 %v4849_v49, %v4845_v46 }
 0x13d   : > { %v1700_v57 = vpop.f32.mrf.mxu0  ;;  %9744 = vmatprep.subr.bf16.mxu1 %v10284_v1  ;;  %v4854_v62 = vrot.slane %v4852_v50, 1 }
 0x13e   : > { %v11043_v61 = vpop.f32.mrf.mxu1  ;;  %v1705_v19 = vadd.f32 %v1700_v57, %v1647_v3 }
 0x13f   : > { %v9419_v9 = vpop.f32.mrf.mxu0  ;;  %v4855_v8 = vsel %vm296_vm3, %v4850_v60, %v4854_v62 }
 0x140   : > { %v9437_v22 = vpop.f32.mrf.mxu1  ;;  %v1765_v30 = vadd.f32 %v1760_v40, %v1705_v19  ;;  %v4725_v40 = vsel %vm296_vm3, %v4720_v32, %v4724_v20  ;;  %v11093_v9 = vld [vmem:[%s10360_s28 + $0x78] sm:$0xff]   ;;  %v4772_v19 = vrot.slane %v11022_v47, 1 }
 0x141   : > { %v1806_v17 = vpop.f32.mrf.mxu0  ;;  %9717 = vmatmul.mubr.msk.bf16.vlgmr.msra.gmra.mxu0 %vm309_vm2, %v4444_v0  ;;  %v5051_v35 = vshll.u32 %v11093_v9, 16 }
 0x142   : > { %v1813_v24 = vadd.f32 %v1806_v17, %v1764_v21  ;;  %9727 = vmatpush3.bf16.msra.mxu0 %v10404_v31  ;;  %v11053_v26 = vpop.f32.mrf.mxu1  ;;  %9735 = vmatmul.mubr.msk.bf16.vlgmr.msra.gmra.mxu1 %vm309_vm2, %v4607_v10  ;;  %v4773_v21 = vrot.slane %v11035_v56, 1  ;;  %v4944_v17 = vrot.slane %v11060_v33, 1 }
 0x143   : > { %v9430_v28 = vpop.f32.mrf.mxu0  ;;  %9728 = vmatprep.mubr.msk.bf16.mxu0 %vm10285_vm1, %v10284_v1  ;;  %9738 = vmatprep.subr.bf16.mxu0 %v10284_v1 }
 0x144   : > { %v1815_v36 = vadd.f32 %v10843_v39, %v1813_v24  ;;  %v9448_v38 = vpop.f32.mrf.mxu1  ;;  %9745 = vmatpush3.bf16.msra.mxu1 %v10422_v42  ;;  %9746 = vmatprep.mubr.msk.bf16.mxu1 %vm10285_vm1, %v10284_v1  ;;  %v11108_v24 = vld [vmem:[%s10360_s28 + $0x80] ss:$0 sps:$4 sm:$0x11]   ;;  %v4774_v33 = vsel %vm404_vm4, %v4772_v19, %v4773_v21  ;;  %v10220_v19 = vld [vmem:[%s10360_s28 + $0x8c] ss:$0 sps:$4 sm:$0x11]  }
 0x145   : > { %v1809_v11 = vpop.f32.mrf.mxu0  ;;  %9756 = vmatprep.subr.bf16.mxu1 %v10284_v1 }
 0x146   : > { %v1817_v44 = vmax.f32 %v1815_v36, 0.0  ;;  %v1814_v45 = vadd.f32 %v1809_v11, %v1765_v30  ;;  %v11069_v63 = vpop.f32.mrf.mxu1  ;;  %v5053_v30 = vrot.slane %v5051_v35, 1 }
 0x147   : > { %v9431_v48 = vpop.f32.mrf.mxu0 }
 0x148   : > { %v1822_v52 = vadd.f32 %v8610_v37, %v1817_v44  ;;  %v1816_v25 = vadd.f32 %v10843_v39, %v1814_v45  ;;  %v9449_v53 = vpop.f32.mrf.mxu1 }
 0x149   : > { %v1930_v43 = vpop.f32.mrf.mxu0  ;;  %9729 = vmatmul.mubr.msk.bf16.vlgmr.msra.gmra.mxu0 %vm309_vm2, %v4558_v16 }
 0x14a   : > { %8612 = vst.msk [vmem:[%s10879_s27 + $0x20] sm:$0xff] %vm309_vm2, %v1822_v52  ;;  %v1818_v54 = vmax.f32 %v1816_v25, 0.0  ;;  %9739 = vmatpush3.bf16.msra.mxu0 %v10440_v51  ;;  %v2091_v55 = vpop.f32.mrf.mxu1  ;;  %9747 = vmatmul.mubr.msk.bf16.vlgmr.msra.gmra.mxu1 %vm309_vm2, %v4725_v40  ;;  %v1931_v10 = vadd.f32 %v1930_v43, %v11028_v29  ;;  %v4943_v29 = vrot.slane %v11049_v15, 1 }
 0x14b   : > { %v9442_v58 = vpop.f32.mrf.mxu0  ;;  %9740 = vmatprep.mubr.msk.bf16.mxu0 %vm10285_vm1, %v10284_v1  ;;  %9750 = vmatprep.subr.bf16.mxu0 %v10284_v1 }
 0x14c   : > { %v1823_v57 = vadd.f32 %v8611_v41, %v1818_v54  ;;  %v9460_v0 = vpop.f32.mrf.mxu1  ;;  %9757 = vmatpush3.bf16.msra.mxu1 %v10344_v4  ;;  %9758 = vmatprep.mubr.msk.bf16.mxu1 %vm10285_vm1, %v10284_v1  ;;  %v4945_v36 = vsel %vm404_vm4, %v4943_v29, %v4944_v17 }
 0x14d   : > { %v1933_v3 = vpop.f32.mrf.mxu0  ;;  %9768 = vmatprep.subr.bf16.mxu1 %v10284_v1 }
 0x14e   : > { %8613 = vst.msk [vmem:[%s10879_s27 + $0x28] sm:$0xff] %vm309_vm2, %v1823_v57  ;;  %v2094_v5 = vpop.f32.mrf.mxu1  ;;  %v1934_v27 = vadd.f32 %v1933_v3, %v11043_v61  ;;  %v5049_v61 = vshrl.u32 %v11093_v9, 16 }
 0x14f   : > { %v9443_v6 = vpop.f32.mrf.mxu0 }
 0x150   : > { %v9461_v12 = vpop.f32.mrf.mxu1  ;;  %v1985_v38 = vadd.f32 %v11069_v63, %v1934_v27  ;;  %v5054_v40 = vor.u32 %v5053_v30, %v5049_v61 }
 0x151   : > { %v2031_v13 = vpop.f32.mrf.mxu0  ;;  %9741 = vmatmul.mubr.msk.bf16.vlgmr.msra.gmra.mxu0 %vm309_vm2, %v11022_v47  ;;  %v1984_v47 = vadd.f32 %v11053_v26, %v1931_v10  ;;  %v5056_v26 = vshll.u32 %v11108_v24, 16  ;;  %v10219_v12 = vld [vmem:[%s10360_s28 + $0x84] sm:$0xff]  }
 0x152   : > { %9751 = vmatpush3.bf16.msra.mxu0 %v10458_v59  ;;  %v2198_v14 = vpop.f32.mrf.mxu1  ;;  %9759 = vmatmul.mubr.msk.bf16.vlgmr.msra.gmra.mxu1 %vm309_vm2, %v4855_v8  ;;  %v5218_v35 = vshll.u32 %v10219_v12, 16 }
 0x153   : > { %v9454_v22 = vpop.f32.mrf.mxu0  ;;  %9752 = vmatprep.mubr.msk.bf16.mxu0 %vm10285_vm1, %v10284_v1  ;;  %9762 = vmatprep.subr.bf16.mxu0 %v10284_v1  ;;  %v2038_v32 = vadd.f32 %v2031_v13, %v1984_v47  ;;  %v5058_v46 = vrot.slane %v5056_v26, 1  ;;  %v8638_v13 = vld [vmem:[%s10851_s24 + $0x30] sm:$0xff]  ;;  %v5223_v26 = vshll.u32 %v10220_v19, 16 }
 0x154   : > { %v9472_v28 = vpop.f32.mrf.mxu1  ;;  %9769 = vmatpush3.bf16.msra.mxu1 %v10380_v18  ;;  %9770 = vmatprep.mubr.msk.bf16.mxu1 %vm10285_vm1, %v10284_v1  ;;  %v5220_v30 = vrot.slane %v5218_v35, 1  ;;  %v10223_v35 = vld [vmem:[%s10360_s28 + $0x84] sm:$0xff]  }
 0x155   : > { %v2034_v56 = vpop.f32.mrf.mxu0  ;;  %9780 = vmatprep.subr.bf16.mxu1 %v10284_v1  ;;  %v2098_v45 = vadd.f32 %v2091_v55, %v2038_v32  ;;  %v5059_v41 = vsel %vm296_vm3, %v5054_v40, %v5058_v46  ;;  %v5107_v32 = vrot.slane %v11108_v24, 1  ;;  %v5216_v24 = vshrl.u32 %v10219_v12, 16 }
 0x156   : > { %v2201_v20 = vpop.f32.mrf.mxu1  ;;  %v2039_v44 = vadd.f32 %v2034_v56, %v1985_v38  ;;  %v5106_v56 = vrot.slane %v11093_v9, 1 }
 0x157   : > { %v9455_v34 = vpop.f32.mrf.mxu0  ;;  %v5221_v46 = vor.u32 %v5220_v30, %v5216_v24  ;;  %v5607_v30 = vrot.slane %v10223_v35, 1 }
 0x158   : > { %v9473_v37 = vpop.f32.mrf.mxu1  ;;  %v2099_v52 = vadd.f32 %v2094_v5, %v2039_v44  ;;  %v5273_v34 = vrot.slane %v10219_v12, 1  ;;  %v11173_v44 = vld [vmem:[%s10360_s28 + $0x78] sm:$0xff]  }
 0x159   : > { %v2140_v11 = vpop.f32.mrf.mxu0  ;;  %9753 = vmatmul.mubr.msk.bf16.vlgmr.msra.gmra.mxu0 %vm309_vm2, %v4774_v33 }
 0x15a   : > { %9763 = vmatpush3.bf16.msra.mxu0 %v10334_v2  ;;  %v2307_v16 = vpop.f32.mrf.mxu1  ;;  %9771 = vmatmul.mubr.msk.bf16.vlgmr.msra.gmra.mxu1 %vm309_vm2, %v4945_v36  ;;  %v2147_v63 = vadd.f32 %v2140_v11, %v2098_v45  ;;  %v5108_v11 = vsel %vm404_vm4, %v5106_v56, %v5107_v32  ;;  %v11215_v56 = vld [vmem:[%s10360_s28 + $0x90] sm:$0xff]  }
 0x15b   : > { %v9466_v48 = vpop.f32.mrf.mxu0  ;;  %9764 = vmatprep.mubr.msk.bf16.mxu0 %vm10285_vm1, %v10284_v1  ;;  %9774 = vmatprep.subr.bf16.mxu0 %v10284_v1 }
 0x15c   : > { %v9484_v49 = vpop.f32.mrf.mxu1  ;;  %9781 = vmatpush3.bf16.msra.mxu1 %v10404_v31  ;;  %9782 = vmatprep.mubr.msk.bf16.mxu1 %vm10285_vm1, %v10284_v1  ;;  %v2205_v54 = vadd.f32 %v2198_v14, %v2147_v63  ;;  %v5225_v63 = vrot.slane %v5223_v26, 1 }
 0x15d   : > { %v2143_v50 = vpop.f32.mrf.mxu0  ;;  %9792 = vmatprep.subr.bf16.mxu1 %v10284_v1 }
 0x15e   : > { %v2310_v25 = vpop.f32.mrf.mxu1  ;;  %v2148_v43 = vadd.f32 %v2143_v50, %v2099_v52  ;;  %v11182_v50 = vld [vmem:[%s10360_s28 + $0x80] ss:$0 sps:$4 sm:$0x11]   ;;  %v5348_v52 = vshll.u32 %v11173_v44, 16 }
 0x15f   : > { %v9467_v53 = vpop.f32.mrf.mxu0 }
 0x160   : > { %v9485_v55 = vpop.f32.mrf.mxu1  ;;  %v2206_v3 = vadd.f32 %v2201_v20, %v2148_v43  ;;  %v8639_v20 = vld [vmem:[%s10851_s24 + $0x38] sm:$0xff]  ;;  %v5226_v43 = vsel %vm296_vm3, %v5221_v46, %v5225_v63  ;;  %v5550_v46 = vshrl.u32 %v10223_v35, 16 }
 0x161   : > { %v2258_v58 = vpop.f32.mrf.mxu0  ;;  %9765 = vmatmul.mubr.msk.bf16.vlgmr.msra.gmra.mxu0 %vm309_vm2, %v11049_v15 }
 0x162   : > { %v2265_v60 = vadd.f32 %v2258_v58, %v2205_v54  ;;  %9775 = vmatpush3.bf16.msra.mxu0 %v10364_v7  ;;  %v11136_v62 = vpop.f32.mrf.mxu1  ;;  %9783 = vmatmul.mubr.msk.bf16.vlgmr.msra.gmra.mxu1 %vm309_vm2, %v5059_v41  ;;  %v5346_v58 = vshrl.u32 %v11173_v44, 16 }
 0x163   : > { %v9478_v57 = vpop.f32.mrf.mxu0  ;;  %9776 = vmatprep.mubr.msk.bf16.mxu0 %vm10285_vm1, %v10284_v1  ;;  %9786 = vmatprep.subr.bf16.mxu0 %v10284_v1 }
 0x164   : > { %v2314_v0 = vadd.f32 %v2307_v16, %v2265_v60  ;;  %v9496_v5 = vpop.f32.mrf.mxu1  ;;  %9793 = vmatpush3.bf16.msra.mxu1 %v10440_v51  ;;  %9794 = vmatprep.mubr.msk.bf16.mxu1 %vm10285_vm1, %v10284_v1  ;;  %v5350_v60 = vrot.slane %v5348_v52, 1  ;;  %v5353_v57 = vshll.u32 %v11182_v50, 16 }
 0x165   : > { %v2261_v15 = vpop.f32.mrf.mxu0  ;;  %9804 = vmatprep.subr.bf16.mxu1 %v10284_v1 }
 0x166   : > { %v2316_v6 = vadd.f32 %v10843_v39, %v2314_v0  ;;  %v2266_v8 = vadd.f32 %v2261_v15, %v2206_v3  ;;  %v11147_v10 = vpop.f32.mrf.mxu1 }
 0x167   : > { %v9479_v14 = vpop.f32.mrf.mxu0 }
 0x168   : > { %v2318_v21 = vmax.f32 %v2316_v6, 0.0  ;;  %v2315_v22 = vadd.f32 %v2310_v25, %v2266_v8  ;;  %v9497_v29 = vpop.f32.mrf.mxu1 }
 0x169   : > { %v2388_v17 = vpop.f32.mrf.mxu0  ;;  %9777 = vmatmul.mubr.msk.bf16.vlgmr.msra.gmra.mxu0 %vm309_vm2, %v11093_v9 }
 0x16a   : > { %v2323_v27 = vadd.f32 %v8638_v13, %v2318_v21  ;;  %v2317_v47 = vadd.f32 %v10843_v39, %v2315_v22  ;;  %9787 = vmatpush3.bf16.msra.mxu0 %v10392_v23  ;;  %v11156_v28 = vpop.f32.mrf.mxu1  ;;  %9795 = vmatmul.mubr.msk.bf16.vlgmr.msra.gmra.mxu1 %vm309_vm2, %v10219_v12  ;;  %v5274_v39 = vrot.slane %v10220_v19, 1  ;;  %v2432_v54 = vadd.f32 %v11136_v62, %v2388_v17 }
 0x16b   : > { %v9490_v33 = vpop.f32.mrf.mxu0  ;;  %9788 = vmatprep.mubr.msk.bf16.mxu0 %vm10285_vm1, %v10284_v1  ;;  %9798 = vmatprep.subr.bf16.mxu0 %v10284_v1  ;;  %v5351_v62 = vor.u32 %v5350_v60, %v5346_v58  ;;  %v5355_v12 = vrot.slane %v5353_v57, 1 }
 0x16c   : > { %8640 = vst.msk [vmem:[%s10879_s27 + $0x30] sm:$0xff] %vm309_vm2, %v2323_v27  ;;  %v2319_v36 = vmax.f32 %v2317_v47, 0.0  ;;  %v9508_v61 = vpop.f32.mrf.mxu1  ;;  %9805 = vmatpush3.bf16.msra.mxu1 %v10458_v59  ;;  %9806 = vmatprep.mubr.msk.bf16.mxu1 %vm10285_vm1, %v10284_v1  ;;  %v5275_v16 = vsel %vm404_vm4, %v5273_v34, %v5274_v39  ;;  %v10224_v47 = vld [vmem:[%s10360_s28 + $0x8c] ss:$0 sps:$4 sm:$0x11]   ;;  %v5444_v33 = vrot.slane %v11173_v44, 1 }
 0x16d   : > { %v2391_v9 = vpop.f32.mrf.mxu0  ;;  %9816 = vmatprep.subr.bf16.mxu1 %v10284_v1  ;;  %v5356_v17 = vsel %vm296_vm3, %v5351_v62, %v5355_v12  ;;  %v5445_v34 = vrot.slane %v11182_v50, 1  ;;  %v5608_v26 = vrot.slane %v10224_v47, 1  ;;  %v11253_v62 = vld [vmem:[%s10360_s28 + $0x8c] ss:$0 sps:$4 sm:$0x11]  }
 0x16e   : > { %v2324_v38 = vadd.f32 %v8639_v20, %v2319_v36  ;;  %v2535_v37 = vpop.f32.mrf.mxu1  ;;  %v2435_v6 = vadd.f32 %v11147_v10, %v2391_v9  ;;  %v5552_v9 = vshll.u32 %v10223_v35, 16 }
 0x16f   : > { %v9491_v45 = vpop.f32.mrf.mxu0  ;;  %v5609_v52 = vsel %vm404_vm4, %v5607_v30, %v5608_v26 }
 0x170   : > { %8641 = vst.msk [vmem:[%s10879_s27 + $0x38] sm:$0xff] %vm309_vm2, %v2324_v38  ;;  %v9509_v48 = vpop.f32.mrf.mxu1  ;;  %v11228_v38 = vld [vmem:[%s10360_s28 + $0x98] ss:$0 sps:$4 sm:$0x11]   ;;  %v5554_v63 = vrot.slane %v5552_v9, 1  ;;  %v8667_v9 = vld [vmem:[%s10851_s24 + $0x48] sm:$0xff] }
 0x171   : > { %v2478_v40 = vpop.f32.mrf.mxu0  ;;  %9789 = vmatmul.mubr.msk.bf16.vlgmr.msra.gmra.mxu0 %vm309_vm2, %v5108_v11 }
 0x172   : > { %9799 = vmatpush3.bf16.msra.mxu0 %v10422_v42  ;;  %v2641_v49 = vpop.f32.mrf.mxu1  ;;  %9807 = vmatmul.mubr.msk.bf16.vlgmr.msra.gmra.mxu1 %vm309_vm2, %v5275_v16  ;;  %v2485_v3 = vadd.f32 %v2478_v40, %v2432_v54  ;;  %v5446_v16 = vsel %vm404_vm4, %v5444_v33, %v5445_v34  ;;  %v5854_v33 = vshll.u32 %v11253_v62, 16 }
 0x173   : > { %v9502_v25 = vpop.f32.mrf.mxu0  ;;  %9800 = vmatprep.mubr.msk.bf16.mxu0 %vm10285_vm1, %v10284_v1  ;;  %9810 = vmatprep.subr.bf16.mxu0 %v10284_v1 }
 0x174   : > { %v9520_v53 = vpop.f32.mrf.mxu1  ;;  %9817 = vmatpush3.bf16.msra.mxu1 %v10334_v2  ;;  %9818 = vmatprep.mubr.msk.bf16.mxu1 %vm10285_vm1, %v10284_v1  ;;  %v2539_v10 = vadd.f32 %v11156_v28, %v2485_v3  ;;  %v5717_v25 = vshrl.u32 %v11215_v56, 16  ;;  %v5555_v3 = vor.u32 %v5554_v63, %v5550_v46 }
 0x175   : > { %v2481_v41 = vpop.f32.mrf.mxu0  ;;  %9828 = vmatprep.subr.bf16.mxu1 %v10284_v1 }
 0x176   : > { %v2644_v55 = vpop.f32.mrf.mxu1  ;;  %v2486_v14 = vadd.f32 %v2481_v41, %v2435_v6  ;;  %v5724_v41 = vshll.u32 %v11228_v38, 16 }
 0x177   : > { %v9503_v0 = vpop.f32.mrf.mxu0 }
 0x178   : > { %v9521_v5 = vpop.f32.mrf.mxu1  ;;  %v2540_v28 = vadd.f32 %v2535_v37, %v2486_v14  ;;  %v5719_v37 = vshll.u32 %v11215_v56, 16 }
 0x179   : > { %v2592_v15 = vpop.f32.mrf.mxu0  ;;  %9801 = vmatmul.mubr.msk.bf16.vlgmr.msra.gmra.mxu0 %vm309_vm2, %v5226_v43  ;;  %v11242_v43 = vld [vmem:[%s10360_s28 + $0x84] sm:$0xff]  }
 0x17a   : > { %9811 = vmatpush3.bf16.msra.mxu0 %v10344_v4  ;;  %v2759_v8 = vpop.f32.mrf.mxu1  ;;  %9819 = vmatmul.mubr.msk.bf16.vlgmr.msra.gmra.mxu1 %vm309_vm2, %v11173_v44  ;;  %v2599_v22 = vadd.f32 %v2592_v15, %v2539_v10  ;;  %v5721_v53 = vrot.slane %v5719_v37, 1  ;;  %v5849_v12 = vshll.u32 %v11242_v43, 16 }
 0x17b   : > { %v9514_v13 = vpop.f32.mrf.mxu0  ;;  %9812 = vmatprep.mubr.msk.bf16.mxu0 %vm10285_vm1, %v10284_v1  ;;  %9822 = vmatprep.subr.bf16.mxu0 %v10284_v1 }
 0x17c   : > { %v9532_v19 = vpop.f32.mrf.mxu1  ;;  %9829 = vmatpush3.bf16.msra.mxu1 %v10364_v7  ;;  %9830 = vmatprep.mubr.msk.bf16.mxu1 %vm10285_vm1, %v10284_v1  ;;  %v2648_v36 = vadd.f32 %v2641_v49, %v2599_v22  ;;  %v5557_v49 = vshll.u32 %v10224_v47, 16  ;;  %v5722_v6 = vor.u32 %v5721_v53, %v5717_v25  ;;  %v11259_v13 = vld [vmem:[%s11828_s3] ss:$0 sm:$0xff] }
 0x17d   : > { %v2595_v21 = vpop.f32.mrf.mxu0  ;;  %9840 = vmatprep.subr.bf16.mxu1 %v10284_v1 }
 0x17e   : > { %v11209_v29 = vpop.f32.mrf.mxu1  ;;  %v2600_v39 = vadd.f32 %v2595_v21, %v2540_v28  ;;  %v5559_v5 = vrot.slane %v5557_v49, 1  ;;  %v8666_v21 = vld [vmem:[%s10851_s24 + $0x40] sm:$0xff] }
 0x17f   : > { %v9515_v27 = vpop.f32.mrf.mxu0 }
 0x180   : > { %v9533_v32 = vpop.f32.mrf.mxu1  ;;  %v2649_v48 = vadd.f32 %v2644_v55, %v2600_v39  ;;  %v5560_v47 = vsel %vm296_vm3, %v5555_v3, %v5559_v5 }
 0x181   : > { %v2699_v20 = vpop.f32.mrf.mxu0  ;;  %9813 = vmatmul.mubr.msk.bf16.vlgmr.msra.gmra.mxu0 %vm309_vm2, %v5356_v17  ;;  %v5847_v32 = vshrl.u32 %v11242_v43, 16 }
 0x182   : > { %9823 = vmatpush3.bf16.msra.mxu0 %v10380_v18  ;;  %v11221_v61 = vpop.f32.mrf.mxu1  ;;  %9831 = vmatmul.mubr.msk.bf16.vlgmr.msra.gmra.mxu1 %vm309_vm2, %v10223_v35  ;;  %v2706_v11 = vadd.f32 %v2699_v20, %v2648_v36  ;;  %v5851_v20 = vrot.slane %v5849_v12, 1 }
 0x183   : > { %v9526_v24 = vpop.f32.mrf.mxu0  ;;  %9824 = vmatprep.mubr.msk.bf16.mxu0 %vm10285_vm1, %v10284_v1  ;;  %9834 = vmatprep.subr.bf16.mxu0 %v10284_v1 }
 0x184   : > { %v9544_v44 = vpop.f32.mrf.mxu1  ;;  %9841 = vmatpush3.bf16.msra.mxu1 %v10392_v23  ;;  %9842 = vmatprep.mubr.msk.bf16.mxu1 %vm10285_vm1, %v10284_v1  ;;  %v2766_v58 = vadd.f32 %v2759_v8, %v2706_v11  ;;  %v5726_v8 = vrot.slane %v5724_v41, 1  ;;  %v5852_v11 = vor.u32 %v5851_v20, %v5847_v32 }
 0x185   : > { %v2702_v45 = vpop.f32.mrf.mxu0  ;;  %9852 = vmatprep.subr.bf16.mxu1 %v10284_v1  ;;  %v5856_v44 = vrot.slane %v5854_v33, 1 }
 0x186   : > { %v11236_v40 = vpop.f32.mrf.mxu1  ;;  %v2707_v54 = vadd.f32 %v2702_v45, %v2649_v48 }
 0x187   : > { %v9527_v50 = vpop.f32.mrf.mxu0  ;;  %v5857_v49 = vsel %vm296_vm3, %v5852_v11, %v5856_v44 }
 0x188   : > { %v9545_v60 = vpop.f32.mrf.mxu1  ;;  %v2767_v10 = vadd.f32 %v11209_v29, %v2707_v54  ;;  %v5727_v29 = vsel %vm296_vm3, %v5722_v6, %v5726_v8  ;;  %v11292_v50 = vld [vmem:[%s10360_s28 + $0x90] sm:$0xff]   ;;  %v5774_v54 = vrot.slane %v11215_v56, 1 }
 0x189   : > { %v2808_v55 = vpop.f32.mrf.mxu0  ;;  %9825 = vmatmul.mubr.msk.bf16.vlgmr.msra.gmra.mxu0 %vm309_vm2, %v5446_v16  ;;  %v6053_v3 = vshll.u32 %v11292_v50, 16 }
 0x18a   : > { %v2815_v57 = vadd.f32 %v2808_v55, %v2766_v58  ;;  %9835 = vmatpush3.bf16.msra.mxu0 %v10404_v31  ;;  %v11246_v0 = vpop.f32.mrf.mxu1  ;;  %9843 = vmatmul.mubr.msk.bf16.vlgmr.msra.gmra.mxu1 %vm309_vm2, %v5609_v52  ;;  %v5775_v58 = vrot.slane %v11228_v38, 1  ;;  %v5946_v55 = vrot.slane %v11253_v62, 1 }
 0x18b   : > { %v9538_v15 = vpop.f32.mrf.mxu0  ;;  %9836 = vmatprep.mubr.msk.bf16.mxu0 %vm10285_vm1, %v10284_v1  ;;  %9846 = vmatprep.subr.bf16.mxu0 %v10284_v1 }
 0x18c   : > { %v2817_v14 = vadd.f32 %v11259_v13, %v2815_v57  ;;  %v9556_v19 = vpop.f32.mrf.mxu1  ;;  %9853 = vmatpush3.bf16.msra.mxu1 %v10422_v42  ;;  %9854 = vmatprep.mubr.msk.bf16.mxu1 %vm10285_vm1, %v10284_v1  ;;  %v11307_v57 = vld [vmem:[%s10360_s28 + $0x98] ss:$0 sps:$4 sm:$0x11]   ;;  %v5776_v62 = vsel %vm404_vm4, %v5774_v54, %v5775_v58  ;;  %v10232_v54 = vld [vmem:[%s10360_s28 + $0xa4] ss:$0 sps:$4 sm:$0x11]  }
 0x18d   : > { %v2811_v22 = vpop.f32.mrf.mxu0  ;;  %9864 = vmatprep.subr.bf16.mxu1 %v10284_v1 }
 0x18e   : > { %v2819_v17 = vmax.f32 %v2817_v14, 0.0  ;;  %v2816_v35 = vadd.f32 %v2811_v22, %v2767_v10  ;;  %v11268_v27 = vpop.f32.mrf.mxu1  ;;  %v6055_v10 = vrot.slane %v6053_v3, 1 }
 0x18f   : > { %v9539_v28 = vpop.f32.mrf.mxu0 }
 0x190   : > { %v2824_v34 = vadd.f32 %v8666_v21, %v2819_v17  ;;  %v2818_v39 = vadd.f32 %v11259_v13, %v2816_v35  ;;  %v9557_v36 = vpop.f32.mrf.mxu1 }
 0x191   : > { %v2932_v24 = vpop.f32.mrf.mxu0  ;;  %9837 = vmatmul.mubr.msk.bf16.vlgmr.msra.gmra.mxu0 %vm309_vm2, %v5560_v47 }
 0x192   : > { %8668 = vst.msk [vmem:[%s10879_s27 + $0x40] sm:$0xff] %vm309_vm2, %v2824_v34  ;;  %v2820_v30 = vmax.f32 %v2818_v39, 0.0  ;;  %9847 = vmatpush3.bf16.msra.mxu0 %v10440_v51  ;;  %v3093_v26 = vpop.f32.mrf.mxu1  ;;  %9855 = vmatmul.mubr.msk.bf16.vlgmr.msra.gmra.mxu1 %vm309_vm2, %v5727_v29  ;;  %v2933_v52 = vadd.f32 %v2932_v24, %v11221_v61  ;;  %v5945_v61 = vrot.slane %v11242_v43, 1 }
 0x193   : > { %v9550_v37 = vpop.f32.mrf.mxu0  ;;  %9848 = vmatprep.mubr.msk.bf16.mxu0 %vm10285_vm1, %v10284_v1  ;;  %9858 = vmatprep.subr.bf16.mxu0 %v10284_v1 }
 0x194   : > { %v2825_v45 = vadd.f32 %v8667_v9, %v2820_v30  ;;  %v9568_v16 = vpop.f32.mrf.mxu1  ;;  %9865 = vmatpush3.bf16.msra.mxu1 %v10344_v4  ;;  %9866 = vmatprep.mubr.msk.bf16.mxu1 %vm10285_vm1, %v10284_v1  ;;  %v5947_v14 = vsel %vm404_vm4, %v5945_v61, %v5946_v55 }
 0x195   : > { %v2935_v48 = vpop.f32.mrf.mxu0  ;;  %9876 = vmatprep.subr.bf16.mxu1 %v10284_v1 }
 0x196   : > { %8669 = vst.msk [vmem:[%s10879_s27 + $0x48] sm:$0xff] %vm309_vm2, %v2825_v45  ;;  %v3096_v46 = vpop.f32.mrf.mxu1  ;;  %v2936_v5 = vadd.f32 %v2935_v48, %v11236_v40  ;;  %v6051_v40 = vshrl.u32 %v11292_v50, 16 }
 0x197   : > { %v9551_v63 = vpop.f32.mrf.mxu0 }
 0x198   : > { %v9569_v25 = vpop.f32.mrf.mxu1  ;;  %v2987_v19 = vadd.f32 %v11268_v27, %v2936_v5  ;;  %v6056_v29 = vor.u32 %v6055_v10, %v6051_v40 }
 0x199   : > { %v3033_v53 = vpop.f32.mrf.mxu0  ;;  %9849 = vmatmul.mubr.msk.bf16.vlgmr.msra.gmra.mxu0 %vm309_vm2, %v11215_v56  ;;  %v2986_v56 = vadd.f32 %v11246_v0, %v2933_v52  ;;  %v6058_v0 = vshll.u32 %v11307_v57, 16  ;;  %v10231_v25 = vld [vmem:[%s10360_s28 + $0x9c] sm:$0xff]  }
 0x19a   : > { %9859 = vmatpush3.bf16.msra.mxu0 %v10458_v59  ;;  %v3200_v41 = vpop.f32.mrf.mxu1  ;;  %9867 = vmatmul.mubr.msk.bf16.vlgmr.msra.gmra.mxu1 %vm309_vm2, %v5857_v49  ;;  %v6220_v3 = vshll.u32 %v10231_v25, 16 }
 0x19b   : > { %v9562_v60 = vpop.f32.mrf.mxu0  ;;  %9860 = vmatprep.mubr.msk.bf16.mxu0 %vm10285_vm1, %v10284_v1  ;;  %9870 = vmatprep.subr.bf16.mxu0 %v10284_v1  ;;  %v3040_v6 = vadd.f32 %v3033_v53, %v2986_v56  ;;  %v6060_v32 = vrot.slane %v6058_v0, 1  ;;  %v8694_v53 = vld [vmem:[%s10851_s24 + $0x50] sm:$0xff] }
 0x19c   : > { %v9580_v15 = vpop.f32.mrf.mxu1  ;;  %9877 = vmatpush3.bf16.msra.mxu1 %v10380_v18  ;;  %9878 = vmatprep.mubr.msk.bf16.mxu1 %vm10285_vm1, %v10284_v1  ;;  %v6222_v0 = vrot.slane %v6220_v3, 1 }
 0x19d   : > { %v3036_v38 = vpop.f32.mrf.mxu0  ;;  %9888 = vmatprep.subr.bf16.mxu1 %v10284_v1  ;;  %v3100_v35 = vadd.f32 %v3093_v26, %v3040_v6  ;;  %v6061_v9 = vsel %vm296_vm3, %v6056_v29, %v6060_v32  ;;  %v6109_v6 = vrot.slane %v11307_v57, 1  ;;  %v6218_v57 = vshrl.u32 %v10231_v25, 16 }
 0x19e   : > { %v3203_v8 = vpop.f32.mrf.mxu1  ;;  %v3041_v17 = vadd.f32 %v3036_v38, %v2987_v19  ;;  %v6108_v38 = vrot.slane %v11292_v50, 1  ;;  %v6225_v19 = vshll.u32 %v10232_v54, 16 }
 0x19f   : > { %v9563_v12 = vpop.f32.mrf.mxu0 }
 0x1a0   : > { %v9581_v21 = vpop.f32.mrf.mxu1  ;;  %v3101_v34 = vadd.f32 %v3096_v46, %v3041_v17  ;;  %v6275_v12 = vrot.slane %v10231_v25, 1  ;;  %v6110_v17 = vsel %vm404_vm4, %v6108_v38, %v6109_v6  ;;  %v10236_v38 = vld [vmem:[%s10360_s28 + $0xa4] ss:$0 sps:$4 sm:$0x11]   ;;  %v11412_v6 = vld [vmem:[%s10360_s28 + $0xa8] sm:$0xff]  }
 0x1a1   : > { %v3142_v22 = vpop.f32.mrf.mxu0  ;;  %9861 = vmatmul.mubr.msk.bf16.vlgmr.msra.gmra.mxu0 %vm309_vm2, %v5776_v62 }
 0x1a2   : > { %9871 = vmatpush3.bf16.msra.mxu0 %v10334_v2  ;;  %v3309_v47 = vpop.f32.mrf.mxu1  ;;  %9879 = vmatmul.mubr.msk.bf16.vlgmr.msra.gmra.mxu1 %vm309_vm2, %v5947_v14  ;;  %v3149_v27 = vadd.f32 %v3142_v22, %v3100_v35  ;;  %v6276_v14 = vrot.slane %v10232_v54, 1  ;;  %v11372_v35 = vld [vmem:[%s10360_s28 + $0x90] sm:$0xff]  }
 0x1a3   : > { %v9574_v28 = vpop.f32.mrf.mxu0  ;;  %9872 = vmatprep.mubr.msk.bf16.mxu0 %vm10285_vm1, %v10284_v1  ;;  %9882 = vmatprep.subr.bf16.mxu0 %v10284_v1 }
 0x1a4   : > { %v9592_v20 = vpop.f32.mrf.mxu1  ;;  %9889 = vmatpush3.bf16.msra.mxu1 %v10404_v31  ;;  %9890 = vmatprep.mubr.msk.bf16.mxu1 %vm10285_vm1, %v10284_v1  ;;  %v3207_v30 = vadd.f32 %v3200_v41, %v3149_v27  ;;  %v6277_v28 = vsel %vm404_vm4, %v6275_v12, %v6276_v14  ;;  %v6223_v27 = vor.u32 %v6222_v0, %v6218_v57  ;;  %v6446_v12 = vrot.slane %v11372_v35, 1 }
 0x1a5   : > { %v3145_v33 = vpop.f32.mrf.mxu0  ;;  %9900 = vmatprep.subr.bf16.mxu1 %v10284_v1  ;;  %v6227_v20 = vrot.slane %v6225_v19, 1 }
 0x1a6   : > { %v3312_v39 = vpop.f32.mrf.mxu1  ;;  %v3150_v24 = vadd.f32 %v3145_v33, %v3101_v34  ;;  %v11381_v34 = vld [vmem:[%s10360_s28 + $0x98] ss:$0 sps:$4 sm:$0x11]  }
 0x1a7   : > { %v9575_v36 = vpop.f32.mrf.mxu0  ;;  %v6447_v14 = vrot.slane %v11381_v34, 1 }
 0x1a8   : > { %v9593_v26 = vpop.f32.mrf.mxu1  ;;  %v3208_v48 = vadd.f32 %v3203_v8, %v3150_v24  ;;  %v8695_v8 = vld [vmem:[%s10851_s24 + $0x58] sm:$0xff] }
 0x1a9   : > { %v3260_v37 = vpop.f32.mrf.mxu0  ;;  %9873 = vmatmul.mubr.msk.bf16.vlgmr.msra.gmra.mxu0 %vm309_vm2, %v11242_v43 }
 0x1aa   : > { %v3267_v11 = vadd.f32 %v3260_v37, %v3207_v30  ;;  %9883 = vmatpush3.bf16.msra.mxu0 %v10364_v7  ;;  %v11335_v44 = vpop.f32.mrf.mxu1  ;;  %9891 = vmatmul.mubr.msk.bf16.vlgmr.msra.gmra.mxu1 %vm309_vm2, %v6061_v9  ;;  %v6228_v30 = vsel %vm296_vm3, %v6223_v27, %v6227_v20 }
 0x1ab   : > { %v9586_v45 = vpop.f32.mrf.mxu0  ;;  %9884 = vmatprep.mubr.msk.bf16.mxu0 %vm10285_vm1, %v10284_v1  ;;  %9894 = vmatprep.subr.bf16.mxu0 %v10284_v1 }
 0x1ac   : > { %v3316_v16 = vadd.f32 %v3309_v47, %v3267_v11  ;;  %v9604_v46 = vpop.f32.mrf.mxu1  ;;  %9901 = vmatpush3.bf16.msra.mxu1 %v10440_v51  ;;  %9902 = vmatprep.mubr.msk.bf16.mxu1 %vm10285_vm1, %v10284_v1  ;;  %v6348_v11 = vshrl.u32 %v11372_v35, 16 }
 0x1ad   : > { %v3263_v43 = vpop.f32.mrf.mxu0  ;;  %9912 = vmatprep.subr.bf16.mxu1 %v10284_v1 }
 0x1ae   : > { %v3318_v63 = vadd.f32 %v11259_v13, %v3316_v16  ;;  %v3268_v49 = vadd.f32 %v3263_v43, %v3208_v48  ;;  %v11346_v52 = vpop.f32.mrf.mxu1  ;;  %v6355_v16 = vshll.u32 %v11381_v34, 16  ;;  %v6559_v34 = vshll.u32 %v10236_v38, 16 }
 0x1af   : > { %v9587_v41 = vpop.f32.mrf.mxu0 }
 0x1b0   : > { %v3320_v58 = vmax.f32 %v3318_v63, 0.0  ;;  %v3317_v60 = vadd.f32 %v3312_v39, %v3268_v49  ;;  %v9605_v61 = vpop.f32.mrf.mxu1  ;;  %v6350_v39 = vshll.u32 %v11372_v35, 16 }
 0x1b1   : > { %v3390_v55 = vpop.f32.mrf.mxu0  ;;  %9885 = vmatmul.mubr.msk.bf16.vlgmr.msra.gmra.mxu0 %vm309_vm2, %v11292_v50 }
 0x1b2   : > { %v3325_v5 = vadd.f32 %v8694_v53, %v3320_v58  ;;  %v3319_v56 = vadd.f32 %v11259_v13, %v3317_v60  ;;  %9895 = vmatpush3.bf16.msra.mxu0 %v10392_v23  ;;  %v11355_v15 = vpop.f32.mrf.mxu1  ;;  %9903 = vmatmul.mubr.msk.bf16.vlgmr.msra.gmra.mxu1 %vm309_vm2, %v10231_v25  ;;  %v3434_v26 = vadd.f32 %v11335_v44, %v3390_v55  ;;  %v6352_v45 = vrot.slane %v6350_v39, 1 }
 0x1b3   : > { %v9598_v62 = vpop.f32.mrf.mxu0  ;;  %9896 = vmatprep.mubr.msk.bf16.mxu0 %vm10285_vm1, %v10284_v1  ;;  %9906 = vmatprep.subr.bf16.mxu0 %v10284_v1  ;;  %v6357_v53 = vrot.slane %v6355_v16, 1 }
 0x1b4   : > { %8696 = vst.msk [vmem:[%s10879_s27 + $0x50] sm:$0xff] %vm309_vm2, %v3325_v5  ;;  %v3321_v40 = vmax.f32 %v3319_v56, 0.0  ;;  %v9616_v10 = vpop.f32.mrf.mxu1  ;;  %9913 = vmatpush3.bf16.msra.mxu1 %v10458_v59  ;;  %9914 = vmatprep.mubr.msk.bf16.mxu1 %vm10285_vm1, %v10284_v1  ;;  %v6353_v44 = vor.u32 %v6352_v45, %v6348_v11  ;;  %v10235_v5 = vld [vmem:[%s10360_s28 + $0x9c] sm:$0xff]  }
 0x1b5   : > { %v3393_v50 = vpop.f32.mrf.mxu0  ;;  %9924 = vmatprep.subr.bf16.mxu1 %v10284_v1  ;;  %v6554_v57 = vshll.u32 %v10235_v5, 16  ;;  %v6609_v19 = vrot.slane %v10235_v5, 1  ;;  %v6552_v20 = vshrl.u32 %v10235_v5, 16 }
 0x1b6   : > { %v3326_v21 = vadd.f32 %v8695_v8, %v3321_v40  ;;  %v3537_v22 = vpop.f32.mrf.mxu1  ;;  %v3437_v49 = vadd.f32 %v11346_v52, %v3393_v50  ;;  %v6358_v3 = vsel %vm296_vm3, %v6353_v44, %v6357_v53  ;;  %v11450_v53 = vld [vmem:[%s10360_s28 + $0xa4] ss:$0 sps:$4 sm:$0x11]  }
 0x1b7   : > { %v9599_v47 = vpop.f32.mrf.mxu0 }
 0x1b8   : > { %8697 = vst.msk [vmem:[%s10879_s27 + $0x58] sm:$0xff] %vm309_vm2, %v3326_v21  ;;  %v9617_v29 = vpop.f32.mrf.mxu1  ;;  %v6610_v21 = vrot.slane %v10236_v38, 1 }
 0x1b9   : > { %v3480_v32 = vpop.f32.mrf.mxu0  ;;  %9897 = vmatmul.mubr.msk.bf16.vlgmr.msra.gmra.mxu0 %vm309_vm2, %v6110_v17  ;;  %v6721_v17 = vshll.u32 %v11412_v6, 16  ;;  %v6448_v29 = vsel %vm404_vm4, %v6446_v12, %v6447_v14  ;;  %v6856_v12 = vshll.u32 %v11450_v53, 16 }
 0x1ba   : > { %9907 = vmatpush3.bf16.msra.mxu0 %v10422_v42  ;;  %v3643_v33 = vpop.f32.mrf.mxu1  ;;  %9915 = vmatmul.mubr.msk.bf16.vlgmr.msra.gmra.mxu1 %vm309_vm2, %v6277_v28  ;;  %v3487_v46 = vadd.f32 %v3480_v32, %v3434_v26  ;;  %v11439_v26 = vld [vmem:[%s10360_s28 + $0x9c] sm:$0xff]  }
 0x1bb   : > { %v9610_v36 = vpop.f32.mrf.mxu0  ;;  %9908 = vmatprep.mubr.msk.bf16.mxu0 %vm10285_vm1, %v10284_v1  ;;  %9918 = vmatprep.subr.bf16.mxu0 %v10284_v1 }
 0x1bc   : > { %v9628_v9 = vpop.f32.mrf.mxu1  ;;  %9925 = vmatpush3.bf16.msra.mxu1 %v10334_v2  ;;  %9926 = vmatprep.mubr.msk.bf16.mxu1 %vm10285_vm1, %v10284_v1  ;;  %v3541_v52 = vadd.f32 %v11355_v15, %v3487_v46  ;;  %v6611_v36 = vsel %vm404_vm4, %v6609_v19, %v6610_v21 }
 0x1bd   : > { %v3483_v24 = vpop.f32.mrf.mxu0  ;;  %9936 = vmatprep.subr.bf16.mxu1 %v10284_v1  ;;  %v6719_v9 = vshrl.u32 %v11412_v6, 16 }
 0x1be   : > { %v3646_v37 = vpop.f32.mrf.mxu1  ;;  %v3488_v54 = vadd.f32 %v3483_v24, %v3437_v49  ;;  %v6723_v24 = vrot.slane %v6721_v17, 1 }
 0x1bf   : > { %v9611_v48 = vpop.f32.mrf.mxu0 }
 0x1c0   : > { %v9629_v43 = vpop.f32.mrf.mxu1  ;;  %v3542_v8 = vadd.f32 %v3537_v22, %v3488_v54  ;;  %v11425_v22 = vld [vmem:[%s10360_s28 + $0xb0] ss:$0 sps:$4 sm:$0x11]  }
 0x1c1   : > { %v3594_v63 = vpop.f32.mrf.mxu0  ;;  %9909 = vmatmul.mubr.msk.bf16.vlgmr.msra.gmra.mxu0 %vm309_vm2, %v6228_v30  ;;  %v6726_v30 = vshll.u32 %v11425_v22, 16 }
 0x1c2   : > { %9919 = vmatpush3.bf16.msra.mxu0 %v10344_v4  ;;  %v3761_v25 = vpop.f32.mrf.mxu1  ;;  %9927 = vmatmul.mubr.msk.bf16.vlgmr.msra.gmra.mxu1 %vm309_vm2, %v11372_v35  ;;  %v3601_v61 = vadd.f32 %v3594_v63, %v3541_v52  ;;  %v6561_v63 = vrot.slane %v6559_v34, 1 }
 0x1c3   : > { %v9622_v41 = vpop.f32.mrf.mxu0  ;;  %9920 = vmatprep.mubr.msk.bf16.mxu0 %vm10285_vm1, %v10284_v1  ;;  %9930 = vmatprep.subr.bf16.mxu0 %v10284_v1  ;;  %v6728_v44 = vrot.slane %v6726_v30, 1 }
 0x1c4   : > { %v9640_v58 = vpop.f32.mrf.mxu1  ;;  %9937 = vmatpush3.bf16.msra.mxu1 %v10364_v7  ;;  %9938 = vmatprep.mubr.msk.bf16.mxu1 %vm10285_vm1, %v10284_v1  ;;  %v3650_v10 = vadd.f32 %v3643_v33, %v3601_v61  ;;  %v6556_v33 = vrot.slane %v6554_v57, 1  ;;  %v6851_v41 = vshll.u32 %v11439_v26, 16  ;;  %v8723_v57 = vld [vmem:[%s10851_s24 + $0x68] sm:$0xff] }
 0x1c5   : > { %v3597_v60 = vpop.f32.mrf.mxu0  ;;  %9948 = vmatprep.subr.bf16.mxu1 %v10284_v1 }
 0x1c6   : > { %v3764_v55 = vpop.f32.mrf.mxu1  ;;  %v3602_v40 = vadd.f32 %v3597_v60, %v3542_v8  ;;  %v6557_v43 = vor.u32 %v6556_v33, %v6552_v20  ;;  %v8722_v60 = vld [vmem:[%s10851_s24 + $0x60] sm:$0xff] }
 0x1c7   : > { %v9623_v56 = vpop.f32.mrf.mxu0 }
 0x1c8   : > { %v9641_v15 = vpop.f32.mrf.mxu1  ;;  %v3651_v32 = vadd.f32 %v3646_v37, %v3602_v40  ;;  %v6562_v38 = vsel %vm296_vm3, %v6557_v43, %v6561_v63 }
 0x1c9   : > { %v3701_v62 = vpop.f32.mrf.mxu0  ;;  %9921 = vmatmul.mubr.msk.bf16.vlgmr.msra.gmra.mxu0 %vm309_vm2, %v6358_v3  ;;  %v6849_v15 = vshrl.u32 %v11439_v26, 16 }
 0x1ca   : > { %9931 = vmatpush3.bf16.msra.mxu0 %v10380_v18  ;;  %v11418_v50 = vpop.f32.mrf.mxu1  ;;  %9939 = vmatmul.mubr.msk.bf16.vlgmr.msra.gmra.mxu1 %vm309_vm2, %v10235_v5  ;;  %v3708_v35 = vadd.f32 %v3701_v62, %v3650_v10  ;;  %v6853_v62 = vrot.slane %v6851_v41, 1 }
 0x1cb   : > { %v9634_v0 = vpop.f32.mrf.mxu0  ;;  %9932 = vmatprep.mubr.msk.bf16.mxu0 %vm10285_vm1, %v10284_v1  ;;  %9942 = vmatprep.subr.bf16.mxu0 %v10284_v1 }
 0x1cc   : > { %v9652_v47 = vpop.f32.mrf.mxu1  ;;  %9949 = vmatpush3.bf16.msra.mxu1 %v10392_v23  ;;  %9950 = vmatprep.mubr.msk.bf16.mxu1 %vm10285_vm1, %v10284_v1  ;;  %v3768_v45 = vadd.f32 %v3761_v25, %v3708_v35  ;;  %v6724_v25 = vor.u32 %v6723_v24, %v6719_v9  ;;  %v6854_v35 = vor.u32 %v6853_v62, %v6849_v15 }
 0x1cd   : > { %v3704_v28 = vpop.f32.mrf.mxu0  ;;  %9960 = vmatprep.subr.bf16.mxu1 %v10284_v1  ;;  %v6858_v47 = vrot.slane %v6856_v12, 1 }
 0x1ce   : > { %v11433_v27 = vpop.f32.mrf.mxu1  ;;  %v3709_v11 = vadd.f32 %v3704_v28, %v3651_v32 }
 0x1cf   : > { %v9635_v39 = vpop.f32.mrf.mxu0  ;;  %v6859_v34 = vsel %vm296_vm3, %v6854_v35, %v6858_v47 }
 0x1d0   : > { %v9653_v16 = vpop.f32.mrf.mxu1  ;;  %v3769_v52 = vadd.f32 %v3764_v55, %v3709_v11  ;;  %v6729_v55 = vsel %vm296_vm3, %v6724_v25, %v6728_v44  ;;  %v11483_v39 = vld [vmem:[%s10360_s28 + $0xa8] sm:$0xff]   ;;  %v6776_v11 = vrot.slane %v11412_v6, 1 }
 0x1d1   : > { %v3810_v37 = vpop.f32.mrf.mxu0  ;;  %9933 = vmatmul.mubr.msk.bf16.vlgmr.msra.gmra.mxu0 %vm309_vm2, %v6448_v29  ;;  %v7055_v43 = vshll.u32 %v11483_v39, 16 }
 0x1d2   : > { %v3817_v48 = vadd.f32 %v3810_v37, %v3768_v45  ;;  %9943 = vmatpush3.bf16.msra.mxu0 %v10404_v31  ;;  %v11443_v46 = vpop.f32.mrf.mxu1  ;;  %9951 = vmatmul.mubr.msk.bf16.vlgmr.msra.gmra.mxu1 %vm309_vm2, %v6611_v36  ;;  %v6777_v45 = vrot.slane %v11425_v22, 1  ;;  %v6948_v37 = vrot.slane %v11450_v53, 1 }
 0x1d3   : > { %v9646_v49 = vpop.f32.mrf.mxu0  ;;  %9944 = vmatprep.mubr.msk.bf16.mxu0 %vm10285_vm1, %v10284_v1  ;;  %9954 = vmatprep.subr.bf16.mxu0 %v10284_v1 }
 0x1d4   : > { %v3819_v54 = vadd.f32 %v11259_v13, %v3817_v48  ;;  %v9664_v58 = vpop.f32.mrf.mxu1  ;;  %9961 = vmatpush3.bf16.msra.mxu1 %v10422_v42  ;;  %9962 = vmatprep.mubr.msk.bf16.mxu1 %vm10285_vm1, %v10284_v1  ;;  %v11498_v48 = vld [vmem:[%s10360_s28 + $0xb0] ss:$0 sps:$4 sm:$0x11]   ;;  %v6778_v53 = vsel %vm404_vm4, %v6776_v11, %v6777_v45  ;;  %v10244_v11 = vld [vmem:[%s10360_s28 + $0xbc] ss:$0 sps:$4 sm:$0x11]  }
 0x1d5   : > { %v3813_v61 = vpop.f32.mrf.mxu0  ;;  %9972 = vmatprep.subr.bf16.mxu1 %v10284_v1 }
 0x1d6   : > { %v3821_v3 = vmax.f32 %v3819_v54, 0.0  ;;  %v3818_v5 = vadd.f32 %v3813_v61, %v3769_v52  ;;  %v11459_v56 = vpop.f32.mrf.mxu1  ;;  %v7057_v52 = vrot.slane %v7055_v43, 1 }
 0x1d7   : > { %v9647_v8 = vpop.f32.mrf.mxu0 }
 0x1d8   : > { %v3826_v14 = vadd.f32 %v8722_v60, %v3821_v3  ;;  %v3820_v40 = vadd.f32 %v11259_v13, %v3818_v5  ;;  %v9665_v10 = vpop.f32.mrf.mxu1 }
 0x1d9   : > { %v3934_v0 = vpop.f32.mrf.mxu0  ;;  %9945 = vmatmul.mubr.msk.bf16.vlgmr.msra.gmra.mxu0 %vm309_vm2, %v6562_v38 }
 0x1da   : > { %8724 = vst.msk [vmem:[%s10879_s27 + $0x60] sm:$0xff] %vm309_vm2, %v3826_v14  ;;  %v3822_v19 = vmax.f32 %v3820_v40, 0.0  ;;  %9955 = vmatpush3.bf16.msra.mxu0 %v10440_v51  ;;  %v4095_v21 = vpop.f32.mrf.mxu1  ;;  %9963 = vmatmul.mubr.msk.bf16.vlgmr.msra.gmra.mxu1 %vm309_vm2, %v6729_v55  ;;  %v3935_v36 = vadd.f32 %v3934_v0, %v11418_v50  ;;  %v6947_v50 = vrot.slane %v11439_v26, 1 }
 0x1db   : > { %v9658_v17 = vpop.f32.mrf.mxu0  ;;  %9956 = vmatprep.mubr.msk.bf16.mxu0 %vm10285_vm1, %v10284_v1  ;;  %9966 = vmatprep.subr.bf16.mxu0 %v10284_v1 }
 0x1dc   : > { %v3827_v28 = vadd.f32 %v8723_v57, %v3822_v19  ;;  %v9676_v29 = vpop.f32.mrf.mxu1  ;;  %9973 = vmatpush3.bf16.msra.mxu1 %v10344_v4  ;;  %9974 = vmatprep.mubr.msk.bf16.mxu1 %vm10285_vm1, %v10284_v1  ;;  %v6949_v54 = vsel %vm404_vm4, %v6947_v50, %v6948_v37 }
 0x1dd   : > { %v3937_v32 = vpop.f32.mrf.mxu0  ;;  %9984 = vmatprep.subr.bf16.mxu1 %v10284_v1 }
 0x1de   : > { %8725 = vst.msk [vmem:[%s10879_s27 + $0x68] sm:$0xff] %vm309_vm2, %v3827_v28  ;;  %v4098_v20 = vpop.f32.mrf.mxu1  ;;  %v3938_v63 = vadd.f32 %v3937_v32, %v11433_v27  ;;  %v7053_v27 = vshrl.u32 %v11483_v39, 16 }
 0x1df   : > { %v9659_v33 = vpop.f32.mrf.mxu0 }
 0x1e0   : > { %v9677_v9 = vpop.f32.mrf.mxu1  ;;  %v3989_v58 = vadd.f32 %v11459_v56, %v3938_v63  ;;  %v7058_v55 = vor.u32 %v7057_v52, %v7053_v27 }
 0x1e1   : > { %v4035_v24 = vpop.f32.mrf.mxu0  ;;  %9957 = vmatmul.mubr.msk.bf16.vlgmr.msra.gmra.mxu0 %vm309_vm2, %v11412_v6  ;;  %v3988_v6 = vadd.f32 %v11443_v46, %v3935_v36  ;;  %v7060_v46 = vshll.u32 %v11498_v48, 16  ;;  %v10243_v9 = vld [vmem:[%s10360_s28 + $0xb4] sm:$0xff]  }
 0x1e2   : > { %9967 = vmatpush3.bf16.msra.mxu0 %v10458_v59  ;;  %v4202_v30 = vpop.f32.mrf.mxu1  ;;  %9975 = vmatmul.mubr.msk.bf16.vlgmr.msra.gmra.mxu1 %vm309_vm2, %v6859_v34  ;;  %v7222_v43 = vshll.u32 %v10243_v9, 16 }
 0x1e3   : > { %v9670_v16 = vpop.f32.mrf.mxu0  ;;  %9968 = vmatprep.mubr.msk.bf16.mxu0 %vm10285_vm1, %v10284_v1  ;;  %9978 = vmatprep.subr.bf16.mxu0 %v10284_v1  ;;  %v4042_v25 = vadd.f32 %v4035_v24, %v3988_v6  ;;  %v7062_v15 = vrot.slane %v7060_v46, 1  ;;  %v8750_v24 = vld [vmem:[%s10851_s24 + $0x70] sm:$0xff]  ;;  %v7227_v46 = vshll.u32 %v10244_v11, 16 }
 0x1e4   : > { %v9688_v49 = vpop.f32.mrf.mxu1  ;;  %9985 = vmatpush3.bf16.msra.mxu1 %v10380_v18  ;;  %9986 = vmatprep.mubr.msk.bf16.mxu1 %vm10285_vm1, %v10284_v1  ;;  %v7224_v52 = vrot.slane %v7222_v43, 1  ;;  %v10247_v43 = vld [vmem:[%s10360_s28 + $0xb4] sm:$0xff]  }
 0x1e5   : > { %v4038_v22 = vpop.f32.mrf.mxu0  ;;  %9996 = vmatprep.subr.bf16.mxu1 %v10284_v1  ;;  %v4102_v5 = vadd.f32 %v4095_v21, %v4042_v25  ;;  %v7063_v57 = vsel %vm296_vm3, %v7058_v55, %v7062_v15  ;;  %v7111_v25 = vrot.slane %v11498_v48, 1  ;;  %v7220_v48 = vshrl.u32 %v10243_v9, 16 }
 0x1e6   : > { %v4205_v44 = vpop.f32.mrf.mxu1  ;;  %v4043_v3 = vadd.f32 %v4038_v22, %v3989_v58  ;;  %v7110_v22 = vrot.slane %v11483_v39, 1 }
 0x1e7   : > { %v9671_v41 = vpop.f32.mrf.mxu0  ;;  %v7225_v15 = vor.u32 %v7224_v52, %v7220_v48  ;;  %v7611_v52 = vrot.slane %v10247_v43, 1 }
 0x1e8   : > { %v9689_v60 = vpop.f32.mrf.mxu1  ;;  %v4103_v14 = vadd.f32 %v4098_v20, %v4043_v3  ;;  %v7277_v41 = vrot.slane %v10243_v9, 1  ;;  %v11563_v3 = vld [vmem:[%s10360_s28 + $0xa8] sm:$0xff]  }
 0x1e9   : > { %v4144_v61 = vpop.f32.mrf.mxu0  ;;  %9969 = vmatmul.mubr.msk.bf16.vlgmr.msra.gmra.mxu0 %vm309_vm2, %v6778_v53 }
 0x1ea   : > { %9979 = vmatpush3.bf16.msra.mxu0 %v10334_v2  ;;  %v4311_v38 = vpop.f32.mrf.mxu1  ;;  %9987 = vmatmul.mubr.msk.bf16.vlgmr.msra.gmra.mxu1 %vm309_vm2, %v6949_v54  ;;  %v4151_v56 = vadd.f32 %v4144_v61, %v4102_v5  ;;  %v7112_v61 = vsel %vm404_vm4, %v7110_v22, %v7111_v25  ;;  %v11605_v22 = vld [vmem:[%s10360_s28 + $0xc0] sm:$0xff]  }
 0x1eb   : > { %v9682_v8 = vpop.f32.mrf.mxu0  ;;  %9980 = vmatprep.mubr.msk.bf16.mxu0 %vm10285_vm1, %v10284_v1  ;;  %9990 = vmatprep.subr.bf16.mxu0 %v10284_v1 }
 0x1ec   : > { %v9700_v62 = vpop.f32.mrf.mxu1  ;;  %9997 = vmatpush3.bf16.msra.mxu1 %v10404_v31  ;;  %9998 = vmatprep.mubr.msk.bf16.mxu1 %vm10285_vm1, %v10284_v1  ;;  %v4209_v19 = vadd.f32 %v4202_v30, %v4151_v56  ;;  %v7229_v56 = vrot.slane %v7227_v46, 1 }
 0x1ed   : > { %v4147_v12 = vpop.f32.mrf.mxu0  ;;  %10008 = vmatprep.subr.bf16.mxu1 %v10284_v1 }
 0x1ee   : > { %v4314_v40 = vpop.f32.mrf.mxu1  ;;  %v4152_v0 = vadd.f32 %v4147_v12, %v4103_v14  ;;  %v11572_v12 = vld [vmem:[%s10360_s28 + $0xb0] ss:$0 sps:$4 sm:$0x11]   ;;  %v7352_v14 = vshll.u32 %v11563_v3, 16 }
 0x1ef   : > { %v9683_v10 = vpop.f32.mrf.mxu0 }
 0x1f0   : > { %v9701_v21 = vpop.f32.mrf.mxu1  ;;  %v4210_v32 = vadd.f32 %v4205_v44, %v4152_v0  ;;  %v8751_v44 = vld [vmem:[%s10851_s24 + $0x78] sm:$0xff]  ;;  %v7230_v0 = vsel %vm296_vm3, %v7225_v15, %v7229_v56  ;;  %v7554_v15 = vshrl.u32 %v10247_v43, 16 }
 0x1f1   : > { %v4262_v17 = vpop.f32.mrf.mxu0  ;;  %9981 = vmatmul.mubr.msk.bf16.vlgmr.msra.gmra.mxu0 %vm309_vm2, %v11439_v26 }
 0x1f2   : > { %v4269_v35 = vadd.f32 %v4262_v17, %v4209_v19  ;;  %9991 = vmatpush3.bf16.msra.mxu0 %v10364_v7  ;;  %v11526_v47 = vpop.f32.mrf.mxu1  ;;  %9999 = vmatmul.mubr.msk.bf16.vlgmr.msra.gmra.mxu1 %vm309_vm2, %v7063_v57  ;;  %v7350_v17 = vshrl.u32 %v11563_v3, 16 }
 0x1f3   : > { %v9694_v28 = vpop.f32.mrf.mxu0  ;;  %9992 = vmatprep.mubr.msk.bf16.mxu0 %vm10285_vm1, %v10284_v1  ;;  %10002 = vmatprep.subr.bf16.mxu0 %v10284_v1 }
 0x1f4   : > { %v4318_v29 = vadd.f32 %v4311_v38, %v4269_v35  ;;  %v9712_v20 = vpop.f32.mrf.mxu1  ;;  %10009 = vmatpush3.bf16.msra.mxu1 %v10440_v51  ;;  %10010 = vmatprep.mubr.msk.bf16.mxu1 %vm10285_vm1, %v10284_v1  ;;  %v7354_v35 = vrot.slane %v7352_v14, 1  ;;  %v7357_v28 = vshll.u32 %v11572_v12, 16 }
 0x1f5   : > { %v4265_v26 = vpop.f32.mrf.mxu0  ;;  %10020 = vmatprep.subr.bf16.mxu1 %v10284_v1 }
 0x1f6   : > { %v4320_v33 = vadd.f32 %v11259_v13, %v4318_v29  ;;  %v4270_v34 = vadd.f32 %v4265_v26, %v4210_v32  ;;  %v11537_v36 = vpop.f32.mrf.mxu1 }
 0x1f7   : > { %v9695_v30 = vpop.f32.mrf.mxu0 }
 0x1f8   : > { %v4322_v45 = vmax.f32 %v4320_v33, 0.0  ;;  %v4319_v16 = vadd.f32 %v4314_v40, %v4270_v34  ;;  %v9713_v50 = vpop.f32.mrf.mxu1 }
 0x1f9   : > { %v4392_v37 = vpop.f32.mrf.mxu0  ;;  %9993 = vmatmul.mubr.msk.bf16.vlgmr.msra.gmra.mxu0 %vm309_vm2, %v11483_v39 }
 0x1fa   : > { %v4327_v63 = vadd.f32 %v8750_v24, %v4322_v45  ;;  %v4321_v6 = vadd.f32 %v11259_v13, %v4319_v16  ;;  %10003 = vmatpush3.bf16.msra.mxu0 %v10392_v23  ;;  %v11546_v49 = vpop.f32.mrf.mxu1  ;;  %10011 = vmatmul.mubr.msk.bf16.vlgmr.msra.gmra.mxu1 %vm309_vm2, %v10243_v9  ;;  %v7278_v13 = vrot.slane %v10244_v11, 1  ;;  %v4436_v19 = vadd.f32 %v11526_v47, %v4392_v37 }
 0x1fb   : > { %v9706_v53 = vpop.f32.mrf.mxu0  ;;  %10004 = vmatprep.mubr.msk.bf16.mxu0 %vm10285_vm1, %v10284_v1  ;;  %10014 = vmatprep.subr.bf16.mxu0 %v10284_v1  ;;  %v7355_v47 = vor.u32 %v7354_v35, %v7350_v17  ;;  %v7359_v9 = vrot.slane %v7357_v28, 1 }
 0x1fc   : > { %8752 = vst.msk [vmem:[%s10879_s27 + $0x70] sm:$0xff] %vm309_vm2, %v4327_v63  ;;  %v4323_v54 = vmax.f32 %v4321_v6, 0.0  ;;  %v9724_v27 = vpop.f32.mrf.mxu1  ;;  %10021 = vmatpush3.bf16.msra.mxu1 %v10458_v59  ;;  %10022 = vmatprep.mubr.msk.bf16.mxu1 %vm10285_vm1, %v10284_v1  ;;  %v7279_v38 = vsel %vm404_vm4, %v7277_v41, %v7278_v13  ;;  %v10248_v6 = vld [vmem:[%s10360_s28 + $0xbc] ss:$0 sps:$4 sm:$0x11]   ;;  %v7448_v53 = vrot.slane %v11563_v3, 1 }
 0x1fd   : > { %v4395_v39 = vpop.f32.mrf.mxu0  ;;  %10032 = vmatprep.subr.bf16.mxu1 %v10284_v1  ;;  %v7360_v37 = vsel %vm296_vm3, %v7355_v47, %v7359_v9  ;;  %v7449_v41 = vrot.slane %v11572_v12, 1  ;;  %v7612_v46 = vrot.slane %v10248_v6, 1  ;;  %v11643_v47 = vld [vmem:[%s10360_s28 + $0xbc] ss:$0 sps:$4 sm:$0x11]  }
 0x1fe   : > { %v4328_v58 = vadd.f32 %v8751_v44, %v4323_v54  ;;  %v4539_v60 = vpop.f32.mrf.mxu1  ;;  %v4439_v33 = vadd.f32 %v11537_v36, %v4395_v39  ;;  %v7556_v39 = vshll.u32 %v10247_v43, 16 }
 0x1ff   : > { %v9707_v5 = vpop.f32.mrf.mxu0  ;;  %v7613_v14 = vsel %vm404_vm4, %v7611_v52, %v7612_v46 }
 0x200   : > { %8753 = vst.msk [vmem:[%s10879_s27 + $0x78] sm:$0xff] %vm309_vm2, %v4328_v58  ;;  %v9725_v8 = vpop.f32.mrf.mxu1  ;;  %v11618_v58 = vld [vmem:[%s10360_s28 + $0xc8] ss:$0 sps:$4 sm:$0x11]   ;;  %v7558_v56 = vrot.slane %v7556_v39, 1 }
 0x201   : > { %v4482_v55 = vpop.f32.mrf.mxu0  ;;  %10005 = vmatmul.mubr.msk.bf16.vlgmr.msra.gmra.mxu0 %vm309_vm2, %v7112_v61  ;;  %v8779_v39 = vld [vmem:[%s10851_s24 + $0x88] sm:$0xff] }
 0x202   : > { %10015 = vmatpush3.bf16.msra.mxu0 %v10422_v42  ;;  %v4645_v62 = vpop.f32.mrf.mxu1  ;;  %10023 = vmatmul.mubr.msk.bf16.vlgmr.msra.gmra.mxu1 %vm309_vm2, %v7279_v38  ;;  %v4489_v32 = vadd.f32 %v4482_v55, %v4436_v19  ;;  %v7450_v38 = vsel %vm404_vm4, %v7448_v53, %v7449_v41  ;;  %v7858_v53 = vshll.u32 %v11643_v47, 16 }
 0x203   : > { %v9718_v40 = vpop.f32.mrf.mxu0  ;;  %10016 = vmatprep.mubr.msk.bf16.mxu0 %vm10285_vm1, %v10284_v1  ;;  %10026 = vmatprep.subr.bf16.mxu0 %v10284_v1 }
 0x204   : > { %v9736_v10 = vpop.f32.mrf.mxu1  ;;  %10033 = vmatpush3.bf16.msra.mxu1 %v10334_v2  ;;  %10034 = vmatprep.mubr.msk.bf16.mxu1 %vm10285_vm1, %v10284_v1  ;;  %v4543_v36 = vadd.f32 %v11546_v49, %v4489_v32  ;;  %v7721_v40 = vshrl.u32 %v11605_v22, 16  ;;  %v7559_v32 = vor.u32 %v7558_v56, %v7554_v15 }
 0x205   : > { %v4485_v57 = vpop.f32.mrf.mxu0  ;;  %10044 = vmatprep.subr.bf16.mxu1 %v10284_v1 }
 0x206   : > { %v4648_v21 = vpop.f32.mrf.mxu1  ;;  %v4490_v30 = vadd.f32 %v4485_v57, %v4439_v33  ;;  %v7728_v57 = vshll.u32 %v11618_v58, 16 }
 0x207   : > { %v9719_v29 = vpop.f32.mrf.mxu0 }
 0x208   : > { %v9737_v20 = vpop.f32.mrf.mxu1  ;;  %v4544_v49 = vadd.f32 %v4539_v60, %v4490_v30  ;;  %v7723_v60 = vshll.u32 %v11605_v22, 16 }
 0x209   : > { %v4596_v26 = vpop.f32.mrf.mxu0  ;;  %10017 = vmatmul.mubr.msk.bf16.vlgmr.msra.gmra.mxu0 %vm309_vm2, %v7230_v0  ;;  %v11632_v0 = vld [vmem:[%s10360_s28 + $0xb4] sm:$0xff]  }
 0x20a   : > { %10027 = vmatpush3.bf16.msra.mxu0 %v10344_v4  ;;  %v4763_v34 = vpop.f32.mrf.mxu1  ;;  %10035 = vmatmul.mubr.msk.bf16.vlgmr.msra.gmra.mxu1 %vm309_vm2, %v11563_v3  ;;  %v4603_v16 = vadd.f32 %v4596_v26, %v4543_v36  ;;  %v7725_v10 = vrot.slane %v7723_v60, 1  ;;  %v7853_v9 = vshll.u32 %v11632_v0, 16 }
 0x20b   : > { %v9730_v24 = vpop.f32.mrf.mxu0  ;;  %10028 = vmatprep.mubr.msk.bf16.mxu0 %vm10285_vm1, %v10284_v1  ;;  %10038 = vmatprep.subr.bf16.mxu0 %v10284_v1 }
 0x20c   : > { %v9748_v11 = vpop.f32.mrf.mxu1  ;;  %10045 = vmatpush3.bf16.msra.mxu1 %v10364_v7  ;;  %10046 = vmatprep.mubr.msk.bf16.mxu1 %vm10285_vm1, %v10284_v1  ;;  %v4652_v54 = vadd.f32 %v4645_v62, %v4603_v16  ;;  %v7561_v62 = vshll.u32 %v10248_v6, 16  ;;  %v7726_v33 = vor.u32 %v7725_v10, %v7721_v40  ;;  %v11649_v24 = vld [vmem:[%s11828_s3] ss:$0 sm:$0xff] }
 0x20d   : > { %v4599_v45 = vpop.f32.mrf.mxu0  ;;  %10056 = vmatprep.subr.bf16.mxu1 %v10284_v1 }
 0x20e   : > { %v11599_v50 = vpop.f32.mrf.mxu1  ;;  %v4604_v13 = vadd.f32 %v4599_v45, %v4544_v49  ;;  %v7563_v20 = vrot.slane %v7561_v62, 1  ;;  %v8778_v45 = vld [vmem:[%s10851_s24 + $0x80] sm:$0xff] }
 0x20f   : > { %v9731_v63 = vpop.f32.mrf.mxu0 }
 0x210   : > { %v9749_v25 = vpop.f32.mrf.mxu1  ;;  %v4653_v8 = vadd.f32 %v4648_v21, %v4604_v13  ;;  %v7564_v6 = vsel %vm296_vm3, %v7559_v32, %v7563_v20 }
 0x211   : > { %v4703_v44 = vpop.f32.mrf.mxu0  ;;  %10029 = vmatmul.mubr.msk.bf16.vlgmr.msra.gmra.mxu0 %vm309_vm2, %v7360_v37  ;;  %v7851_v25 = vshrl.u32 %v11632_v0, 16 }
 0x212   : > { %10039 = vmatpush3.bf16.msra.mxu0 %v10380_v18  ;;  %v11611_v27 = vpop.f32.mrf.mxu1  ;;  %10047 = vmatmul.mubr.msk.bf16.vlgmr.msra.gmra.mxu1 %vm309_vm2, %v10247_v43  ;;  %v4710_v61 = vadd.f32 %v4703_v44, %v4652_v54  ;;  %v7855_v44 = vrot.slane %v7853_v9, 1 }
 0x213   : > { %v9742_v48 = vpop.f32.mrf.mxu0  ;;  %10040 = vmatprep.mubr.msk.bf16.mxu0 %vm10285_vm1, %v10284_v1  ;;  %10050 = vmatprep.subr.bf16.mxu0 %v10284_v1 }
 0x214   : > { %v9760_v3 = vpop.f32.mrf.mxu1  ;;  %10057 = vmatpush3.bf16.msra.mxu1 %v10392_v23  ;;  %10058 = vmatprep.mubr.msk.bf16.mxu1 %vm10285_vm1, %v10284_v1  ;;  %v4770_v17 = vadd.f32 %v4763_v34, %v4710_v61  ;;  %v7730_v34 = vrot.slane %v7728_v57, 1  ;;  %v7856_v61 = vor.u32 %v7855_v44, %v7851_v25  ;;  %v7778_v57 = vrot.slane %v11605_v22, 1 }
 0x215   : > { %v4706_v5 = vpop.f32.mrf.mxu0  ;;  %10068 = vmatprep.subr.bf16.mxu1 %v10284_v1  ;;  %v7860_v3 = vrot.slane %v7858_v53, 1 }
 0x216   : > { %v11626_v55 = vpop.f32.mrf.mxu1  ;;  %v4711_v19 = vadd.f32 %v4706_v5, %v4653_v8 }
 0x217   : > { %v9743_v12 = vpop.f32.mrf.mxu0  ;;  %v7861_v62 = vsel %vm296_vm3, %v7856_v61, %v7860_v3 }
 0x218   : > { %v9761_v35 = vpop.f32.mrf.mxu1  ;;  %v4771_v36 = vadd.f32 %v11599_v50, %v4711_v19  ;;  %v7731_v50 = vsel %vm296_vm3, %v7726_v33, %v7730_v34  ;;  %v11682_v12 = vld [vmem:[%s10360_s28 + $0xc0] sm:$0xff]   ;;  %v7779_v19 = vrot.slane %v11618_v58, 1 }
 0x219   : > { %v4812_v21 = vpop.f32.mrf.mxu0  ;;  %10041 = vmatmul.mubr.msk.bf16.vlgmr.msra.gmra.mxu0 %vm309_vm2, %v7450_v38  ;;  %v7950_v35 = vrot.slane %v11643_v47, 1 }
 0x21a   : > { %v4819_v28 = vadd.f32 %v4812_v21, %v4770_v17  ;;  %10051 = vmatpush3.bf16.msra.mxu0 %v10404_v31  ;;  %v11636_v29 = vpop.f32.mrf.mxu1  ;;  %10059 = vmatmul.mubr.msk.bf16.vlgmr.msra.gmra.mxu1 %vm309_vm2, %v7613_v14  ;;  %v11697_v21 = vld [vmem:[%s10360_s28 + $0xc8] ss:$0 sps:$4 sm:$0x11]   ;;  %v7780_v34 = vsel %vm404_vm4, %v7778_v57, %v7779_v19 }
 0x21b   : > { %v9754_v26 = vpop.f32.mrf.mxu0  ;;  %10052 = vmatprep.mubr.msk.bf16.mxu0 %vm10285_vm1, %v10284_v1  ;;  %10062 = vmatprep.subr.bf16.mxu0 %v10284_v1  ;;  %v8113_v57 = vrot.slane %v11697_v21, 1 }
 0x21c   : > { %v4821_v30 = vadd.f32 %v11649_v24, %v4819_v28  ;;  %v9772_v11 = vpop.f32.mrf.mxu1  ;;  %10069 = vmatpush3.bf16.msra.mxu1 %v10422_v42  ;;  %10070 = vmatprep.mubr.msk.bf16.mxu1 %vm10285_vm1, %v10284_v1  ;;  %v8057_v28 = vshll.u32 %v11682_v12, 16 }
 0x21d   : > { %v4815_v16 = vpop.f32.mrf.mxu0  ;;  %10080 = vmatprep.subr.bf16.mxu1 %v10284_v1 }
 0x21e   : > { %v4823_v37 = vmax.f32 %v4821_v30, 0.0  ;;  %v4820_v43 = vadd.f32 %v4815_v16, %v4771_v36  ;;  %v11658_v63 = vpop.f32.mrf.mxu1  ;;  %v8059_v30 = vrot.slane %v8057_v28, 1  ;;  %v8807_v28 = vld [vmem:[%s10851_s24 + $0x98] sm:$0xff] }
 0x21f   : > { %v9755_v49 = vpop.f32.mrf.mxu0 }
 0x220   : > { %v4828_v41 = vadd.f32 %v8778_v45, %v4823_v37  ;;  %v4822_v13 = vadd.f32 %v11649_v24, %v4820_v43  ;;  %v9773_v54 = vpop.f32.mrf.mxu1 }
 0x221   : > { %v4936_v48 = vpop.f32.mrf.mxu0  ;;  %10053 = vmatmul.mubr.msk.bf16.vlgmr.msra.gmra.mxu0 %vm309_vm2, %v7564_v6 }
 0x222   : > { %8780 = vst.msk [vmem:[%s10879_s27 + $0x80] sm:$0xff] %vm309_vm2, %v4828_v41  ;;  %v4824_v52 = vmax.f32 %v4822_v13, 0.0  ;;  %10063 = vmatpush3.bf16.msra.mxu0 %v10440_v51  ;;  %v5097_v46 = vpop.f32.mrf.mxu1  ;;  %10071 = vmatmul.mubr.msk.bf16.vlgmr.msra.gmra.mxu1 %vm309_vm2, %v7731_v50  ;;  %v4937_v14 = vadd.f32 %v4936_v48, %v11611_v27  ;;  %v7949_v27 = vrot.slane %v11632_v0, 1 }
 0x223   : > { %v9766_v60 = vpop.f32.mrf.mxu0  ;;  %10064 = vmatprep.mubr.msk.bf16.mxu0 %vm10285_vm1, %v10284_v1  ;;  %10074 = vmatprep.subr.bf16.mxu0 %v10284_v1 }
 0x224   : > { %v4829_v5 = vadd.f32 %v8779_v39, %v4824_v52  ;;  %v9784_v38 = vpop.f32.mrf.mxu1  ;;  %10081 = vmatpush3.bf16.msra.mxu1 %v10344_v4  ;;  %10082 = vmatprep.mubr.msk.bf16.mxu1 %vm10285_vm1, %v10284_v1  ;;  %v7951_v9 = vsel %vm404_vm4, %v7949_v27, %v7950_v35 }
 0x225   : > { %v4939_v8 = vpop.f32.mrf.mxu0  ;;  %10092 = vmatprep.subr.bf16.mxu1 %v10284_v1 }
 0x226   : > { %8781 = vst.msk [vmem:[%s10879_s27 + $0x88] sm:$0xff] %vm309_vm2, %v4829_v5  ;;  %v5100_v15 = vpop.f32.mrf.mxu1  ;;  %v4940_v32 = vadd.f32 %v4939_v8, %v11626_v55  ;;  %v8055_v55 = vshrl.u32 %v11682_v12, 16  ;;  %v10255_v8 = vld [vmem:[%s10360_s28 + $0xcc] sm:$0xff]  }
 0x227   : > { %v9767_v56 = vpop.f32.mrf.mxu0  ;;  %v8224_v35 = vshll.u32 %v10255_v8, 16 }
 0x228   : > { %v9785_v40 = vpop.f32.mrf.mxu1  ;;  %v8060_v6 = vor.u32 %v8059_v30, %v8055_v55 }
 0x229   : > { %v5037_v10 = vpop.f32.mrf.mxu0  ;;  %10065 = vmatmul.mubr.msk.bf16.vlgmr.msra.gmra.mxu0 %vm309_vm2, %v11605_v22  ;;  %v4990_v22 = vadd.f32 %v11636_v29, %v4937_v14  ;;  %v8062_v29 = vshll.u32 %v11697_v21, 16 }
 0x22a   : > { %10075 = vmatpush3.bf16.msra.mxu0 %v10458_v59  ;;  %v5204_v4 = vpop.f32.mrf.mxu1  ;;  %10083 = vmatmul.mubr.msk.bf16.vlgmr.msra.gmra.mxu1 %vm309_vm2, %v7861_v62  ;;  %v10256_v62 = vld [vmem:[%s10360_s28 + $0xd4] ss:$0 sps:$4 sm:$0x11]  }
 0x22b   : > { %v9778_v17 = vpop.f32.mrf.mxu0  ;;  %10076 = vmatprep.mubr.msk.bf16.mxu0 %vm10285_vm1, %v10284_v1  ;;  %10086 = vmatprep.subr.bf16.mxu0 %v10284_v1  ;;  %v5044_v26 = vadd.f32 %v5037_v10, %v4990_v22  ;;  %v8064_v49 = vrot.slane %v8062_v29, 1  ;;  %v8279_v22 = vrot.slane %v10255_v8, 1 }
 0x22c   : > { %v9796_v20 = vpop.f32.mrf.mxu1  ;;  %10093 = vmatpush3.bf16.msra.mxu1 %v10380_v18  ;;  %10094 = vmatprep.mubr.msk.bf16.mxu1 %vm10285_vm1, %v10284_v1  ;;  %v4991_v18 = vadd.f32 %v11658_v63, %v4940_v32 }
 0x22d   : > { %v5040_v58 = vpop.f32.mrf.mxu0  ;;  %10104 = vmatprep.subr.bf16.mxu1 %v10284_v1  ;;  %v5104_v16 = vadd.f32 %v5097_v46, %v5044_v26  ;;  %v8065_v41 = vsel %vm296_vm3, %v8060_v6, %v8064_v49 }
 0x22e   : > { %v5207_v33 = vpop.f32.mrf.mxu1  ;;  %v5045_v45 = vadd.f32 %v5040_v58, %v4991_v18 }
 0x22f   : > { %v9779_v47 = vpop.f32.mrf.mxu0 }
 0x230   : > { %v9797_v36 = vpop.f32.mrf.mxu1  ;;  %v8226_v47 = vrot.slane %v8224_v35, 1 }
 0x231   : > { %v5146_v11 = vpop.f32.mrf.mxu0  ;;  %10077 = vmatmul.mubr.msk.bf16.vlgmr.msra.gmra.mxu0 %vm309_vm2, %v7780_v34  ;;  %v8222_v34 = vshrl.u32 %v10255_v8, 16 }
 0x232   : > { %10087 = vmatpush3.bf16.msra.mxu0 %v10334_v2  ;;  %v5313_v37 = vpop.f32.mrf.mxu1  ;;  %10095 = vmatmul.mubr.msk.bf16.vlgmr.msra.gmra.mxu1 %vm309_vm2, %v7951_v9  ;;  %v5153_v63 = vadd.f32 %v5146_v11, %v5104_v16  ;;  %v5105_v2 = vadd.f32 %v5100_v15, %v5045_v45  ;;  %v8806_v15 = vld [vmem:[%s10851_s24 + $0x90] sm:$0xff]  ;;  %v8229_v9 = vshll.u32 %v10256_v62, 16 }
 0x233   : > { %v9790_v43 = vpop.f32.mrf.mxu0  ;;  %10088 = vmatprep.mubr.msk.bf16.mxu0 %vm10285_vm1, %v10284_v1  ;;  %10098 = vmatprep.subr.bf16.mxu0 %v10284_v1  ;;  %v8227_v36 = vor.u32 %v8226_v47, %v8222_v34 }
 0x234   : > { %v9808_v50 = vpop.f32.mrf.mxu1  ;;  %10105 = vmatpush3.bf16.msra.mxu1 %v10404_v31  ;;  %10106 = vmatprep.mubr.msk.bf16.mxu1 %vm10285_vm1, %v10284_v1  ;;  %v5211_v54 = vadd.f32 %v5204_v4, %v5153_v63  ;;  %v8231_v11 = vrot.slane %v8229_v9, 1 }
 0x235   : > { %v5149_v25 = vpop.f32.mrf.mxu0  ;;  %10116 = vmatprep.subr.bf16.mxu1 %v10284_v1 }
 0x236   : > { %v5316_v44 = vpop.f32.mrf.mxu1  ;;  %v5154_v13 = vadd.f32 %v5149_v25, %v5105_v2  ;;  %v8232_v49 = vsel %vm296_vm3, %v8227_v36, %v8231_v11 }
 0x237   : > { %v9791_v53 = vpop.f32.mrf.mxu0 }
 0x238   : > { %v9809_v39 = vpop.f32.mrf.mxu1  ;;  %v5212_v61 = vadd.f32 %v5207_v33, %v5154_v13 }
 0x239   : > { %v5264_v48 = vpop.f32.mrf.mxu0  ;;  %10089 = vmatmul.mubr.msk.bf16.vlgmr.msra.gmra.mxu0 %vm309_vm2, %v11632_v0 }
 0x23a   : > { %v5271_v52 = vadd.f32 %v5264_v48, %v5211_v54  ;;  %10099 = vmatpush3.bf16.msra.mxu0 %v10364_v7  ;;  %v11725_v31 = vpop.f32.mrf.mxu1  ;;  %10107 = vmatmul.mubr.msk.bf16.vlgmr.msra.gmra.mxu1 %vm309_vm2, %v8065_v41 }
 0x23b   : > { %v9802_v46 = vpop.f32.mrf.mxu0  ;;  %10100 = vmatprep.mubr.msk.bf16.mxu0 %vm10285_vm1, %v10284_v1  ;;  %10110 = vmatprep.subr.bf16.mxu0 %v10284_v1 }
 0x23c   : > { %v5320_v60 = vadd.f32 %v5313_v37, %v5271_v52  ;;  %v9820_v3 = vpop.f32.mrf.mxu1  ;;  %10117 = vmatpush3.bf16.msra.mxu1 %v10440_v51  ;;  %10118 = vmatprep.mubr.msk.bf16.mxu1 %vm10285_vm1, %v10284_v1  ;;  %v8112_v51 = vrot.slane %v11682_v12, 1 }
 0x23d   : > { %v5267_v7 = vpop.f32.mrf.mxu0  ;;  %10128 = vmatprep.subr.bf16.mxu1 %v10284_v1 }
 0x23e   : > { %v5322_v0 = vadd.f32 %v11649_v24, %v5320_v60  ;;  %v5272_v5 = vadd.f32 %v5267_v7, %v5212_v61  ;;  %v5440_v38 = vpop.f32.mrf.mxu1  ;;  %v8114_v58 = vsel %vm404_vm4, %v8112_v51, %v8113_v57 }
 0x23f   : > { %v9803_v56 = vpop.f32.mrf.mxu0 }
 0x240   : > { %v5324_v14 = vmax.f32 %v5322_v0, 0.0  ;;  %v5321_v40 = vadd.f32 %v5316_v44, %v5272_v5  ;;  %v9821_v10 = vpop.f32.mrf.mxu1 }
 0x241   : > { %v5394_v4 = vpop.f32.mrf.mxu0  ;;  %10101 = vmatmul.mubr.msk.bf16.vlgmr.msra.gmra.mxu0 %vm309_vm2, %v11682_v12  ;;  %v8280_v12 = vrot.slane %v10256_v62, 1 }
 0x242   : > { %v5329_v19 = vadd.f32 %v8806_v15, %v5324_v14  ;;  %v5323_v17 = vadd.f32 %v11649_v24, %v5321_v40  ;;  %10111 = vmatpush3.bf16.msra.mxu0 %v10392_v23  ;;  %v5538_v27 = vpop.f32.mrf.mxu1  ;;  %10119 = vmatmul.mubr.msk.bf16.vlgmr.msra.gmra.mxu1 %vm309_vm2, %v10255_v8  ;;  %v5438_v43 = vadd.f32 %v11725_v31, %v5394_v4 }
 0x243   : > { %v9814_v32 = vpop.f32.mrf.mxu0  ;;  %10112 = vmatprep.mubr.msk.bf16.mxu0 %vm10285_vm1, %v10284_v1  ;;  %10122 = vmatprep.subr.bf16.mxu0 %v10284_v1  ;;  %v8281_v30 = vsel %vm404_vm4, %v8279_v22, %v8280_v12 }
 0x244   : > { %8808 = vst.msk [vmem:[%s10879_s27 + $0x90] sm:$0xff] %vm309_vm2, %v5329_v19  ;;  %v5325_v21 = vmax.f32 %v5323_v17, 0.0  ;;  %v9832_v20 = vpop.f32.mrf.mxu1  ;;  %10129 = vmatpush3.bf16.msra.mxu1 %v10458_v59  ;;  %10130 = vmatprep.mubr.msk.bf16.mxu1 %vm10285_vm1, %v10284_v1 }
 0x245   : > { %v5397_v23 = vpop.f32.mrf.mxu0 }
 0x246   : > { %v5330_v26 = vadd.f32 %v8807_v28, %v5325_v21  ;;  %v5541_v33 = vpop.f32.mrf.mxu1  ;;  %v5441_v2 = vadd.f32 %v5440_v38, %v5397_v23  ;;  %v8834_v28 = vld [vmem:[%s10851_s24 + $0xa0] sm:$0xff] }
 0x247   : > { %v9815_v55 = vpop.f32.mrf.mxu0 }
 0x248   : > { %8809 = vst.msk [vmem:[%s10879_s27 + $0x98] sm:$0xff] %vm309_vm2, %v5330_v26  ;;  %v9833_v29 = vpop.f32.mrf.mxu1 }
 0x249   : > { %v5484_v18 = vpop.f32.mrf.mxu0  ;;  %10113 = vmatmul.mubr.msk.bf16.vlgmr.msra.gmra.mxu0 %vm309_vm2, %v8114_v58 }
 0x24a   : > { %10123 = vmatpush3.bf16.msra.mxu0 %v10422_v42  ;;  %v5647_v59 = vpop.f32.mrf.mxu1  ;;  %10131 = vmatmul.mubr.msk.bf16.vlgmr.msra.gmra.mxu1 %vm309_vm2, %v8281_v30  ;;  %v5491_v50 = vadd.f32 %v5484_v18, %v5438_v43 }
 0x24b   : > { %v9826_v45 = vpop.f32.mrf.mxu0  ;;  %10124 = vmatprep.mubr.msk.bf16.mxu0 %vm10285_vm1, %v10284_v1 }
 0x24c   : > { %v9844_v16 = vpop.f32.mrf.mxu1  ;;  %v5545_v13 = vadd.f32 %v5538_v27, %v5491_v50 }
 0x24d   : > { %v5487_v37 = vpop.f32.mrf.mxu0 }
 0x24e   : > { %v5650_v6 = vpop.f32.mrf.mxu1  ;;  %v5492_v41 = vadd.f32 %v5487_v37, %v5441_v2 }
 0x24f   : > { %v9827_v63 = vpop.f32.mrf.mxu0 }
 0x250   : > { %v9845_v25 = vpop.f32.mrf.mxu1  ;;  %v5546_v31 = vadd.f32 %v5541_v33, %v5492_v41  ;;  %v8835_v33 = vld [vmem:[%s10851_s24 + $0xa8] sm:$0xff] }
 0x251   : > { %v5598_v42 = vpop.f32.mrf.mxu0  ;;  %10125 = vmatmul.mubr.msk.bf16.vlgmr.msra.gmra.mxu0 %vm309_vm2, %v8232_v49 }
 0x252   : > { %v5765_v44 = vpop.f32.mrf.mxu1  ;;  %v5605_v39 = vadd.f32 %v5598_v42, %v5545_v13 }
 0x253   : > { %v9838_v53 = vpop.f32.mrf.mxu0 }
 0x254   : > { %v9856_v54 = vpop.f32.mrf.mxu1  ;;  %v5654_v3 = vadd.f32 %v5647_v59, %v5605_v39 }
 0x255   : > { %v5601_v1 = vpop.f32.mrf.mxu0 }
 0x256   : > { %v5768_v48 = vpop.f32.mrf.mxu1  ;;  %v5606_v61 = vadd.f32 %v5601_v1, %v5546_v31 }
 0x257   : > { %v9839_v52 = vpop.f32.mrf.mxu0 }
 0x258   : > { %v9857_v46 = vpop.f32.mrf.mxu1  ;;  %v5655_v15 = vadd.f32 %v5650_v6, %v5606_v61 }
 0x259   : > { %v5705_v60 = vpop.f32.mrf.mxu0 }
 0x25a   : > { %v5895_v7 = vpop.f32.mrf.mxu1  ;;  %v5712_v5 = vadd.f32 %v5705_v60, %v5654_v3 }
 0x25b   : > { %v9850_v0 = vpop.f32.mrf.mxu0 }
 0x25c   : > { %v9868_v8 = vpop.f32.mrf.mxu1  ;;  %v5772_v40 = vadd.f32 %v5765_v44, %v5712_v5 }
 0x25d   : > { %v5708_v38 = vpop.f32.mrf.mxu0 }
 0x25e   : > { %v5898_v56 = vpop.f32.mrf.mxu1  ;;  %v5713_v14 = vadd.f32 %v5708_v38, %v5655_v15 }
 0x25f   : > { %v9851_v62 = vpop.f32.mrf.mxu0 }
 0x260   : > { %v9869_v10 = vpop.f32.mrf.mxu1  ;;  %v5773_v27 = vadd.f32 %v5768_v48, %v5713_v14 }
 0x261   : > { %v5814_v4 = vpop.f32.mrf.mxu0 }
 0x262   : > { %v5821_v51 = vadd.f32 %v5814_v4, %v5772_v40  ;;  %v5985_v57 = vpop.f32.mrf.mxu1 }
 0x263   : > { %v9862_v19 = vpop.f32.mrf.mxu0 }
 0x264   : > { %v5823_v17 = vadd.f32 %v11649_v24, %v5821_v51  ;;  %v9880_v35 = vpop.f32.mrf.mxu1 }
 0x265   : > { %v5817_v32 = vpop.f32.mrf.mxu0 }
 0x266   : > { %v5825_v22 = vmax.f32 %v5823_v17, 0.0  ;;  %v5822_v12 = vadd.f32 %v5817_v32, %v5773_v27  ;;  %v5988_v21 = vpop.f32.mrf.mxu1 }
 0x267   : > { %v9863_v20 = vpop.f32.mrf.mxu0 }
 0x268   : > { %v5830_v23 = vadd.f32 %v8834_v28, %v5825_v22  ;;  %v5824_v58 = vadd.f32 %v11649_v24, %v5822_v12  ;;  %v9881_v26 = vpop.f32.mrf.mxu1 }
 0x269   : > { %v5938_v34 = vpop.f32.mrf.mxu0 }
 0x26a   : > { %8836 = vst.msk [vmem:[%s10879_s27 + $0xa0] sm:$0xff] %vm309_vm2, %v5830_v23  ;;  %v5826_v47 = vmax.f32 %v5824_v58, 0.0  ;;  %v6099_v9 = vpop.f32.mrf.mxu1  ;;  %v5939_v11 = vadd.f32 %v5938_v34, %v5895_v7 }
 0x26b   : > { %v9874_v55 = vpop.f32.mrf.mxu0 }
 0x26c   : > { %v5831_v30 = vadd.f32 %v8835_v33, %v5826_v47  ;;  %v9892_v29 = vpop.f32.mrf.mxu1  ;;  %v5992_v49 = vadd.f32 %v5985_v57, %v5939_v11  ;;  %v8862_v57 = vld [vmem:[%s10851_s24 + $0xb0] sm:$0xff] }
 0x26d   : > { %v5941_v18 = vpop.f32.mrf.mxu0 }
 0x26e   : > { %8837 = vst.msk [vmem:[%s10879_s27 + $0xa8] sm:$0xff] %vm309_vm2, %v5831_v30  ;;  %v6102_v59 = vpop.f32.mrf.mxu1  ;;  %v5942_v6 = vadd.f32 %v5941_v18, %v5898_v56 }
 0x26f   : > { %v9875_v36 = vpop.f32.mrf.mxu0 }
 0x270   : > { %v9893_v45 = vpop.f32.mrf.mxu1  ;;  %v5993_v44 = vadd.f32 %v5988_v21, %v5942_v6  ;;  %v8863_v21 = vld [vmem:[%s10851_s24 + $0xb8] sm:$0xff] }
 0x271   : > { %v6039_v16 = vpop.f32.mrf.mxu0 }
 0x272   : > { %v6206_v37 = vpop.f32.mrf.mxu1  ;;  %v6046_v25 = vadd.f32 %v6039_v16, %v5992_v49 }
 0x273   : > { %v9886_v43 = vpop.f32.mrf.mxu0 }
 0x274   : > { %v9904_v63 = vpop.f32.mrf.mxu1  ;;  %v6106_v54 = vadd.f32 %v6099_v9, %v6046_v25 }
 0x275   : > { %v6042_v50 = vpop.f32.mrf.mxu0 }
 0x276   : > { %v6209_v42 = vpop.f32.mrf.mxu1  ;;  %v6047_v13 = vadd.f32 %v6042_v50, %v5993_v44 }
 0x277   : > { %v9887_v2 = vpop.f32.mrf.mxu0 }
 0x278   : > { %v9905_v53 = vpop.f32.mrf.mxu1  ;;  %v6107_v46 = vadd.f32 %v6102_v59, %v6047_v13 }
 0x279   : > { %v6148_v41 = vpop.f32.mrf.mxu0 }
 0x27a   : > { %v6315_v1 = vpop.f32.mrf.mxu1  ;;  %v6155_v48 = vadd.f32 %v6148_v41, %v6106_v54 }
 0x27b   : > { %v9898_v39 = vpop.f32.mrf.mxu0 }
 0x27c   : > { %v9916_v52 = vpop.f32.mrf.mxu1  ;;  %v6213_v7 = vadd.f32 %v6206_v37, %v6155_v48 }
 0x27d   : > { %v6151_v31 = vpop.f32.mrf.mxu0 }
 0x27e   : > { %v6318_v60 = vpop.f32.mrf.mxu1  ;;  %v6156_v3 = vadd.f32 %v6151_v31, %v6107_v46 }
 0x27f   : > { %v9899_v61 = vpop.f32.mrf.mxu0 }
 0x280   : > { %v9917_v0 = vpop.f32.mrf.mxu1  ;;  %v6214_v62 = vadd.f32 %v6209_v42, %v6156_v3 }
 0x281   : > { %v6266_v5 = vpop.f32.mrf.mxu0 }
 0x282   : > { %v6273_v8 = vadd.f32 %v6266_v5, %v6213_v7  ;;  %v6439_v38 = vpop.f32.mrf.mxu1 }
 0x283   : > { %v9910_v15 = vpop.f32.mrf.mxu0 }
 0x284   : > { %v6322_v56 = vadd.f32 %v6315_v1, %v6273_v8  ;;  %v9928_v14 = vpop.f32.mrf.mxu1 }
 0x285   : > { %v6269_v40 = vpop.f32.mrf.mxu0 }
 0x286   : > { %v6324_v10 = vadd.f32 %v11649_v24, %v6322_v56  ;;  %v6274_v4 = vadd.f32 %v6269_v40, %v6214_v62  ;;  %v6442_v51 = vpop.f32.mrf.mxu1 }
 0x287   : > { %v9911_v19 = vpop.f32.mrf.mxu0 }
 0x288   : > { %v6326_v17 = vmax.f32 %v6324_v10, 0.0  ;;  %v6323_v27 = vadd.f32 %v6318_v60, %v6274_v4  ;;  %v9929_v35 = vpop.f32.mrf.mxu1 }
 0x289   : > { %v6396_v28 = vpop.f32.mrf.mxu0 }
 0x28a   : > { %v6331_v32 = vadd.f32 %v8862_v57, %v6326_v17  ;;  %v6325_v22 = vadd.f32 %v11649_v24, %v6323_v27  ;;  %v6540_v12 = vpop.f32.mrf.mxu1  ;;  %v6440_v36 = vadd.f32 %v6439_v38, %v6396_v28 }
 0x28b   : > { %v9922_v20 = vpop.f32.mrf.mxu0 }
 0x28c   : > { %8864 = vst.msk [vmem:[%s10879_s27 + $0xb0] sm:$0xff] %vm309_vm2, %v6331_v32  ;;  %v6327_v23 = vmax.f32 %v6325_v22, 0.0  ;;  %v9940_v58 = vpop.f32.mrf.mxu1 }
 0x28d   : > { %v6399_v26 = vpop.f32.mrf.mxu0 }
 0x28e   : > { %v6332_v33 = vadd.f32 %v8863_v21, %v6327_v23  ;;  %v6543_v34 = vpop.f32.mrf.mxu1  ;;  %v6443_v6 = vadd.f32 %v6442_v51, %v6399_v26  ;;  %v8890_v51 = vld [vmem:[%s10851_s24 + $0xc0] sm:$0xff] }
 0x28f   : > { %v9923_v47 = vpop.f32.mrf.mxu0 }
 0x290   : > { %8865 = vst.msk [vmem:[%s10879_s27 + $0xb8] sm:$0xff] %vm309_vm2, %v6332_v33  ;;  %v9941_v9 = vpop.f32.mrf.mxu1 }
 0x291   : > { %v6486_v55 = vpop.f32.mrf.mxu0 }
 0x292   : > { %v6649_v30 = vpop.f32.mrf.mxu1  ;;  %v6493_v16 = vadd.f32 %v6486_v55, %v6440_v36 }
 0x293   : > { %v9934_v29 = vpop.f32.mrf.mxu0 }
 0x294   : > { %v9952_v18 = vpop.f32.mrf.mxu1  ;;  %v6547_v25 = vadd.f32 %v6540_v12, %v6493_v16  ;;  %v8891_v12 = vld [vmem:[%s10851_s24 + $0xc8] sm:$0xff] }
 0x295   : > { %v6489_v59 = vpop.f32.mrf.mxu0 }
 0x296   : > { %v6652_v11 = vpop.f32.mrf.mxu1  ;;  %v6494_v50 = vadd.f32 %v6489_v59, %v6443_v6 }
 0x297   : > { %v9935_v45 = vpop.f32.mrf.mxu0 }
 0x298   : > { %v9953_v37 = vpop.f32.mrf.mxu1  ;;  %v6548_v13 = vadd.f32 %v6543_v34, %v6494_v50 }
 0x299   : > { %v6600_v43 = vpop.f32.mrf.mxu0 }
 0x29a   : > { %v6767_v49 = vpop.f32.mrf.mxu1  ;;  %v6607_v44 = vadd.f32 %v6600_v43, %v6547_v25 }
 0x29b   : > { %v9946_v63 = vpop.f32.mrf.mxu0 }
 0x29c   : > { %v9964_v42 = vpop.f32.mrf.mxu1  ;;  %v6656_v48 = vadd.f32 %v6649_v30, %v6607_v44 }
 0x29d   : > { %v6603_v2 = vpop.f32.mrf.mxu0 }
 0x29e   : > { %v6770_v53 = vpop.f32.mrf.mxu1  ;;  %v6608_v39 = vadd.f32 %v6603_v2, %v6548_v13 }
 0x29f   : > { %v9947_v41 = vpop.f32.mrf.mxu0 }
 0x2a0   : > { %v9965_v54 = vpop.f32.mrf.mxu1  ;;  %v6657_v3 = vadd.f32 %v6652_v11, %v6608_v39 }
 0x2a1   : > { %v6707_v1 = vpop.f32.mrf.mxu0 }
 0x2a2   : > { %v6897_v52 = vpop.f32.mrf.mxu1  ;;  %v6714_v46 = vadd.f32 %v6707_v1, %v6656_v48 }
 0x2a3   : > { %v9958_v31 = vpop.f32.mrf.mxu0 }
 0x2a4   : > { %v9976_v60 = vpop.f32.mrf.mxu1  ;;  %v6774_v8 = vadd.f32 %v6767_v49, %v6714_v46 }
 0x2a5   : > { %v6710_v61 = vpop.f32.mrf.mxu0 }
 0x2a6   : > { %v6900_v7 = vpop.f32.mrf.mxu1  ;;  %v6715_v5 = vadd.f32 %v6710_v61, %v6657_v3 }
 0x2a7   : > { %v9959_v0 = vpop.f32.mrf.mxu0 }
 0x2a8   : > { %v9977_v38 = vpop.f32.mrf.mxu1  ;;  %v6775_v10 = vadd.f32 %v6770_v53, %v6715_v5 }
 0x2a9   : > { %v6816_v15 = vpop.f32.mrf.mxu0 }
 0x2aa   : > { %v6823_v56 = vadd.f32 %v6816_v15, %v6774_v8  ;;  %v6987_v62 = vpop.f32.mrf.mxu1 }
 0x2ab   : > { %v9970_v14 = vpop.f32.mrf.mxu0 }
 0x2ac   : > { %v6825_v40 = vadd.f32 %v11649_v24, %v6823_v56  ;;  %v9988_v4 = vpop.f32.mrf.mxu1 }
 0x2ad   : > { %v6819_v57 = vpop.f32.mrf.mxu0 }
 0x2ae   : > { %v6827_v19 = vmax.f32 %v6825_v40, 0.0  ;;  %v6824_v17 = vadd.f32 %v6819_v57, %v6775_v10  ;;  %v6990_v27 = vpop.f32.mrf.mxu1 }
 0x2af   : > { %v9971_v35 = vpop.f32.mrf.mxu0 }
 0x2b0   : > { %v6832_v28 = vadd.f32 %v8890_v51, %v6827_v19  ;;  %v6826_v32 = vadd.f32 %v11649_v24, %v6824_v17  ;;  %v9989_v22 = vpop.f32.mrf.mxu1 }
 0x2b1   : > { %v6940_v21 = vpop.f32.mrf.mxu0 }
 0x2b2   : > { %8892 = vst.msk [vmem:[%s10879_s27 + $0xc0] sm:$0xff] %vm309_vm2, %v6832_v28  ;;  %v6828_v20 = vmax.f32 %v6826_v32, 0.0  ;;  %v7101_v23 = vpop.f32.mrf.mxu1  ;;  %v6941_v55 = vadd.f32 %v6940_v21, %v6897_v52 }
 0x2b3   : > { %v9982_v58 = vpop.f32.mrf.mxu0 }
 0x2b4   : > { %v6833_v26 = vadd.f32 %v8891_v12, %v6828_v20  ;;  %v10000_v33 = vpop.f32.mrf.mxu1  ;;  %v6994_v11 = vadd.f32 %v6987_v62, %v6941_v55  ;;  %v8918_v62 = vld [vmem:[%s10851_s24 + $0xd0] sm:$0xff] }
 0x2b5   : > { %v6943_v34 = vpop.f32.mrf.mxu0 }
 0x2b6   : > { %8893 = vst.msk [vmem:[%s10879_s27 + $0xc8] sm:$0xff] %vm309_vm2, %v6833_v26  ;;  %v7104_v47 = vpop.f32.mrf.mxu1  ;;  %v6944_v36 = vadd.f32 %v6943_v34, %v6900_v7 }
 0x2b7   : > { %v9983_v9 = vpop.f32.mrf.mxu0 }
 0x2b8   : > { %v10001_v30 = vpop.f32.mrf.mxu1  ;;  %v6995_v49 = vadd.f32 %v6990_v27, %v6944_v36  ;;  %v8919_v27 = vld [vmem:[%s10851_s24 + $0xd8] sm:$0xff] }
 0x2b9   : > { %v7041_v29 = vpop.f32.mrf.mxu0 }
 0x2ba   : > { %v7208_v18 = vpop.f32.mrf.mxu1  ;;  %v7048_v37 = vadd.f32 %v7041_v29, %v6994_v11 }
 0x2bb   : > { %v9994_v59 = vpop.f32.mrf.mxu0 }
 0x2bc   : > { %v10012_v45 = vpop.f32.mrf.mxu1  ;;  %v7108_v42 = vadd.f32 %v7101_v23, %v7048_v37 }
 0x2bd   : > { %v7044_v16 = vpop.f32.mrf.mxu0 }
 0x2be   : > { %v7211_v43 = vpop.f32.mrf.mxu1  ;;  %v7049_v25 = vadd.f32 %v7044_v16, %v6995_v49 }
 0x2bf   : > { %v9995_v6 = vpop.f32.mrf.mxu0 }
 0x2c0   : > { %v10013_v63 = vpop.f32.mrf.mxu1  ;;  %v7109_v54 = vadd.f32 %v7104_v47, %v7049_v25 }
 0x2c1   : > { %v7150_v50 = vpop.f32.mrf.mxu0 }
 0x2c2   : > { %v7317_v2 = vpop.f32.mrf.mxu1  ;;  %v7157_v53 = vadd.f32 %v7150_v50, %v7108_v42 }
 0x2c3   : > { %v10006_v44 = vpop.f32.mrf.mxu0 }
 0x2c4   : > { %v10024_v41 = vpop.f32.mrf.mxu1  ;;  %v7215_v52 = vadd.f32 %v7208_v18, %v7157_v53 }
 0x2c5   : > { %v7153_v13 = vpop.f32.mrf.mxu0 }
 0x2c6   : > { %v7320_v1 = vpop.f32.mrf.mxu1  ;;  %v7158_v48 = vadd.f32 %v7153_v13, %v7109_v54 }
 0x2c7   : > { %v10007_v39 = vpop.f32.mrf.mxu0 }
 0x2c8   : > { %v10025_v31 = vpop.f32.mrf.mxu1  ;;  %v7216_v0 = vadd.f32 %v7211_v43, %v7158_v48 }
 0x2c9   : > { %v7268_v46 = vpop.f32.mrf.mxu0 }
 0x2ca   : > { %v7275_v60 = vadd.f32 %v7268_v46, %v7215_v52  ;;  %v7441_v61 = vpop.f32.mrf.mxu1 }
 0x2cb   : > { %v10018_v3 = vpop.f32.mrf.mxu0 }
 0x2cc   : > { %v7324_v7 = vadd.f32 %v7317_v2, %v7275_v60  ;;  %v10036_v5 = vpop.f32.mrf.mxu1 }
 0x2cd   : > { %v7271_v8 = vpop.f32.mrf.mxu0 }
 0x2ce   : > { %v7326_v38 = vadd.f32 %v11649_v24, %v7324_v7  ;;  %v7276_v15 = vadd.f32 %v7271_v8, %v7216_v0  ;;  %v7444_v56 = vpop.f32.mrf.mxu1 }
 0x2cf   : > { %v10019_v14 = vpop.f32.mrf.mxu0 }
 0x2d0   : > { %v7328_v40 = vmax.f32 %v7326_v38, 0.0  ;;  %v7325_v10 = vadd.f32 %v7320_v1, %v7276_v15  ;;  %v10037_v4 = vpop.f32.mrf.mxu1 }
 0x2d1   : > { %v7398_v51 = vpop.f32.mrf.mxu0 }
 0x2d2   : > { %v7333_v57 = vadd.f32 %v8918_v62, %v7328_v40  ;;  %v7327_v19 = vadd.f32 %v11649_v24, %v7325_v10  ;;  %v7542_v17 = vpop.f32.mrf.mxu1  ;;  %v7442_v9 = vadd.f32 %v7441_v61, %v7398_v51 }
 0x2d3   : > { %v10030_v35 = vpop.f32.mrf.mxu0 }
 0x2d4   : > { %8920 = vst.msk [vmem:[%s10879_s27 + $0xd0] sm:$0xff] %vm309_vm2, %v7333_v57  ;;  %v7329_v28 = vmax.f32 %v7327_v19, 0.0  ;;  %v10048_v32 = vpop.f32.mrf.mxu1 }
 0x2d5   : > { %v7401_v22 = vpop.f32.mrf.mxu0 }
 0x2d6   : > { %v7334_v12 = vadd.f32 %v8919_v27, %v7329_v28  ;;  %v7545_v21 = vpop.f32.mrf.mxu1  ;;  %v7445_v36 = vadd.f32 %v7444_v56, %v7401_v22  ;;  %v8946_v56 = vld [vmem:[%s10851_s24 + $0xe0] sm:$0xff] }
 0x2d7   : > { %v10031_v20 = vpop.f32.mrf.mxu0 }
 0x2d8   : > { %8921 = vst.msk [vmem:[%s10879_s27 + $0xd8] sm:$0xff] %vm309_vm2, %v7334_v12  ;;  %v10049_v23 = vpop.f32.mrf.mxu1 }
 0x2d9   : > { %v7488_v58 = vpop.f32.mrf.mxu0 }
 0x2da   : > { %v7651_v26 = vpop.f32.mrf.mxu1  ;;  %v7495_v29 = vadd.f32 %v7488_v58, %v7442_v9 }
 0x2db   : > { %v10042_v33 = vpop.f32.mrf.mxu0 }
 0x2dc   : > { %v10060_v34 = vpop.f32.mrf.mxu1  ;;  %v7549_v37 = vadd.f32 %v7542_v17, %v7495_v29  ;;  %v8947_v17 = vld [vmem:[%s10851_s24 + $0xe8] sm:$0xff] }
 0x2dd   : > { %v7491_v47 = vpop.f32.mrf.mxu0 }
 0x2de   : > { %v7654_v55 = vpop.f32.mrf.mxu1  ;;  %v7496_v16 = vadd.f32 %v7491_v47, %v7445_v36 }
 0x2df   : > { %v10043_v30 = vpop.f32.mrf.mxu0 }
 0x2e0   : > { %v10061_v18 = vpop.f32.mrf.mxu1  ;;  %v7550_v25 = vadd.f32 %v7545_v21, %v7496_v16 }
 0x2e1   : > { %v7602_v59 = vpop.f32.mrf.mxu0 }
 0x2e2   : > { %v7769_v11 = vpop.f32.mrf.mxu1  ;;  %v7609_v49 = vadd.f32 %v7602_v59, %v7549_v37 }
 0x2e3   : > { %v10054_v45 = vpop.f32.mrf.mxu0 }
 0x2e4   : > { %v10072_v43 = vpop.f32.mrf.mxu1  ;;  %v7658_v53 = vadd.f32 %v7651_v26, %v7609_v49 }
 0x2e5   : > { %v7605_v6 = vpop.f32.mrf.mxu0 }
 0x2e6   : > { %v7772_v63 = vpop.f32.mrf.mxu1  ;;  %v7610_v44 = vadd.f32 %v7605_v6, %v7550_v25 }
 0x2e7   : > { %v10055_v50 = vpop.f32.mrf.mxu0 }
 0x2e8   : > { %v10073_v42 = vpop.f32.mrf.mxu1  ;;  %v7659_v48 = vadd.f32 %v7654_v55, %v7610_v44 }
 0x2e9   : > { %v7709_v2 = vpop.f32.mrf.mxu0 }
 0x2ea   : > { %v7899_v41 = vpop.f32.mrf.mxu1  ;;  %v7716_v54 = vadd.f32 %v7709_v2, %v7658_v53 }
 0x2eb   : > { %v10066_v13 = vpop.f32.mrf.mxu0 }
 0x2ec   : > { %v10084_v1 = vpop.f32.mrf.mxu1  ;;  %v7776_v60 = vadd.f32 %v7769_v11, %v7716_v54 }
 0x2ed   : > { %v7712_v39 = vpop.f32.mrf.mxu0 }
 0x2ee   : > { %v7902_v52 = vpop.f32.mrf.mxu1  ;;  %v7717_v46 = vadd.f32 %v7712_v39, %v7659_v48 }
 0x2ef   : > { %v10067_v31 = vpop.f32.mrf.mxu0 }
 0x2f0   : > { %v10085_v61 = vpop.f32.mrf.mxu1  ;;  %v7777_v38 = vadd.f32 %v7772_v63, %v7717_v46  ;;  %v10259_v31 = vld [vmem:[%s11828_s3] ss:$0 sm:$0xff] }
 0x2f1   : > { %v7818_v3 = vpop.f32.mrf.mxu0  ;;  %v8974_v61 = vld [vmem:[%s10851_s24 + $0xf0] sm:$0xff] }
 0x2f2   : > { %v7825_v7 = vadd.f32 %v7818_v3, %v7776_v60  ;;  %v7989_v0 = vpop.f32.mrf.mxu1 }
 0x2f3   : > { %v10078_v5 = vpop.f32.mrf.mxu0 }
 0x2f4   : > { %v7827_v8 = vadd.f32 %v11649_v24, %v7825_v7  ;;  %v10096_v15 = vpop.f32.mrf.mxu1 }
 0x2f5   : > { %v7821_v62 = vpop.f32.mrf.mxu0 }
 0x2f6   : > { %v7829_v14 = vmax.f32 %v7827_v8, 0.0  ;;  %v7826_v40 = vadd.f32 %v7821_v62, %v7777_v38  ;;  %v7992_v10 = vpop.f32.mrf.mxu1  ;;  %v8975_v38 = vld [vmem:[%s10851_s24 + $0xf8] sm:$0xff] }
 0x2f7   : > { %v10079_v4 = vpop.f32.mrf.mxu0 }
 0x2f8   : > { %v7834_v51 = vadd.f32 %v8946_v56, %v7829_v14  ;;  %v7828_v57 = vadd.f32 %v11649_v24, %v7826_v40  ;;  %v10097_v19 = vpop.f32.mrf.mxu1 }
 0x2f9   : > { %v7942_v27 = vpop.f32.mrf.mxu0 }
 0x2fa   : > { %8948 = vst.msk [vmem:[%s10879_s27 + $0xe0] sm:$0xff] %vm309_vm2, %v7834_v51  ;;  %v7830_v35 = vmax.f32 %v7828_v57, 0.0  ;;  %v8103_v28 = vpop.f32.mrf.mxu1  ;;  %v7943_v58 = vadd.f32 %v7942_v27, %v7899_v41 }
 0x2fb   : > { %v10090_v32 = vpop.f32.mrf.mxu0 }
 0x2fc   : > { %v7835_v22 = vadd.f32 %v8947_v17, %v7830_v35  ;;  %v10108_v12 = vpop.f32.mrf.mxu1  ;;  %v7996_v9 = vadd.f32 %v7989_v0, %v7943_v58 }
 0x2fd   : > { %v7945_v21 = vpop.f32.mrf.mxu0 }
 0x2fe   : > { %8949 = vst.msk [vmem:[%s10879_s27 + $0xe8] sm:$0xff] %vm309_vm2, %v7835_v22  ;;  %v8106_v20 = vpop.f32.mrf.mxu1  ;;  %v7946_v47 = vadd.f32 %v7945_v21, %v7902_v52 }
 0x2ff   : > { %v10091_v23 = vpop.f32.mrf.mxu0 }
 0x300   : > { %v10109_v26 = vpop.f32.mrf.mxu1  ;;  %v7997_v36 = vadd.f32 %v7992_v10, %v7946_v47 }
 0x301   : > { %v8043_v33 = vpop.f32.mrf.mxu0 }
 0x302   : > { %v8210_v34 = vpop.f32.mrf.mxu1  ;;  %v8050_v29 = vadd.f32 %v8043_v33, %v7996_v9 }
 0x303   : > { %v10102_v24 = vpop.f32.mrf.mxu0 }
 0x304   : > { %v10120_v55 = vpop.f32.mrf.mxu1  ;;  %v8110_v37 = vadd.f32 %v8103_v28, %v8050_v29 }
 0x305   : > { %v8046_v30 = vpop.f32.mrf.mxu0 }
 0x306   : > { %v8213_v18 = vpop.f32.mrf.mxu1  ;;  %v8051_v16 = vadd.f32 %v8046_v30, %v7997_v36 }
 0x307   : > { %v10103_v59 = vpop.f32.mrf.mxu0 }
 0x308   : > { %v10121_v11 = vpop.f32.mrf.mxu1  ;;  %v8111_v25 = vadd.f32 %v8106_v20, %v8051_v16 }
 0x309   : > { %v8152_v45 = vpop.f32.mrf.mxu0 }
 0x30a   : > { %v8319_v43 = vpop.f32.mrf.mxu1  ;;  %v8159_v49 = vadd.f32 %v8152_v45, %v8110_v37 }
 0x30b   : > { %v10114_v6 = vpop.f32.mrf.mxu0 }
 0x30c   : > { %v10132_v63 = vpop.f32.mrf.mxu1  ;;  %v8217_v53 = vadd.f32 %v8210_v34, %v8159_v49 }
 0x30d   : > { %v8155_v50 = vpop.f32.mrf.mxu0 }
 0x30e   : > { %v8322_v42 = vpop.f32.mrf.mxu1  ;;  %v8160_v44 = vadd.f32 %v8155_v50, %v8111_v25 }
 0x30f   : > { %v10115_v2 = vpop.f32.mrf.mxu0 }
 0x310   : > { %v10133_v41 = vpop.f32.mrf.mxu1  ;;  %v8218_v48 = vadd.f32 %v8213_v18, %v8160_v44 }
 0x311   : > { %v8270_v13 = vpop.f32.mrf.mxu0 }
 0x312   : > { %v8277_v54 = vadd.f32 %v8270_v13, %v8217_v53 }
 0x313   : > { %v10126_v1 = vpop.f32.mrf.mxu0 }
 0x314   : > { %v8326_v39 = vadd.f32 %v8319_v43, %v8277_v54 }
 0x315   : > { %v8273_v52 = vpop.f32.mrf.mxu0 }
 0x316   : > { %v8328_v46 = vadd.f32 %v10259_v31, %v8326_v39  ;;  %v8278_v60 = vadd.f32 %v8273_v52, %v8218_v48 }
 0x317   : > { %v10127_v3 = vpop.f32.mrf.mxu0 }
 0x318   : > { %v8330_v7 = vmax.f32 %v8328_v46, 0.0  ;;  %v8327_v0 = vadd.f32 %v8322_v42, %v8278_v60 }
 0x31a   : > { %v8335_v5 = vadd.f32 %v8974_v61, %v8330_v7  ;;  %v8329_v8 = vadd.f32 %v10259_v31, %v8327_v0 }
 0x31c   : > { %8976 = vst.msk [vmem:[%s10879_s27 + $0xf0] sm:$0xff] %vm309_vm2, %v8335_v5  ;;  %v8331_v15 = vmax.f32 %v8329_v8, 0.0 }
 0x31e   : > { %v8336_v56 = vadd.f32 %v8975_v38, %v8331_v15 }
 0x320   : > { %8977 = vst.msk [vmem:[%s10879_s27 + $0xf8] sm:$0xff] %vm309_vm2, %v8336_v56 }
 0x321 PF: > { %s14_s17 = sadd.s32 1, %s10282_s17   ;;  %s11830_s15 = smov %s10278_s16 }
 0x322   : > { %p11_p5 = scmp.ge.s32.totalorder %s14_s17, 4   ;;  %s11831_s16 = smov %s11833_s18 }
 0x324   :  { %13 = sbr.rel (!%p11_p5) target bundleno = 2 (0x2), region = 125 }

</bundles_post_ra>
